<compile_context>
chip_gen: v6e
topology: v6e:2x2x1
jax: 0.10.0
libtpu: 0.0.40
codegen_flags: <defaults>
</compile_context>

<pallas_src>
from functools import partial

import jax
import jax.numpy as jnp
from jax.experimental import pallas as pl
from jax.experimental.pallas import tpu as pltpu


# ---------------------------------------------------------------------------
# Tap bookkeeping shared by the packed-weight builder (wrapper) and the
# in-kernel im2col assembly, so their orderings can never drift apart.
# ---------------------------------------------------------------------------
def _conv_taps(rates):
    """(branch, kh, kw, di, dj) per K-block of the packed conv weight.

    Block 0 is the spatial-centre tap, shared by the 1x1 branch and the centre
    tap of the three dilated 3x3 branches; the rest are the 8 non-centre taps
    of each dilated branch in (kh, kw) order.
    """
    taps = [(None, 1, 1, 0, 0)]
    for b, r in enumerate(rates):
        for kh in range(3):
            for kw in range(3):
                if kh == 1 and kw == 1:
                    continue
                taps.append((b, kh, kw, (kh - 1) * r, (kw - 1) * r))
    return taps


def _pack_conv_weights(w0, w1, w2, w3, rates):
    """Packs branches 0..3 into one (n_taps*C_in, 4*C_out) weight.

    Off-branch blocks are zero, so one MXU dot computes all four branch
    pre-activations at once (small-C path only; the zeros are free there).
    """
    C_in, C_out = w0.shape
    w3x3 = (w1, w2, w3)
    zeros = jnp.zeros((C_in, C_out), w0.dtype)
    blocks = []
    for (b, kh, kw, _, _) in _conv_taps(rates):
        if b is None:
            blocks.append(jnp.concatenate([w0, w1[1, 1], w2[1, 1], w3[1, 1]], axis=-1))
        else:
            cols = [zeros, zeros, zeros, zeros]
            cols[b + 1] = w3x3[b][kh, kw]
            blocks.append(jnp.concatenate(cols, axis=-1))
    return jnp.concatenate(blocks, axis=0)


# ---------------------------------------------------------------------------
# In-kernel helpers
# ---------------------------------------------------------------------------
def _pooled_row(xm, wpool, wproj4, bpool):
    """Branch 4: global-avg-pool -> 1x1 conv + BN + ReLU -> projection row.

    The pooled map is 1x1, so the align_corners=False bilinear upsample is a
    constant broadcast; only its (1, C_out) projection row is needed.
    """
    f32, bf16 = jnp.float32, jnp.bfloat16
    yp = jnp.maximum(
        jnp.dot(xm.astype(bf16), wpool, preferred_element_type=f32) + bpool, 0.0)
    return jnp.dot(yp.astype(bf16), wproj4, preferred_element_type=f32)


def _store_output(o_ref, out, out_scr, *, H, W, C_out, wide_out):
    if wide_out:
        # Lane-dense store (review: the masked 8-lane vst + strided output DMA
        # was the store-bound tail).  Go through a small VMEM scratch so the
        # lane repacking is expressed with ref-level slices only.
        out_scr[...] = out.reshape(H, W, C_out).astype(out_scr.dtype)
        for w in range(W):
            o_ref[0, :, w * C_out:(w + 1) * C_out] = out_scr[:, w, :].astype(o_ref.dtype)
    else:
        o_ref[0] = out.astype(o_ref.dtype)


def _fill_padded(xpad_scr, x_ref, H, W, P):
    # In-kernel zero padding: no padded HBM copy / extra XLA pad pass.
    # TODO(synk): zero only the halo strips (interior is overwritten each step)
    # once the production row-band grid axis exists.
    xpad_scr[...] = jnp.zeros_like(xpad_scr)
    xpad_scr[P:P + H, P:P + W, :] = x_ref[0]


# ---------------------------------------------------------------------------
# Kernel: collapsed-dot path (small channel counts, e.g. unit-test shapes)
# ---------------------------------------------------------------------------
def aspp_small_kernel(x_ref, xmean_ref, wbig_ref, wprojc_ref, wpool_ref,
                      wproj4_ref, bconv_ref, bpp_ref, o_ref,
                      xpad_scr, xcol_scr, out_scr,
                      *, H, W, C_in, C_out, rates, P, wide_out):
    """One grid step == one batch image.

    x_ref    : (1, H, W, C_in)  f32 unpadded image
    xmean_ref: (1, 1, C_in)     f32 full-image spatial mean
    wbig_ref : (n_taps*C_in, 4*C_out) bf16 block-packed folded conv weights
    wprojc_ref: (4*C_out, C_out) bf16 projection weight (spatial branches)
    wpool_ref: (C_in, C_out)    bf16 folded pooled-branch 1x1 weight
    wproj4_ref: (C_out, C_out)  bf16 projection weight (pooled branch)
    bconv_ref: (1, 4*C_out)     f32 folded BN shift, branches 0..3
    bpp_ref  : (2, 1, C_out)    f32 folded BN shift for pool / projection
    o_ref    : (1, H, W*C_out)  (lane-dense) or (1, H*W, C_out)
    xpad_scr : (H+2P, W+2P, C_in) f32 zero-padded image scratch
    xcol_scr : (H, W, n_taps*C_in) bf16 im2col (K-collapsed MXU operand)
    out_scr  : (H, W, C_out)    f32 lane-dense store staging
    """
    f32, bf16 = jnp.float32, jnp.bfloat16
    HW = H * W
    taps = _conv_taps(rates)

    _fill_padded(xpad_scr, x_ref, H, W, P)

    # im2col: pack all tap slabs along lanes once -> the whole spatial compute
    # of branches 0..3 collapses to two MXU dots instead of 28 tiny ones.
    for t, (_, _, _, di, dj) in enumerate(taps):
        xcol_scr[:, :, t * C_in:(t + 1) * C_in] = (
            xpad_scr[P + di:P + di + H, P + dj:P + dj + W, :].astype(bf16))
    xbig = xcol_scr[...].reshape(HW, len(taps) * C_in)

    # branches 0..3: conv + folded BN + ReLU in one block-packed dot
    y = jnp.dot(xbig, wbig_ref[...], preferred_element_type=f32)
    y = jnp.maximum(y + bconv_ref[...], 0.0)                       # (HW, 4*C_out)

    # channel concat + 1x1 projection, fused as a single dot
    proj = jnp.dot(y.astype(bf16), wprojc_ref[...], preferred_element_type=f32)

    # branch 4 contributes one broadcast row
    prow = _pooled_row(xmean_ref[0], wpool_ref[...], wproj4_ref[...], bpp_ref[0])

    # projection BN + ReLU epilogue
    # TODO(synk): nn.Dropout(0.5) is identity in eval mode; training-mode
    # dropout (stateful PRNG + mask) is not implemented here.
    out = jnp.maximum(proj + prow + bpp_ref[1], 0.0)               # (HW, C_out)
    _store_output(o_ref, out, out_scr, H=H, W=W, C_out=C_out, wide_out=wide_out)


# ---------------------------------------------------------------------------
# Kernel: per-tap dot-chain path (production channel counts, C >= 128)
# ---------------------------------------------------------------------------
def aspp_big_kernel(x_ref, xmean_ref, w0_ref, w1_ref, w2_ref, w3_ref,
                    wpool_ref, wproj5_ref, bconv_ref, bpp_ref, o_ref,
                    *scratch, H, W, C_in, C_out, rates, P, wide_out):
    f32, bf16 = jnp.float32, jnp.bfloat16
    HW = H * W
    xpad_scr = scratch[0]
    out_scr = scratch[1] if wide_out else None

    _fill_padded(xpad_scr, x_ref, H, W, P)

    def tap(di, dj):
        # direct per-tap slice: minimal live range (no persistent column windows)
        return (xpad_scr[P + di:P + di + H, P + dj:P + dj + W, :]
                .reshape(HW, C_in).astype(bf16))

    def bbias(i):
        return bconv_ref[:, i * C_out:(i + 1) * C_out]

    xc = tap(0, 0)
    y0 = jnp.maximum(jnp.dot(xc, w0_ref[...], preferred_element_type=f32) + bbias(0), 0.0)
    proj = jnp.dot(y0.astype(bf16), wproj5_ref[0], preferred_element_type=f32)

    # TODO(synk): at production sizes (C_in>=1024, rates 6/12/18) this wants a
    # spatial row-band grid axis (halo'd input block, marked "parallel" so the
    # two v7x TensorCores split one image) and single-buffered weight specs so
    # everything fits v7x's 64 MiB VMEM; whole-image blocks are for small maps.
    for bi, (w_ref, r) in enumerate(
            ((w1_ref, rates[0]), (w2_ref, rates[1]), (w3_ref, rates[2])), start=1):
        acc = None
        for kh in range(3):
            for kw in range(3):
                xs = xc if (kh == 1 and kw == 1) else tap((kh - 1) * r, (kw - 1) * r)
                # per-tap weight ref indexing: never materializes the whole
                # (3,3,Cin,Cout) block in vregs
                t = jnp.dot(xs, w_ref[kh, kw], preferred_element_type=f32)
                acc = t if acc is None else acc + t        # uninterrupted MXU chain
        y = jnp.maximum(acc + bbias(bi), 0.0)
        proj = proj + jnp.dot(y.astype(bf16), wproj5_ref[bi], preferred_element_type=f32)

    prow = _pooled_row(xmean_ref[0], wpool_ref[...], wproj5_ref[4], bpp_ref[0])
    out = jnp.maximum(proj + prow + bpp_ref[1], 0.0)
    _store_output(o_ref, out, out_scr, H=H, W=W, C_out=C_out, wide_out=wide_out)


# ---------------------------------------------------------------------------
# Wrapper
# ---------------------------------------------------------------------------
def _vmem_limit_bytes():
    # Derive the scoped-VMEM limit from the chip instead of hard-coding 32 MiB
    # (v5e/v6e: 128 MiB physical -> ~112 MiB, v7x: 64 MiB -> ~56 MiB).
    cap = 64 * 1024 * 1024          # conservative fallback if the query fails
    try:
        cap = int(getattr(pltpu.get_tpu_info(), "vmem_capacity_bytes", cap))
    except Exception:
        pass
    return (cap // 8) * 7


def aspp_pallas(x_nhwc, w0, w1, w2, w3, wpool, wproj5, biases, rates):
    B, H, W, C_in = x_nhwc.shape
    C_out = w0.shape[1]
    rates = tuple(int(r) for r in rates)
    P = max(rates)
    Hp, Wp = H + 2 * P, W + 2 * P
    HW = H * W
    f32, bf16 = jnp.float32, jnp.bfloat16

    # Full-image spatial mean computed outside the kernel so it stays correct
    # once a spatial row-band grid axis is added.
    xmean = jnp.mean(x_nhwc, axis=(1, 2)).reshape(B, 1, C_in)

    bconv = jnp.concatenate([biases[0], biases[1], biases[2], biases[3]], axis=-1)
    bias_pp = jnp.stack([biases[4], biases[5]])                     # (2, 1, C_out)

    # Lane-dense output layout for narrow C_out (W*C_out == 128 at test shapes).
    # For production C_out (multiple of 128) the natural (HW, C_out) layout is
    # already dense and is used directly.
    wide_out = (C_out % 128) != 0
    if wide_out:
        out_shape = jax.ShapeDtypeStruct((B, H, W * C_out), jnp.float32)
        out_spec = pl.BlockSpec((1, H, W * C_out), lambda b: (b, 0, 0))
    else:
        out_shape = jax.ShapeDtypeStruct((B, HW, C_out), jnp.float32)
        out_spec = pl.BlockSpec((1, HW, C_out), lambda b: (b, 0, 0))

    cparams = pltpu.CompilerParams(
        dimension_semantics=("parallel",),
        vmem_limit_bytes=_vmem_limit_bytes())

    static = dict(H=H, W=W, C_in=C_in, C_out=C_out, rates=rates, P=P, wide_out=wide_out)

    def full(shape):
        return pl.BlockSpec(shape, lambda b, _s=shape: (0,) * len(_s))

    if C_in < 128 and C_out < 128:
        # ---- collapsed-dot path (small / unit-test channel counts) ----
        n_taps = len(_conv_taps(rates))
        wbig = _pack_conv_weights(w0, w1, w2, w3, rates).astype(bf16)
        wprojc = wproj5[:4].reshape(4 * C_out, C_out).astype(bf16)
        wproj4 = wproj5[4].astype(bf16)
        kernel = partial(aspp_small_kernel, **static)
        out = pl.pallas_call(
            kernel,
            out_shape=out_shape,
            grid_spec=pltpu.PrefetchScalarGridSpec(
                num_scalar_prefetch=0,
                grid=(B,),
                in_specs=[
                    pl.BlockSpec((1, H, W, C_in), lambda b: (b, 0, 0, 0)),
                    pl.BlockSpec((1, 1, C_in), lambda b: (b, 0, 0)),
                    full((n_taps * C_in, 4 * C_out)),
                    full((4 * C_out, C_out)),
                    full((C_in, C_out)),
                    full((C_out, C_out)),
                    full((1, 4 * C_out)),
                    full((2, 1, C_out)),
                ],
                out_specs=out_spec,
                scratch_shapes=[
                    pltpu.VMEM((Hp, Wp, C_in), f32),            # padded image
                    pltpu.VMEM((H, W, n_taps * C_in), bf16),    # im2col operand
                    pltpu.VMEM((H, W, C_out), f32),             # store staging
                ]),
            compiler_params=cparams,
        )(x_nhwc, xmean, wbig, wprojc, wpool.astype(bf16), wproj4, bconv, bias_pp)
    else:
        # ---- per-tap dot-chain path (production channel counts) ----
        kernel = partial(aspp_big_kernel, **static)
        scratch = [pltpu.VMEM((Hp, Wp, C_in), f32)]
        if wide_out:
            scratch.append(pltpu.VMEM((H, W, C_out), f32))
        out = pl.pallas_call(
            kernel,
            out_shape=out_shape,
            grid_spec=pltpu.PrefetchScalarGridSpec(
                num_scalar_prefetch=0,
                grid=(B,),
                in_specs=[
                    pl.BlockSpec((1, H, W, C_in), lambda b: (b, 0, 0, 0)),
                    pl.BlockSpec((1, 1, C_in), lambda b: (b, 0, 0)),
                    full((C_in, C_out)),
                    full((3, 3, C_in, C_out)),
                    full((3, 3, C_in, C_out)),
                    full((3, 3, C_in, C_out)),
                    full((C_in, C_out)),
                    full((5, C_out, C_out)),
                    full((1, 4 * C_out)),
                    full((2, 1, C_out)),
                ],
                out_specs=out_spec,
                scratch_shapes=scratch),
            compiler_params=cparams,
        )(x_nhwc, xmean, w0.astype(bf16), w1.astype(bf16), w2.astype(bf16),
          w3.astype(bf16), wpool.astype(bf16), wproj5.astype(bf16), bconv, bias_pp)

    return out.reshape(B, H, W, C_out)


# ---------------- plain-JAX reference (for correctness check) ----------------
def aspp_reference(x_nhwc, w0, w1, w2, w3, wpool, wproj5, biases, rates):
    HIGH = jax.lax.Precision.HIGHEST

    def bn_relu(y, i):
        return jnp.maximum(y + biases[i, 0], 0.0)

    def conv1x1(x, w):
        return jnp.einsum('bhwc,co->bhwo', x, w, precision=HIGH)

    def conv3x3(x, w, d):
        return jax.lax.conv_general_dilated(
            x, w, window_strides=(1, 1), padding=[(d, d), (d, d)],
            rhs_dilation=(d, d),
            dimension_numbers=('NHWC', 'HWIO', 'NHWC'), precision=HIGH)

    y0 = bn_relu(conv1x1(x_nhwc, w0), 0)
    y1 = bn_relu(conv3x3(x_nhwc, w1, rates[0]), 1)
    y2 = bn_relu(conv3x3(x_nhwc, w2, rates[1]), 2)
    y3 = bn_relu(conv3x3(x_nhwc, w3, rates[2]), 3)
    xm = jnp.mean(x_nhwc, axis=(1, 2), keepdims=True)
    yp = bn_relu(conv1x1(xm, wpool), 4)
    y4 = jnp.broadcast_to(yp, y0.shape)
    cat = jnp.concatenate([y0, y1, y2, y3, y4], axis=-1)
    wproj_flat = wproj5.reshape(-1, wproj5.shape[-1])
    return bn_relu(conv1x1(cat, wproj_flat), 5)


def bn_params(k, c):
    k1, k2, k3, k4 = jax.random.split(k, 4)
    gamma = 1.0 + 0.1 * jax.random.normal(k1, (c,), jnp.float32)
    beta = 0.1 * jax.random.normal(k2, (c,), jnp.float32)
    mean = 0.1 * jax.random.normal(k3, (c,), jnp.float32)
    var = 0.5 + 0.5 * jax.random.uniform(k4, (c,), jnp.float32)
    return gamma, beta, mean, var


def fold_bn(w_last_axis_out, bn, eps=1e-5):
    """Fold eval-mode BatchNorm into a conv weight (out-channels on last axis)."""
    gamma, beta, mean, var = bn
    scale = gamma / jnp.sqrt(var + eps)
    return w_last_axis_out * scale, beta - mean * scale


if __name__ == "__main__":
    B, C_in, H, W = 2, 4, 16, 16
    C_out = 8
    rates = (1, 2, 3)

    key = jax.random.PRNGKey(0)
    keys = jax.random.split(key, 8)

    # input in the PyTorch NCHW convention
    x_nchw = jax.random.normal(keys[0], (B, C_in, H, W), jnp.float32)

    # conv weights in the PyTorch OIHW convention (as in ASPP.__init__)
    w0_t = 0.3 * jax.random.normal(keys[1], (C_out, C_in, 1, 1), jnp.float32)
    w1_t = 0.3 * jax.random.normal(keys[2], (C_out, C_in, 3, 3), jnp.float32)
    w2_t = 0.3 * jax.random.normal(keys[3], (C_out, C_in, 3, 3), jnp.float32)
    w3_t = 0.3 * jax.random.normal(keys[4], (C_out, C_in, 3, 3), jnp.float32)
    wp_t = 0.3 * jax.random.normal(keys[5], (C_out, C_in, 1, 1), jnp.float32)
    wj_t = 0.3 * jax.random.normal(keys[6], (C_out, 5 * C_out, 1, 1), jnp.float32)
    bns = [bn_params(k, C_out) for k in jax.random.split(keys[7], 6)]

    # transpose to channels-last conventions and fold BN (eval mode)
    w0, b0 = fold_bn(jnp.transpose(w0_t[:, :, 0, 0]), bns[0])          # (Cin, Cout)
    w1, b1 = fold_bn(jnp.transpose(w1_t, (2, 3, 1, 0)), bns[1])        # (3,3,Cin,Cout)
    w2, b2 = fold_bn(jnp.transpose(w2_t, (2, 3, 1, 0)), bns[2])
    w3, b3 = fold_bn(jnp.transpose(w3_t, (2, 3, 1, 0)), bns[3])
    wpool, bp = fold_bn(jnp.transpose(wp_t[:, :, 0, 0]), bns[4])       # (Cin, Cout)
    wproj, bj = fold_bn(jnp.transpose(wj_t[:, :, 0, 0]), bns[5])       # (5*Cout, Cout)
    wproj5 = wproj.reshape(5, C_out, C_out)
    biases = jnp.stack([b0, b1, b2, b3, bp, bj])[:, None, :]           # (6,1,Cout)

    x_nhwc = jnp.transpose(x_nchw, (0, 2, 3, 1))                       # NCHW -> NHWC

    out = aspp_pallas(x_nhwc, w0, w1, w2, w3, wpool, wproj5, biases, rates)
    out = jax.block_until_ready(out)

    ref = aspp_reference(x_nhwc, w0, w1, w2, w3, wpool, wproj5, biases, rates)
    assert out.shape == (B, H, W, C_out), out.shape
    # MXU operands are bf16 in the kernel while the reference runs f32 at
    # Precision.HIGHEST, so allow a bf16-sized tolerance.
    max_err = float(jnp.max(jnp.abs(out - ref)))
    mean_err = float(jnp.mean(jnp.abs(out - ref)))
    assert max_err < 1.5e-1, f"max abs error too large: {max_err}"
    assert mean_err < 2e-2, f"mean abs error too large: {mean_err}"
    print("KERNEL_OK")
</pallas_src>

<mosaic_0001>
module attributes {stable_mosaic.version = 11 : i64} {
  func.func @aspp_small_kernel(%arg0: i32, %arg1: memref<1x16x16x4xf32, #tpu.memory_space<vmem>>, %arg2: memref<1x1x4xf32, #tpu.memory_space<vmem>>, %arg3: memref<100x32xbf16, #tpu.memory_space<vmem>>, %arg4: memref<32x8xbf16, #tpu.memory_space<vmem>>, %arg5: memref<4x8xbf16, #tpu.memory_space<vmem>>, %arg6: memref<8x8xbf16, #tpu.memory_space<vmem>>, %arg7: memref<1x32xf32, #tpu.memory_space<vmem>>, %arg8: memref<2x1x8xf32, #tpu.memory_space<vmem>>, %arg9: memref<1x16x128xf32, #tpu.memory_space<vmem>>, %arg10: memref<22x22x4xf32, #tpu.memory_space<vmem>>, %arg11: memref<16x16x100xbf16, #tpu.memory_space<vmem>>, %arg12: memref<16x16x8xf32, #tpu.memory_space<vmem>>) attributes {dimension_semantics = [#tpu.dimension_semantics<parallel>], iteration_bounds = array<i64: 2>, scalar_prefetch = 0 : i64, scratch_operands = 3 : i64, tpu.core_type = #tpu.core_type<tc>, window_params = [{transform_indices = @transform_0, window_bounds = array<i64: 1, 16, 16, 4>}, {transform_indices = @transform_1, window_bounds = array<i64: 1, 1, 4>}, {pipeline_mode = #tpu.pipeline_mode<synchronous>, transform_indices = @transform_2, window_bounds = array<i64: 100, 32>}, {pipeline_mode = #tpu.pipeline_mode<synchronous>, transform_indices = @transform_3, window_bounds = array<i64: 32, 8>}, {pipeline_mode = #tpu.pipeline_mode<synchronous>, transform_indices = @transform_4, window_bounds = array<i64: 4, 8>}, {pipeline_mode = #tpu.pipeline_mode<synchronous>, transform_indices = @transform_5, window_bounds = array<i64: 8, 8>}, {pipeline_mode = #tpu.pipeline_mode<synchronous>, transform_indices = @transform_6, window_bounds = array<i64: 1, 32>}, {pipeline_mode = #tpu.pipeline_mode<synchronous>, transform_indices = @transform_7, window_bounds = array<i64: 2, 1, 8>}, {transform_indices = @transform_8, window_bounds = array<i64: 1, 16, 128>}]} {
    %cst = arith.constant 0.000000e+00 : f32
    %0 = vector.broadcast %cst : f32 to vector<22x22x4xf32>
    %c0 = arith.constant 0 : index
    %c0_0 = arith.constant 0 : index
    %c0_1 = arith.constant 0 : index
    %1 = vector.load %arg10[%c0, %c0_0, %c0_1] : memref<22x22x4xf32, #tpu.memory_space<vmem>>, vector<22x22x4xf32>
    tpu.vector_store %arg10[%c0, %c0_0, %c0_1], %0 {strides = array<i32>} : memref<22x22x4xf32, #tpu.memory_space<vmem>>, vector<22x22x4xf32>,
    %c0_2 = arith.constant 0 : index
    %c0_3 = arith.constant 0 : index
    %c0_4 = arith.constant 0 : index
    %c0_5 = arith.constant 0 : index
    %2 = vector.load %arg1[%c0_2, %c0_3, %c0_4, %c0_5] : memref<1x16x16x4xf32, #tpu.memory_space<vmem>>, vector<1x16x16x4xf32>
    %3 = vector.shape_cast %2 : vector<1x16x16x4xf32> to vector<16x16x4xf32>
    %c3 = arith.constant 3 : index
    %c3_6 = arith.constant 3 : index
    %c0_7 = arith.constant 0 : index
    %4 = vector.load %arg10[%c3, %c3_6, %c0_7] : memref<22x22x4xf32, #tpu.memory_space<vmem>>, vector<16x16x4xf32>
    tpu.vector_store %arg10[%c3, %c3_6, %c0_7], %3 {strides = array<i32>} : memref<22x22x4xf32, #tpu.memory_space<vmem>>, vector<16x16x4xf32>,
    %c3_8 = arith.constant 3 : index
    %c3_9 = arith.constant 3 : index
    %c0_10 = arith.constant 0 : index
    %5 = vector.load %arg10[%c3_8, %c3_9, %c0_10] : memref<22x22x4xf32, #tpu.memory_space<vmem>>, vector<16x16x4xf32>
    %6 = arith.truncf %5 : vector<16x16x4xf32> to vector<16x16x4xbf16>
    %c0_11 = arith.constant 0 : index
    %c0_12 = arith.constant 0 : index
    %c0_13 = arith.constant 0 : index
    %7 = vector.load %arg11[%c0_11, %c0_12, %c0_13] : memref<16x16x100xbf16, #tpu.memory_space<vmem>>, vector<16x16x4xbf16>
    tpu.vector_store %arg11[%c0_11, %c0_12, %c0_13], %6 {strides = array<i32>} : memref<16x16x100xbf16, #tpu.memory_space<vmem>>, vector<16x16x4xbf16>,
    %c2 = arith.constant 2 : index
    %c2_14 = arith.constant 2 : index
    %c0_15 = arith.constant 0 : index
    %8 = vector.load %arg10[%c2, %c2_14, %c0_15] : memref<22x22x4xf32, #tpu.memory_space<vmem>>, vector<16x16x4xf32>
    %9 = arith.truncf %8 : vector<16x16x4xf32> to vector<16x16x4xbf16>
    %c0_16 = arith.constant 0 : index
    %c0_17 = arith.constant 0 : index
    %c4 = arith.constant 4 : index
    %10 = vector.load %arg11[%c0_16, %c0_17, %c4] : memref<16x16x100xbf16, #tpu.memory_space<vmem>>, vector<16x16x4xbf16>
    tpu.vector_store %arg11[%c0_16, %c0_17, %c4], %9 {strides = array<i32>} : memref<16x16x100xbf16, #tpu.memory_space<vmem>>, vector<16x16x4xbf16>,
    %c2_18 = arith.constant 2 : index
    %c3_19 = arith.constant 3 : index
    %c0_20 = arith.constant 0 : index
    %11 = vector.load %arg10[%c2_18, %c3_19, %c0_20] : memref<22x22x4xf32, #tpu.memory_space<vmem>>, vector<16x16x4xf32>
    %12 = arith.truncf %11 : vector<16x16x4xf32> to vector<16x16x4xbf16>
    %c0_21 = arith.constant 0 : index
    %c0_22 = arith.constant 0 : index
    %c8 = arith.constant 8 : index
    %13 = vector.load %arg11[%c0_21, %c0_22, %c8] : memref<16x16x100xbf16, #tpu.memory_space<vmem>>, vector<16x16x4xbf16>
    tpu.vector_store %arg11[%c0_21, %c0_22, %c8], %12 {strides = array<i32>} : memref<16x16x100xbf16, #tpu.memory_space<vmem>>, vector<16x16x4xbf16>,
    %c2_23 = arith.constant 2 : index
    %c4_24 = arith.constant 4 : index
    %c0_25 = arith.constant 0 : index
    %14 = vector.load %arg10[%c2_23, %c4_24, %c0_25] : memref<22x22x4xf32, #tpu.memory_space<vmem>>, vector<16x16x4xf32>
    %15 = arith.truncf %14 : vector<16x16x4xf32> to vector<16x16x4xbf16>
    %c0_26 = arith.constant 0 : index
    %c0_27 = arith.constant 0 : index
    %c12 = arith.constant 12 : index
    %16 = vector.load %arg11[%c0_26, %c0_27, %c12] : memref<16x16x100xbf16, #tpu.memory_space<vmem>>, vector<16x16x4xbf16>
    tpu.vector_store %arg11[%c0_26, %c0_27, %c12], %15 {strides = array<i32>} : memref<16x16x100xbf16, #tpu.memory_space<vmem>>, vector<16x16x4xbf16>,
    %c3_28 = arith.constant 3 : index
    %c2_29 = arith.constant 2 : index
    %c0_30 = arith.constant 0 : index
    %17 = vector.load %arg10[%c3_28, %c2_29, %c0_30] : memref<22x22x4xf32, #tpu.memory_space<vmem>>, vector<16x16x4xf32>
    %18 = arith.truncf %17 : vector<16x16x4xf32> to vector<16x16x4xbf16>
    %c0_31 = arith.constant 0 : index
    %c0_32 = arith.constant 0 : index
    %c16 = arith.constant 16 : index
    %19 = vector.load %arg11[%c0_31, %c0_32, %c16] : memref<16x16x100xbf16, #tpu.memory_space<vmem>>, vector<16x16x4xbf16>
    tpu.vector_store %arg11[%c0_31, %c0_32, %c16], %18 {strides = array<i32>} : memref<16x16x100xbf16, #tpu.memory_space<vmem>>, vector<16x16x4xbf16>,
    %c3_33 = arith.constant 3 : index
    %c4_34 = arith.constant 4 : index
    %c0_35 = arith.constant 0 : index
    %20 = vector.load %arg10[%c3_33, %c4_34, %c0_35] : memref<22x22x4xf32, #tpu.memory_space<vmem>>, vector<16x16x4xf32>
    %21 = arith.truncf %20 : vector<16x16x4xf32> to vector<16x16x4xbf16>
    %c0_36 = arith.constant 0 : index
    %c0_37 = arith.constant 0 : index
    %c20 = arith.constant 20 : index
    %22 = vector.load %arg11[%c0_36, %c0_37, %c20] : memref<16x16x100xbf16, #tpu.memory_space<vmem>>, vector<16x16x4xbf16>
    tpu.vector_store %arg11[%c0_36, %c0_37, %c20], %21 {strides = array<i32>} : memref<16x16x100xbf16, #tpu.memory_space<vmem>>, vector<16x16x4xbf16>,
    %c4_38 = arith.constant 4 : index
    %c2_39 = arith.constant 2 : index
    %c0_40 = arith.constant 0 : index
    %23 = vector.load %arg10[%c4_38, %c2_39, %c0_40] : memref<22x22x4xf32, #tpu.memory_space<vmem>>, vector<16x16x4xf32>
    %24 = arith.truncf %23 : vector<16x16x4xf32> to vector<16x16x4xbf16>
    %c0_41 = arith.constant 0 : index
    %c0_42 = arith.constant 0 : index
    %c24 = arith.constant 24 : index
    %25 = vector.load %arg11[%c0_41, %c0_42, %c24] : memref<16x16x100xbf16, #tpu.memory_space<vmem>>, vector<16x16x4xbf16>
    tpu.vector_store %arg11[%c0_41, %c0_42, %c24], %24 {strides = array<i32>} : memref<16x16x100xbf16, #tpu.memory_space<vmem>>, vector<16x16x4xbf16>,
    %c4_43 = arith.constant 4 : index
    %c3_44 = arith.constant 3 : index
    %c0_45 = arith.constant 0 : index
    %26 = vector.load %arg10[%c4_43, %c3_44, %c0_45] : memref<22x22x4xf32, #tpu.memory_space<vmem>>, vector<16x16x4xf32>
    %27 = arith.truncf %26 : vector<16x16x4xf32> to vector<16x16x4xbf16>
    %c0_46 = arith.constant 0 : index
    %c0_47 = arith.constant 0 : index
    %c28 = arith.constant 28 : index
    %28 = vector.load %arg11[%c0_46, %c0_47, %c28] : memref<16x16x100xbf16, #tpu.memory_space<vmem>>, vector<16x16x4xbf16>
    tpu.vector_store %arg11[%c0_46, %c0_47, %c28], %27 {strides = array<i32>} : memref<16x16x100xbf16, #tpu.memory_space<vmem>>, vector<16x16x4xbf16>,
    %c4_48 = arith.constant 4 : index
    %c4_49 = arith.constant 4 : index
    %c0_50 = arith.constant 0 : index
    %29 = vector.load %arg10[%c4_48, %c4_49, %c0_50] : memref<22x22x4xf32, #tpu.memory_space<vmem>>, vector<16x16x4xf32>
    %30 = arith.truncf %29 : vector<16x16x4xf32> to vector<16x16x4xbf16>
    %c0_51 = arith.constant 0 : index
    %c0_52 = arith.constant 0 : index
    %c32 = arith.constant 32 : index
    %31 = vector.load %arg11[%c0_51, %c0_52, %c32] : memref<16x16x100xbf16, #tpu.memory_space<vmem>>, vector<16x16x4xbf16>
    tpu.vector_store %arg11[%c0_51, %c0_52, %c32], %30 {strides = array<i32>} : memref<16x16x100xbf16, #tpu.memory_space<vmem>>, vector<16x16x4xbf16>,
    %c1 = arith.constant 1 : index
    %c1_53 = arith.constant 1 : index
    %c0_54 = arith.constant 0 : index
    %32 = vector.load %arg10[%c1, %c1_53, %c0_54] : memref<22x22x4xf32, #tpu.memory_space<vmem>>, vector<16x16x4xf32>
    %33 = arith.truncf %32 : vector<16x16x4xf32> to vector<16x16x4xbf16>
    %c0_55 = arith.constant 0 : index
    %c0_56 = arith.constant 0 : index
    %c36 = arith.constant 36 : index
    %34 = vector.load %arg11[%c0_55, %c0_56, %c36] : memref<16x16x100xbf16, #tpu.memory_space<vmem>>, vector<16x16x4xbf16>
    tpu.vector_store %arg11[%c0_55, %c0_56, %c36], %33 {strides = array<i32>} : memref<16x16x100xbf16, #tpu.memory_space<vmem>>, vector<16x16x4xbf16>,
    %c1_57 = arith.constant 1 : index
    %c3_58 = arith.constant 3 : index
    %c0_59 = arith.constant 0 : index
    %35 = vector.load %arg10[%c1_57, %c3_58, %c0_59] : memref<22x22x4xf32, #tpu.memory_space<vmem>>, vector<16x16x4xf32>
    %36 = arith.truncf %35 : vector<16x16x4xf32> to vector<16x16x4xbf16>
    %c0_60 = arith.constant 0 : index
    %c0_61 = arith.constant 0 : index
    %c40 = arith.constant 40 : index
    %37 = vector.load %arg11[%c0_60, %c0_61, %c40] : memref<16x16x100xbf16, #tpu.memory_space<vmem>>, vector<16x16x4xbf16>
    tpu.vector_store %arg11[%c0_60, %c0_61, %c40], %36 {strides = array<i32>} : memref<16x16x100xbf16, #tpu.memory_space<vmem>>, vector<16x16x4xbf16>,
    %c1_62 = arith.constant 1 : index
    %c5 = arith.constant 5 : index
    %c0_63 = arith.constant 0 : index
    %38 = vector.load %arg10[%c1_62, %c5, %c0_63] : memref<22x22x4xf32, #tpu.memory_space<vmem>>, vector<16x16x4xf32>
    %39 = arith.truncf %38 : vector<16x16x4xf32> to vector<16x16x4xbf16>
    %c0_64 = arith.constant 0 : index
    %c0_65 = arith.constant 0 : index
    %c44 = arith.constant 44 : index
    %40 = vector.load %arg11[%c0_64, %c0_65, %c44] : memref<16x16x100xbf16, #tpu.memory_space<vmem>>, vector<16x16x4xbf16>
    tpu.vector_store %arg11[%c0_64, %c0_65, %c44], %39 {strides = array<i32>} : memref<16x16x100xbf16, #tpu.memory_space<vmem>>, vector<16x16x4xbf16>,
    %c3_66 = arith.constant 3 : index
    %c1_67 = arith.constant 1 : index
    %c0_68 = arith.constant 0 : index
    %41 = vector.load %arg10[%c3_66, %c1_67, %c0_68] : memref<22x22x4xf32, #tpu.memory_space<vmem>>, vector<16x16x4xf32>
    %42 = arith.truncf %41 : vector<16x16x4xf32> to vector<16x16x4xbf16>
    %c0_69 = arith.constant 0 : index
    %c0_70 = arith.constant 0 : index
    %c48 = arith.constant 48 : index
    %43 = vector.load %arg11[%c0_69, %c0_70, %c48] : memref<16x16x100xbf16, #tpu.memory_space<vmem>>, vector<16x16x4xbf16>
    tpu.vector_store %arg11[%c0_69, %c0_70, %c48], %42 {strides = array<i32>} : memref<16x16x100xbf16, #tpu.memory_space<vmem>>, vector<16x16x4xbf16>,
    %c3_71 = arith.constant 3 : index
    %c5_72 = arith.constant 5 : index
    %c0_73 = arith.constant 0 : index
    %44 = vector.load %arg10[%c3_71, %c5_72, %c0_73] : memref<22x22x4xf32, #tpu.memory_space<vmem>>, vector<16x16x4xf32>
    %45 = arith.truncf %44 : vector<16x16x4xf32> to vector<16x16x4xbf16>
    %c0_74 = arith.constant 0 : index
    %c0_75 = arith.constant 0 : index
    %c52 = arith.constant 52 : index
    %46 = vector.load %arg11[%c0_74, %c0_75, %c52] : memref<16x16x100xbf16, #tpu.memory_space<vmem>>, vector<16x16x4xbf16>
    tpu.vector_store %arg11[%c0_74, %c0_75, %c52], %45 {strides = array<i32>} : memref<16x16x100xbf16, #tpu.memory_space<vmem>>, vector<16x16x4xbf16>,
    %c5_76 = arith.constant 5 : index
    %c1_77 = arith.constant 1 : index
    %c0_78 = arith.constant 0 : index
    %47 = vector.load %arg10[%c5_76, %c1_77, %c0_78] : memref<22x22x4xf32, #tpu.memory_space<vmem>>, vector<16x16x4xf32>
    %48 = arith.truncf %47 : vector<16x16x4xf32> to vector<16x16x4xbf16>
    %c0_79 = arith.constant 0 : index
    %c0_80 = arith.constant 0 : index
    %c56 = arith.constant 56 : index
    %49 = vector.load %arg11[%c0_79, %c0_80, %c56] : memref<16x16x100xbf16, #tpu.memory_space<vmem>>, vector<16x16x4xbf16>
    tpu.vector_store %arg11[%c0_79, %c0_80, %c56], %48 {strides = array<i32>} : memref<16x16x100xbf16, #tpu.memory_space<vmem>>, vector<16x16x4xbf16>,
    %c5_81 = arith.constant 5 : index
    %c3_82 = arith.constant 3 : index
    %c0_83 = arith.constant 0 : index
    %50 = vector.load %arg10[%c5_81, %c3_82, %c0_83] : memref<22x22x4xf32, #tpu.memory_space<vmem>>, vector<16x16x4xf32>
    %51 = arith.truncf %50 : vector<16x16x4xf32> to vector<16x16x4xbf16>
    %c0_84 = arith.constant 0 : index
    %c0_85 = arith.constant 0 : index
    %c60 = arith.constant 60 : index
    %52 = vector.load %arg11[%c0_84, %c0_85, %c60] : memref<16x16x100xbf16, #tpu.memory_space<vmem>>, vector<16x16x4xbf16>
    tpu.vector_store %arg11[%c0_84, %c0_85, %c60], %51 {strides = array<i32>} : memref<16x16x100xbf16, #tpu.memory_space<vmem>>, vector<16x16x4xbf16>,
    %c5_86 = arith.constant 5 : index
    %c5_87 = arith.constant 5 : index
    %c0_88 = arith.constant 0 : index
    %53 = vector.load %arg10[%c5_86, %c5_87, %c0_88] : memref<22x22x4xf32, #tpu.memory_space<vmem>>, vector<16x16x4xf32>
    %54 = arith.truncf %53 : vector<16x16x4xf32> to vector<16x16x4xbf16>
    %c0_89 = arith.constant 0 : index
    %c0_90 = arith.constant 0 : index
    %c64 = arith.constant 64 : index
    %55 = vector.load %arg11[%c0_89, %c0_90, %c64] : memref<16x16x100xbf16, #tpu.memory_space<vmem>>, vector<16x16x4xbf16>
    tpu.vector_store %arg11[%c0_89, %c0_90, %c64], %54 {strides = array<i32>} : memref<16x16x100xbf16, #tpu.memory_space<vmem>>, vector<16x16x4xbf16>,
    %c0_91 = arith.constant 0 : index
    %c0_92 = arith.constant 0 : index
    %c0_93 = arith.constant 0 : index
    %56 = vector.load %arg10[%c0_91, %c0_92, %c0_93] : memref<22x22x4xf32, #tpu.memory_space<vmem>>, vector<16x16x4xf32>
    %57 = arith.truncf %56 : vector<16x16x4xf32> to vector<16x16x4xbf16>
    %c0_94 = arith.constant 0 : index
    %c0_95 = arith.constant 0 : index
    %c68 = arith.constant 68 : index
    %58 = vector.load %arg11[%c0_94, %c0_95, %c68] : memref<16x16x100xbf16, #tpu.memory_space<vmem>>, vector<16x16x4xbf16>
    tpu.vector_store %arg11[%c0_94, %c0_95, %c68], %57 {strides = array<i32>} : memref<16x16x100xbf16, #tpu.memory_space<vmem>>, vector<16x16x4xbf16>,
    %c0_96 = arith.constant 0 : index
    %c3_97 = arith.constant 3 : index
    %c0_98 = arith.constant 0 : index
    %59 = vector.load %arg10[%c0_96, %c3_97, %c0_98] : memref<22x22x4xf32, #tpu.memory_space<vmem>>, vector<16x16x4xf32>
    %60 = arith.truncf %59 : vector<16x16x4xf32> to vector<16x16x4xbf16>
    %c0_99 = arith.constant 0 : index
    %c0_100 = arith.constant 0 : index
    %c72 = arith.constant 72 : index
    %61 = vector.load %arg11[%c0_99, %c0_100, %c72] : memref<16x16x100xbf16, #tpu.memory_space<vmem>>, vector<16x16x4xbf16>
    tpu.vector_store %arg11[%c0_99, %c0_100, %c72], %60 {strides = array<i32>} : memref<16x16x100xbf16, #tpu.memory_space<vmem>>, vector<16x16x4xbf16>,
    %c0_101 = arith.constant 0 : index
    %c6 = arith.constant 6 : index
    %c0_102 = arith.constant 0 : index
    %62 = vector.load %arg10[%c0_101, %c6, %c0_102] : memref<22x22x4xf32, #tpu.memory_space<vmem>>, vector<16x16x4xf32>
    %63 = arith.truncf %62 : vector<16x16x4xf32> to vector<16x16x4xbf16>
    %c0_103 = arith.constant 0 : index
    %c0_104 = arith.constant 0 : index
    %c76 = arith.constant 76 : index
    %64 = vector.load %arg11[%c0_103, %c0_104, %c76] : memref<16x16x100xbf16, #tpu.memory_space<vmem>>, vector<16x16x4xbf16>
    tpu.vector_store %arg11[%c0_103, %c0_104, %c76], %63 {strides = array<i32>} : memref<16x16x100xbf16, #tpu.memory_space<vmem>>, vector<16x16x4xbf16>,
    %c3_105 = arith.constant 3 : index
    %c0_106 = arith.constant 0 : index
    %c0_107 = arith.constant 0 : index
    %65 = vector.load %arg10[%c3_105, %c0_106, %c0_107] : memref<22x22x4xf32, #tpu.memory_space<vmem>>, vector<16x16x4xf32>
    %66 = arith.truncf %65 : vector<16x16x4xf32> to vector<16x16x4xbf16>
    %c0_108 = arith.constant 0 : index
    %c0_109 = arith.constant 0 : index
    %c80 = arith.constant 80 : index
    %67 = vector.load %arg11[%c0_108, %c0_109, %c80] : memref<16x16x100xbf16, #tpu.memory_space<vmem>>, vector<16x16x4xbf16>
    tpu.vector_store %arg11[%c0_108, %c0_109, %c80], %66 {strides = array<i32>} : memref<16x16x100xbf16, #tpu.memory_space<vmem>>, vector<16x16x4xbf16>,
    %c3_110 = arith.constant 3 : index
    %c6_111 = arith.constant 6 : index
    %c0_112 = arith.constant 0 : index
    %68 = vector.load %arg10[%c3_110, %c6_111, %c0_112] : memref<22x22x4xf32, #tpu.memory_space<vmem>>, vector<16x16x4xf32>
    %69 = arith.truncf %68 : vector<16x16x4xf32> to vector<16x16x4xbf16>
    %c0_113 = arith.constant 0 : index
    %c0_114 = arith.constant 0 : index
    %c84 = arith.constant 84 : index
    %70 = vector.load %arg11[%c0_113, %c0_114, %c84] : memref<16x16x100xbf16, #tpu.memory_space<vmem>>, vector<16x16x4xbf16>
    tpu.vector_store %arg11[%c0_113, %c0_114, %c84], %69 {strides = array<i32>} : memref<16x16x100xbf16, #tpu.memory_space<vmem>>, vector<16x16x4xbf16>,
    %c6_115 = arith.constant 6 : index
    %c0_116 = arith.constant 0 : index
    %c0_117 = arith.constant 0 : index
    %71 = vector.load %arg10[%c6_115, %c0_116, %c0_117] : memref<22x22x4xf32, #tpu.memory_space<vmem>>, vector<16x16x4xf32>
    %72 = arith.truncf %71 : vector<16x16x4xf32> to vector<16x16x4xbf16>
    %c0_118 = arith.constant 0 : index
    %c0_119 = arith.constant 0 : index
    %c88 = arith.constant 88 : index
    %73 = vector.load %arg11[%c0_118, %c0_119, %c88] : memref<16x16x100xbf16, #tpu.memory_space<vmem>>, vector<16x16x4xbf16>
    tpu.vector_store %arg11[%c0_118, %c0_119, %c88], %72 {strides = array<i32>} : memref<16x16x100xbf16, #tpu.memory_space<vmem>>, vector<16x16x4xbf16>,
    %c6_120 = arith.constant 6 : index
    %c3_121 = arith.constant 3 : index
    %c0_122 = arith.constant 0 : index
    %74 = vector.load %arg10[%c6_120, %c3_121, %c0_122] : memref<22x22x4xf32, #tpu.memory_space<vmem>>, vector<16x16x4xf32>
    %75 = arith.truncf %74 : vector<16x16x4xf32> to vector<16x16x4xbf16>
    %c0_123 = arith.constant 0 : index
    %c0_124 = arith.constant 0 : index
    %c92 = arith.constant 92 : index
    %76 = vector.load %arg11[%c0_123, %c0_124, %c92] : memref<16x16x100xbf16, #tpu.memory_space<vmem>>, vector<16x16x4xbf16>
    tpu.vector_store %arg11[%c0_123, %c0_124, %c92], %75 {strides = array<i32>} : memref<16x16x100xbf16, #tpu.memory_space<vmem>>, vector<16x16x4xbf16>,
    %c6_125 = arith.constant 6 : index
    %c6_126 = arith.constant 6 : index
    %c0_127 = arith.constant 0 : index
    %77 = vector.load %arg10[%c6_125, %c6_126, %c0_127] : memref<22x22x4xf32, #tpu.memory_space<vmem>>, vector<16x16x4xf32>
    %78 = arith.truncf %77 : vector<16x16x4xf32> to vector<16x16x4xbf16>
    %c0_128 = arith.constant 0 : index
    %c0_129 = arith.constant 0 : index
    %c96 = arith.constant 96 : index
    %79 = vector.load %arg11[%c0_128, %c0_129, %c96] : memref<16x16x100xbf16, #tpu.memory_space<vmem>>, vector<16x16x4xbf16>
    tpu.vector_store %arg11[%c0_128, %c0_129, %c96], %78 {strides = array<i32>} : memref<16x16x100xbf16, #tpu.memory_space<vmem>>, vector<16x16x4xbf16>,
    %c0_130 = arith.constant 0 : index
    %c0_131 = arith.constant 0 : index
    %c0_132 = arith.constant 0 : index
    %80 = vector.load %arg11[%c0_130, %c0_131, %c0_132] : memref<16x16x100xbf16, #tpu.memory_space<vmem>>, vector<16x16x100xbf16>
    %81 = vector.shape_cast %80 : vector<16x16x100xbf16> to vector<256x100xbf16>
    %c0_133 = arith.constant 0 : index
    %c0_134 = arith.constant 0 : index
    %82 = vector.load %arg3[%c0_133, %c0_134] : memref<100x32xbf16, #tpu.memory_space<vmem>>, vector<100x32xbf16>
    %cst_135 = arith.constant dense<0.000000e+00> : vector<256x32xf32>
    %83 = tpu.matmul %81, %82, %cst_135 {dimension_numbers = #tpu.dot_dimension_numbers<[1], [0], [0], [1], [0, 0, 1, 1], [], []>} : vector<256x100xbf16>, vector<100x32xbf16>, vector<256x32xf32> -> vector<256x32xf32>
    %c0_136 = arith.constant 0 : index
    %c0_137 = arith.constant 0 : index
    %84 = vector.load %arg7[%c0_136, %c0_137] : memref<1x32xf32, #tpu.memory_space<vmem>>, vector<1x32xf32>
    %85 = vector.broadcast %84 : vector<1x32xf32> to vector<256x32xf32>
    %86 = arith.addf %83, %85 : vector<256x32xf32>
    %cst_138 = arith.constant 0.000000e+00 : f32
    %87 = vector.broadcast %cst_138 : f32 to vector<256x32xf32>
    %88 = arith.maximumf %86, %87 : vector<256x32xf32>
    %89 = arith.truncf %88 : vector<256x32xf32> to vector<256x32xbf16>
    %c0_139 = arith.constant 0 : index
    %c0_140 = arith.constant 0 : index
    %90 = vector.load %arg4[%c0_139, %c0_140] : memref<32x8xbf16, #tpu.memory_space<vmem>>, vector<32x8xbf16>
    %cst_141 = arith.constant dense<0.000000e+00> : vector<256x8xf32>
    %91 = tpu.matmul %89, %90, %cst_141 {dimension_numbers = #tpu.dot_dimension_numbers<[1], [0], [0], [1], [0, 0, 1, 1], [], []>} : vector<256x32xbf16>, vector<32x8xbf16>, vector<256x8xf32> -> vector<256x8xf32>
    %c0_142 = arith.constant 0 : index
    %c0_143 = arith.constant 0 : index
    %c0_144 = arith.constant 0 : index
    %92 = vector.load %arg2[%c0_142, %c0_143, %c0_144] : memref<1x1x4xf32, #tpu.memory_space<vmem>>, vector<1x1x4xf32>
    %93 = vector.shape_cast %92 : vector<1x1x4xf32> to vector<1x4xf32>
    %c0_145 = arith.constant 0 : index
    %c0_146 = arith.constant 0 : index
    %94 = vector.load %arg5[%c0_145, %c0_146] : memref<4x8xbf16, #tpu.memory_space<vmem>>, vector<4x8xbf16>
    %c0_147 = arith.constant 0 : index
    %c0_148 = arith.constant 0 : index
    %95 = vector.load %arg6[%c0_147, %c0_148] : memref<8x8xbf16, #tpu.memory_space<vmem>>, vector<8x8xbf16>
    %c0_149 = arith.constant 0 : index
    %c0_150 = arith.constant 0 : index
    %c0_151 = arith.constant 0 : index
    %96 = vector.load %arg8[%c0_149, %c0_150, %c0_151] : memref<2x1x8xf32, #tpu.memory_space<vmem>>, vector<1x1x8xf32>
    %97 = vector.shape_cast %96 : vector<1x1x8xf32> to vector<1x8xf32>
    %98 = arith.truncf %93 : vector<1x4xf32> to vector<1x4xbf16>
    %cst_152 = arith.constant dense<0.000000e+00> : vector<1x8xf32>
    %99 = tpu.matmul %98, %94, %cst_152 {dimension_numbers = #tpu.dot_dimension_numbers<[1], [0], [0], [1], [0, 0, 1, 1], [], []>} : vector<1x4xbf16>, vector<4x8xbf16>, vector<1x8xf32> -> vector<1x8xf32>
    %100 = arith.addf %99, %97 : vector<1x8xf32>
    %cst_153 = arith.constant 0.000000e+00 : f32
    %101 = vector.broadcast %cst_153 : f32 to vector<1x8xf32>
    %102 = arith.maximumf %100, %101 : vector<1x8xf32>
    %103 = arith.truncf %102 : vector<1x8xf32> to vector<1x8xbf16>
    %cst_154 = arith.constant dense<0.000000e+00> : vector<1x8xf32>
    %104 = tpu.matmul %103, %95, %cst_154 {dimension_numbers = #tpu.dot_dimension_numbers<[1], [0], [0], [1], [0, 0, 1, 1], [], []>} : vector<1x8xbf16>, vector<8x8xbf16>, vector<1x8xf32> -> vector<1x8xf32>
    %105 = vector.broadcast %104 : vector<1x8xf32> to vector<256x8xf32>
    %106 = arith.addf %91, %105 : vector<256x8xf32>
    %c1_155 = arith.constant 1 : index
    %c0_156 = arith.constant 0 : index
    %c0_157 = arith.constant 0 : index
    %107 = vector.load %arg8[%c1_155, %c0_156, %c0_157] : memref<2x1x8xf32, #tpu.memory_space<vmem>>, vector<1x1x8xf32>
    %108 = vector.shape_cast %107 : vector<1x1x8xf32> to vector<1x8xf32>
    %109 = vector.broadcast %108 : vector<1x8xf32> to vector<256x8xf32>
    %110 = arith.addf %106, %109 : vector<256x8xf32>
    %cst_158 = arith.constant 0.000000e+00 : f32
    %111 = vector.broadcast %cst_158 : f32 to vector<256x8xf32>
    %112 = arith.maximumf %110, %111 : vector<256x8xf32>
    %113 = vector.shape_cast %112 : vector<256x8xf32> to vector<16x16x8xf32>
    %c0_159 = arith.constant 0 : index
    %c0_160 = arith.constant 0 : index
    %c0_161 = arith.constant 0 : index
    %114 = vector.load %arg12[%c0_159, %c0_160, %c0_161] : memref<16x16x8xf32, #tpu.memory_space<vmem>>, vector<16x16x8xf32>
    tpu.vector_store %arg12[%c0_159, %c0_160, %c0_161], %113 {strides = array<i32>} : memref<16x16x8xf32, #tpu.memory_space<vmem>>, vector<16x16x8xf32>,
    %c0_162 = arith.constant 0 : index
    %c0_163 = arith.constant 0 : index
    %c0_164 = arith.constant 0 : index
    %115 = vector.load %arg12[%c0_162, %c0_163, %c0_164] : memref<16x16x8xf32, #tpu.memory_space<vmem>>, vector<16x1x8xf32>
    %116 = vector.shape_cast %115 : vector<16x1x8xf32> to vector<16x8xf32>
    %c0_165 = arith.constant 0 : index
    %c0_166 = arith.constant 0 : index
    %c0_167 = arith.constant 0 : index
    %117 = vector.load %arg9[%c0_165, %c0_166, %c0_167] : memref<1x16x128xf32, #tpu.memory_space<vmem>>, vector<1x16x8xf32>
    %118 = vector.shape_cast %117 : vector<1x16x8xf32> to vector<16x8xf32>
    %119 = vector.shape_cast %116 : vector<16x8xf32> to vector<1x16x8xf32>
    tpu.vector_store %arg9[%c0_165, %c0_166, %c0_167], %119 {strides = array<i32>} : memref<1x16x128xf32, #tpu.memory_space<vmem>>, vector<1x16x8xf32>,
    %c0_168 = arith.constant 0 : index
    %c1_169 = arith.constant 1 : index
    %c0_170 = arith.constant 0 : index
    %120 = vector.load %arg12[%c0_168, %c1_169, %c0_170] : memref<16x16x8xf32, #tpu.memory_space<vmem>>, vector<16x1x8xf32>
    %121 = vector.shape_cast %120 : vector<16x1x8xf32> to vector<16x8xf32>
    %c0_171 = arith.constant 0 : index
    %c0_172 = arith.constant 0 : index
    %c8_173 = arith.constant 8 : index
    %122 = vector.load %arg9[%c0_171, %c0_172, %c8_173] : memref<1x16x128xf32, #tpu.memory_space<vmem>>, vector<1x16x8xf32>
    %123 = vector.shape_cast %122 : vector<1x16x8xf32> to vector<16x8xf32>
    %124 = vector.shape_cast %121 : vector<16x8xf32> to vector<1x16x8xf32>
    tpu.vector_store %arg9[%c0_171, %c0_172, %c8_173], %124 {strides = array<i32>} : memref<1x16x128xf32, #tpu.memory_space<vmem>>, vector<1x16x8xf32>,
    %c0_174 = arith.constant 0 : index
    %c2_175 = arith.constant 2 : index
    %c0_176 = arith.constant 0 : index
    %125 = vector.load %arg12[%c0_174, %c2_175, %c0_176] : memref<16x16x8xf32, #tpu.memory_space<vmem>>, vector<16x1x8xf32>
    %126 = vector.shape_cast %125 : vector<16x1x8xf32> to vector<16x8xf32>
    %c0_177 = arith.constant 0 : index
    %c0_178 = arith.constant 0 : index
    %c16_179 = arith.constant 16 : index
    %127 = vector.load %arg9[%c0_177, %c0_178, %c16_179] : memref<1x16x128xf32, #tpu.memory_space<vmem>>, vector<1x16x8xf32>
    %128 = vector.shape_cast %127 : vector<1x16x8xf32> to vector<16x8xf32>
    %129 = vector.shape_cast %126 : vector<16x8xf32> to vector<1x16x8xf32>
    tpu.vector_store %arg9[%c0_177, %c0_178, %c16_179], %129 {strides = array<i32>} : memref<1x16x128xf32, #tpu.memory_space<vmem>>, vector<1x16x8xf32>,
    %c0_180 = arith.constant 0 : index
    %c3_181 = arith.constant 3 : index
    %c0_182 = arith.constant 0 : index
    %130 = vector.load %arg12[%c0_180, %c3_181, %c0_182] : memref<16x16x8xf32, #tpu.memory_space<vmem>>, vector<16x1x8xf32>
    %131 = vector.shape_cast %130 : vector<16x1x8xf32> to vector<16x8xf32>
    %c0_183 = arith.constant 0 : index
    %c0_184 = arith.constant 0 : index
    %c24_185 = arith.constant 24 : index
    %132 = vector.load %arg9[%c0_183, %c0_184, %c24_185] : memref<1x16x128xf32, #tpu.memory_space<vmem>>, vector<1x16x8xf32>
    %133 = vector.shape_cast %132 : vector<1x16x8xf32> to vector<16x8xf32>
    %134 = vector.shape_cast %131 : vector<16x8xf32> to vector<1x16x8xf32>
    tpu.vector_store %arg9[%c0_183, %c0_184, %c24_185], %134 {strides = array<i32>} : memref<1x16x128xf32, #tpu.memory_space<vmem>>, vector<1x16x8xf32>,
    %c0_186 = arith.constant 0 : index
    %c4_187 = arith.constant 4 : index
    %c0_188 = arith.constant 0 : index
    %135 = vector.load %arg12[%c0_186, %c4_187, %c0_188] : memref<16x16x8xf32, #tpu.memory_space<vmem>>, vector<16x1x8xf32>
    %136 = vector.shape_cast %135 : vector<16x1x8xf32> to vector<16x8xf32>
    %c0_189 = arith.constant 0 : index
    %c0_190 = arith.constant 0 : index
    %c32_191 = arith.constant 32 : index
    %137 = vector.load %arg9[%c0_189, %c0_190, %c32_191] : memref<1x16x128xf32, #tpu.memory_space<vmem>>, vector<1x16x8xf32>
    %138 = vector.shape_cast %137 : vector<1x16x8xf32> to vector<16x8xf32>
    %139 = vector.shape_cast %136 : vector<16x8xf32> to vector<1x16x8xf32>
    tpu.vector_store %arg9[%c0_189, %c0_190, %c32_191], %139 {strides = array<i32>} : memref<1x16x128xf32, #tpu.memory_space<vmem>>, vector<1x16x8xf32>,
    %c0_192 = arith.constant 0 : index
    %c5_193 = arith.constant 5 : index
    %c0_194 = arith.constant 0 : index
    %140 = vector.load %arg12[%c0_192, %c5_193, %c0_194] : memref<16x16x8xf32, #tpu.memory_space<vmem>>, vector<16x1x8xf32>
    %141 = vector.shape_cast %140 : vector<16x1x8xf32> to vector<16x8xf32>
    %c0_195 = arith.constant 0 : index
    %c0_196 = arith.constant 0 : index
    %c40_197 = arith.constant 40 : index
    %142 = vector.load %arg9[%c0_195, %c0_196, %c40_197] : memref<1x16x128xf32, #tpu.memory_space<vmem>>, vector<1x16x8xf32>
    %143 = vector.shape_cast %142 : vector<1x16x8xf32> to vector<16x8xf32>
    %144 = vector.shape_cast %141 : vector<16x8xf32> to vector<1x16x8xf32>
    tpu.vector_store %arg9[%c0_195, %c0_196, %c40_197], %144 {strides = array<i32>} : memref<1x16x128xf32, #tpu.memory_space<vmem>>, vector<1x16x8xf32>,
    %c0_198 = arith.constant 0 : index
    %c6_199 = arith.constant 6 : index
    %c0_200 = arith.constant 0 : index
    %145 = vector.load %arg12[%c0_198, %c6_199, %c0_200] : memref<16x16x8xf32, #tpu.memory_space<vmem>>, vector<16x1x8xf32>
    %146 = vector.shape_cast %145 : vector<16x1x8xf32> to vector<16x8xf32>
    %c0_201 = arith.constant 0 : index
    %c0_202 = arith.constant 0 : index
    %c48_203 = arith.constant 48 : index
    %147 = vector.load %arg9[%c0_201, %c0_202, %c48_203] : memref<1x16x128xf32, #tpu.memory_space<vmem>>, vector<1x16x8xf32>
    %148 = vector.shape_cast %147 : vector<1x16x8xf32> to vector<16x8xf32>
    %149 = vector.shape_cast %146 : vector<16x8xf32> to vector<1x16x8xf32>
    tpu.vector_store %arg9[%c0_201, %c0_202, %c48_203], %149 {strides = array<i32>} : memref<1x16x128xf32, #tpu.memory_space<vmem>>, vector<1x16x8xf32>,
    %c0_204 = arith.constant 0 : index
    %c7 = arith.constant 7 : index
    %c0_205 = arith.constant 0 : index
    %150 = vector.load %arg12[%c0_204, %c7, %c0_205] : memref<16x16x8xf32, #tpu.memory_space<vmem>>, vector<16x1x8xf32>
    %151 = vector.shape_cast %150 : vector<16x1x8xf32> to vector<16x8xf32>
    %c0_206 = arith.constant 0 : index
    %c0_207 = arith.constant 0 : index
    %c56_208 = arith.constant 56 : index
    %152 = vector.load %arg9[%c0_206, %c0_207, %c56_208] : memref<1x16x128xf32, #tpu.memory_space<vmem>>, vector<1x16x8xf32>
    %153 = vector.shape_cast %152 : vector<1x16x8xf32> to vector<16x8xf32>
    %154 = vector.shape_cast %151 : vector<16x8xf32> to vector<1x16x8xf32>
    tpu.vector_store %arg9[%c0_206, %c0_207, %c56_208], %154 {strides = array<i32>} : memref<1x16x128xf32, #tpu.memory_space<vmem>>, vector<1x16x8xf32>,
    %c0_209 = arith.constant 0 : index
    %c8_210 = arith.constant 8 : index
    %c0_211 = arith.constant 0 : index
    %155 = vector.load %arg12[%c0_209, %c8_210, %c0_211] : memref<16x16x8xf32, #tpu.memory_space<vmem>>, vector<16x1x8xf32>
    %156 = vector.shape_cast %155 : vector<16x1x8xf32> to vector<16x8xf32>
    %c0_212 = arith.constant 0 : index
    %c0_213 = arith.constant 0 : index
    %c64_214 = arith.constant 64 : index
    %157 = vector.load %arg9[%c0_212, %c0_213, %c64_214] : memref<1x16x128xf32, #tpu.memory_space<vmem>>, vector<1x16x8xf32>
    %158 = vector.shape_cast %157 : vector<1x16x8xf32> to vector<16x8xf32>
    %159 = vector.shape_cast %156 : vector<16x8xf32> to vector<1x16x8xf32>
    tpu.vector_store %arg9[%c0_212, %c0_213, %c64_214], %159 {strides = array<i32>} : memref<1x16x128xf32, #tpu.memory_space<vmem>>, vector<1x16x8xf32>,
    %c0_215 = arith.constant 0 : index
    %c9 = arith.constant 9 : index
    %c0_216 = arith.constant 0 : index
    %160 = vector.load %arg12[%c0_215, %c9, %c0_216] : memref<16x16x8xf32, #tpu.memory_space<vmem>>, vector<16x1x8xf32>
    %161 = vector.shape_cast %160 : vector<16x1x8xf32> to vector<16x8xf32>
    %c0_217 = arith.constant 0 : index
    %c0_218 = arith.constant 0 : index
    %c72_219 = arith.constant 72 : index
    %162 = vector.load %arg9[%c0_217, %c0_218, %c72_219] : memref<1x16x128xf32, #tpu.memory_space<vmem>>, vector<1x16x8xf32>
    %163 = vector.shape_cast %162 : vector<1x16x8xf32> to vector<16x8xf32>
    %164 = vector.shape_cast %161 : vector<16x8xf32> to vector<1x16x8xf32>
    tpu.vector_store %arg9[%c0_217, %c0_218, %c72_219], %164 {strides = array<i32>} : memref<1x16x128xf32, #tpu.memory_space<vmem>>, vector<1x16x8xf32>,
    %c0_220 = arith.constant 0 : index
    %c10 = arith.constant 10 : index
    %c0_221 = arith.constant 0 : index
    %165 = vector.load %arg12[%c0_220, %c10, %c0_221] : memref<16x16x8xf32, #tpu.memory_space<vmem>>, vector<16x1x8xf32>
    %166 = vector.shape_cast %165 : vector<16x1x8xf32> to vector<16x8xf32>
    %c0_222 = arith.constant 0 : index
    %c0_223 = arith.constant 0 : index
    %c80_224 = arith.constant 80 : index
    %167 = vector.load %arg9[%c0_222, %c0_223, %c80_224] : memref<1x16x128xf32, #tpu.memory_space<vmem>>, vector<1x16x8xf32>
    %168 = vector.shape_cast %167 : vector<1x16x8xf32> to vector<16x8xf32>
    %169 = vector.shape_cast %166 : vector<16x8xf32> to vector<1x16x8xf32>
    tpu.vector_store %arg9[%c0_222, %c0_223, %c80_224], %169 {strides = array<i32>} : memref<1x16x128xf32, #tpu.memory_space<vmem>>, vector<1x16x8xf32>,
    %c0_225 = arith.constant 0 : index
    %c11 = arith.constant 11 : index
    %c0_226 = arith.constant 0 : index
    %170 = vector.load %arg12[%c0_225, %c11, %c0_226] : memref<16x16x8xf32, #tpu.memory_space<vmem>>, vector<16x1x8xf32>
    %171 = vector.shape_cast %170 : vector<16x1x8xf32> to vector<16x8xf32>
    %c0_227 = arith.constant 0 : index
    %c0_228 = arith.constant 0 : index
    %c88_229 = arith.constant 88 : index
    %172 = vector.load %arg9[%c0_227, %c0_228, %c88_229] : memref<1x16x128xf32, #tpu.memory_space<vmem>>, vector<1x16x8xf32>
    %173 = vector.shape_cast %172 : vector<1x16x8xf32> to vector<16x8xf32>
    %174 = vector.shape_cast %171 : vector<16x8xf32> to vector<1x16x8xf32>
    tpu.vector_store %arg9[%c0_227, %c0_228, %c88_229], %174 {strides = array<i32>} : memref<1x16x128xf32, #tpu.memory_space<vmem>>, vector<1x16x8xf32>,
    %c0_230 = arith.constant 0 : index
    %c12_231 = arith.constant 12 : index
    %c0_232 = arith.constant 0 : index
    %175 = vector.load %arg12[%c0_230, %c12_231, %c0_232] : memref<16x16x8xf32, #tpu.memory_space<vmem>>, vector<16x1x8xf32>
    %176 = vector.shape_cast %175 : vector<16x1x8xf32> to vector<16x8xf32>
    %c0_233 = arith.constant 0 : index
    %c0_234 = arith.constant 0 : index
    %c96_235 = arith.constant 96 : index
    %177 = vector.load %arg9[%c0_233, %c0_234, %c96_235] : memref<1x16x128xf32, #tpu.memory_space<vmem>>, vector<1x16x8xf32>
    %178 = vector.shape_cast %177 : vector<1x16x8xf32> to vector<16x8xf32>
    %179 = vector.shape_cast %176 : vector<16x8xf32> to vector<1x16x8xf32>
    tpu.vector_store %arg9[%c0_233, %c0_234, %c96_235], %179 {strides = array<i32>} : memref<1x16x128xf32, #tpu.memory_space<vmem>>, vector<1x16x8xf32>,
    %c0_236 = arith.constant 0 : index
    %c13 = arith.constant 13 : index
    %c0_237 = arith.constant 0 : index
    %180 = vector.load %arg12[%c0_236, %c13, %c0_237] : memref<16x16x8xf32, #tpu.memory_space<vmem>>, vector<16x1x8xf32>
    %181 = vector.shape_cast %180 : vector<16x1x8xf32> to vector<16x8xf32>
    %c0_238 = arith.constant 0 : index
    %c0_239 = arith.constant 0 : index
    %c104 = arith.constant 104 : index
    %182 = vector.load %arg9[%c0_238, %c0_239, %c104] : memref<1x16x128xf32, #tpu.memory_space<vmem>>, vector<1x16x8xf32>
    %183 = vector.shape_cast %182 : vector<1x16x8xf32> to vector<16x8xf32>
    %184 = vector.shape_cast %181 : vector<16x8xf32> to vector<1x16x8xf32>
    tpu.vector_store %arg9[%c0_238, %c0_239, %c104], %184 {strides = array<i32>} : memref<1x16x128xf32, #tpu.memory_space<vmem>>, vector<1x16x8xf32>,
    %c0_240 = arith.constant 0 : index
    %c14 = arith.constant 14 : index
    %c0_241 = arith.constant 0 : index
    %185 = vector.load %arg12[%c0_240, %c14, %c0_241] : memref<16x16x8xf32, #tpu.memory_space<vmem>>, vector<16x1x8xf32>
    %186 = vector.shape_cast %185 : vector<16x1x8xf32> to vector<16x8xf32>
    %c0_242 = arith.constant 0 : index
    %c0_243 = arith.constant 0 : index
    %c112 = arith.constant 112 : index
    %187 = vector.load %arg9[%c0_242, %c0_243, %c112] : memref<1x16x128xf32, #tpu.memory_space<vmem>>, vector<1x16x8xf32>
    %188 = vector.shape_cast %187 : vector<1x16x8xf32> to vector<16x8xf32>
    %189 = vector.shape_cast %186 : vector<16x8xf32> to vector<1x16x8xf32>
    tpu.vector_store %arg9[%c0_242, %c0_243, %c112], %189 {strides = array<i32>} : memref<1x16x128xf32, #tpu.memory_space<vmem>>, vector<1x16x8xf32>,
    %c0_244 = arith.constant 0 : index
    %c15 = arith.constant 15 : index
    %c0_245 = arith.constant 0 : index
    %190 = vector.load %arg12[%c0_244, %c15, %c0_245] : memref<16x16x8xf32, #tpu.memory_space<vmem>>, vector<16x1x8xf32>
    %191 = vector.shape_cast %190 : vector<16x1x8xf32> to vector<16x8xf32>
    %c0_246 = arith.constant 0 : index
    %c0_247 = arith.constant 0 : index
    %c120 = arith.constant 120 : index
    %192 = vector.load %arg9[%c0_246, %c0_247, %c120] : memref<1x16x128xf32, #tpu.memory_space<vmem>>, vector<1x16x8xf32>
    %193 = vector.shape_cast %192 : vector<1x16x8xf32> to vector<16x8xf32>
    %194 = vector.shape_cast %191 : vector<16x8xf32> to vector<1x16x8xf32>
    tpu.vector_store %arg9[%c0_246, %c0_247, %c120], %194 {strides = array<i32>} : memref<1x16x128xf32, #tpu.memory_space<vmem>>, vector<1x16x8xf32>,
    return
  }
  func.func @transform_0(%arg0: i32) -> (i32, i32, i32, i32) {
    %c0_i32 = arith.constant 0 : i32
    %c0_i32_0 = arith.constant 0 : i32
    %c0_i32_1 = arith.constant 0 : i32
    %c0_i32_2 = arith.constant 0 : i32
    return %arg0, %c0_i32, %c0_i32_0, %c0_i32_1 : i32, i32, i32, i32
  }
  func.func @transform_1(%arg0: i32) -> (i32, i32, i32) {
    %c0_i32 = arith.constant 0 : i32
    %c0_i32_0 = arith.constant 0 : i32
    %c0_i32_1 = arith.constant 0 : i32
    return %arg0, %c0_i32, %c0_i32_0 : i32, i32, i32
  }
  func.func @transform_2(%arg0: i32) -> (i32, i32) {
    %c0_i32 = arith.constant 0 : i32
    %c0_i32_0 = arith.constant 0 : i32
    %c0_i32_1 = arith.constant 0 : i32
    return %c0_i32, %c0_i32_0 : i32, i32
  }
  func.func @transform_3(%arg0: i32) -> (i32, i32) {
    %c0_i32 = arith.constant 0 : i32
    %c0_i32_0 = arith.constant 0 : i32
    %c0_i32_1 = arith.constant 0 : i32
    return %c0_i32, %c0_i32_0 : i32, i32
  }
  func.func @transform_4(%arg0: i32) -> (i32, i32) {
    %c0_i32 = arith.constant 0 : i32
    %c0_i32_0 = arith.constant 0 : i32
    %c0_i32_1 = arith.constant 0 : i32
    return %c0_i32, %c0_i32_0 : i32, i32
  }
  func.func @transform_5(%arg0: i32) -> (i32, i32) {
    %c0_i32 = arith.constant 0 : i32
    %c0_i32_0 = arith.constant 0 : i32
    %c0_i32_1 = arith.constant 0 : i32
    return %c0_i32, %c0_i32_0 : i32, i32
  }
  func.func @transform_6(%arg0: i32) -> (i32, i32) {
    %c0_i32 = arith.constant 0 : i32
    %c0_i32_0 = arith.constant 0 : i32
    %c0_i32_1 = arith.constant 0 : i32
    return %c0_i32, %c0_i32_0 : i32, i32
  }
  func.func @transform_7(%arg0: i32) -> (i32, i32, i32) {
    %c0_i32 = arith.constant 0 : i32
    %c0_i32_0 = arith.constant 0 : i32
    %c0_i32_1 = arith.constant 0 : i32
    %c0_i32_2 = arith.constant 0 : i32
    return %c0_i32, %c0_i32_0, %c0_i32_1 : i32, i32, i32
  }
  func.func @transform_8(%arg0: i32) -> (i32, i32, i32) {
    %c0_i32 = arith.constant 0 : i32
    %c0_i32_0 = arith.constant 0 : i32
    %c0_i32_1 = arith.constant 0 : i32
    return %arg0, %c0_i32, %c0_i32_0 : i32, i32, i32
  }
}

</mosaic_0001>

<bundles_post_ra>
// kernel: tpu_custom_call.1
= control target key start
LH: loop header
LB: loop body
LE: loop exit
PB: predicated region body
PF: predicated region fallthrough
CT: control target
= control target key end

     0   :  { %13 = vsyncpa [#allocation6], 0  ;;  %s14525_s0 = inlined_call_operand.vmem [shape: f32[2,16,16,4], index: 0, kind: input, shape index: {}]   ;;  %s14526_s1 = inlined_call_operand.vmem [shape: f32[2,1,4], index: 1, kind: input, shape index: {}]   ;;  %s14527_s2 = inlined_call_operand.vmem [shape: bf16[100,32], index: 2, kind: input, shape index: {}]   ;;  %s14528_s3 = inlined_call_operand.vmem [shape: bf16[32,8], index: 3, kind: input, shape index: {}]   ;;  %s14529_s4 = inlined_call_operand.vmem [shape: bf16[4,8], index: 4, kind: input, shape index: {}]   ;;  %s14530_s5 = inlined_call_operand.vmem [shape: bf16[8,8], index: 5, kind: input, shape index: {}]   ;;  %s14531_s6 = inlined_call_operand.vmem [shape: f32[1,32], index: 6, kind: input, shape index: {}]   ;;  %s14532_s7 = inlined_call_operand.vmem [shape: f32[2,1,8], index: 7, kind: input, shape index: {}]   ;;  %s14533_s8 = inlined_call_operand.hbm [shape: f32[2,16,128], index: 8, kind: output, shape index: {}]  }
   0x1   :  { %15 = vsyncpa [#allocation6 + $0x1], 0  ;;  %s10927_s27 = smov 0   ;;  %s10929_s28 = smov 0  }
   0x2   :  { %s10931_s29 = smov 0   ;;  %s10933_s30 = smov 0  }
   0x3 LB: > { %s10948_s9 = sadd.s32 4294967295, %s10849_s30   ;;  %s8877_s10 = sadd.s32 4294967294, %s10849_s30   ;;  %s10849_s30 = sphi %s10933_s30, %s14606_s30   ;;  %s10845_s29 = sphi %s10931_s29, %s14605_s29   ;;  %s10841_s28 = sphi %s10929_s28, %s14604_s28   ;;  %s10837_s27 = sphi %s10927_s27, %s14603_s27  }
   0x4   : > { %s10952_s11 = sadd.s32 1, %s10849_s30   ;;  %s206_s12 = sadd.s32 1, %s10845_s29 }
   0x5   : > { %s203_s13 = ssub.s32 %s10849_s30, %s10952_s11  ;;  %p216_p0 = scmp.ne.s32.totalorder %s10845_s29, %s10841_s28 }
   0x6   : > { %p204_p1 = scmp.eq.s32.totalorder %s203_s13, 0  ;;  %p217_p2 = scmp.eq.s32.totalorder %s10948_s9, 1 }
   0x7   : > { %p222_p3 = scmp.ne.s32.totalorder %s10841_s28, %s10837_s27  ;;  %p223_p4 = scmp.eq.s32.totalorder %s8877_s10, 1 }
   0x8   : > { %s10963_s14 = scalar_select %p204_p1, %s10845_s29, %s206_s12  }
   0x9   : > { %p10965_p5 = por %p217_p2, %p216_p0  ;;  %p10969_p6 = por %p223_p4, %p222_p3 }
   0xa   : > { %p8880_p7 = scmp.ge.s32.totalorder %s10849_s30, 1  ;;  %p273_p8 = scmp.lt.s32.totalorder %s10849_s30, 3 }
   0xc   : > { %p274_p9 = pnand %p8880_p7, %p273_p8 }
   0xe   : > { %277 = sbr.rel (%p274_p9) target bundleno = 2322 (0x912), region = 52 }
  0x13   : > { %vm319_vm0 = vcmask 31744   ;;  %p310_p10 = scmp.lt.s32.totalorder %s10948_s9, 1  ;;  %vm322_vm1 = vcmask 29696   ;;  %v14534_v0 = vmov 0.0   ;;  %s10852_s22 = smov 4   ;;  %vm612_vm2 = vcmask 27648  }
  0x14   : > { %327 = vst.msk [vmem:[#allocation2 + $0x30] sm:$0xff] %vm319_vm0, %v14534_v0  ;;  %328 = vst.msk [vmem:[#allocation2 + $0x38] sm:$0xff] %vm319_vm0, %v14534_v0  ;;  %10644 = vmatprep.subr.bf16.mxu1 %v14534_v0  ;;  %s14550_s23 = smov 8   ;;  %vm870_vm3 = vcmask 60448   ;;  %s10854_s24 = smov 12   ;;  %vm1127_vm4 = vcmask 93248  }
  0x15   : > { %320 = vst.msk [vmem:[#allocation2] sm:$0xff] %vm319_vm0, %v14534_v0  ;;  %321 = vst.msk [vmem:[#allocation2 + $0x8] sm:$0xff] %vm319_vm0, %v14534_v0  ;;  %s11112_s17 = scalar_select %p310_p10, %s10948_s9, 1  ;;  %vm1384_vm5 = vcmask 126048   ;;  %vm1641_vm6 = vcmask 158848   ;;  %vm1898_vm7 = vcmask 191648  }
  0x16   : > { %324 = vst.msk [vmem:[#allocation2 + $0x18] sm:$0xff] %vm319_vm0, %v14534_v0  ;;  %325 = vst.msk [vmem:[#allocation2 + $0x20] sm:$0xff] %vm319_vm0, %v14534_v0  ;;  %s14548_s25 = smov 16   ;;  %s10856_s26 = smov 20   ;;  %vm2156_vm8 = vcmask 224448   ;;  %vm2413_vm9 = vcmask 257248  }
  0x17   : > { %330 = vst.msk [vmem:[#allocation2 + $0x48] sm:$0xff] %vm319_vm0, %v14534_v0  ;;  %331 = vst.msk [vmem:[#allocation2 + $0x50] sm:$0xff] %vm319_vm0, %v14534_v0  ;;  %s9751_s18 = sshll.u32 %s11112_s17, 8  ;;  %s14546_s10 = smov 24   ;;  %vm2670_vm10 = vcmask 290048   ;;  %vm2928_vm11 = vcmask 322848  }
  0x18   : > { %333 = vst.msk [vmem:[#allocation2 + $0x60] sm:$0xff] %vm319_vm0, %v14534_v0  ;;  %334 = vst.msk [vmem:[#allocation2 + $0x68] sm:$0xff] %vm319_vm0, %v14534_v0  ;;  %s11118_s21 = scalar_lea.vmem %s14525_s0, %s9751_s18  ;;  %s10858_s12 = smov 28   ;;  %vm3185_vm12 = vcmask 355648   ;;  %vm3442_vm13 = vcmask 388448   ;;  %vm3699_vm14 = vcmask 421248  }
  0x19   : > { %336 = vst.msk [vmem:[#allocation2 + $0x78] sm:$0xff] %vm319_vm0, %v14534_v0  ;;  %337 = vst.msk [vmem:[#allocation2 + $0x80] sm:$0xff] %vm319_vm0, %v14534_v0  ;;  %v387_v1 = vld [vmem:[%s11118_s21] sm:$0xff]  ;;  %v388_v2 = vld [vmem:[%s11118_s21 + $0x8] sm:$0xff]  ;;  %s14544_s13 = smov 32   ;;  %s10860_s18 = smov 36  }
  0x1a   : > { %339 = vst.msk [vmem:[#allocation2 + $0x90] sm:$0xff] %vm319_vm0, %v14534_v0  ;;  %340 = vst.msk [vmem:[#allocation2 + $0x98] sm:$0xff] %vm319_vm0, %v14534_v0  ;;  %v389_v3 = vld [vmem:[%s11118_s21 + $0x10] sm:$0xff]  ;;  %v390_v4 = vld [vmem:[%s11118_s21 + $0x18] sm:$0xff]  ;;  %s14542_s19 = smov 40   ;;  %s10862_s20 = smov 44  }
  0x1b   : > { %342 = vst.msk [vmem:[#allocation2 + $0xa8] sm:$0xff] %vm319_vm0, %v14534_v0  ;;  %343 = vst.msk [vmem:[#allocation2 + $0xb0] sm:$0xff] %vm319_vm0, %v14534_v0  ;;  %v391_v5 = vld [vmem:[%s11118_s21 + $0x20] sm:$0xff]  ;;  %v392_v6 = vld [vmem:[%s11118_s21 + $0x28] sm:$0xff]  ;;  %vm3956_vm15 = vcmask 454048  }
  0x1c   : > { %345 = vst.msk [vmem:[#allocation2 + $0xc0] sm:$0xff] %vm319_vm0, %v14534_v0  ;;  %346 = vst.msk [vmem:[#allocation2 + $0xc8] sm:$0xff] %vm319_vm0, %v14534_v0  ;;  %v646_v7 = vld [vmem:[#allocation2 + $0x32] sm:$0xff]  ;;  %v395_v12 = vld [vmem:[%s11118_s21 + $0x40] sm:$0xff] }
  0x1d   : > { %348 = vst.msk [vmem:[#allocation2 + $0xd8] sm:$0xff] %vm319_vm0, %v14534_v0  ;;  %349 = vst.msk [vmem:[#allocation2 + $0xe0] sm:$0xff] %vm319_vm0, %v14534_v0  ;;  %v393_v9 = vld [vmem:[%s11118_s21 + $0x30] sm:$0xff]  ;;  %v9784_v10 = vpack.c.bf16 %v646_v7, %v646_v7  ;;  %v394_v11 = vld [vmem:[%s11118_s21 + $0x38] sm:$0xff] }
  0x1e   : > { %351 = vst.msk [vmem:[#allocation2 + $0xf0] sm:$0xff] %vm319_vm0, %v14534_v0  ;;  %352 = vst.msk [vmem:[#allocation2 + $0xf8] sm:$0xff] %vm319_vm0, %v14534_v0  ;;  %v396_v13 = vld [vmem:[%s11118_s21 + $0x48] sm:$0xff]  ;;  %v397_v14 = vld [vmem:[%s11118_s21 + $0x50] sm:$0xff] }
  0x1f   : > { %354 = vst.msk [vmem:[#allocation2 + $0x108] sm:$0xff] %vm319_vm0, %v14534_v0  ;;  %355 = vst.msk [vmem:[#allocation2 + $0x110] sm:$0xff] %vm319_vm0, %v14534_v0  ;;  %v398_v15 = vld [vmem:[%s11118_s21 + $0x58] sm:$0xff]  ;;  %v399_v16 = vld [vmem:[%s11118_s21 + $0x60] sm:$0xff]  ;;  %774 = vrot.lane.b32.xlu0 %v9784_v10, %s10852_s22 }
  0x20   : > { %357 = vst.msk [vmem:[#allocation2 + $0x120] sm:$0xff] %vm319_vm0, %v14534_v0  ;;  %358 = vst.msk [vmem:[#allocation2 + $0x128] sm:$0xff] %vm319_vm0, %v14534_v0  ;;  %v400_v18 = vld [vmem:[%s11118_s21 + $0x68] sm:$0xff]  ;;  %v401_v19 = vld [vmem:[%s11118_s21 + $0x70] sm:$0xff] }
  0x21   : > { %360 = vst.msk [vmem:[#allocation2 + $0x138] sm:$0xff] %vm319_vm0, %v14534_v0  ;;  %361 = vst.msk [vmem:[#allocation2 + $0x140] sm:$0xff] %vm319_vm0, %v14534_v0  ;;  %v402_v20 = vld [vmem:[%s11118_s21 + $0x78] sm:$0xff]  ;;  %v403_v21 = vld [vmem:[%s11118_s21 + $0x80] sm:$0xff] }
  0x22   : > { %363 = vst.msk [vmem:[#allocation2 + $0x150] sm:$0xff] %vm319_vm0, %v14534_v0  ;;  %364 = vst.msk [vmem:[#allocation2 + $0x158] sm:$0xff] %vm319_vm0, %v14534_v0  ;;  %v404_v22 = vld [vmem:[%s11118_s21 + $0x88] sm:$0xff]  ;;  %v405_v23 = vld [vmem:[%s11118_s21 + $0x90] sm:$0xff] }
  0x23   : > { %366 = vst.msk [vmem:[#allocation2 + $0x168] sm:$0xff] %vm319_vm0, %v14534_v0  ;;  %367 = vst.msk [vmem:[#allocation2 + $0x170] sm:$0xff] %vm319_vm0, %v14534_v0  ;;  %v406_v24 = vld [vmem:[%s11118_s21 + $0x98] sm:$0xff]  ;;  %v407_v25 = vld [vmem:[%s11118_s21 + $0xa0] sm:$0xff] }
  0x24   : > { %369 = vst.msk [vmem:[#allocation2 + $0x180] sm:$0xff] %vm319_vm0, %v14534_v0  ;;  %370 = vst.msk [vmem:[#allocation2 + $0x188] sm:$0xff] %vm319_vm0, %v14534_v0  ;;  %v408_v26 = vld [vmem:[%s11118_s21 + $0xa8] sm:$0xff]  ;;  %v409_v33 = vld [vmem:[%s11118_s21 + $0xb0] sm:$0xff] }
  0x25   : > { %372 = vst.msk [vmem:[#allocation2 + $0x198] sm:$0xff] %vm319_vm0, %v14534_v0  ;;  %373 = vst.msk [vmem:[#allocation2 + $0x1a0] sm:$0xff] %vm319_vm0, %v14534_v0  ;;  %v410_v34 = vld [vmem:[%s11118_s21 + $0xb8] sm:$0xff]  ;;  %v411_v41 = vld [vmem:[%s11118_s21 + $0xc0] sm:$0xff] }
  0x26   : > { %375 = vst.msk [vmem:[#allocation2 + $0x1b0] sm:$0xff] %vm319_vm0, %v14534_v0  ;;  %376 = vst.msk [vmem:[#allocation2 + $0x1b8] sm:$0xff] %vm319_vm0, %v14534_v0  ;;  %v412_v42 = vld [vmem:[%s11118_s21 + $0xc8] sm:$0xff]  ;;  %v413_v43 = vld [vmem:[%s11118_s21 + $0xd0] sm:$0xff] }
  0x27   : > { %378 = vst.msk [vmem:[#allocation2 + $0x1c8] sm:$0xff] %vm319_vm0, %v14534_v0  ;;  %379 = vst.msk [vmem:[#allocation2 + $0x1d0] sm:$0xff] %vm319_vm0, %v14534_v0  ;;  %v414_v45 = vld [vmem:[%s11118_s21 + $0xd8] sm:$0xff]  ;;  %v415_v46 = vld [vmem:[%s11118_s21 + $0xe0] sm:$0xff] }
  0x28   : > { %381 = vst.msk [vmem:[#allocation2 + $0x1e0] sm:$0xff] %vm319_vm0, %v14534_v0  ;;  %382 = vst.msk [vmem:[#allocation2 + $0x1e8] sm:$0xff] %vm319_vm0, %v14534_v0  ;;  %v416_v47 = vld [vmem:[%s11118_s21 + $0xe8] sm:$0xff] }
  0x29   : > { %384 = vst.msk [vmem:[#allocation2 + $0x1f8] sm:$0xff] %vm319_vm0, %v14534_v0  ;;  %385 = vst.msk [vmem:[#allocation2 + $0x200] sm:$0xff] %vm319_vm0, %v14534_v0 }
  0x2a   : > { %329 = vst.msk [vmem:[#allocation2 + $0x40] sm:$0x3f] %vm322_vm1, %v14534_v0  ;;  %323 = vst.msk [vmem:[#allocation2 + $0x10] sm:$0x3f] %vm322_vm1, %v14534_v0 }
  0x2b   : > { %326 = vst.msk [vmem:[#allocation2 + $0x28] sm:$0x3f] %vm322_vm1, %v14534_v0  ;;  %332 = vst.msk [vmem:[#allocation2 + $0x58] sm:$0x3f] %vm322_vm1, %v14534_v0 }
  0x2c   : > { %335 = vst.msk [vmem:[#allocation2 + $0x70] sm:$0x3f] %vm322_vm1, %v14534_v0  ;;  %338 = vst.msk [vmem:[#allocation2 + $0x88] sm:$0x3f] %vm322_vm1, %v14534_v0 }
  0x2d   : > { %341 = vst.msk [vmem:[#allocation2 + $0xa0] sm:$0x3f] %vm322_vm1, %v14534_v0  ;;  %344 = vst.msk [vmem:[#allocation2 + $0xb8] sm:$0x3f] %vm322_vm1, %v14534_v0 }
  0x2e   : > { %347 = vst.msk [vmem:[#allocation2 + $0xd0] sm:$0x3f] %vm322_vm1, %v14534_v0  ;;  %350 = vst.msk [vmem:[#allocation2 + $0xe8] sm:$0x3f] %vm322_vm1, %v14534_v0 }
  0x2f   : > { %353 = vst.msk [vmem:[#allocation2 + $0x100] sm:$0x3f] %vm322_vm1, %v14534_v0  ;;  %356 = vst.msk [vmem:[#allocation2 + $0x118] sm:$0x3f] %vm322_vm1, %v14534_v0 }
  0x30   : > { %359 = vst.msk [vmem:[#allocation2 + $0x130] sm:$0x3f] %vm322_vm1, %v14534_v0  ;;  %362 = vst.msk [vmem:[#allocation2 + $0x148] sm:$0x3f] %vm322_vm1, %v14534_v0 }
  0x31   : > { %365 = vst.msk [vmem:[#allocation2 + $0x160] sm:$0x3f] %vm322_vm1, %v14534_v0  ;;  %368 = vst.msk [vmem:[#allocation2 + $0x178] sm:$0x3f] %vm322_vm1, %v14534_v0  ;;  %v647_v8 = vld [vmem:[#allocation2 + $0x3a] sm:$0xff] }
  0x32   : > { %371 = vst.msk [vmem:[#allocation2 + $0x190] sm:$0x3f] %vm322_vm1, %v14534_v0  ;;  %374 = vst.msk [vmem:[#allocation2 + $0x1a8] sm:$0x3f] %vm322_vm1, %v14534_v0  ;;  %v9785_v17 = vpack.c.bf16 %v647_v8, %v647_v8 }
  0x33   : > { %377 = vst.msk [vmem:[#allocation2 + $0x1c0] sm:$0x3f] %vm322_vm1, %v14534_v0  ;;  %380 = vst.msk [vmem:[#allocation2 + $0x1d8] sm:$0x3f] %vm322_vm1, %v14534_v0 }
  0x34   : > { %383 = vst.msk [vmem:[#allocation2 + $0x1f0] sm:$0x3f] %vm322_vm1, %v14534_v0  ;;  %386 = vst.msk [vmem:[#allocation2 + $0x208] sm:$0x3f] %vm322_vm1, %v14534_v0  ;;  %776 = vrot.lane.b32.xlu0 %v9785_v17, %s10852_s22  ;;  %vm4214_vm1 = vcmask 486848  }
  0x35   : > { %420 = vst.msk [vmem:[#allocation2 + $0x4b] sm:$0xff] %vm319_vm0, %v387_v1  ;;  %421 = vst.msk [vmem:[#allocation2 + $0x53] sm:$0xff] %vm319_vm0, %v388_v2 }
  0x36   : > { %422 = vst.msk [vmem:[#allocation2 + $0x63] sm:$0xff] %vm319_vm0, %v389_v3  ;;  %423 = vst.msk [vmem:[#allocation2 + $0x6b] sm:$0xff] %vm319_vm0, %v390_v4 }
  0x37   : > { %424 = vst.msk [vmem:[#allocation2 + $0x7b] sm:$0xff] %vm319_vm0, %v391_v5  ;;  %425 = vst.msk [vmem:[#allocation2 + $0x83] sm:$0xff] %vm319_vm0, %v392_v6 }
  0x38   : > { %426 = vst.msk [vmem:[#allocation2 + $0x93] sm:$0xff] %vm319_vm0, %v393_v9  ;;  %427 = vst.msk [vmem:[#allocation2 + $0x9b] sm:$0xff] %vm319_vm0, %v394_v11 }
  0x39   : > { %428 = vst.msk [vmem:[#allocation2 + $0xab] sm:$0xff] %vm319_vm0, %v395_v12  ;;  %429 = vst.msk [vmem:[#allocation2 + $0xb3] sm:$0xff] %vm319_vm0, %v396_v13 }
  0x3a   : > { %430 = vst.msk [vmem:[#allocation2 + $0xc3] sm:$0xff] %vm319_vm0, %v397_v14  ;;  %431 = vst.msk [vmem:[#allocation2 + $0xcb] sm:$0xff] %vm319_vm0, %v398_v15 }
  0x3b   : > { %432 = vst.msk [vmem:[#allocation2 + $0xdb] sm:$0xff] %vm319_vm0, %v399_v16  ;;  %433 = vst.msk [vmem:[#allocation2 + $0xe3] sm:$0xff] %vm319_vm0, %v400_v18 }
  0x3c   : > { %434 = vst.msk [vmem:[#allocation2 + $0xf3] sm:$0xff] %vm319_vm0, %v401_v19  ;;  %435 = vst.msk [vmem:[#allocation2 + $0xfb] sm:$0xff] %vm319_vm0, %v402_v20  ;;  %v648_v27 = vld [vmem:[#allocation2 + $0x4a] sm:$0xff]  ;;  %v649_v28 = vld [vmem:[#allocation2 + $0x52] sm:$0xff] }
  0x3d   : > { %436 = vst.msk [vmem:[#allocation2 + $0x10b] sm:$0xff] %vm319_vm0, %v403_v21  ;;  %437 = vst.msk [vmem:[#allocation2 + $0x113] sm:$0xff] %vm319_vm0, %v404_v22  ;;  %v650_v29 = vld [vmem:[#allocation2 + $0x62] sm:$0xff]  ;;  %v9786_v30 = vpack.c.bf16 %v648_v27, %v648_v27  ;;  %v9787_v35 = vpack.c.bf16 %v649_v28, %v649_v28  ;;  %v651_v36 = vld [vmem:[#allocation2 + $0x6a] sm:$0xff] }
  0x3e   : > { %438 = vst.msk [vmem:[#allocation2 + $0x123] sm:$0xff] %vm319_vm0, %v405_v23  ;;  %439 = vst.msk [vmem:[#allocation2 + $0x12b] sm:$0xff] %vm319_vm0, %v406_v24  ;;  %v9788_v31 = vpack.c.bf16 %v650_v29, %v650_v29  ;;  %v652_v32 = vld [vmem:[#allocation2 + $0x7a] sm:$0xff]  ;;  %v9789_v39 = vpack.c.bf16 %v651_v36, %v651_v36  ;;  %v653_v40 = vld [vmem:[#allocation2 + $0x82] sm:$0xff] }
  0x3f   : > { %440 = vst.msk [vmem:[#allocation2 + $0x13b] sm:$0xff] %vm319_vm0, %v407_v25  ;;  %441 = vst.msk [vmem:[#allocation2 + $0x143] sm:$0xff] %vm319_vm0, %v408_v26  ;;  %778 = vrot.lane.b32.xlu1 %v9786_v30, %s10852_s22  ;;  %v9790_v37 = vpack.c.bf16 %v652_v32, %v652_v32  ;;  %v654_v38 = vld [vmem:[#allocation2 + $0x92] sm:$0xff]  ;;  %v9791_v49 = vpack.c.bf16 %v653_v40, %v653_v40  ;;  %v655_v50 = vld [vmem:[#allocation2 + $0x9a] sm:$0xff] }
  0x40   : > { %442 = vst.msk [vmem:[#allocation2 + $0x153] sm:$0xff] %vm319_vm0, %v409_v33  ;;  %443 = vst.msk [vmem:[#allocation2 + $0x15b] sm:$0xff] %vm319_vm0, %v410_v34  ;;  %782 = vrot.lane.b32.xlu0 %v9788_v31, %s10852_s22  ;;  %v9792_v44 = vpack.c.bf16 %v654_v38, %v654_v38  ;;  %v656_v48 = vld [vmem:[#allocation2 + $0xaa] sm:$0xff]  ;;  %v906_v52 = vld [vmem:[#allocation2 + $0x53] sm:$0xff]  ;;  %v9793_v9 = vpack.c.bf16 %v655_v50, %v655_v50 }
  0x41   : > { %444 = vst.msk [vmem:[#allocation2 + $0x16b] sm:$0xff] %vm319_vm0, %v411_v41  ;;  %445 = vst.msk [vmem:[#allocation2 + $0x173] sm:$0xff] %vm319_vm0, %v412_v42  ;;  %v905_v51 = vld [vmem:[#allocation2 + $0x4b] sm:$0xff]  ;;  %v11187_v53 = vld [vmem:[#allocation2 + $0xc2] sm:$0xff]  ;;  %v11191_v55 = vpack.c.bf16 %v906_v52, %v906_v52  ;;  %v9794_v59 = vpack.c.bf16 %v656_v48, %v656_v48 }
  0x42   : > { %446 = vst.msk [vmem:[#allocation2 + $0x183] sm:$0xff] %vm319_vm0, %v413_v43  ;;  %447 = vst.msk [vmem:[#allocation2 + $0x18b] sm:$0xff] %vm319_vm0, %v414_v45  ;;  %v11189_v54 = vpack.c.bf16 %v905_v51, %v905_v51  ;;  %v907_v56 = vld [vmem:[#allocation2 + $0x63] sm:$0xff]  ;;  %v908_v57 = vld [vmem:[#allocation2 + $0x6b] sm:$0xff]  ;;  %v9796_v20 = vpack.c.bf16 %v11187_v53, %v11187_v53 }
  0x43   : > { %780 = vrot.lane.b32.xlu1 %v9787_v35, %s10852_s22  ;;  %448 = vst.msk [vmem:[#allocation2 + $0x19b] sm:$0xff] %vm319_vm0, %v415_v46  ;;  %449 = vst.msk [vmem:[#allocation2 + $0x1a3] sm:$0xff] %vm319_vm0, %v416_v47  ;;  %v909_v58 = vld [vmem:[#allocation2 + $0x7b] sm:$0xff]  ;;  %v11194_v60 = vpack.c.bf16 %v907_v56, %v907_v56  ;;  %v11196_v61 = vpack.c.bf16 %v908_v57, %v908_v57  ;;  %v910_v63 = vld [vmem:[#allocation2 + $0x83] sm:$0xff] }
  0x44   : > { %786 = vrot.lane.b32.xlu0 %v9790_v37, %s10852_s22  ;;  %v11198_v62 = vpack.c.bf16 %v909_v58, %v909_v58  ;;  %v911_v1 = vld [vmem:[#allocation2 + $0x93] sm:$0xff]  ;;  %v912_v2 = vld [vmem:[#allocation2 + $0x9b] sm:$0xff]  ;;  %v11200_v3 = vpack.c.bf16 %v910_v63, %v910_v63  ;;  %v913_v6 = vld [vmem:[#allocation2 + $0xab] sm:$0xff]  ;;  %613 = vst.msk [vmem:[#allocation3] sm:$0xf] %vm612_vm2, %v11189_v54 }
  0x45   : > { %v11202_v4 = vpack.c.bf16 %v911_v1, %v911_v1  ;;  %v11204_v5 = vpack.c.bf16 %v912_v2, %v912_v2  ;;  %v914_v7 = vld [vmem:[#allocation2 + $0xb3] sm:$0xff]  ;;  %v915_v8 = vld [vmem:[#allocation2 + $0xc3] sm:$0xff]  ;;  %614 = vst.msk [vmem:[#allocation3 + $0x4] sm:$0xf] %vm612_vm2, %v11191_v55  ;;  %v11211_v10 = vpack.c.bf16 %v913_v6, %v913_v6  ;;  %v916_v13 = vld [vmem:[#allocation2 + $0xcb] sm:$0xff] }
  0x46   : > { %v11213_v11 = vpack.c.bf16 %v914_v7, %v914_v7  ;;  %v11215_v12 = vpack.c.bf16 %v915_v8, %v915_v8  ;;  %v917_v14 = vld [vmem:[#allocation2 + $0xdb] sm:$0xff]  ;;  %v918_v15 = vld [vmem:[#allocation2 + $0xe3] sm:$0xff]  ;;  %615 = vst.msk [vmem:[#allocation3 + $0x8] sm:$0xf] %vm612_vm2, %v11194_v60  ;;  %616 = vst.msk [vmem:[#allocation3 + $0xc] sm:$0xf] %vm612_vm2, %v11196_v61  ;;  %v11223_v17 = vpack.c.bf16 %v916_v13, %v916_v13 }
  0x47   : > { %784 = vrot.lane.b32.xlu1 %v9789_v39, %s10852_s22  ;;  %617 = vst.msk [vmem:[#allocation3 + $0x10] sm:$0xf] %vm612_vm2, %v11198_v62  ;;  %v657_v16 = vld [vmem:[#allocation2 + $0xb2] sm:$0xff]  ;;  %v11225_v18 = vpack.c.bf16 %v917_v14, %v917_v14  ;;  %v11227_v19 = vpack.c.bf16 %v918_v15, %v918_v15  ;;  %618 = vst.msk [vmem:[#allocation3 + $0x14] sm:$0xf] %vm612_vm2, %v11200_v3  ;;  %v660_v21 = vld [vmem:[#allocation2 + $0xda] sm:$0xff] }
  0x48   : > { %790 = vrot.lane.b32.xlu0 %v9792_v44, %s10852_s22  ;;  %619 = vst.msk [vmem:[#allocation3 + $0x18] sm:$0xf] %vm612_vm2, %v11202_v4  ;;  %620 = vst.msk [vmem:[#allocation3 + $0x1c] sm:$0xf] %vm612_vm2, %v11204_v5  ;;  %v11244_v22 = vld [vmem:[#allocation2 + $0xca] sm:$0xff]  ;;  %v919_v23 = vld [vmem:[#allocation2 + $0xf3] sm:$0xff]  ;;  %v9795_v26 = vpack.c.bf16 %v657_v16, %v657_v16  ;;  %v9798_v40 = vpack.c.bf16 %v660_v21, %v660_v21 }
  0x49   : > { %621 = vst.msk [vmem:[#allocation3 + $0x20] sm:$0xf] %vm612_vm2, %v11211_v10  ;;  %622 = vst.msk [vmem:[#allocation3 + $0x24] sm:$0xf] %vm612_vm2, %v11213_v11  ;;  %v920_v24 = vld [vmem:[#allocation2 + $0xfb] sm:$0xff]  ;;  %v921_v25 = vld [vmem:[#allocation2 + $0x10b] sm:$0xff]  ;;  %v11253_v27 = vpack.c.bf16 %v919_v23, %v919_v23  ;;  %v9797_v53 = vpack.c.bf16 %v11244_v22, %v11244_v22 }
  0x4a   : > { %623 = vst.msk [vmem:[#allocation3 + $0x28] sm:$0xf] %vm612_vm2, %v11215_v12  ;;  %624 = vst.msk [vmem:[#allocation3 + $0x2c] sm:$0xf] %vm612_vm2, %v11223_v17  ;;  %v11255_v28 = vpack.c.bf16 %v920_v24, %v920_v24  ;;  %v11257_v29 = vpack.c.bf16 %v921_v25, %v921_v25  ;;  %v922_v30 = vld [vmem:[#allocation2 + $0x113] sm:$0xff]  ;;  %v923_v31 = vld [vmem:[#allocation2 + $0x123] sm:$0xff] }
  0x4b   : > { %788 = vrot.lane.b32.xlu1 %v9791_v49, %s10852_s22  ;;  %625 = vst.msk [vmem:[#allocation3 + $0x30] sm:$0xf] %vm612_vm2, %v11225_v18  ;;  %626 = vst.msk [vmem:[#allocation3 + $0x34] sm:$0xf] %vm612_vm2, %v11227_v19  ;;  %v924_v32 = vld [vmem:[#allocation2 + $0x12b] sm:$0xff]  ;;  %v11259_v34 = vpack.c.bf16 %v922_v30, %v922_v30  ;;  %v11261_v35 = vpack.c.bf16 %v923_v31, %v923_v31  ;;  %v925_v37 = vld [vmem:[#allocation2 + $0x13b] sm:$0xff] }
  0x4c   : > { %794 = vrot.lane.b32.xlu0 %v9794_v59, %s10852_s22  ;;  %v662_v33 = vld [vmem:[#allocation2 + $0xf2] sm:$0xff]  ;;  %v11263_v36 = vpack.c.bf16 %v924_v32, %v924_v32  ;;  %v926_v38 = vld [vmem:[#allocation2 + $0x143] sm:$0xff]  ;;  %v11266_v41 = vpack.c.bf16 %v925_v37, %v925_v37  ;;  %v928_v44 = vld [vmem:[#allocation2 + $0x15b] sm:$0xff]  ;;  %627 = vst.msk [vmem:[#allocation3 + $0x38] sm:$0xf] %vm612_vm2, %v11253_v27 }
  0x4d   : > { %v927_v39 = vld [vmem:[#allocation2 + $0x153] sm:$0xff]  ;;  %v11268_v42 = vpack.c.bf16 %v926_v38, %v926_v38  ;;  %v929_v45 = vld [vmem:[#allocation2 + $0x16b] sm:$0xff]  ;;  %628 = vst.msk [vmem:[#allocation3 + $0x3c] sm:$0xf] %vm612_vm2, %v11255_v28  ;;  %629 = vst.msk [vmem:[#allocation3 + $0x40] sm:$0xf] %vm612_vm2, %v11257_v29  ;;  %v11278_v47 = vpack.c.bf16 %v928_v44, %v928_v44  ;;  %v9800_v2 = vpack.c.bf16 %v662_v33, %v662_v33 }
  0x4e   : > { %v11270_v43 = vpack.c.bf16 %v927_v39, %v927_v39  ;;  %v930_v46 = vld [vmem:[#allocation2 + $0x173] sm:$0xff]  ;;  %v11280_v48 = vpack.c.bf16 %v929_v45, %v929_v45  ;;  %v931_v50 = vld [vmem:[#allocation2 + $0x183] sm:$0xff]  ;;  %v932_v51 = vld [vmem:[#allocation2 + $0x18b] sm:$0xff]  ;;  %630 = vst.msk [vmem:[#allocation3 + $0x44] sm:$0xf] %vm612_vm2, %v11259_v34 }
  0x4f   : > { %792 = vrot.lane.b32.xlu1 %v9793_v9, %s10852_s22  ;;  %v11282_v49 = vpack.c.bf16 %v930_v46, %v930_v46  ;;  %v933_v52 = vld [vmem:[#allocation2 + $0x19b] sm:$0xff]  ;;  %631 = vst.msk [vmem:[#allocation3 + $0x48] sm:$0xf] %vm612_vm2, %v11261_v35  ;;  %632 = vst.msk [vmem:[#allocation3 + $0x4c] sm:$0xf] %vm612_vm2, %v11263_v36  ;;  %v11293_v56 = vpack.c.bf16 %v931_v50, %v931_v50  ;;  %v11295_v57 = vpack.c.bf16 %v932_v51, %v932_v51  ;;  %v934_v59 = vld [vmem:[#allocation2 + $0x1a3] sm:$0xff] }
  0x50   : > { %798 = vrot.lane.b32.xlu0 %v9796_v20, %s10852_s22  ;;  %v11297_v58 = vpack.c.bf16 %v933_v52, %v933_v52  ;;  %633 = vst.msk [vmem:[#allocation3 + $0x50] sm:$0xf] %vm612_vm2, %v11266_v41  ;;  %634 = vst.msk [vmem:[#allocation3 + $0x54] sm:$0xf] %vm612_vm2, %v11268_v42  ;;  %v661_v63 = vld [vmem:[#allocation2 + $0xe2] sm:$0xff]  ;;  %v11305_v1 = vpack.c.bf16 %v934_v59, %v934_v59  ;;  %v664_v6 = vld [vmem:[#allocation2 + $0x10a] sm:$0xff] }
  0x51   : > { %635 = vst.msk [vmem:[#allocation3 + $0x58] sm:$0xf] %vm612_vm2, %v11270_v43  ;;  %636 = vst.msk [vmem:[#allocation3 + $0x5c] sm:$0xf] %vm612_vm2, %v11278_v47  ;;  %v9799_v7 = vpack.c.bf16 %v661_v63, %v661_v63  ;;  %v663_v8 = vld [vmem:[#allocation2 + $0xfa] sm:$0xff]  ;;  %v9802_v9 = vpack.c.bf16 %v664_v6, %v664_v6  ;;  %v666_v13 = vld [vmem:[#allocation2 + $0x122] sm:$0xff] }
  0x52   : > { %637 = vst.msk [vmem:[#allocation3 + $0x60] sm:$0xf] %vm612_vm2, %v11280_v48  ;;  %638 = vst.msk [vmem:[#allocation3 + $0x64] sm:$0xf] %vm612_vm2, %v11282_v49  ;;  %v9801_v14 = vpack.c.bf16 %v663_v8, %v663_v8  ;;  %v665_v15 = vld [vmem:[#allocation2 + $0x112] sm:$0xff]  ;;  %v9804_v16 = vpack.c.bf16 %v666_v13, %v666_v13  ;;  %v668_v20 = vld [vmem:[#allocation2 + $0x13a] sm:$0xff] }
  0x53   : > { %796 = vrot.lane.b32.xlu1 %v9795_v26, %s10852_s22  ;;  %639 = vst.msk [vmem:[#allocation3 + $0x68] sm:$0xf] %vm612_vm2, %v11293_v56  ;;  %640 = vst.msk [vmem:[#allocation3 + $0x6c] sm:$0xf] %vm612_vm2, %v11295_v57  ;;  %v9803_v21 = vpack.c.bf16 %v665_v15, %v665_v15  ;;  %v667_v22 = vld [vmem:[#allocation2 + $0x12a] sm:$0xff]  ;;  %v9806_v23 = vpack.c.bf16 %v668_v20, %v668_v20  ;;  %v670_v24 = vld [vmem:[#allocation2 + $0x152] sm:$0xff] }
  0x54   : > { %802 = vrot.lane.b32.xlu0 %v9798_v40, %s10852_s22  ;;  %641 = vst.msk [vmem:[#allocation3 + $0x70] sm:$0xf] %vm612_vm2, %v11297_v58  ;;  %642 = vst.msk [vmem:[#allocation3 + $0x74] sm:$0xf] %vm612_vm2, %v11305_v1  ;;  %v417_v25 = vld [vmem:[%s11118_s21 + $0xf0] sm:$0xff]  ;;  %v418_v26 = vld [vmem:[%s11118_s21 + $0xf8] sm:$0xff]  ;;  %v9805_v30 = vpack.c.bf16 %v667_v22, %v667_v22  ;;  %v9808_v32 = vpack.c.bf16 %v670_v24, %v670_v24 }
  0x55   : > { %450 = vst.msk [vmem:[#allocation2 + $0x1b3] sm:$0xff] %vm319_vm0, %v417_v25  ;;  %451 = vst.msk [vmem:[#allocation2 + $0x1bb] sm:$0xff] %vm319_vm0, %v418_v26  ;;  %v669_v31 = vld [vmem:[#allocation2 + $0x142] sm:$0xff]  ;;  %v672_v33 = vld [vmem:[#allocation2 + $0x16a] sm:$0xff]  ;;  %s14540_s21 = smov 48  }
  0x56   : > { %v9807_v37 = vpack.c.bf16 %v669_v31, %v669_v31  ;;  %v671_v38 = vld [vmem:[#allocation2 + $0x15a] sm:$0xff]  ;;  %v9810_v39 = vpack.c.bf16 %v672_v33, %v672_v33  ;;  %v674_v40 = vld [vmem:[#allocation2 + $0x182] sm:$0xff]  ;;  %v673_v52 = vld [vmem:[#allocation2 + $0x172] sm:$0xff] }
  0x57   : > { %800 = vrot.lane.b32.xlu1 %v9797_v53, %s10852_s22  ;;  %v9809_v46 = vpack.c.bf16 %v671_v38, %v671_v38  ;;  %v9812_v53 = vpack.c.bf16 %v674_v40, %v674_v40  ;;  %v676_v59 = vld [vmem:[#allocation2 + $0x19a] sm:$0xff]  ;;  %v9811_v63 = vpack.c.bf16 %v673_v52, %v673_v52  ;;  %v1170_v20 = vld [vmem:[#allocation2 + $0xac] sm:$0xff]  ;;  %v1172_v26 = vld [vmem:[#allocation2 + $0xc4] sm:$0xff] }
  0x58   : > { %806 = vrot.lane.b32.xlu0 %v9800_v2, %s10852_s22  ;;  %v675_v2 = vld [vmem:[#allocation2 + $0x18a] sm:$0xff]  ;;  %v9814_v6 = vpack.c.bf16 %v676_v59, %v676_v59  ;;  %v904_v15 = vld [vmem:[#allocation2 + $0x3b] sm:$0xff]  ;;  %v11450_v25 = vpack.c.bf16 %v1170_v20, %v1170_v20 }
  0x59   : > { %v9813_v8 = vpack.c.bf16 %v675_v2, %v675_v2  ;;  %v1174_v38 = vld [vmem:[#allocation2 + $0xdc] sm:$0xff]  ;;  %v1178_v2 = vld [vmem:[#allocation2 + $0x10c] sm:$0xff]  ;;  %v1187_v20 = vld [vmem:[#allocation2 + $0x174] sm:$0xff] }
  0x5a   : > { %v1446_v0 = vld [vmem:[#allocation2 + $0x1a2] sm:$0xff] }
  0x5b   : > { %804 = vrot.lane.b32.xlu1 %v9799_v7, %s10852_s22  ;;  %v903_v7 = vld [vmem:[#allocation2 + $0x33] sm:$0xff] }
  0x5c   : > { %810 = vrot.lane.b32.xlu0 %v9802_v9, %s10852_s22  ;;  %v482_v44 = vld [vmem:[#allocation2 + $0x1b3] sm:$0xff]  ;;  %v483_v45 = vld [vmem:[#allocation2 + $0x1bb] sm:$0xff]  ;;  %v9816_v13 = vpack.c.bf16 %v903_v7, %v903_v7 }
  0x5d   : > { %v9782_v50 = vpack.c.bf16 %v482_v44, %v482_v44  ;;  %v9783_v51 = vpack.c.bf16 %v483_v45, %v483_v45  ;;  %v677_v9 = vld [vmem:[#allocation2 + $0x1a2] sm:$0xff]  ;;  %v1173_v44 = vld [vmem:[#allocation2 + $0xcc] sm:$0xff] }
  0x5f   : > { %808 = vrot.lane.b32.xlu1 %v9801_v14, %s10852_s22  ;;  %643 = vst.msk [vmem:[#allocation3 + $0x78] sm:$0xf] %vm612_vm2, %v9782_v50  ;;  %644 = vst.msk [vmem:[#allocation3 + $0x7c] sm:$0xf] %vm612_vm2, %v9783_v51  ;;  %v9815_v14 = vpack.c.bf16 %v677_v9, %v677_v9  ;;  %v1176_v50 = vld [vmem:[#allocation2 + $0xf4] sm:$0xff]  ;;  %v11475_v51 = vpack.c.bf16 %v1173_v44, %v1173_v44  ;;  %vm4471_vm2 = vcmask 519648  }
  0x60   : > { %814 = vrot.lane.b32.xlu0 %v9804_v16, %s10852_s22  ;;  %v9817_v16 = vpack.c.bf16 %v904_v15, %v904_v15 }
  0x63   : > { %812 = vrot.lane.b32.xlu1 %v9803_v21, %s10852_s22 }
  0x64   : > { %818 = vrot.lane.b32.xlu0 %v9806_v23, %s10852_s22  ;;  %v1169_v23 = vld [vmem:[#allocation2 + $0x9c] sm:$0xff] }
  0x67   : > { %816 = vrot.lane.b32.xlu1 %v9805_v30, %s10852_s22  ;;  %v11455_v30 = vpack.c.bf16 %v1169_v23, %v1169_v23 }
  0x68   : > { %822 = vrot.lane.b32.xlu0 %v9808_v32, %s10852_s22  ;;  %v1171_v32 = vld [vmem:[#allocation2 + $0xb4] sm:$0xff] }
  0x6b   : > { %820 = vrot.lane.b32.xlu1 %v9807_v37, %s10852_s22  ;;  %v11460_v37 = vpack.c.bf16 %v1172_v26, %v1172_v26  ;;  %v11545_v26 = vpack.c.bf16 %v1187_v20, %v1187_v20 }
  0x6c   : > { %826 = vrot.lane.b32.xlu0 %v9810_v39, %s10852_s22  ;;  %v11465_v39 = vpack.c.bf16 %v1171_v32, %v1171_v32  ;;  %v1189_v32 = vld [vmem:[#allocation2 + $0x18c] sm:$0xff] }
  0x6d   : > { %v11555_v44 = vpack.c.bf16 %v1189_v32, %v1189_v32  ;;  %v1426_v32 = vld [vmem:[#allocation2 + $0xb2] sm:$0xff] }
  0x6f   : > { %824 = vrot.lane.b32.xlu1 %v9809_v46, %s10852_s22  ;;  %v11470_v46 = vpack.c.bf16 %v1174_v38, %v1174_v38 }
  0x70   : > { %830 = vrot.lane.b32.xlu0 %v9812_v53, %s10852_s22  ;;  %v1175_v53 = vld [vmem:[#allocation2 + $0xe4] sm:$0xff] }
  0x73   : > { %828 = vrot.lane.b32.xlu1 %v9811_v63, %s10852_s22  ;;  %v11480_v63 = vpack.c.bf16 %v1176_v50, %v1176_v50  ;;  %v1191_v50 = vld [vmem:[#allocation2 + $0x1a4] sm:$0xff] }
  0x74   : > { %834 = vrot.lane.b32.xlu0 %v9814_v6, %s10852_s22  ;;  %v11485_v6 = vpack.c.bf16 %v1175_v53, %v1175_v53 }
  0x77   : > { %832 = vrot.lane.b32.xlu1 %v9813_v8, %s10852_s22  ;;  %v1177_v8 = vld [vmem:[#allocation2 + $0xfc] sm:$0xff] }
  0x78   : > { %1031 = vrot.lane.b32.xlu0 %v9816_v13, %s14550_s23  ;;  %v11490_v13 = vpack.c.bf16 %v1178_v2, %v1178_v2  ;;  %v11495_v15 = vpack.c.bf16 %v1177_v8, %v1177_v8  ;;  %v11563_v2 = vpack.c.bf16 %v1191_v50, %v1191_v50  ;;  %v1418_v8 = vld [vmem:[#allocation2 + $0x52] sm:$0xff]  ;;  %v11609_v50 = vpack.c.bf16 %v1426_v32, %v1426_v32 }
  0x7b   : > { %836 = vrot.lane.b32.xlu1 %v9815_v14, %s10852_s22  ;;  %v1180_v14 = vld [vmem:[#allocation2 + $0x124] sm:$0xff]  ;;  %s10864_s22 = smov 52  }
  0x7c   : > { %1035 = vrot.lane.b32.xlu0 %v11189_v54, %s14550_s23 }
  0x7f   : > { %1033 = vrot.lane.b32.xlu1 %v9817_v16, %s14550_s23 }
  0x80   : > { %1039 = vrot.lane.b32.xlu0 %v11194_v60, %s14550_s23 }
  0x83   : > { %1037 = vrot.lane.b32.xlu1 %v11191_v55, %s14550_s23 }
  0x84   : > { %1043 = vrot.lane.b32.xlu0 %v11198_v62, %s14550_s23 }
  0x87   : > { %1041 = vrot.lane.b32.xlu1 %v11196_v61, %s14550_s23  ;;  %v1160_v61 = vld [vmem:[#allocation2 + $0x34] sm:$0xff] }
  0x88   : > { %1047 = vrot.lane.b32.xlu0 %v11202_v4, %s14550_s23  ;;  %v9848_v4 = vpack.c.bf16 %v1160_v61, %v1160_v61  ;;  %v1182_v61 = vld [vmem:[#allocation2 + $0x13c] sm:$0xff] }
  0x8b   : > { %1045 = vrot.lane.b32.xlu1 %v11200_v3, %s14550_s23 }
  0x8c   : > { %1051 = vrot.lane.b32.xlu0 %v11211_v10, %s14550_s23 }
  0x8f   : > { %1049 = vrot.lane.b32.xlu1 %v11204_v5, %s14550_s23  ;;  %v1162_v5 = vld [vmem:[#allocation2 + $0x4c] sm:$0xff] }
  0x90   : > { %1055 = vrot.lane.b32.xlu0 %v11215_v12, %s14550_s23 }
  0x91   : > { %v775_v54 = vpop.permute.xlu0 %774 }
  0x92   : > { %871 = vst.msk [vmem:[#allocation3] sm:$0xf] %vm870_vm3, %v775_v54  ;;  %v1179_v54 = vld [vmem:[#allocation2 + $0x114] sm:$0xff] }
  0x93   : > { %1053 = vrot.lane.b32.xlu1 %v11213_v11, %s14550_s23  ;;  %v1161_v11 = vld [vmem:[#allocation2 + $0x3c] sm:$0xff] }
  0x94   : > { %1059 = vrot.lane.b32.xlu0 %v11225_v18, %s14550_s23  ;;  %v1164_v18 = vld [vmem:[#allocation2 + $0x64] sm:$0xff] }
  0x97   : > { %1057 = vrot.lane.b32.xlu1 %v11223_v17, %s14550_s23  ;;  %v11413_v17 = vpack.c.bf16 %v1162_v5, %v1162_v5 }
  0x98   : > { %1063 = vrot.lane.b32.xlu0 %v11253_v27, %s14550_s23 }
  0x9b   : > { %1061 = vrot.lane.b32.xlu1 %v11227_v19, %s14550_s23  ;;  %v9849_v19 = vpack.c.bf16 %v1161_v11, %v1161_v11  ;;  %v1184_v11 = vld [vmem:[#allocation2 + $0x154] sm:$0xff] }
  0x9c   : > { %1067 = vrot.lane.b32.xlu0 %v11257_v29, %s14550_s23 }
  0x9f   : > { %1065 = vrot.lane.b32.xlu1 %v11255_v28, %s14550_s23  ;;  %v1163_v28 = vld [vmem:[#allocation2 + $0x54] sm:$0xff] }
  0xa0   : > { %1071 = vrot.lane.b32.xlu0 %v11261_v35, %s14550_s23  ;;  %v1166_v35 = vld [vmem:[#allocation2 + $0x7c] sm:$0xff] }
  0xa3   : > { %1069 = vrot.lane.b32.xlu1 %v11259_v34, %s14550_s23  ;;  %v11421_v34 = vpack.c.bf16 %v1164_v18, %v1164_v18 }
  0xa4   : > { %1075 = vrot.lane.b32.xlu0 %v11266_v41, %s14550_s23 }
  0xa6   : > { %v777_v55 = vpop.permute.xlu0 %776 }
  0xa7   : > { %1073 = vrot.lane.b32.xlu1 %v11263_v36, %s14550_s23  ;;  %872 = vst.msk [vmem:[#allocation3 + $0x4] sm:$0xf] %vm870_vm3, %v777_v55  ;;  %v11425_v36 = vpack.c.bf16 %v1163_v28, %v1163_v28  ;;  %v11520_v28 = vpack.c.bf16 %v1184_v11, %v1184_v11 }
  0xa8   : > { %1079 = vrot.lane.b32.xlu0 %v11270_v43, %s14550_s23 }
  0xab   : > { %1077 = vrot.lane.b32.xlu1 %v11268_v42, %s14550_s23  ;;  %v1165_v42 = vld [vmem:[#allocation2 + $0x6c] sm:$0xff] }
  0xac   : > { %1083 = vrot.lane.b32.xlu0 %v11280_v48, %s14550_s23  ;;  %v1168_v48 = vld [vmem:[#allocation2 + $0x94] sm:$0xff] }
  0xaf   : > { %1081 = vrot.lane.b32.xlu1 %v11278_v47, %s14550_s23  ;;  %v11430_v47 = vpack.c.bf16 %v1166_v35, %v1166_v35 }
  0xb0   : > { %1087 = vrot.lane.b32.xlu0 %v11293_v56, %s14550_s23 }
  0xb1   : > { %v779_v60 = vpop.permute.xlu1 %778 }
  0xb2   : > { %873 = vst.msk [vmem:[#allocation3 + $0x8] sm:$0xf] %vm870_vm3, %v779_v60  ;;  %v783_v62 = vpop.permute.xlu0 %782  ;;  %v11500_v60 = vpack.c.bf16 %v1180_v14, %v1180_v14 }
  0xb3   : > { %1085 = vrot.lane.b32.xlu1 %v11282_v49, %s14550_s23  ;;  %875 = vst.msk [vmem:[#allocation3 + $0x10] sm:$0xf] %vm870_vm3, %v783_v62  ;;  %v11435_v49 = vpack.c.bf16 %v1165_v42, %v1165_v42  ;;  %v11505_v62 = vpack.c.bf16 %v1179_v54, %v1179_v54  ;;  %v1185_v42 = vld [vmem:[#allocation2 + $0x15c] sm:$0xff]  ;;  %v9881_v54 = vpack.c.bf16 %v1418_v8, %v1418_v8  ;;  %v1431_v8 = vld [vmem:[#allocation2 + $0xf2] sm:$0xff] }
  0xb4   : > { %1091 = vrot.lane.b32.xlu0 %v11297_v58, %s14550_s23 }
  0xb5   : > { %v781_v3 = vpop.permute.xlu1 %780 }
  0xb6   : > { %874 = vst.msk [vmem:[#allocation3 + $0xc] sm:$0xf] %vm870_vm3, %v781_v3  ;;  %v787_v10 = vpop.permute.xlu0 %786 }
  0xb7   : > { %1089 = vrot.lane.b32.xlu1 %v11295_v57, %s14550_s23  ;;  %877 = vst.msk [vmem:[#allocation3 + $0x18] sm:$0xf] %vm870_vm3, %v787_v10  ;;  %v1167_v57 = vld [vmem:[#allocation2 + $0x84] sm:$0xff]  ;;  %v11510_v10 = vpack.c.bf16 %v1182_v61, %v1182_v61 }
  0xb8   : > { %1288 = vrot.lane.b32.xlu0 %v9848_v4, %s10854_s24  ;;  %v11445_v21 = vpack.c.bf16 %v1167_v57, %v1167_v57  ;;  %v1181_v4 = vld [vmem:[#allocation2 + $0x12c] sm:$0xff]  ;;  %v11535_v57 = vpack.c.bf16 %v1185_v42, %v1185_v42 }
  0xb9   : > { %v785_v12 = vpop.permute.xlu1 %784  ;;  %v1420_v61 = vld [vmem:[#allocation2 + $0x6a] sm:$0xff] }
  0xba   : > { %876 = vst.msk [vmem:[#allocation3 + $0x14] sm:$0xf] %vm870_vm3, %v785_v12  ;;  %v791_v27 = vpop.permute.xlu0 %790  ;;  %v11515_v12 = vpack.c.bf16 %v1181_v4, %v1181_v4  ;;  %v11579_v11 = vpack.c.bf16 %v1420_v61, %v1420_v61  ;;  %v11624_v61 = vpack.c.bf16 %v1431_v8, %v1431_v8 }
  0xbb   : > { %1093 = vrot.lane.b32.xlu1 %v11305_v1, %s14550_s23  ;;  %879 = vst.msk [vmem:[#allocation3 + $0x20] sm:$0xf] %vm870_vm3, %v791_v27  ;;  %v11440_v1 = vpack.c.bf16 %v1168_v48, %v1168_v48  ;;  %s14580_s23 = smov 84  }
  0xbc   : > { %1292 = vrot.lane.b32.xlu0 %v11413_v17, %s10854_s24 }
  0xbd   : > { %v789_v29 = vpop.permute.xlu1 %788 }
  0xbe   : > { %878 = vst.msk [vmem:[#allocation3 + $0x1c] sm:$0xf] %vm870_vm3, %v789_v29  ;;  %v795_v41 = vpop.permute.xlu0 %794  ;;  %v1186_v29 = vld [vmem:[#allocation2 + $0x16c] sm:$0xff] }
  0xbf   : > { %1290 = vrot.lane.b32.xlu1 %v9849_v19, %s10854_s24  ;;  %881 = vst.msk [vmem:[#allocation3 + $0x28] sm:$0xf] %vm870_vm3, %v795_v41  ;;  %v1183_v19 = vld [vmem:[#allocation2 + $0x144] sm:$0xff]  ;;  %v11530_v48 = vpack.c.bf16 %v1186_v29, %v1186_v29 }
  0xc0   : > { %1296 = vrot.lane.b32.xlu0 %v11421_v34, %s10854_s24  ;;  %v11525_v35 = vpack.c.bf16 %v1183_v19, %v1183_v19  ;;  %v1422_v19 = vld [vmem:[#allocation2 + $0x82] sm:$0xff] }
  0xc1   : > { %v793_v43 = vpop.permute.xlu1 %792  ;;  %v11589_v42 = vpack.c.bf16 %v1422_v19, %v1422_v19  ;;  %v1432_v19 = vld [vmem:[#allocation2 + $0xfa] sm:$0xff] }
  0xc2   : > { %880 = vst.msk [vmem:[#allocation3 + $0x24] sm:$0xf] %vm870_vm3, %v793_v43  ;;  %v799_v56 = vpop.permute.xlu0 %798 }
  0xc3   : > { %1294 = vrot.lane.b32.xlu1 %v11425_v36, %s10854_s24  ;;  %883 = vst.msk [vmem:[#allocation3 + $0x30] sm:$0xf] %vm870_vm3, %v799_v56  ;;  %v1188_v56 = vld [vmem:[#allocation2 + $0x184] sm:$0xff] }
  0xc4   : > { %1300 = vrot.lane.b32.xlu0 %v11430_v47, %s10854_s24  ;;  %v11540_v23 = vpack.c.bf16 %v1188_v56, %v1188_v56  ;;  %v1424_v56 = vld [vmem:[#allocation2 + $0x9a] sm:$0xff] }
  0xc5   : > { %v797_v58 = vpop.permute.xlu1 %796 }
  0xc6   : > { %882 = vst.msk [vmem:[#allocation3 + $0x2c] sm:$0xf] %vm870_vm3, %v797_v58  ;;  %v803_v22 = vpop.permute.xlu0 %802 }
  0xc7   : > { %1298 = vrot.lane.b32.xlu1 %v11435_v49, %s10854_s24  ;;  %885 = vst.msk [vmem:[#allocation3 + $0x38] sm:$0xf] %vm870_vm3, %v803_v22 }
  0xc8   : > { %1304 = vrot.lane.b32.xlu0 %v11440_v1, %s10854_s24 }
  0xc9   : > { %v801_v24 = vpop.permute.xlu1 %800 }
  0xca   : > { %884 = vst.msk [vmem:[#allocation3 + $0x34] sm:$0xf] %vm870_vm3, %v801_v24  ;;  %v807_v31 = vpop.permute.xlu0 %806  ;;  %v1190_v24 = vld [vmem:[#allocation2 + $0x19c] sm:$0xff] }
  0xcb   : > { %1302 = vrot.lane.b32.xlu1 %v11445_v21, %s10854_s24  ;;  %887 = vst.msk [vmem:[#allocation3 + $0x40] sm:$0xf] %vm870_vm3, %v807_v31  ;;  %v11550_v38 = vpack.c.bf16 %v1190_v24, %v1190_v24  ;;  %v11599_v24 = vpack.c.bf16 %v1424_v56, %v1424_v56  ;;  %v11639_v56 = vpack.c.bf16 %v1432_v19, %v1432_v19 }
  0xcc   : > { %1308 = vrot.lane.b32.xlu0 %v11450_v25, %s10854_s24 }
  0xcd   : > { %v805_v33 = vpop.permute.xlu1 %804 }
  0xce   : > { %886 = vst.msk [vmem:[#allocation3 + $0x3c] sm:$0xf] %vm870_vm3, %v805_v33  ;;  %v811_v40 = vpop.permute.xlu0 %810 }
  0xcf   : > { %1306 = vrot.lane.b32.xlu1 %v11455_v30, %s10854_s24  ;;  %889 = vst.msk [vmem:[#allocation3 + $0x48] sm:$0xf] %vm870_vm3, %v811_v40  ;;  %v1417_v40 = vld [vmem:[#allocation2 + $0x4a] sm:$0xff] }
  0xd0   : > { %1312 = vrot.lane.b32.xlu0 %v11460_v37, %s10854_s24  ;;  %v9880_v53 = vpack.c.bf16 %v1417_v40, %v1417_v40 }
  0xd1   : > { %v809_v45 = vpop.permute.xlu1 %808 }
  0xd2   : > { %888 = vst.msk [vmem:[#allocation3 + $0x44] sm:$0xf] %vm870_vm3, %v809_v45  ;;  %v815_v52 = vpop.permute.xlu0 %814 }
  0xd3   : > { %1310 = vrot.lane.b32.xlu1 %v11465_v39, %s10854_s24  ;;  %891 = vst.msk [vmem:[#allocation3 + $0x50] sm:$0xf] %vm870_vm3, %v815_v52 }
  0xd4   : > { %1316 = vrot.lane.b32.xlu0 %v11470_v46, %s10854_s24 }
  0xd5   : > { %v813_v59 = vpop.permute.xlu1 %812 }
  0xd6   : > { %890 = vst.msk [vmem:[#allocation3 + $0x4c] sm:$0xf] %vm870_vm3, %v813_v59  ;;  %v819_v7 = vpop.permute.xlu0 %818  ;;  %v1419_v59 = vld [vmem:[#allocation2 + $0x62] sm:$0xff] }
  0xd7   : > { %1314 = vrot.lane.b32.xlu1 %v11475_v51, %s10854_s24  ;;  %893 = vst.msk [vmem:[#allocation3 + $0x58] sm:$0xf] %vm870_vm3, %v819_v7  ;;  %v11567_v14 = vpack.c.bf16 %v1419_v59, %v1419_v59 }
  0xd8   : > { %1320 = vrot.lane.b32.xlu0 %v11480_v63, %s10854_s24 }
  0xd9   : > { %v817_v9 = vpop.permute.xlu1 %816 }
  0xda   : > { %892 = vst.msk [vmem:[#allocation3 + $0x54] sm:$0xf] %vm870_vm3, %v817_v9  ;;  %v823_v16 = vpop.permute.xlu0 %822 }
  0xdb   : > { %1318 = vrot.lane.b32.xlu1 %v11485_v6, %s10854_s24  ;;  %895 = vst.msk [vmem:[#allocation3 + $0x60] sm:$0xf] %vm870_vm3, %v823_v16  ;;  %v1421_v16 = vld [vmem:[#allocation2 + $0x7a] sm:$0xff] }
  0xdc   : > { %1324 = vrot.lane.b32.xlu0 %v11490_v13, %s10854_s24  ;;  %v11575_v4 = vpack.c.bf16 %v1421_v16, %v1421_v16 }
  0xdd   : > { %v821_v55 = vpop.permute.xlu1 %820 }
  0xde   : > { %894 = vst.msk [vmem:[#allocation3 + $0x5c] sm:$0xf] %vm870_vm3, %v821_v55  ;;  %v827_v3 = vpop.permute.xlu0 %826 }
  0xdf   : > { %1322 = vrot.lane.b32.xlu1 %v11495_v15, %s10854_s24  ;;  %897 = vst.msk [vmem:[#allocation3 + $0x68] sm:$0xf] %vm870_vm3, %v827_v3 }
  0xe0   : > { %1328 = vrot.lane.b32.xlu0 %v11500_v60, %s10854_s24 }
  0xe1   : > { %v825_v5 = vpop.permute.xlu1 %824 }
  0xe2   : > { %896 = vst.msk [vmem:[#allocation3 + $0x64] sm:$0xf] %vm870_vm3, %v825_v5  ;;  %v831_v18 = vpop.permute.xlu0 %830  ;;  %v1423_v5 = vld [vmem:[#allocation2 + $0x92] sm:$0xff] }
  0xe3   : > { %1326 = vrot.lane.b32.xlu1 %v11505_v62, %s10854_s24  ;;  %899 = vst.msk [vmem:[#allocation3 + $0x70] sm:$0xf] %vm870_vm3, %v831_v18  ;;  %v11584_v29 = vpack.c.bf16 %v1423_v5, %v1423_v5 }
  0xe4   : > { %1332 = vrot.lane.b32.xlu0 %v11510_v10, %s10854_s24 }
  0xe5   : > { %v829_v27 = vpop.permute.xlu1 %828 }
  0xe6   : > { %898 = vst.msk [vmem:[#allocation3 + $0x6c] sm:$0xf] %vm870_vm3, %v829_v27  ;;  %v835_v41 = vpop.permute.xlu0 %834 }
  0xe7   : > { %1330 = vrot.lane.b32.xlu1 %v11515_v12, %s10854_s24  ;;  %901 = vst.msk [vmem:[#allocation3 + $0x78] sm:$0xf] %vm870_vm3, %v835_v41  ;;  %v1425_v41 = vld [vmem:[#allocation2 + $0xaa] sm:$0xff] }
  0xe8   : > { %1336 = vrot.lane.b32.xlu0 %v11520_v28, %s10854_s24  ;;  %v11594_v20 = vpack.c.bf16 %v1425_v41, %v1425_v41 }
  0xe9   : > { %v833_v43 = vpop.permute.xlu1 %832 }
  0xea   : > { %900 = vst.msk [vmem:[#allocation3 + $0x74] sm:$0xf] %vm870_vm3, %v833_v43  ;;  %v1032_v58 = vpop.permute.xlu0 %1031 }
  0xeb   : > { %1334 = vrot.lane.b32.xlu1 %v11525_v35, %s10854_s24  ;;  %1128 = vst.msk [vmem:[#allocation3] sm:$0xf] %vm1127_vm4, %v1032_v58 }
  0xec   : > { %1340 = vrot.lane.b32.xlu0 %v11530_v48, %s10854_s24 }
  0xed   : > { %v837_v22 = vpop.permute.xlu1 %836 }
  0xee   : > { %902 = vst.msk [vmem:[#allocation3 + $0x7c] sm:$0xf] %vm870_vm3, %v837_v22  ;;  %v1036_v31 = vpop.permute.xlu0 %1035  ;;  %v1427_v22 = vld [vmem:[#allocation2 + $0xc2] sm:$0xff]  ;;  %vm7038_vm3 = vcmask 1041408  }
  0xef   : > { %1338 = vrot.lane.b32.xlu1 %v11535_v57, %s10854_s24  ;;  %1130 = vst.msk [vmem:[#allocation3 + $0x8] sm:$0xf] %vm1127_vm4, %v1036_v31  ;;  %v11604_v40 = vpack.c.bf16 %v1427_v22, %v1427_v22  ;;  %v1434_v22 = vld [vmem:[#allocation2 + $0x112] sm:$0xff] }
  0xf0   : > { %1344 = vrot.lane.b32.xlu0 %v11540_v23, %s10854_s24 }
  0xf1   : > { %v1034_v33 = vpop.permute.xlu1 %1033 }
  0xf2   : > { %1129 = vst.msk [vmem:[#allocation3 + $0x4] sm:$0xf] %vm1127_vm4, %v1034_v33  ;;  %v1040_v45 = vpop.permute.xlu0 %1039 }
  0xf3   : > { %1342 = vrot.lane.b32.xlu1 %v11545_v26, %s10854_s24  ;;  %1132 = vst.msk [vmem:[#allocation3 + $0x10] sm:$0xf] %vm1127_vm4, %v1040_v45  ;;  %v1429_v45 = vld [vmem:[#allocation2 + $0xda] sm:$0xff] }
  0xf4   : > { %1348 = vrot.lane.b32.xlu0 %v11550_v38, %s10854_s24 }
  0xf5   : > { %v1038_v52 = vpop.permute.xlu1 %1037 }
  0xf6   : > { %1131 = vst.msk [vmem:[#allocation3 + $0xc] sm:$0xf] %vm1127_vm4, %v1038_v52  ;;  %v1044_v7 = vpop.permute.xlu0 %1043 }
  0xf7   : > { %1346 = vrot.lane.b32.xlu1 %v11555_v44, %s10854_s24  ;;  %1134 = vst.msk [vmem:[#allocation3 + $0x18] sm:$0xf] %vm1127_vm4, %v1044_v7  ;;  %v11614_v7 = vpack.c.bf16 %v1429_v45, %v1429_v45  ;;  %v11649_v45 = vpack.c.bf16 %v1434_v22, %v1434_v22  ;;  %v1440_v22 = vld [vmem:[#allocation2 + $0x15a] sm:$0xff] }
  0xf8   : > { %1545 = vrot.lane.b32.xlu0 %v9880_v53, %s14548_s25  ;;  %v1428_v53 = vld [vmem:[#allocation2 + $0xca] sm:$0xff] }
  0xf9   : > { %v1042_v9 = vpop.permute.xlu1 %1041 }
  0xfa   : > { %1133 = vst.msk [vmem:[#allocation3 + $0x14] sm:$0xf] %vm1127_vm4, %v1042_v9  ;;  %v1048_v55 = vpop.permute.xlu0 %1047  ;;  %v11619_v9 = vpack.c.bf16 %v1428_v53, %v1428_v53  ;;  %v1436_v53 = vld [vmem:[#allocation2 + $0x12a] sm:$0xff] }
  0xfb   : > { %1350 = vrot.lane.b32.xlu1 %v11563_v2, %s10854_s24  ;;  %1136 = vst.msk [vmem:[#allocation3 + $0x20] sm:$0xf] %vm1127_vm4, %v1048_v55  ;;  %s14538_s24 = smov 56  }
  0xfc   : > { %1549 = vrot.lane.b32.xlu0 %v11567_v14, %s14548_s25 }
  0xfd   : > { %v1046_v3 = vpop.permute.xlu1 %1045 }
  0xfe   : > { %1135 = vst.msk [vmem:[#allocation3 + $0x1c] sm:$0xf] %vm1127_vm4, %v1046_v3  ;;  %v1052_v18 = vpop.permute.xlu0 %1051  ;;  %v1433_v3 = vld [vmem:[#allocation2 + $0x10a] sm:$0xff] }
  0xff   : > { %1547 = vrot.lane.b32.xlu1 %v9881_v54, %s14548_s25  ;;  %1138 = vst.msk [vmem:[#allocation3 + $0x28] sm:$0xf] %vm1127_vm4, %v1052_v18  ;;  %v1430_v54 = vld [vmem:[#allocation2 + $0xe2] sm:$0xff]  ;;  %v11634_v41 = vpack.c.bf16 %v1433_v3, %v1433_v3 }
 0x100   : > { %1553 = vrot.lane.b32.xlu0 %v11575_v4, %s14548_s25  ;;  %v11629_v5 = vpack.c.bf16 %v1430_v54, %v1430_v54  ;;  %v11659_v54 = vpack.c.bf16 %v1436_v53, %v1436_v53  ;;  %v1438_v3 = vld [vmem:[#allocation2 + $0x142] sm:$0xff]  ;;  %v11679_v53 = vpack.c.bf16 %v1440_v22, %v1440_v22  ;;  %v1444_v22 = vld [vmem:[#allocation2 + $0x18a] sm:$0xff] }
 0x101   : > { %v1050_v27 = vpop.permute.xlu1 %1049 }
 0x102   : > { %1137 = vst.msk [vmem:[#allocation3 + $0x24] sm:$0xf] %vm1127_vm4, %v1050_v27  ;;  %v1056_v43 = vpop.permute.xlu0 %1055  ;;  %14574 = vst [vmem:[#allocation8_spill] sm:$0xff] %v11679_v53 }
 0x103   : > { %1551 = vrot.lane.b32.xlu1 %v11579_v11, %s14548_s25  ;;  %1140 = vst.msk [vmem:[#allocation3 + $0x30] sm:$0xf] %vm1127_vm4, %v1056_v43  ;;  %v1435_v43 = vld [vmem:[#allocation2 + $0x122] sm:$0xff] }
 0x104   : > { %1557 = vrot.lane.b32.xlu0 %v11584_v29, %s14548_s25  ;;  %v11644_v32 = vpack.c.bf16 %v1435_v43, %v1435_v43  ;;  %v11669_v43 = vpack.c.bf16 %v1438_v3, %v1438_v3 }
 0x105   : > { %v1054_v58 = vpop.permute.xlu1 %1053 }
 0x106   : > { %1139 = vst.msk [vmem:[#allocation3 + $0x2c] sm:$0xf] %vm1127_vm4, %v1054_v58  ;;  %v1060_v31 = vpop.permute.xlu0 %1059 }
 0x107   : > { %1555 = vrot.lane.b32.xlu1 %v11589_v42, %s14548_s25  ;;  %1142 = vst.msk [vmem:[#allocation3 + $0x38] sm:$0xf] %vm1127_vm4, %v1060_v31 }
 0x108   : > { %1561 = vrot.lane.b32.xlu0 %v11594_v20, %s14548_s25 }
 0x109   : > { %v1058_v33 = vpop.permute.xlu1 %1057 }
 0x10a   : > { %1141 = vst.msk [vmem:[#allocation3 + $0x34] sm:$0xf] %vm1127_vm4, %v1058_v33  ;;  %v1064_v52 = vpop.permute.xlu0 %1063  ;;  %v1437_v33 = vld [vmem:[#allocation2 + $0x13a] sm:$0xff] }
 0x10b   : > { %1559 = vrot.lane.b32.xlu1 %v11599_v24, %s14548_s25  ;;  %1144 = vst.msk [vmem:[#allocation3 + $0x40] sm:$0xf] %vm1127_vm4, %v1064_v52  ;;  %v11654_v8 = vpack.c.bf16 %v1437_v33, %v1437_v33 }
 0x10c   : > { %1565 = vrot.lane.b32.xlu0 %v11604_v40, %s14548_s25 }
 0x10d   : > { %v1062_v59 = vpop.permute.xlu1 %1061 }
 0x10e   : > { %1143 = vst.msk [vmem:[#allocation3 + $0x3c] sm:$0xf] %vm1127_vm4, %v1062_v59  ;;  %v1068_v16 = vpop.permute.xlu0 %1067 }
 0x10f   : > { %1563 = vrot.lane.b32.xlu1 %v11609_v50, %s14548_s25  ;;  %1146 = vst.msk [vmem:[#allocation3 + $0x48] sm:$0xf] %vm1127_vm4, %v1068_v16  ;;  %v1439_v16 = vld [vmem:[#allocation2 + $0x152] sm:$0xff] }
 0x110   : > { %1569 = vrot.lane.b32.xlu0 %v11614_v7, %s14548_s25  ;;  %v11664_v19 = vpack.c.bf16 %v1439_v16, %v1439_v16  ;;  %v1442_v16 = vld [vmem:[#allocation2 + $0x172] sm:$0xff] }
 0x111   : > { %v1066_v55 = vpop.permute.xlu1 %1065 }
 0x112   : > { %1145 = vst.msk [vmem:[#allocation3 + $0x44] sm:$0xf] %vm1127_vm4, %v1066_v55  ;;  %v1072_v18 = vpop.permute.xlu0 %1071 }
 0x113   : > { %1567 = vrot.lane.b32.xlu1 %v11619_v9, %s14548_s25  ;;  %1148 = vst.msk [vmem:[#allocation3 + $0x50] sm:$0xf] %vm1127_vm4, %v1072_v18 }
 0x114   : > { %1573 = vrot.lane.b32.xlu0 %v11624_v61, %s14548_s25 }
 0x115   : > { %v1070_v27 = vpop.permute.xlu1 %1069 }
 0x116   : > { %1147 = vst.msk [vmem:[#allocation3 + $0x4c] sm:$0xf] %vm1127_vm4, %v1070_v27  ;;  %v1076_v58 = vpop.permute.xlu0 %1075  ;;  %v1441_v27 = vld [vmem:[#allocation2 + $0x16a] sm:$0xff] }
 0x117   : > { %1571 = vrot.lane.b32.xlu1 %v11629_v5, %s14548_s25  ;;  %1150 = vst.msk [vmem:[#allocation3 + $0x58] sm:$0xf] %vm1127_vm4, %v1076_v58  ;;  %v11674_v33 = vpack.c.bf16 %v1441_v27, %v1441_v27  ;;  %v11689_v27 = vpack.c.bf16 %v1442_v16, %v1442_v16 }
 0x118   : > { %1577 = vrot.lane.b32.xlu0 %v11634_v41, %s14548_s25 }
 0x119   : > { %v1074_v31 = vpop.permute.xlu1 %1073  ;;  %14575 = vst [vmem:[#allocation9_spill] sm:$0xff] %v11689_v27 }
 0x11a   : > { %1149 = vst.msk [vmem:[#allocation3 + $0x54] sm:$0xf] %vm1127_vm4, %v1074_v31  ;;  %v1080_v52 = vpop.permute.xlu0 %1079 }
 0x11b   : > { %1575 = vrot.lane.b32.xlu1 %v11639_v56, %s14548_s25  ;;  %1152 = vst.msk [vmem:[#allocation3 + $0x60] sm:$0xf] %vm1127_vm4, %v1080_v52  ;;  %v1443_v52 = vld [vmem:[#allocation2 + $0x182] sm:$0xff] }
 0x11c   : > { %1581 = vrot.lane.b32.xlu0 %v11644_v32, %s14548_s25  ;;  %v11684_v3 = vpack.c.bf16 %v1443_v52, %v1443_v52  ;;  %v1447_v52 = vld [vmem:[#allocation2 + $0x1b2] sm:$0xff] }
 0x11d   : > { %v1078_v59 = vpop.permute.xlu1 %1077 }
 0x11e   : > { %1151 = vst.msk [vmem:[#allocation3 + $0x5c] sm:$0xf] %vm1127_vm4, %v1078_v59  ;;  %v1084_v55 = vpop.permute.xlu0 %1083 }
 0x11f   : > { %1579 = vrot.lane.b32.xlu1 %v11649_v45, %s14548_s25  ;;  %1154 = vst.msk [vmem:[#allocation3 + $0x68] sm:$0xf] %vm1127_vm4, %v1084_v55 }
 0x120   : > { %1585 = vrot.lane.b32.xlu0 %v11654_v8, %s14548_s25 }
 0x121   : > { %v1082_v18 = vpop.permute.xlu1 %1081 }
 0x122   : > { %1153 = vst.msk [vmem:[#allocation3 + $0x64] sm:$0xf] %vm1127_vm4, %v1082_v18  ;;  %v1088_v58 = vpop.permute.xlu0 %1087  ;;  %v1445_v18 = vld [vmem:[#allocation2 + $0x19a] sm:$0xff] }
 0x123   : > { %1583 = vrot.lane.b32.xlu1 %v11659_v54, %s14548_s25  ;;  %1156 = vst.msk [vmem:[#allocation3 + $0x70] sm:$0xf] %vm1127_vm4, %v1088_v58 }
 0x124   : > { %1589 = vrot.lane.b32.xlu0 %v11664_v19, %s14548_s25 }
 0x125   : > { %v1086_v31 = vpop.permute.xlu1 %1085 }
 0x126   : > { %1155 = vst.msk [vmem:[#allocation3 + $0x6c] sm:$0xf] %vm1127_vm4, %v1086_v31  ;;  %v1092_v59 = vpop.permute.xlu0 %1091 }
 0x127   : > { %1587 = vrot.lane.b32.xlu1 %v11669_v43, %s14548_s25  ;;  %1158 = vst.msk [vmem:[#allocation3 + $0x78] sm:$0xf] %vm1127_vm4, %v1092_v59  ;;  %v11694_v59 = vpack.c.bf16 %v1445_v18, %v1445_v18  ;;  %v11709_v18 = vpack.c.bf16 %v1446_v0, %v1446_v0 }
 0x128   : > { %1593 = vrot.lane.b32.xlu0 %v11674_v33, %s14548_s25 }
 0x129   : > { %v1090_v55 = vpop.permute.xlu1 %1089 }
 0x12a   : > { %1157 = vst.msk [vmem:[#allocation3 + $0x74] sm:$0xf] %vm1127_vm4, %v1090_v55  ;;  %v1289_v58 = vpop.permute.xlu0 %1288  ;;  %v11699_v55 = vpack.c.bf16 %v1444_v22, %v1444_v22  ;;  %v1448_v22 = vld [vmem:[#allocation2 + $0x1ba] sm:$0xff] }
 0x12b   : > { %1591 = vrot.lane.b32.xlu1 %v11679_v53, %s14548_s25  ;;  %1385 = vst.msk [vmem:[#allocation3] sm:$0xf] %vm1384_vm5, %v1289_v58  ;;  %v11704_v53 = vpack.c.bf16 %v1447_v52, %v1447_v52  ;;  %v11717_v52 = vpack.c.bf16 %v1448_v22, %v1448_v22 }
 0x12c   : > { %1597 = vrot.lane.b32.xlu0 %v11684_v3, %s14548_s25 }
 0x12d   : > { %v1094_v31 = vpop.permute.xlu1 %1093 }
 0x12e   : > { %1159 = vst.msk [vmem:[#allocation3 + $0x7c] sm:$0xf] %vm1127_vm4, %v1094_v31  ;;  %v1293_v16 = vpop.permute.xlu0 %1292  ;;  %vm10876_vm4 = vmmov 0  }
 0x12f   : > { %1595 = vrot.lane.b32.xlu1 %v11689_v27, %s14548_s25  ;;  %1387 = vst.msk [vmem:[#allocation3 + $0x8] sm:$0xf] %vm1384_vm5, %v1293_v16 }
 0x130   : > { %1601 = vrot.lane.b32.xlu0 %v11694_v59, %s14548_s25 }
 0x131   : > { %v1291_v58 = vpop.permute.xlu1 %1290 }
 0x132   : > { %1386 = vst.msk [vmem:[#allocation3 + $0x4] sm:$0xf] %vm1384_vm5, %v1291_v58  ;;  %v1297_v31 = vpop.permute.xlu0 %1296 }
 0x133   : > { %1599 = vrot.lane.b32.xlu1 %v11699_v55, %s14548_s25  ;;  %1389 = vst.msk [vmem:[#allocation3 + $0x10] sm:$0xf] %vm1384_vm5, %v1297_v31 }
 0x134   : > { %1605 = vrot.lane.b32.xlu0 %v11704_v53, %s14548_s25 }
 0x135   : > { %v1295_v27 = vpop.permute.xlu1 %1294 }
 0x136   : > { %1388 = vst.msk [vmem:[#allocation3 + $0xc] sm:$0xf] %vm1384_vm5, %v1295_v27  ;;  %v1301_v16 = vpop.permute.xlu0 %1300 }
 0x137   : > { %1603 = vrot.lane.b32.xlu1 %v11709_v18, %s14548_s25  ;;  %1391 = vst.msk [vmem:[#allocation3 + $0x18] sm:$0xf] %vm1384_vm5, %v1301_v16 }
 0x138   : > { %1802 = vrot.lane.b32.xlu0 %v11413_v17, %s10856_s26 }
 0x139   : > { %v1299_v0 = vpop.permute.xlu1 %1298 }
 0x13a   : > { %1390 = vst.msk [vmem:[#allocation3 + $0x14] sm:$0xf] %vm1384_vm5, %v1299_v0  ;;  %v1305_v58 = vpop.permute.xlu0 %1304  ;;  %v1705_v0 = vld [vmem:[#allocation2 + $0x1bc] sm:$0xff] }
 0x13b   : > { %1607 = vrot.lane.b32.xlu1 %v11717_v52, %s14548_s25  ;;  %1393 = vst.msk [vmem:[#allocation3 + $0x20] sm:$0xf] %vm1384_vm5, %v1305_v58  ;;  %s14584_s25 = smov 16  }
 0x13c   : > { %1806 = vrot.lane.b32.xlu0 %v11421_v34, %s10856_s26 }
 0x13d   : > { %v1303_v27 = vpop.permute.xlu1 %1302 }
 0x13e   : > { %1392 = vst.msk [vmem:[#allocation3 + $0x1c] sm:$0xf] %vm1384_vm5, %v1303_v27  ;;  %v1309_v31 = vpop.permute.xlu0 %1308 }
 0x13f   : > { %1804 = vrot.lane.b32.xlu1 %v11425_v36, %s10856_s26  ;;  %1395 = vst.msk [vmem:[#allocation3 + $0x28] sm:$0xf] %vm1384_vm5, %v1309_v31 }
 0x140   : > { %1810 = vrot.lane.b32.xlu0 %v11430_v47, %s10856_s26 }
 0x141   : > { %v1307_v17 = vpop.permute.xlu1 %1306 }
 0x142   : > { %1394 = vst.msk [vmem:[#allocation3 + $0x24] sm:$0xf] %vm1384_vm5, %v1307_v17  ;;  %v1313_v22 = vpop.permute.xlu0 %1312 }
 0x143   : > { %1808 = vrot.lane.b32.xlu1 %v11435_v49, %s10856_s26  ;;  %1397 = vst.msk [vmem:[#allocation3 + $0x30] sm:$0xf] %vm1384_vm5, %v1313_v22 }
 0x144   : > { %1814 = vrot.lane.b32.xlu0 %v11440_v1, %s10856_s26 }
 0x145   : > { %v1311_v34 = vpop.permute.xlu1 %1310 }
 0x146   : > { %1396 = vst.msk [vmem:[#allocation3 + $0x2c] sm:$0xf] %vm1384_vm5, %v1311_v34  ;;  %v1317_v36 = vpop.permute.xlu0 %1316 }
 0x147   : > { %1812 = vrot.lane.b32.xlu1 %v11445_v21, %s10856_s26  ;;  %1399 = vst.msk [vmem:[#allocation3 + $0x38] sm:$0xf] %vm1384_vm5, %v1317_v36  ;;  %v1962_v36 = vld [vmem:[#allocation2 + $0x1ca] sm:$0xff] }
 0x148   : > { %1818 = vrot.lane.b32.xlu0 %v11450_v25, %s10856_s26 }
 0x149   : > { %v1315_v47 = vpop.permute.xlu1 %1314 }
 0x14a   : > { %1398 = vst.msk [vmem:[#allocation3 + $0x34] sm:$0xf] %vm1384_vm5, %v1315_v47  ;;  %v1321_v49 = vpop.permute.xlu0 %1320 }
 0x14b   : > { %1816 = vrot.lane.b32.xlu1 %v11455_v30, %s10856_s26  ;;  %1401 = vst.msk [vmem:[#allocation3 + $0x40] sm:$0xf] %vm1384_vm5, %v1321_v49  ;;  %v9974_v49 = vpack.c.bf16 %v1962_v36, %v1962_v36 }
 0x14c   : > { %1822 = vrot.lane.b32.xlu0 %v11460_v37, %s10856_s26 }
 0x14d   : > { %v1319_v1 = vpop.permute.xlu1 %1318 }
 0x14e   : > { %1400 = vst.msk [vmem:[#allocation3 + $0x3c] sm:$0xf] %vm1384_vm5, %v1319_v1  ;;  %v1325_v21 = vpop.permute.xlu0 %1324  ;;  %v2189_v1 = vld [vmem:[#allocation2 + $0x63] sm:$0xff] }
 0x14f   : > { %1820 = vrot.lane.b32.xlu1 %v11465_v39, %s10856_s26  ;;  %1403 = vst.msk [vmem:[#allocation3 + $0x48] sm:$0xf] %vm1384_vm5, %v1325_v21  ;;  %v1963_v21 = vld [vmem:[#allocation2 + $0x1d2] sm:$0xff] }
 0x150   : > { %1826 = vrot.lane.b32.xlu0 %v11470_v46, %s10856_s26 }
 0x151   : > { %v1323_v25 = vpop.permute.xlu1 %1322 }
 0x152   : > { %1402 = vst.msk [vmem:[#allocation3 + $0x44] sm:$0xf] %vm1384_vm5, %v1323_v25  ;;  %v1329_v30 = vpop.permute.xlu0 %1328 }
 0x153   : > { %1824 = vrot.lane.b32.xlu1 %v11475_v51, %s10856_s26  ;;  %1405 = vst.msk [vmem:[#allocation3 + $0x50] sm:$0xf] %vm1384_vm5, %v1329_v30  ;;  %v2191_v30 = vld [vmem:[#allocation2 + $0x7b] sm:$0xff] }
 0x154   : > { %1830 = vrot.lane.b32.xlu0 %v11480_v63, %s10856_s26 }
 0x155   : > { %v1327_v37 = vpop.permute.xlu1 %1326 }
 0x156   : > { %1404 = vst.msk [vmem:[#allocation3 + $0x4c] sm:$0xf] %vm1384_vm5, %v1327_v37  ;;  %v1333_v39 = vpop.permute.xlu0 %1332 }
 0x157   : > { %1828 = vrot.lane.b32.xlu1 %v11485_v6, %s10856_s26  ;;  %1407 = vst.msk [vmem:[#allocation3 + $0x58] sm:$0xf] %vm1384_vm5, %v1333_v39  ;;  %v2190_v39 = vld [vmem:[#allocation2 + $0x6b] sm:$0xff] }
 0x158   : > { %1834 = vrot.lane.b32.xlu0 %v11490_v13, %s10856_s26 }
 0x159   : > { %v1331_v46 = vpop.permute.xlu1 %1330 }
 0x15a   : > { %1406 = vst.msk [vmem:[#allocation3 + $0x54] sm:$0xf] %vm1384_vm5, %v1331_v46  ;;  %v1337_v51 = vpop.permute.xlu0 %1336  ;;  %v9978_v46 = vpack.c.bf16 %v2191_v30, %v2191_v30 }
 0x15b   : > { %1832 = vrot.lane.b32.xlu1 %v11495_v15, %s10856_s26  ;;  %1409 = vst.msk [vmem:[#allocation3 + $0x60] sm:$0xf] %vm1384_vm5, %v1337_v51  ;;  %v2193_v51 = vld [vmem:[#allocation2 + $0x93] sm:$0xff] }
 0x15c   : > { %1838 = vrot.lane.b32.xlu0 %v11500_v60, %s10856_s26 }
 0x15d   : > { %v1335_v63 = vpop.permute.xlu1 %1334 }
 0x15e   : > { %1408 = vst.msk [vmem:[#allocation3 + $0x5c] sm:$0xf] %vm1384_vm5, %v1335_v63  ;;  %v1341_v6 = vpop.permute.xlu0 %1340  ;;  %v9977_v63 = vpack.c.bf16 %v2190_v39, %v2190_v39 }
 0x15f   : > { %1836 = vrot.lane.b32.xlu1 %v11505_v62, %s10856_s26  ;;  %1411 = vst.msk [vmem:[#allocation3 + $0x68] sm:$0xf] %vm1384_vm5, %v1341_v6 }
 0x160   : > { %1842 = vrot.lane.b32.xlu0 %v11510_v10, %s10856_s26 }
 0x161   : > { %v1339_v13 = vpop.permute.xlu1 %1338 }
 0x162   : > { %1410 = vst.msk [vmem:[#allocation3 + $0x64] sm:$0xf] %vm1384_vm5, %v1339_v13  ;;  %v1345_v15 = vpop.permute.xlu0 %1344 }
 0x163   : > { %1840 = vrot.lane.b32.xlu1 %v11515_v12, %s10856_s26  ;;  %1413 = vst.msk [vmem:[#allocation3 + $0x70] sm:$0xf] %vm1384_vm5, %v1345_v15  ;;  %v9980_v15 = vpack.c.bf16 %v2193_v51, %v2193_v51 }
 0x164   : > { %1846 = vrot.lane.b32.xlu0 %v11520_v28, %s10856_s26 }
 0x165   : > { %v1343_v60 = vpop.permute.xlu1 %1342 }
 0x166   : > { %1412 = vst.msk [vmem:[#allocation3 + $0x6c] sm:$0xf] %vm1384_vm5, %v1343_v60  ;;  %v1349_v62 = vpop.permute.xlu0 %1348  ;;  %v2195_v60 = vld [vmem:[#allocation2 + $0xab] sm:$0xff] }
 0x167   : > { %1844 = vrot.lane.b32.xlu1 %v11525_v35, %s10856_s26  ;;  %1415 = vst.msk [vmem:[#allocation3 + $0x78] sm:$0xf] %vm1384_vm5, %v1349_v62  ;;  %v1704_v35 = vld [vmem:[#allocation2 + $0x1b4] sm:$0xff] }
 0x168   : > { %1850 = vrot.lane.b32.xlu0 %v11530_v48, %s10856_s26 }
 0x169   : > { %v1347_v10 = vpop.permute.xlu1 %1346 }
 0x16a   : > { %1414 = vst.msk [vmem:[#allocation3 + $0x74] sm:$0xf] %vm1384_vm5, %v1347_v10  ;;  %v1546_v12 = vpop.permute.xlu0 %1545 }
 0x16b   : > { %1848 = vrot.lane.b32.xlu1 %v11535_v57, %s10856_s26  ;;  %1642 = vst.msk [vmem:[#allocation3] sm:$0xf] %vm1641_vm6, %v1546_v12  ;;  %v11806_v57 = vpack.c.bf16 %v1704_v35, %v1704_v35  ;;  %v2194_v12 = vld [vmem:[#allocation2 + $0x9b] sm:$0xff]  ;;  %v9982_v35 = vpack.c.bf16 %v2195_v60, %v2195_v60 }
 0x16c   : > { %1854 = vrot.lane.b32.xlu0 %v11540_v23, %s10856_s26 }
 0x16d   : > { %v1351_v28 = vpop.permute.xlu1 %1350 }
 0x16e   : > { %1416 = vst.msk [vmem:[#allocation3 + $0x7c] sm:$0xf] %vm1384_vm5, %v1351_v28  ;;  %v1550_v48 = vpop.permute.xlu0 %1549  ;;  %vm4985_vm5 = vcmask 585248  }
 0x16f   : > { %1852 = vrot.lane.b32.xlu1 %v11545_v26, %s10856_s26  ;;  %1644 = vst.msk [vmem:[#allocation3 + $0x8] sm:$0xf] %vm1641_vm6, %v1550_v48  ;;  %v11817_v26 = vpack.c.bf16 %v1705_v0, %v1705_v0  ;;  %v2197_v48 = vld [vmem:[#allocation2 + $0xc3] sm:$0xff]  ;;  %v2196_v0 = vld [vmem:[#allocation2 + $0xb3] sm:$0xff] }
 0x170   : > { %1858 = vrot.lane.b32.xlu0 %v11550_v38, %s10856_s26 }
 0x171   : > { %v1548_v16 = vpop.permute.xlu1 %1547 }
 0x172   : > { %1643 = vst.msk [vmem:[#allocation3 + $0x4] sm:$0xf] %vm1641_vm6, %v1548_v16  ;;  %v1554_v23 = vpop.permute.xlu0 %1553  ;;  %v9981_v16 = vpack.c.bf16 %v2194_v12, %v2194_v12 }
 0x173   : > { %1856 = vrot.lane.b32.xlu1 %v11555_v44, %s10856_s26  ;;  %1646 = vst.msk [vmem:[#allocation3 + $0x10] sm:$0xf] %vm1641_vm6, %v1554_v23 }
 0x174   : > { %1862 = vrot.lane.b32.xlu0 %v11806_v57, %s10856_s26 }
 0x175   : > { %v1552_v58 = vpop.permute.xlu1 %1551 }
 0x176   : > { %1645 = vst.msk [vmem:[#allocation3 + $0xc] sm:$0xf] %vm1641_vm6, %v1552_v58  ;;  %v1558_v38 = vpop.permute.xlu0 %1557 }
 0x177   : > { %1860 = vrot.lane.b32.xlu1 %v11563_v2, %s10856_s26  ;;  %1648 = vst.msk [vmem:[#allocation3 + $0x18] sm:$0xf] %vm1641_vm6, %v1558_v38  ;;  %v9984_v38 = vpack.c.bf16 %v2197_v48, %v2197_v48 }
 0x178   : > { %2060 = vrot.lane.b32.xlu0 %v11567_v14, %s14546_s10 }
 0x179   : > { %v1556_v27 = vpop.permute.xlu1 %1555 }
 0x17a   : > { %1647 = vst.msk [vmem:[#allocation3 + $0x14] sm:$0xf] %vm1641_vm6, %v1556_v27  ;;  %v1562_v44 = vpop.permute.xlu0 %1561  ;;  %v2199_v27 = vld [vmem:[#allocation2 + $0xdb] sm:$0xff] }
 0x17b   : > { %1864 = vrot.lane.b32.xlu1 %v11817_v26, %s10856_s26  ;;  %1650 = vst.msk [vmem:[#allocation3 + $0x20] sm:$0xf] %vm1641_vm6, %v1562_v44  ;;  %v9983_v44 = vpack.c.bf16 %v2196_v0, %v2196_v0  ;;  %s10866_s26 = smov 60  }
 0x17c   : > { %2064 = vrot.lane.b32.xlu0 %v11575_v4, %s14546_s10 }
 0x17d   : > { %v1560_v31 = vpop.permute.xlu1 %1559 }
 0x17e   : > { %1649 = vst.msk [vmem:[#allocation3 + $0x1c] sm:$0xf] %vm1641_vm6, %v1560_v31  ;;  %v1566_v2 = vpop.permute.xlu0 %1565 }
 0x17f   : > { %2062 = vrot.lane.b32.xlu1 %v11579_v11, %s14546_s10  ;;  %1652 = vst.msk [vmem:[#allocation3 + $0x28] sm:$0xf] %vm1641_vm6, %v1566_v2  ;;  %v2198_v2 = vld [vmem:[#allocation2 + $0xcb] sm:$0xff] }
 0x180   : > { %2068 = vrot.lane.b32.xlu0 %v11584_v29, %s14546_s10 }
 0x181   : > { %v1564_v14 = vpop.permute.xlu1 %1563 }
 0x182   : > { %1651 = vst.msk [vmem:[#allocation3 + $0x24] sm:$0xf] %vm1641_vm6, %v1564_v14  ;;  %v1570_v17 = vpop.permute.xlu0 %1569 }
 0x183   : > { %2066 = vrot.lane.b32.xlu1 %v11589_v42, %s14546_s10  ;;  %1654 = vst.msk [vmem:[#allocation3 + $0x30] sm:$0xf] %vm1641_vm6, %v1570_v17  ;;  %v9986_v17 = vpack.c.bf16 %v2199_v27, %v2199_v27 }
 0x184   : > { %2072 = vrot.lane.b32.xlu0 %v11594_v20, %s14546_s10 }
 0x185   : > { %v1568_v4 = vpop.permute.xlu1 %1567 }
 0x186   : > { %1653 = vst.msk [vmem:[#allocation3 + $0x2c] sm:$0xf] %vm1641_vm6, %v1568_v4  ;;  %v1574_v11 = vpop.permute.xlu0 %1573  ;;  %v2201_v4 = vld [vmem:[#allocation2 + $0xf3] sm:$0xff] }
 0x187   : > { %2070 = vrot.lane.b32.xlu1 %v11599_v24, %s14546_s10  ;;  %1656 = vst.msk [vmem:[#allocation3 + $0x38] sm:$0xf] %vm1641_vm6, %v1574_v11  ;;  %v9985_v11 = vpack.c.bf16 %v2198_v2, %v2198_v2 }
 0x188   : > { %2076 = vrot.lane.b32.xlu0 %v11604_v40, %s14546_s10 }
 0x189   : > { %v1572_v29 = vpop.permute.xlu1 %1571 }
 0x18a   : > { %1655 = vst.msk [vmem:[#allocation3 + $0x34] sm:$0xf] %vm1641_vm6, %v1572_v29  ;;  %v1578_v42 = vpop.permute.xlu0 %1577 }
 0x18b   : > { %2074 = vrot.lane.b32.xlu1 %v11609_v50, %s14546_s10  ;;  %1658 = vst.msk [vmem:[#allocation3 + $0x40] sm:$0xf] %vm1641_vm6, %v1578_v42  ;;  %v2200_v42 = vld [vmem:[#allocation2 + $0xe3] sm:$0xff] }
 0x18c   : > { %2080 = vrot.lane.b32.xlu0 %v11614_v7, %s14546_s10 }
 0x18d   : > { %v1576_v20 = vpop.permute.xlu1 %1575 }
 0x18e   : > { %1657 = vst.msk [vmem:[#allocation3 + $0x3c] sm:$0xf] %vm1641_vm6, %v1576_v20  ;;  %v1582_v24 = vpop.permute.xlu0 %1581 }
 0x18f   : > { %2078 = vrot.lane.b32.xlu1 %v11619_v9, %s14546_s10  ;;  %1660 = vst.msk [vmem:[#allocation3 + $0x48] sm:$0xf] %vm1641_vm6, %v1582_v24  ;;  %v9988_v24 = vpack.c.bf16 %v2201_v4, %v2201_v4 }
 0x190   : > { %2084 = vrot.lane.b32.xlu0 %v11624_v61, %s14546_s10 }
 0x191   : > { %v1580_v40 = vpop.permute.xlu1 %1579 }
 0x192   : > { %1659 = vst.msk [vmem:[#allocation3 + $0x44] sm:$0xf] %vm1641_vm6, %v1580_v40  ;;  %v1586_v50 = vpop.permute.xlu0 %1585  ;;  %v2203_v40 = vld [vmem:[#allocation2 + $0x10b] sm:$0xff] }
 0x193   : > { %2082 = vrot.lane.b32.xlu1 %v11629_v5, %s14546_s10  ;;  %1662 = vst.msk [vmem:[#allocation3 + $0x50] sm:$0xf] %vm1641_vm6, %v1586_v50  ;;  %v9987_v50 = vpack.c.bf16 %v2200_v42, %v2200_v42 }
 0x194   : > { %2088 = vrot.lane.b32.xlu0 %v11634_v41, %s14546_s10 }
 0x195   : > { %v1584_v7 = vpop.permute.xlu1 %1583 }
 0x196   : > { %1661 = vst.msk [vmem:[#allocation3 + $0x4c] sm:$0xf] %vm1641_vm6, %v1584_v7  ;;  %v1590_v9 = vpop.permute.xlu0 %1589 }
 0x197   : > { %2086 = vrot.lane.b32.xlu1 %v11639_v56, %s14546_s10  ;;  %1664 = vst.msk [vmem:[#allocation3 + $0x58] sm:$0xf] %vm1641_vm6, %v1590_v9  ;;  %v2202_v9 = vld [vmem:[#allocation2 + $0xfb] sm:$0xff] }
 0x198   : > { %2092 = vrot.lane.b32.xlu0 %v11644_v32, %s14546_s10 }
 0x199   : > { %v1588_v61 = vpop.permute.xlu1 %1587 }
 0x19a   : > { %1663 = vst.msk [vmem:[#allocation3 + $0x54] sm:$0xf] %vm1641_vm6, %v1588_v61  ;;  %v1594_v5 = vpop.permute.xlu0 %1593 }
 0x19b   : > { %2090 = vrot.lane.b32.xlu1 %v11649_v45, %s14546_s10  ;;  %1666 = vst.msk [vmem:[#allocation3 + $0x60] sm:$0xf] %vm1641_vm6, %v1594_v5  ;;  %v9990_v5 = vpack.c.bf16 %v2203_v40, %v2203_v40 }
 0x19c   : > { %2096 = vrot.lane.b32.xlu0 %v11654_v8, %s14546_s10 }
 0x19d   : > { %v1592_v41 = vpop.permute.xlu1 %1591 }
 0x19e   : > { %1665 = vst.msk [vmem:[#allocation3 + $0x5c] sm:$0xf] %vm1641_vm6, %v1592_v41  ;;  %v1598_v56 = vpop.permute.xlu0 %1597  ;;  %v2205_v41 = vld [vmem:[#allocation2 + $0x123] sm:$0xff] }
 0x19f   : > { %2094 = vrot.lane.b32.xlu1 %v11659_v54, %s14546_s10  ;;  %1668 = vst.msk [vmem:[#allocation3 + $0x68] sm:$0xf] %vm1641_vm6, %v1598_v56  ;;  %v14576_v54 = vld [vmem:[#allocation8_spill] sm:$0xff]  ;;  %v9989_v56 = vpack.c.bf16 %v2202_v9, %v2202_v9 }
 0x1a0   : > { %2100 = vrot.lane.b32.xlu0 %v11664_v19, %s14546_s10 }
 0x1a1   : > { %v1596_v32 = vpop.permute.xlu1 %1595 }
 0x1a2   : > { %1667 = vst.msk [vmem:[#allocation3 + $0x64] sm:$0xf] %vm1641_vm6, %v1596_v32  ;;  %v1602_v45 = vpop.permute.xlu0 %1601 }
 0x1a3   : > { %2098 = vrot.lane.b32.xlu1 %v11669_v43, %s14546_s10  ;;  %1670 = vst.msk [vmem:[#allocation3 + $0x70] sm:$0xf] %vm1641_vm6, %v1602_v45  ;;  %v14577_v43 = vld [vmem:[#allocation9_spill] sm:$0xff] }
 0x1a4   : > { %2104 = vrot.lane.b32.xlu0 %v11674_v33, %s14546_s10  ;;  %v2204_v45 = vld [vmem:[#allocation2 + $0x113] sm:$0xff] }
 0x1a5   : > { %v1600_v8 = vpop.permute.xlu1 %1599 }
 0x1a6   : > { %1669 = vst.msk [vmem:[#allocation3 + $0x6c] sm:$0xf] %vm1641_vm6, %v1600_v8  ;;  %v1606_v22 = vpop.permute.xlu0 %1605 }
 0x1a7   : > { %2102 = vrot.lane.b32.xlu1 %v14576_v54, %s14546_s10  ;;  %1672 = vst.msk [vmem:[#allocation3 + $0x78] sm:$0xf] %vm1641_vm6, %v1606_v22  ;;  %v9992_v54 = vpack.c.bf16 %v2205_v41, %v2205_v41  ;;  %v2207_v22 = vld [vmem:[#allocation2 + $0x13b] sm:$0xff] }
 0x1a8   : > { %2108 = vrot.lane.b32.xlu0 %v11684_v3, %s14546_s10  ;;  %v9994_v36 = vpack.c.bf16 %v2207_v22, %v2207_v22 }
 0x1a9   : > { %v1604_v19 = vpop.permute.xlu1 %1603 }
 0x1aa   : > { %1671 = vst.msk [vmem:[#allocation3 + $0x74] sm:$0xf] %vm1641_vm6, %v1604_v19  ;;  %v1803_v34 = vpop.permute.xlu0 %1802  ;;  %v9991_v19 = vpack.c.bf16 %v2204_v45, %v2204_v45 }
 0x1ab   : > { %2106 = vrot.lane.b32.xlu1 %v14577_v43, %s14546_s10  ;;  %1899 = vst.msk [vmem:[#allocation3] sm:$0xf] %vm1898_vm7, %v1803_v34  ;;  %v2206_v34 = vld [vmem:[#allocation2 + $0x12b] sm:$0xff] }
 0x1ac   : > { %2112 = vrot.lane.b32.xlu0 %v11694_v59, %s14546_s10 }
 0x1ad   : > { %v1608_v33 = vpop.permute.xlu1 %1607 }
 0x1ae   : > { %1673 = vst.msk [vmem:[#allocation3 + $0x7c] sm:$0xf] %vm1641_vm6, %v1608_v33  ;;  %v1807_v3 = vpop.permute.xlu0 %1806  ;;  %vm5242_vm6 = vcmask 618048  }
 0x1af   : > { %2110 = vrot.lane.b32.xlu1 %v11699_v55, %s14546_s10  ;;  %1901 = vst.msk [vmem:[#allocation3 + $0x8] sm:$0xf] %vm1898_vm7, %v1807_v3  ;;  %v9976_v55 = vpack.c.bf16 %v2189_v1, %v2189_v1  ;;  %v2209_v3 = vld [vmem:[#allocation2 + $0x153] sm:$0xff]  ;;  %v2208_v1 = vld [vmem:[#allocation2 + $0x143] sm:$0xff] }
 0x1b0   : > { %2116 = vrot.lane.b32.xlu0 %v11704_v53, %s14546_s10  ;;  %v9975_v53 = vpack.c.bf16 %v1963_v21, %v1963_v21  ;;  %v9996_v21 = vpack.c.bf16 %v2209_v3, %v2209_v3 }
 0x1b1   : > { %v1805_v47 = vpop.permute.xlu1 %1804 }
 0x1b2   : > { %1900 = vst.msk [vmem:[#allocation3 + $0x4] sm:$0xf] %vm1898_vm7, %v1805_v47  ;;  %v1811_v59 = vpop.permute.xlu0 %1810  ;;  %v9993_v47 = vpack.c.bf16 %v2206_v34, %v2206_v34 }
 0x1b3   : > { %2114 = vrot.lane.b32.xlu1 %v11709_v18, %s14546_s10  ;;  %1903 = vst.msk [vmem:[#allocation3 + $0x10] sm:$0xf] %vm1898_vm7, %v1811_v59 }
 0x1b4   : > { %2120 = vrot.lane.b32.xlu0 %v9974_v49, %s14546_s10 }
 0x1b5   : > { %v1809_v25 = vpop.permute.xlu1 %1808 }
 0x1b6   : > { %1902 = vst.msk [vmem:[#allocation3 + $0xc] sm:$0xf] %vm1898_vm7, %v1809_v25  ;;  %v1815_v37 = vpop.permute.xlu0 %1814  ;;  %v2211_v25 = vld [vmem:[#allocation2 + $0x16b] sm:$0xff] }
 0x1b7   : > { %2118 = vrot.lane.b32.xlu1 %v11717_v52, %s14546_s10  ;;  %1905 = vst.msk [vmem:[#allocation3 + $0x18] sm:$0xf] %vm1898_vm7, %v1815_v37  ;;  %v2192_v52 = vld [vmem:[#allocation2 + $0x83] sm:$0xff]  ;;  %v9998_v39 = vpack.c.bf16 %v2211_v25, %v2211_v25 }
 0x1b8   : > { %2317 = vrot.lane.b32.xlu0 %v9976_v55, %s10858_s12  ;;  %v9979_v62 = vpack.c.bf16 %v2192_v52, %v2192_v52  ;;  %v9995_v55 = vpack.c.bf16 %v2208_v1, %v2208_v1 }
 0x1b9   : > { %v1813_v18 = vpop.permute.xlu1 %1812 }
 0x1ba   : > { %1904 = vst.msk [vmem:[#allocation3 + $0x14] sm:$0xf] %vm1898_vm7, %v1813_v18  ;;  %v1819_v6 = vpop.permute.xlu0 %1818  ;;  %v2213_v18 = vld [vmem:[#allocation2 + $0x183] sm:$0xff] }
 0x1bb   : > { %2122 = vrot.lane.b32.xlu1 %v9975_v53, %s14546_s10  ;;  %1907 = vst.msk [vmem:[#allocation3 + $0x20] sm:$0xf] %vm1898_vm7, %v1819_v6  ;;  %v2210_v53 = vld [vmem:[#allocation2 + $0x15b] sm:$0xff]  ;;  %v10000_v52 = vpack.c.bf16 %v2213_v18, %v2213_v18  ;;  %s14552_s10 = smov 92  }
 0x1bc   : > { %2321 = vrot.lane.b32.xlu0 %v9978_v46, %s10858_s12  ;;  %v9997_v46 = vpack.c.bf16 %v2210_v53, %v2210_v53 }
 0x1bd   : > { %v1817_v13 = vpop.permute.xlu1 %1816 }
 0x1be   : > { %1906 = vst.msk [vmem:[#allocation3 + $0x1c] sm:$0xf] %vm1898_vm7, %v1817_v13  ;;  %v1823_v10 = vpop.permute.xlu0 %1822  ;;  %v2215_v13 = vld [vmem:[#allocation2 + $0x19b] sm:$0xff] }
 0x1bf   : > { %2319 = vrot.lane.b32.xlu1 %v9977_v63, %s10858_s12  ;;  %1909 = vst.msk [vmem:[#allocation3 + $0x28] sm:$0xf] %vm1898_vm7, %v1823_v10  ;;  %v2212_v63 = vld [vmem:[#allocation2 + $0x173] sm:$0xff]  ;;  %v10002_v12 = vpack.c.bf16 %v2215_v13, %v2215_v13 }
 0x1c0   : > { %2325 = vrot.lane.b32.xlu0 %v9980_v15, %s10858_s12  ;;  %v9999_v15 = vpack.c.bf16 %v2212_v63, %v2212_v63 }
 0x1c1   : > { %v1821_v28 = vpop.permute.xlu1 %1820 }
 0x1c2   : > { %1908 = vst.msk [vmem:[#allocation3 + $0x24] sm:$0xf] %vm1898_vm7, %v1821_v28  ;;  %v1827_v23 = vpop.permute.xlu0 %1826  ;;  %v2217_v28 = vld [vmem:[#allocation2 + $0x1b3] sm:$0xff] }
 0x1c3   : > { %2323 = vrot.lane.b32.xlu1 %v9979_v62, %s10858_s12  ;;  %1911 = vst.msk [vmem:[#allocation3 + $0x30] sm:$0xf] %vm1898_vm7, %v1827_v23  ;;  %v2214_v62 = vld [vmem:[#allocation2 + $0x18b] sm:$0xff]  ;;  %v10004_v0 = vpack.c.bf16 %v2217_v28, %v2217_v28 }
 0x1c4   : > { %2329 = vrot.lane.b32.xlu0 %v9982_v35, %s10858_s12  ;;  %v10001_v35 = vpack.c.bf16 %v2214_v62, %v2214_v62 }
 0x1c5   : > { %v1825_v58 = vpop.permute.xlu1 %1824 }
 0x1c6   : > { %1910 = vst.msk [vmem:[#allocation3 + $0x2c] sm:$0xf] %vm1898_vm7, %v1825_v58  ;;  %v1831_v31 = vpop.permute.xlu0 %1830  ;;  %v2219_v58 = vld [vmem:[#allocation2 + $0x1cb] sm:$0xff] }
 0x1c7   : > { %2327 = vrot.lane.b32.xlu1 %v9981_v16, %s10858_s12  ;;  %1913 = vst.msk [vmem:[#allocation3 + $0x38] sm:$0xf] %vm1898_vm7, %v1831_v31  ;;  %v2216_v16 = vld [vmem:[#allocation2 + $0x1a3] sm:$0xff]  ;;  %v10006_v2 = vpack.c.bf16 %v2219_v58, %v2219_v58 }
 0x1c8   : > { %2333 = vrot.lane.b32.xlu0 %v9984_v38, %s10858_s12  ;;  %v10003_v38 = vpack.c.bf16 %v2216_v16, %v2216_v16 }
 0x1c9   : > { %v1829_v14 = vpop.permute.xlu1 %1828 }
 0x1ca   : > { %1912 = vst.msk [vmem:[#allocation3 + $0x34] sm:$0xf] %vm1898_vm7, %v1829_v14  ;;  %v1835_v29 = vpop.permute.xlu0 %1834  ;;  %v2446_v14 = vld [vmem:[#allocation2 + $0x64] sm:$0xff] }
 0x1cb   : > { %2331 = vrot.lane.b32.xlu1 %v9983_v44, %s10858_s12  ;;  %1915 = vst.msk [vmem:[#allocation3 + $0x40] sm:$0xf] %vm1898_vm7, %v1835_v29  ;;  %v2218_v44 = vld [vmem:[#allocation2 + $0x1bb] sm:$0xff]  ;;  %v10008_v42 = vpack.c.bf16 %v2446_v14, %v2446_v14 }
 0x1cc   : > { %2337 = vrot.lane.b32.xlu0 %v9986_v17, %s10858_s12  ;;  %v10005_v17 = vpack.c.bf16 %v2218_v44, %v2218_v44 }
 0x1cd   : > { %v1833_v20 = vpop.permute.xlu1 %1832 }
 0x1ce   : > { %1914 = vst.msk [vmem:[#allocation3 + $0x3c] sm:$0xf] %vm1898_vm7, %v1833_v20  ;;  %v1839_v7 = vpop.permute.xlu0 %1838  ;;  %v2448_v20 = vld [vmem:[#allocation2 + $0x7c] sm:$0xff] }
 0x1cf   : > { %2335 = vrot.lane.b32.xlu1 %v9985_v11, %s10858_s12  ;;  %1917 = vst.msk [vmem:[#allocation3 + $0x48] sm:$0xf] %vm1898_vm7, %v1839_v7  ;;  %v2220_v11 = vld [vmem:[#allocation2 + $0x1d3] sm:$0xff]  ;;  %v10010_v9 = vpack.c.bf16 %v2448_v20, %v2448_v20 }
 0x1d0   : > { %2341 = vrot.lane.b32.xlu0 %v9988_v24, %s10858_s12  ;;  %v10007_v24 = vpack.c.bf16 %v2220_v11, %v2220_v11 }
 0x1d1   : > { %v1837_v61 = vpop.permute.xlu1 %1836 }
 0x1d2   : > { %1916 = vst.msk [vmem:[#allocation3 + $0x44] sm:$0xf] %vm1898_vm7, %v1837_v61  ;;  %v1843_v32 = vpop.permute.xlu0 %1842  ;;  %v2450_v61 = vld [vmem:[#allocation2 + $0x94] sm:$0xff] }
 0x1d3   : > { %2339 = vrot.lane.b32.xlu1 %v9987_v50, %s10858_s12  ;;  %1919 = vst.msk [vmem:[#allocation3 + $0x50] sm:$0xf] %vm1898_vm7, %v1843_v32  ;;  %v2447_v50 = vld [vmem:[#allocation2 + $0x6c] sm:$0xff]  ;;  %v10012_v45 = vpack.c.bf16 %v2450_v61, %v2450_v61 }
 0x1d4   : > { %2345 = vrot.lane.b32.xlu0 %v9990_v5, %s10858_s12  ;;  %v10009_v5 = vpack.c.bf16 %v2447_v50, %v2447_v50 }
 0x1d5   : > { %v1841_v8 = vpop.permute.xlu1 %1840 }
 0x1d6   : > { %1918 = vst.msk [vmem:[#allocation3 + $0x4c] sm:$0xf] %vm1898_vm7, %v1841_v8  ;;  %v1847_v43 = vpop.permute.xlu0 %1846  ;;  %v2452_v8 = vld [vmem:[#allocation2 + $0xac] sm:$0xff] }
 0x1d7   : > { %2343 = vrot.lane.b32.xlu1 %v9989_v56, %s10858_s12  ;;  %1921 = vst.msk [vmem:[#allocation3 + $0x58] sm:$0xf] %vm1898_vm7, %v1847_v43  ;;  %v2449_v56 = vld [vmem:[#allocation2 + $0x84] sm:$0xff]  ;;  %v10014_v34 = vpack.c.bf16 %v2452_v8, %v2452_v8 }
 0x1d8   : > { %2349 = vrot.lane.b32.xlu0 %v9992_v54, %s10858_s12  ;;  %v10011_v54 = vpack.c.bf16 %v2449_v56, %v2449_v56 }
 0x1d9   : > { %v1845_v33 = vpop.permute.xlu1 %1844 }
 0x1da   : > { %1920 = vst.msk [vmem:[#allocation3 + $0x54] sm:$0xf] %vm1898_vm7, %v1845_v33  ;;  %v1851_v49 = vpop.permute.xlu0 %1850  ;;  %v2454_v33 = vld [vmem:[#allocation2 + $0xc4] sm:$0xff] }
 0x1db   : > { %2347 = vrot.lane.b32.xlu1 %v9991_v19, %s10858_s12  ;;  %1923 = vst.msk [vmem:[#allocation3 + $0x60] sm:$0xf] %vm1898_vm7, %v1851_v49  ;;  %v2451_v19 = vld [vmem:[#allocation2 + $0x9c] sm:$0xff]  ;;  %v10016_v1 = vpack.c.bf16 %v2454_v33, %v2454_v33  ;;  %v2473_v33 = vld [vmem:[#allocation2 + $0x1a4] sm:$0xff] }
 0x1dc   : > { %2353 = vrot.lane.b32.xlu0 %v9994_v36, %s10858_s12  ;;  %v10013_v36 = vpack.c.bf16 %v2451_v19, %v2451_v19 }
 0x1dd   : > { %v1849_v59 = vpop.permute.xlu1 %1848 }
 0x1de   : > { %1922 = vst.msk [vmem:[#allocation3 + $0x5c] sm:$0xf] %vm1898_vm7, %v1849_v59  ;;  %v1855_v30 = vpop.permute.xlu0 %1854  ;;  %v2456_v59 = vld [vmem:[#allocation2 + $0xdc] sm:$0xff] }
 0x1df   : > { %2351 = vrot.lane.b32.xlu1 %v9993_v47, %s10858_s12  ;;  %1925 = vst.msk [vmem:[#allocation3 + $0x68] sm:$0xf] %vm1898_vm7, %v1855_v30  ;;  %v2453_v47 = vld [vmem:[#allocation2 + $0xb4] sm:$0xff]  ;;  %v10018_v53 = vpack.c.bf16 %v2456_v59, %v2456_v59 }
 0x1e0   : > { %2357 = vrot.lane.b32.xlu0 %v9996_v21, %s10858_s12  ;;  %v10015_v21 = vpack.c.bf16 %v2453_v47, %v2453_v47  ;;  %v10035_v47 = vpack.c.bf16 %v2473_v33, %v2473_v33 }
 0x1e1   : > { %v1853_v37 = vpop.permute.xlu1 %1852 }
 0x1e2   : > { %1924 = vst.msk [vmem:[#allocation3 + $0x64] sm:$0xf] %vm1898_vm7, %v1853_v37  ;;  %v1859_v51 = vpop.permute.xlu0 %1858  ;;  %v2458_v37 = vld [vmem:[#allocation2 + $0xf4] sm:$0xff] }
 0x1e3   : > { %2355 = vrot.lane.b32.xlu1 %v9995_v55, %s10858_s12  ;;  %1927 = vst.msk [vmem:[#allocation3 + $0x70] sm:$0xf] %vm1898_vm7, %v1859_v51  ;;  %v2455_v55 = vld [vmem:[#allocation2 + $0xcc] sm:$0xff]  ;;  %v10020_v63 = vpack.c.bf16 %v2458_v37, %v2458_v37 }
 0x1e4   : > { %2361 = vrot.lane.b32.xlu0 %v9998_v39, %s10858_s12  ;;  %v10017_v39 = vpack.c.bf16 %v2455_v55, %v2455_v55  ;;  %v2477_v55 = vld [vmem:[#allocation2 + $0x1d4] sm:$0xff] }
 0x1e5   : > { %v1857_v6 = vpop.permute.xlu1 %1856  ;;  %v2706_v37 = vld [vmem:[#allocation2 + $0x31] sm:$0xff] }
 0x1e6   : > { %1926 = vst.msk [vmem:[#allocation3 + $0x6c] sm:$0xf] %vm1898_vm7, %v1857_v6  ;;  %v1863_v60 = vpop.permute.xlu0 %1862  ;;  %v2460_v6 = vld [vmem:[#allocation2 + $0x10c] sm:$0xff] }
 0x1e7   : > { %2359 = vrot.lane.b32.xlu1 %v9997_v46, %s10858_s12  ;;  %1929 = vst.msk [vmem:[#allocation3 + $0x78] sm:$0xf] %vm1898_vm7, %v1863_v60  ;;  %v2457_v46 = vld [vmem:[#allocation2 + $0xe4] sm:$0xff]  ;;  %v10022_v62 = vpack.c.bf16 %v2460_v6, %v2460_v6 }
 0x1e8   : > { %2365 = vrot.lane.b32.xlu0 %v10000_v52, %s10858_s12  ;;  %v10019_v52 = vpack.c.bf16 %v2457_v46, %v2457_v46 }
 0x1e9   : > { %v1861_v10 = vpop.permute.xlu1 %1860 }
 0x1ea   : > { %1928 = vst.msk [vmem:[#allocation3 + $0x74] sm:$0xf] %vm1898_vm7, %v1861_v10  ;;  %v2061_v48 = vpop.permute.xlu0 %2060  ;;  %v2462_v10 = vld [vmem:[#allocation2 + $0x124] sm:$0xff] }
 0x1eb   : > { %2363 = vrot.lane.b32.xlu1 %v9999_v15, %s10858_s12  ;;  %2157 = vst.msk [vmem:[#allocation3] sm:$0xf] %vm2156_vm8, %v2061_v48  ;;  %v2459_v15 = vld [vmem:[#allocation2 + $0xfc] sm:$0xff]  ;;  %v10024_v16 = vpack.c.bf16 %v2462_v10, %v2462_v10 }
 0x1ec   : > { %2369 = vrot.lane.b32.xlu0 %v10002_v12, %s10858_s12  ;;  %v10021_v12 = vpack.c.bf16 %v2459_v15, %v2459_v15 }
 0x1ed   : > { %v1865_v23 = vpop.permute.xlu1 %1864 }
 0x1ee   : > { %1930 = vst.msk [vmem:[#allocation3 + $0x7c] sm:$0xf] %vm1898_vm7, %v1865_v23  ;;  %v2065_v27 = vpop.permute.xlu0 %2064  ;;  %v2464_v23 = vld [vmem:[#allocation2 + $0x13c] sm:$0xff]  ;;  %vm5499_vm7 = vcmask 650848  }
 0x1ef   : > { %2367 = vrot.lane.b32.xlu1 %v10001_v35, %s10858_s12  ;;  %2159 = vst.msk [vmem:[#allocation3 + $0x8] sm:$0xf] %vm2156_vm8, %v2065_v27  ;;  %v2461_v35 = vld [vmem:[#allocation2 + $0x114] sm:$0xff]  ;;  %v10026_v44 = vpack.c.bf16 %v2464_v23, %v2464_v23 }
 0x1f0   : > { %2373 = vrot.lane.b32.xlu0 %v10004_v0, %s10858_s12  ;;  %v10023_v0 = vpack.c.bf16 %v2461_v35, %v2461_v35 }
 0x1f1   : > { %v2063_v31 = vpop.permute.xlu1 %2062 }
 0x1f2   : > { %2158 = vst.msk [vmem:[#allocation3 + $0x4] sm:$0xf] %vm2156_vm8, %v2063_v31  ;;  %v2069_v4 = vpop.permute.xlu0 %2068  ;;  %v2466_v31 = vld [vmem:[#allocation2 + $0x154] sm:$0xff] }
 0x1f3   : > { %2371 = vrot.lane.b32.xlu1 %v10003_v38, %s10858_s12  ;;  %2161 = vst.msk [vmem:[#allocation3 + $0x10] sm:$0xf] %vm2156_vm8, %v2069_v4  ;;  %v2463_v38 = vld [vmem:[#allocation2 + $0x12c] sm:$0xff]  ;;  %v10028_v11 = vpack.c.bf16 %v2466_v31, %v2466_v31 }
 0x1f4   : > { %2377 = vrot.lane.b32.xlu0 %v10006_v2, %s10858_s12  ;;  %v10025_v2 = vpack.c.bf16 %v2463_v38, %v2463_v38 }
 0x1f5   : > { %v2067_v29 = vpop.permute.xlu1 %2066 }
 0x1f6   : > { %2160 = vst.msk [vmem:[#allocation3 + $0xc] sm:$0xf] %vm2156_vm8, %v2067_v29  ;;  %v2073_v40 = vpop.permute.xlu0 %2072  ;;  %v2468_v29 = vld [vmem:[#allocation2 + $0x16c] sm:$0xff] }
 0x1f7   : > { %2375 = vrot.lane.b32.xlu1 %v10005_v17, %s10858_s12  ;;  %2163 = vst.msk [vmem:[#allocation3 + $0x18] sm:$0xf] %vm2156_vm8, %v2073_v40  ;;  %v2465_v17 = vld [vmem:[#allocation2 + $0x144] sm:$0xff]  ;;  %v10030_v50 = vpack.c.bf16 %v2468_v29, %v2468_v29 }
 0x1f8   : > { %2574 = vrot.lane.b32.xlu0 %v10008_v42, %s14544_s13  ;;  %v10027_v42 = vpack.c.bf16 %v2465_v17, %v2465_v17 }
 0x1f9   : > { %v2071_v7 = vpop.permute.xlu1 %2070 }
 0x1fa   : > { %2162 = vst.msk [vmem:[#allocation3 + $0x14] sm:$0xf] %vm2156_vm8, %v2071_v7  ;;  %v2077_v41 = vpop.permute.xlu0 %2076  ;;  %v2470_v7 = vld [vmem:[#allocation2 + $0x184] sm:$0xff] }
 0x1fb   : > { %2379 = vrot.lane.b32.xlu1 %v10007_v24, %s10858_s12  ;;  %2165 = vst.msk [vmem:[#allocation3 + $0x20] sm:$0xf] %vm2156_vm8, %v2077_v41  ;;  %v2467_v24 = vld [vmem:[#allocation2 + $0x15c] sm:$0xff]  ;;  %v10032_v56 = vpack.c.bf16 %v2470_v7, %v2470_v7  ;;  %s14564_s12 = smov 64  }
 0x1fc   : > { %2578 = vrot.lane.b32.xlu0 %v10010_v9, %s14544_s13  ;;  %v10029_v9 = vpack.c.bf16 %v2467_v24, %v2467_v24 }
 0x1fd   : > { %v2075_v32 = vpop.permute.xlu1 %2074 }
 0x1fe   : > { %2164 = vst.msk [vmem:[#allocation3 + $0x1c] sm:$0xf] %vm2156_vm8, %v2075_v32  ;;  %v2081_v22 = vpop.permute.xlu0 %2080  ;;  %v2472_v32 = vld [vmem:[#allocation2 + $0x19c] sm:$0xff] }
 0x1ff   : > { %2576 = vrot.lane.b32.xlu1 %v10009_v5, %s14544_s13  ;;  %2167 = vst.msk [vmem:[#allocation3 + $0x28] sm:$0xf] %vm2156_vm8, %v2081_v22  ;;  %v2469_v5 = vld [vmem:[#allocation2 + $0x174] sm:$0xff]  ;;  %v10034_v19 = vpack.c.bf16 %v2472_v32, %v2472_v32 }
 0x200   : > { %2582 = vrot.lane.b32.xlu0 %v10012_v45, %s14544_s13  ;;  %v10031_v45 = vpack.c.bf16 %v2469_v5, %v2469_v5 }
 0x201   : > { %v2079_v43 = vpop.permute.xlu1 %2078 }
 0x202   : > { %2166 = vst.msk [vmem:[#allocation3 + $0x24] sm:$0xf] %vm2156_vm8, %v2079_v43  ;;  %v2085_v3 = vpop.permute.xlu0 %2084 }
 0x203   : > { %2580 = vrot.lane.b32.xlu1 %v10011_v54, %s14544_s13  ;;  %2169 = vst.msk [vmem:[#allocation3 + $0x30] sm:$0xf] %vm2156_vm8, %v2085_v3  ;;  %v2471_v54 = vld [vmem:[#allocation2 + $0x18c] sm:$0xff] }
 0x204   : > { %2586 = vrot.lane.b32.xlu0 %v10014_v34, %s14544_s13  ;;  %v10033_v43 = vpack.c.bf16 %v2471_v54, %v2471_v54  ;;  %v2476_v3 = vld [vmem:[#allocation2 + $0x1cc] sm:$0xff] }
 0x205   : > { %v2083_v49 = vpop.permute.xlu1 %2082  ;;  %v10038_v59 = vpack.c.bf16 %v2476_v3, %v2476_v3  ;;  %v2724_v3 = vld [vmem:[#allocation2 + $0x109] sm:$0xff] }
 0x206   : > { %2168 = vst.msk [vmem:[#allocation3 + $0x2c] sm:$0xf] %vm2156_vm8, %v2083_v49  ;;  %v2089_v25 = vpop.permute.xlu0 %2088 }
 0x207   : > { %2584 = vrot.lane.b32.xlu1 %v10013_v36, %s14544_s13  ;;  %2171 = vst.msk [vmem:[#allocation3 + $0x38] sm:$0xf] %vm2156_vm8, %v2089_v25 }
 0x208   : > { %2590 = vrot.lane.b32.xlu0 %v10016_v1, %s14544_s13 }
 0x209   : > { %v2087_v30 = vpop.permute.xlu1 %2086 }
 0x20a   : > { %2170 = vst.msk [vmem:[#allocation3 + $0x34] sm:$0xf] %vm2156_vm8, %v2087_v30  ;;  %v2093_v18 = vpop.permute.xlu0 %2092 }
 0x20b   : > { %2588 = vrot.lane.b32.xlu1 %v10015_v21, %s14544_s13  ;;  %2173 = vst.msk [vmem:[#allocation3 + $0x40] sm:$0xf] %vm2156_vm8, %v2093_v18  ;;  %v2704_v21 = vld [vmem:[#allocation2 + $0x19] sm:$0xff]  ;;  %v2705_v18 = vld [vmem:[#allocation2 + $0x21] sm:$0xff] }
 0x20c   : > { %2594 = vrot.lane.b32.xlu0 %v10018_v53, %s14544_s13  ;;  %v10040_v53 = vpack.c.bf16 %v2704_v21, %v2704_v21  ;;  %v10041_v6 = vpack.c.bf16 %v2705_v18, %v2705_v18  ;;  %v12126_v21 = vpack.c.bf16 %v2724_v3, %v2724_v3 }
 0x20d   : > { %v2091_v51 = vpop.permute.xlu1 %2090 }
 0x20e   : > { %2172 = vst.msk [vmem:[#allocation3 + $0x3c] sm:$0xf] %vm2156_vm8, %v2091_v51  ;;  %v2097_v13 = vpop.permute.xlu0 %2096  ;;  %v10042_v51 = vpack.c.bf16 %v2706_v37, %v2706_v37 }
 0x20f   : > { %2592 = vrot.lane.b32.xlu1 %v10017_v39, %s14544_s13  ;;  %2175 = vst.msk [vmem:[#allocation3 + $0x48] sm:$0xf] %vm2156_vm8, %v2097_v13 }
 0x210   : > { %2598 = vrot.lane.b32.xlu0 %v10020_v63, %s14544_s13  ;;  %v2708_v63 = vld [vmem:[#allocation2 + $0x49] sm:$0xff] }
 0x211   : > { %v2095_v60 = vpop.permute.xlu1 %2094  ;;  %v12050_v15 = vpack.c.bf16 %v2708_v63, %v2708_v63 }
 0x212   : > { %2174 = vst.msk [vmem:[#allocation3 + $0x44] sm:$0xf] %vm2156_vm8, %v2095_v60  ;;  %v2101_v28 = vpop.permute.xlu0 %2100  ;;  %v2710_v60 = vld [vmem:[#allocation2 + $0x61] sm:$0xff] }
 0x213   : > { %2596 = vrot.lane.b32.xlu1 %v10019_v52, %s14544_s13  ;;  %2177 = vst.msk [vmem:[#allocation3 + $0x50] sm:$0xf] %vm2156_vm8, %v2101_v28  ;;  %v12057_v35 = vpack.c.bf16 %v2710_v60, %v2710_v60  ;;  %v2729_v60 = vld [vmem:[#allocation2 + $0x141] sm:$0xff] }
 0x214   : > { %2602 = vrot.lane.b32.xlu0 %v10022_v62, %s14544_s13 }
 0x215   : > { %v2099_v48 = vpop.permute.xlu1 %2098 }
 0x216   : > { %2176 = vst.msk [vmem:[#allocation3 + $0x4c] sm:$0xf] %vm2156_vm8, %v2099_v48  ;;  %v2105_v58 = vpop.permute.xlu0 %2104  ;;  %v2712_v48 = vld [vmem:[#allocation2 + $0x79] sm:$0xff] }
 0x217   : > { %2600 = vrot.lane.b32.xlu1 %v10021_v12, %s14544_s13  ;;  %2179 = vst.msk [vmem:[#allocation3 + $0x58] sm:$0xf] %vm2156_vm8, %v2105_v58  ;;  %v2709_v12 = vld [vmem:[#allocation2 + $0x51] sm:$0xff]  ;;  %v12066_v38 = vpack.c.bf16 %v2712_v48, %v2712_v48 }
 0x218   : > { %2606 = vrot.lane.b32.xlu0 %v10024_v16, %s14544_s13  ;;  %v12061_v16 = vpack.c.bf16 %v2709_v12, %v2709_v12  ;;  %v2732_v12 = vld [vmem:[#allocation2 + $0x169] sm:$0xff] }
 0x219   : > { %v2103_v27 = vpop.permute.xlu1 %2102 }
 0x21a   : > { %2178 = vst.msk [vmem:[#allocation3 + $0x54] sm:$0xf] %vm2156_vm8, %v2103_v27  ;;  %v2109_v14 = vpop.permute.xlu0 %2108  ;;  %v2714_v27 = vld [vmem:[#allocation2 + $0x91] sm:$0xff] }
 0x21b   : > { %2604 = vrot.lane.b32.xlu1 %v10023_v0, %s14544_s13  ;;  %2181 = vst.msk [vmem:[#allocation3 + $0x60] sm:$0xf] %vm2156_vm8, %v2109_v14  ;;  %v2711_v0 = vld [vmem:[#allocation2 + $0x69] sm:$0xff]  ;;  %v12076_v17 = vpack.c.bf16 %v2714_v27, %v2714_v27  ;;  %v2734_v27 = vld [vmem:[#allocation2 + $0x181] sm:$0xff] }
 0x21c   : > { %2610 = vrot.lane.b32.xlu0 %v10026_v44, %s14544_s13  ;;  %v12071_v44 = vpack.c.bf16 %v2711_v0, %v2711_v0 }
 0x21d   : > { %v2107_v4 = vpop.permute.xlu1 %2106 }
 0x21e   : > { %2180 = vst.msk [vmem:[#allocation3 + $0x5c] sm:$0xf] %vm2156_vm8, %v2107_v4  ;;  %v2113_v20 = vpop.permute.xlu0 %2112  ;;  %v2716_v4 = vld [vmem:[#allocation2 + $0xa9] sm:$0xff] }
 0x21f   : > { %2608 = vrot.lane.b32.xlu1 %v10025_v2, %s14544_s13  ;;  %2183 = vst.msk [vmem:[#allocation3 + $0x68] sm:$0xf] %vm2156_vm8, %v2113_v20  ;;  %v2713_v2 = vld [vmem:[#allocation2 + $0x81] sm:$0xff]  ;;  %v12086_v24 = vpack.c.bf16 %v2716_v4, %v2716_v4 }
 0x220   : > { %2614 = vrot.lane.b32.xlu0 %v10028_v11, %s14544_s13  ;;  %v12081_v11 = vpack.c.bf16 %v2713_v2, %v2713_v2 }
 0x221   : > { %v2111_v40 = vpop.permute.xlu1 %2110 }
 0x222   : > { %2182 = vst.msk [vmem:[#allocation3 + $0x64] sm:$0xf] %vm2156_vm8, %v2111_v40  ;;  %v2117_v61 = vpop.permute.xlu0 %2116  ;;  %v2718_v40 = vld [vmem:[#allocation2 + $0xc1] sm:$0xff] }
 0x223   : > { %2612 = vrot.lane.b32.xlu1 %v10027_v42, %s14544_s13  ;;  %2185 = vst.msk [vmem:[#allocation3 + $0x70] sm:$0xf] %vm2156_vm8, %v2117_v61  ;;  %v2715_v42 = vld [vmem:[#allocation2 + $0x99] sm:$0xff]  ;;  %v12096_v5 = vpack.c.bf16 %v2718_v40, %v2718_v40 }
 0x224   : > { %2618 = vrot.lane.b32.xlu0 %v10030_v50, %s14544_s13  ;;  %v12091_v50 = vpack.c.bf16 %v2715_v42, %v2715_v42  ;;  %v2961_v42 = vld [vmem:[#allocation2 + $0x1b] sm:$0xff] }
 0x225   : > { %v2115_v41 = vpop.permute.xlu1 %2114 }
 0x226   : > { %2184 = vst.msk [vmem:[#allocation3 + $0x6c] sm:$0xf] %vm2156_vm8, %v2115_v41  ;;  %v2121_v8 = vpop.permute.xlu0 %2120  ;;  %v2720_v41 = vld [vmem:[#allocation2 + $0xd9] sm:$0xff] }
 0x227   : > { %2616 = vrot.lane.b32.xlu1 %v10029_v9, %s14544_s13  ;;  %2187 = vst.msk [vmem:[#allocation3 + $0x78] sm:$0xf] %vm2156_vm8, %v2121_v8  ;;  %v2717_v9 = vld [vmem:[#allocation2 + $0xb1] sm:$0xff]  ;;  %v12106_v54 = vpack.c.bf16 %v2720_v41, %v2720_v41 }
 0x228   : > { %2622 = vrot.lane.b32.xlu0 %v10032_v56, %s14544_s13  ;;  %v12101_v56 = vpack.c.bf16 %v2717_v9, %v2717_v9  ;;  %v2963_v41 = vld [vmem:[#allocation2 + $0x33] sm:$0xff] }
 0x229   : > { %v2119_v22 = vpop.permute.xlu1 %2118 }
 0x22a   : > { %2186 = vst.msk [vmem:[#allocation3 + $0x74] sm:$0xf] %vm2156_vm8, %v2119_v22  ;;  %v2318_v34 = vpop.permute.xlu0 %2317  ;;  %v2722_v22 = vld [vmem:[#allocation2 + $0xf1] sm:$0xff] }
 0x22b   : > { %2620 = vrot.lane.b32.xlu1 %v10031_v45, %s14544_s13  ;;  %2414 = vst.msk [vmem:[#allocation3] sm:$0xf] %vm2413_vm9, %v2318_v34  ;;  %v2719_v45 = vld [vmem:[#allocation2 + $0xc9] sm:$0xff]  ;;  %v2721_v34 = vld [vmem:[#allocation2 + $0xe1] sm:$0xff] }
 0x22c   : > { %2626 = vrot.lane.b32.xlu0 %v10034_v19, %s14544_s13  ;;  %v12111_v19 = vpack.c.bf16 %v2719_v45, %v2719_v45 }
 0x22d   : > { %v2123_v36 = vpop.permute.xlu1 %2122 }
 0x22e   : > { %2188 = vst.msk [vmem:[#allocation3 + $0x7c] sm:$0xf] %vm2156_vm8, %v2123_v36  ;;  %v2322_v49 = vpop.permute.xlu0 %2321  ;;  %v12116_v36 = vpack.c.bf16 %v2722_v22, %v2722_v22  ;;  %vm5756_vm8 = vcmask 683648  }
 0x22f   : > { %2624 = vrot.lane.b32.xlu1 %v10033_v43, %s14544_s13  ;;  %2416 = vst.msk [vmem:[#allocation3 + $0x8] sm:$0xf] %vm2413_vm9, %v2322_v49 }
 0x230   : > { %2630 = vrot.lane.b32.xlu0 %v11806_v57, %s14544_s13  ;;  %v10039_v57 = vpack.c.bf16 %v2477_v55, %v2477_v55 }
 0x231   : > { %v2320_v1 = vpop.permute.xlu1 %2319 }
 0x232   : > { %2415 = vst.msk [vmem:[#allocation3 + $0x4] sm:$0xf] %vm2413_vm9, %v2320_v1  ;;  %v2326_v25 = vpop.permute.xlu0 %2325  ;;  %v2723_v1 = vld [vmem:[#allocation2 + $0xf9] sm:$0xff] }
 0x233   : > { %2628 = vrot.lane.b32.xlu1 %v10035_v47, %s14544_s13  ;;  %2418 = vst.msk [vmem:[#allocation3 + $0x10] sm:$0xf] %vm2413_vm9, %v2326_v25  ;;  %v12121_v47 = vpack.c.bf16 %v2721_v34, %v2721_v34  ;;  %v2726_v25 = vld [vmem:[#allocation2 + $0x121] sm:$0xff]  ;;  %v12131_v55 = vpack.c.bf16 %v2723_v1, %v2723_v1  ;;  %v2965_v34 = vld [vmem:[#allocation2 + $0x4b] sm:$0xff] }
 0x234   : > { %2634 = vrot.lane.b32.xlu0 %v10038_v59, %s14544_s13 }
 0x235   : > { %v2324_v30 = vpop.permute.xlu1 %2323 }
 0x236   : > { %2417 = vst.msk [vmem:[#allocation3 + $0xc] sm:$0xf] %vm2413_vm9, %v2324_v30  ;;  %v2330_v39 = vpop.permute.xlu0 %2329 }
 0x237   : > { %2632 = vrot.lane.b32.xlu1 %v11817_v26, %s14544_s13  ;;  %2420 = vst.msk [vmem:[#allocation3 + $0x18] sm:$0xf] %vm2413_vm9, %v2330_v39  ;;  %v2707_v26 = vld [vmem:[#allocation2 + $0x39] sm:$0xff] }
 0x238   : > { %2832 = vrot.lane.b32.xlu0 %v10040_v53, %s10860_s18  ;;  %v10043_v62 = vpack.c.bf16 %v2707_v26, %v2707_v26  ;;  %v2725_v53 = vld [vmem:[#allocation2 + $0x111] sm:$0xff]  ;;  %v2728_v39 = vld [vmem:[#allocation2 + $0x139] sm:$0xff] }
 0x239   : > { %v2328_v46 = vpop.permute.xlu1 %2327  ;;  %v12141_v18 = vpack.c.bf16 %v2725_v53, %v2725_v53 }
 0x23a   : > { %2419 = vst.msk [vmem:[#allocation3 + $0x14] sm:$0xf] %vm2413_vm9, %v2328_v46  ;;  %v2334_v52 = vpop.permute.xlu0 %2333 }
 0x23b   : > { %2636 = vrot.lane.b32.xlu1 %v10039_v57, %s14544_s13  ;;  %2422 = vst.msk [vmem:[#allocation3 + $0x20] sm:$0xf] %vm2413_vm9, %v2334_v52  ;;  %v12136_v57 = vpack.c.bf16 %v2726_v25, %v2726_v25  ;;  %v2730_v52 = vld [vmem:[#allocation2 + $0x151] sm:$0xff]  ;;  %v2967_v25 = vld [vmem:[#allocation2 + $0x63] sm:$0xff]  ;;  %s14562_s13 = smov 96  }
 0x23c   : > { %2836 = vrot.lane.b32.xlu0 %v10042_v51, %s10860_s18  ;;  %v2727_v51 = vld [vmem:[#allocation2 + $0x129] sm:$0xff] }
 0x23d   : > { %v2332_v13 = vpop.permute.xlu1 %2331  ;;  %v12151_v26 = vpack.c.bf16 %v2727_v51, %v2727_v51  ;;  %v2969_v51 = vld [vmem:[#allocation2 + $0x7b] sm:$0xff] }
 0x23e   : > { %2421 = vst.msk [vmem:[#allocation3 + $0x1c] sm:$0xf] %vm2413_vm9, %v2332_v13  ;;  %v2338_v10 = vpop.permute.xlu0 %2337 }
 0x23f   : > { %2834 = vrot.lane.b32.xlu1 %v10041_v6, %s10860_s18  ;;  %2424 = vst.msk [vmem:[#allocation3 + $0x28] sm:$0xf] %vm2413_vm9, %v2338_v10  ;;  %v12146_v6 = vpack.c.bf16 %v2728_v39, %v2728_v39  ;;  %v12156_v10 = vpack.c.bf16 %v2730_v52, %v2730_v52 }
 0x240   : > { %2840 = vrot.lane.b32.xlu0 %v12050_v15, %s10860_s18 }
 0x241   : > { %v2336_v28 = vpop.permute.xlu1 %2335 }
 0x242   : > { %2423 = vst.msk [vmem:[#allocation3 + $0x24] sm:$0xf] %vm2413_vm9, %v2336_v28  ;;  %v2342_v23 = vpop.permute.xlu0 %2341  ;;  %v12161_v28 = vpack.c.bf16 %v2729_v60, %v2729_v60 }
 0x243   : > { %2838 = vrot.lane.b32.xlu1 %v10043_v62, %s10860_s18  ;;  %2426 = vst.msk [vmem:[#allocation3 + $0x30] sm:$0xf] %vm2413_vm9, %v2342_v23  ;;  %v2731_v23 = vld [vmem:[#allocation2 + $0x159] sm:$0xff] }
 0x244   : > { %2844 = vrot.lane.b32.xlu0 %v12057_v35, %s10860_s18 }
 0x245   : > { %v2340_v58 = vpop.permute.xlu1 %2339 }
 0x246   : > { %2425 = vst.msk [vmem:[#allocation3 + $0x2c] sm:$0xf] %vm2413_vm9, %v2340_v58  ;;  %v2346_v31 = vpop.permute.xlu0 %2345  ;;  %v12166_v58 = vpack.c.bf16 %v2732_v12, %v2732_v12  ;;  %v2971_v12 = vld [vmem:[#allocation2 + $0x93] sm:$0xff] }
 0x247   : > { %2842 = vrot.lane.b32.xlu1 %v12061_v16, %s10860_s18  ;;  %2428 = vst.msk [vmem:[#allocation3 + $0x38] sm:$0xf] %vm2413_vm9, %v2346_v31  ;;  %v12171_v31 = vpack.c.bf16 %v2731_v23, %v2731_v23 }
 0x248   : > { %2848 = vrot.lane.b32.xlu0 %v12066_v38, %s10860_s18 }
 0x249   : > { %v2344_v14 = vpop.permute.xlu1 %2343 }
 0x24a   : > { %2427 = vst.msk [vmem:[#allocation3 + $0x34] sm:$0xf] %vm2413_vm9, %v2344_v14  ;;  %v2350_v29 = vpop.permute.xlu0 %2349  ;;  %v2733_v14 = vld [vmem:[#allocation2 + $0x171] sm:$0xff] }
 0x24b   : > { %2846 = vrot.lane.b32.xlu1 %v12071_v44, %s10860_s18  ;;  %2430 = vst.msk [vmem:[#allocation3 + $0x40] sm:$0xf] %vm2413_vm9, %v2350_v29  ;;  %v12176_v29 = vpack.c.bf16 %v2734_v27, %v2734_v27 }
 0x24c   : > { %2852 = vrot.lane.b32.xlu0 %v12076_v17, %s10860_s18 }
 0x24d   : > { %v2348_v20 = vpop.permute.xlu1 %2347 }
 0x24e   : > { %2429 = vst.msk [vmem:[#allocation3 + $0x3c] sm:$0xf] %vm2413_vm9, %v2348_v20  ;;  %v2354_v7 = vpop.permute.xlu0 %2353  ;;  %v12181_v20 = vpack.c.bf16 %v2733_v14, %v2733_v14  ;;  %v2973_v14 = vld [vmem:[#allocation2 + $0xab] sm:$0xff] }
 0x24f   : > { %2850 = vrot.lane.b32.xlu1 %v12081_v11, %s10860_s18  ;;  %2432 = vst.msk [vmem:[#allocation3 + $0x48] sm:$0xf] %vm2413_vm9, %v2354_v7  ;;  %v2735_v7 = vld [vmem:[#allocation2 + $0x189] sm:$0xff] }
 0x250   : > { %2856 = vrot.lane.b32.xlu0 %v12086_v24, %s10860_s18 }
 0x251   : > { %v2352_v61 = vpop.permute.xlu1 %2351 }
 0x252   : > { %2431 = vst.msk [vmem:[#allocation3 + $0x44] sm:$0xf] %vm2413_vm9, %v2352_v61  ;;  %v2358_v32 = vpop.permute.xlu0 %2357  ;;  %v10072_v61 = vpack.c.bf16 %v2961_v42, %v2961_v42 }
 0x253   : > { %2854 = vrot.lane.b32.xlu1 %v12091_v50, %s10860_s18  ;;  %2434 = vst.msk [vmem:[#allocation3 + $0x50] sm:$0xf] %vm2413_vm9, %v2358_v32  ;;  %v12189_v32 = vpack.c.bf16 %v2735_v7, %v2735_v7 }
 0x254   : > { %2860 = vrot.lane.b32.xlu0 %v12096_v5, %s10860_s18 }
 0x255   : > { %v2356_v8 = vpop.permute.xlu1 %2355 }
 0x256   : > { %2433 = vst.msk [vmem:[#allocation3 + $0x4c] sm:$0xf] %vm2413_vm9, %v2356_v8  ;;  %v2362_v43 = vpop.permute.xlu0 %2361  ;;  %v2962_v8 = vld [vmem:[#allocation2 + $0x23] sm:$0xff] }
 0x257   : > { %2858 = vrot.lane.b32.xlu1 %v12101_v56, %s10860_s18  ;;  %2436 = vst.msk [vmem:[#allocation3 + $0x58] sm:$0xf] %vm2413_vm9, %v2362_v43  ;;  %v10074_v43 = vpack.c.bf16 %v2963_v41, %v2963_v41 }
 0x258   : > { %2864 = vrot.lane.b32.xlu0 %v12106_v54, %s10860_s18 }
 0x259   : > { %v2360_v33 = vpop.permute.xlu1 %2359 }
 0x25a   : > { %2435 = vst.msk [vmem:[#allocation3 + $0x54] sm:$0xf] %vm2413_vm9, %v2360_v33  ;;  %v2366_v49 = vpop.permute.xlu0 %2365  ;;  %v10073_v33 = vpack.c.bf16 %v2962_v8, %v2962_v8  ;;  %v2974_v8 = vld [vmem:[#allocation2 + $0xb3] sm:$0xff] }
 0x25b   : > { %2862 = vrot.lane.b32.xlu1 %v12111_v19, %s10860_s18  ;;  %2438 = vst.msk [vmem:[#allocation3 + $0x60] sm:$0xf] %vm2413_vm9, %v2366_v49  ;;  %v2964_v49 = vld [vmem:[#allocation2 + $0x3b] sm:$0xff] }
 0x25c   : > { %2868 = vrot.lane.b32.xlu0 %v12116_v36, %s10860_s18 }
 0x25d   : > { %v2364_v59 = vpop.permute.xlu1 %2363 }
 0x25e   : > { %2437 = vst.msk [vmem:[#allocation3 + $0x5c] sm:$0xf] %vm2413_vm9, %v2364_v59  ;;  %v2370_v30 = vpop.permute.xlu0 %2369  ;;  %v10076_v59 = vpack.c.bf16 %v2965_v34, %v2965_v34  ;;  %v2977_v34 = vld [vmem:[#allocation2 + $0xdb] sm:$0xff] }
 0x25f   : > { %2866 = vrot.lane.b32.xlu1 %v12121_v47, %s10860_s18  ;;  %2440 = vst.msk [vmem:[#allocation3 + $0x68] sm:$0xf] %vm2413_vm9, %v2370_v30  ;;  %v10075_v30 = vpack.c.bf16 %v2964_v49, %v2964_v49  ;;  %v2976_v49 = vld [vmem:[#allocation2 + $0xcb] sm:$0xff] }
 0x260   : > { %2872 = vrot.lane.b32.xlu0 %v12126_v21, %s10860_s18 }
 0x261   : > { %v2368_v37 = vpop.permute.xlu1 %2367 }
 0x262   : > { %2439 = vst.msk [vmem:[#allocation3 + $0x64] sm:$0xf] %vm2413_vm9, %v2368_v37  ;;  %v2374_v46 = vpop.permute.xlu0 %2373  ;;  %v2966_v37 = vld [vmem:[#allocation2 + $0x53] sm:$0xff] }
 0x263   : > { %2870 = vrot.lane.b32.xlu1 %v12131_v55, %s10860_s18  ;;  %2442 = vst.msk [vmem:[#allocation3 + $0x70] sm:$0xf] %vm2413_vm9, %v2374_v46  ;;  %v10078_v46 = vpack.c.bf16 %v2967_v25, %v2967_v25  ;;  %v2979_v25 = vld [vmem:[#allocation2 + $0xf3] sm:$0xff] }
 0x264   : > { %2876 = vrot.lane.b32.xlu0 %v12136_v57, %s10860_s18 }
 0x265   : > { %v2372_v63 = vpop.permute.xlu1 %2371 }
 0x266   : > { %2441 = vst.msk [vmem:[#allocation3 + $0x6c] sm:$0xf] %vm2413_vm9, %v2372_v63  ;;  %v2378_v13 = vpop.permute.xlu0 %2377  ;;  %v10077_v63 = vpack.c.bf16 %v2966_v37, %v2966_v37  ;;  %v2978_v37 = vld [vmem:[#allocation2 + $0xe3] sm:$0xff] }
 0x267   : > { %2874 = vrot.lane.b32.xlu1 %v12141_v18, %s10860_s18  ;;  %2444 = vst.msk [vmem:[#allocation3 + $0x78] sm:$0xf] %vm2413_vm9, %v2378_v13  ;;  %v2968_v13 = vld [vmem:[#allocation2 + $0x6b] sm:$0xff] }
 0x268   : > { %2880 = vrot.lane.b32.xlu0 %v12146_v6, %s10860_s18 }
 0x269   : > { %v2376_v62 = vpop.permute.xlu1 %2375 }
 0x26a   : > { %2443 = vst.msk [vmem:[#allocation3 + $0x74] sm:$0xf] %vm2413_vm9, %v2376_v62  ;;  %v2575_v48 = vpop.permute.xlu0 %2574  ;;  %v10080_v62 = vpack.c.bf16 %v2969_v51, %v2969_v51  ;;  %v2981_v51 = vld [vmem:[#allocation2 + $0x10b] sm:$0xff] }
 0x26b   : > { %2878 = vrot.lane.b32.xlu1 %v12151_v26, %s10860_s18  ;;  %2671 = vst.msk [vmem:[#allocation3] sm:$0xf] %vm2670_vm10, %v2575_v48  ;;  %v10079_v48 = vpack.c.bf16 %v2968_v13, %v2968_v13  ;;  %v2980_v13 = vld [vmem:[#allocation2 + $0xfb] sm:$0xff] }
 0x26c   : > { %2884 = vrot.lane.b32.xlu0 %v12156_v10, %s10860_s18 }
 0x26d   : > { %v2380_v0 = vpop.permute.xlu1 %2379 }
 0x26e   : > { %2445 = vst.msk [vmem:[#allocation3 + $0x7c] sm:$0xf] %vm2413_vm9, %v2380_v0  ;;  %v2579_v2 = vpop.permute.xlu0 %2578  ;;  %v2970_v0 = vld [vmem:[#allocation2 + $0x83] sm:$0xff]  ;;  %vm6013_vm9 = vcmask 716448  }
 0x26f   : > { %2882 = vrot.lane.b32.xlu1 %v12161_v28, %s10860_s18  ;;  %2673 = vst.msk [vmem:[#allocation3 + $0x8] sm:$0xf] %vm2670_vm10, %v2579_v2  ;;  %v10082_v2 = vpack.c.bf16 %v2971_v12, %v2971_v12  ;;  %v2983_v12 = vld [vmem:[#allocation2 + $0x123] sm:$0xff] }
 0x270   : > { %2888 = vrot.lane.b32.xlu0 %v12166_v58, %s10860_s18 }
 0x271   : > { %v2577_v4 = vpop.permute.xlu1 %2576 }
 0x272   : > { %2672 = vst.msk [vmem:[#allocation3 + $0x4] sm:$0xf] %vm2670_vm10, %v2577_v4  ;;  %v2583_v40 = vpop.permute.xlu0 %2582  ;;  %v10081_v4 = vpack.c.bf16 %v2970_v0, %v2970_v0  ;;  %v2982_v0 = vld [vmem:[#allocation2 + $0x113] sm:$0xff] }
 0x273   : > { %2886 = vrot.lane.b32.xlu1 %v12171_v31, %s10860_s18  ;;  %2675 = vst.msk [vmem:[#allocation3 + $0x10] sm:$0xf] %vm2670_vm10, %v2583_v40  ;;  %v2972_v40 = vld [vmem:[#allocation2 + $0x9b] sm:$0xff] }
 0x274   : > { %2892 = vrot.lane.b32.xlu0 %v12176_v29, %s10860_s18  ;;  %v10083_v41 = vpack.c.bf16 %v2972_v40, %v2972_v40  ;;  %v2984_v40 = vld [vmem:[#allocation2 + $0x12b] sm:$0xff] }
 0x275   : > { %v2581_v9 = vpop.permute.xlu1 %2580 }
 0x276   : > { %2674 = vst.msk [vmem:[#allocation3 + $0xc] sm:$0xf] %vm2670_vm10, %v2581_v9  ;;  %v2587_v45 = vpop.permute.xlu0 %2586  ;;  %v10084_v9 = vpack.c.bf16 %v2973_v14, %v2973_v14  ;;  %v2985_v14 = vld [vmem:[#allocation2 + $0x13b] sm:$0xff] }
 0x277   : > { %2890 = vrot.lane.b32.xlu1 %v12181_v20, %s10860_s18  ;;  %2677 = vst.msk [vmem:[#allocation3 + $0x18] sm:$0xf] %vm2670_vm10, %v2587_v45 }
 0x278   : > { %3089 = vrot.lane.b32.xlu0 %v10072_v61, %s14542_s19  ;;  %v2975_v61 = vld [vmem:[#allocation2 + $0xc3] sm:$0xff] }
 0x279   : > { %v2585_v22 = vpop.permute.xlu1 %2584 }
 0x27a   : > { %2676 = vst.msk [vmem:[#allocation3 + $0x14] sm:$0xf] %vm2670_vm10, %v2585_v22  ;;  %v2591_v3 = vpop.permute.xlu0 %2590 }
 0x27b   : > { %2894 = vrot.lane.b32.xlu1 %v12189_v32, %s10860_s18  ;;  %2679 = vst.msk [vmem:[#allocation3 + $0x20] sm:$0xf] %vm2670_vm10, %v2591_v3  ;;  %s10868_s18 = smov 68  }
 0x27c   : > { %3093 = vrot.lane.b32.xlu0 %v10074_v43, %s14542_s19  ;;  %v10086_v43 = vpack.c.bf16 %v2975_v61, %v2975_v61  ;;  %v2987_v61 = vld [vmem:[#allocation2 + $0x153] sm:$0xff] }
 0x27d   : > { %v2589_v1 = vpop.permute.xlu1 %2588 }
 0x27e   : > { %2678 = vst.msk [vmem:[#allocation3 + $0x1c] sm:$0xf] %vm2670_vm10, %v2589_v1  ;;  %v2595_v53 = vpop.permute.xlu0 %2594 }
 0x27f   : > { %3091 = vrot.lane.b32.xlu1 %v10073_v33, %s14542_s19  ;;  %2681 = vst.msk [vmem:[#allocation3 + $0x28] sm:$0xf] %vm2670_vm10, %v2595_v53  ;;  %v10085_v33 = vpack.c.bf16 %v2974_v8, %v2974_v8  ;;  %v2986_v8 = vld [vmem:[#allocation2 + $0x143] sm:$0xff] }
 0x280   : > { %3097 = vrot.lane.b32.xlu0 %v10076_v59, %s14542_s19  ;;  %v10088_v59 = vpack.c.bf16 %v2977_v34, %v2977_v34  ;;  %v2989_v34 = vld [vmem:[#allocation2 + $0x16b] sm:$0xff] }
 0x281   : > { %v2593_v39 = vpop.permute.xlu1 %2592 }
 0x282   : > { %2680 = vst.msk [vmem:[#allocation3 + $0x24] sm:$0xf] %vm2670_vm10, %v2593_v39  ;;  %v2599_v52 = vpop.permute.xlu0 %2598 }
 0x283   : > { %3095 = vrot.lane.b32.xlu1 %v10075_v30, %s14542_s19  ;;  %2683 = vst.msk [vmem:[#allocation3 + $0x30] sm:$0xf] %vm2670_vm10, %v2599_v52  ;;  %v10087_v30 = vpack.c.bf16 %v2976_v49, %v2976_v49  ;;  %v2988_v49 = vld [vmem:[#allocation2 + $0x15b] sm:$0xff] }
 0x284   : > { %3101 = vrot.lane.b32.xlu0 %v10078_v46, %s14542_s19  ;;  %v10090_v46 = vpack.c.bf16 %v2979_v25, %v2979_v25  ;;  %v2991_v25 = vld [vmem:[#allocation2 + $0x183] sm:$0xff] }
 0x285   : > { %v2597_v60 = vpop.permute.xlu1 %2596 }
 0x286   : > { %2682 = vst.msk [vmem:[#allocation3 + $0x2c] sm:$0xf] %vm2670_vm10, %v2597_v60  ;;  %v2603_v23 = vpop.permute.xlu0 %2602 }
 0x287   : > { %3099 = vrot.lane.b32.xlu1 %v10077_v63, %s14542_s19  ;;  %2685 = vst.msk [vmem:[#allocation3 + $0x38] sm:$0xf] %vm2670_vm10, %v2603_v23  ;;  %v10089_v63 = vpack.c.bf16 %v2978_v37, %v2978_v37  ;;  %v2990_v37 = vld [vmem:[#allocation2 + $0x173] sm:$0xff] }
 0x288   : > { %3105 = vrot.lane.b32.xlu0 %v10080_v62, %s14542_s19  ;;  %v10092_v62 = vpack.c.bf16 %v2981_v51, %v2981_v51  ;;  %v3218_v51 = vld [vmem:[#allocation2 + $0x1d] sm:$0xff] }
 0x289   : > { %v2601_v27 = vpop.permute.xlu1 %2600 }
 0x28a   : > { %2684 = vst.msk [vmem:[#allocation3 + $0x34] sm:$0xf] %vm2670_vm10, %v2601_v27  ;;  %v2607_v42 = vpop.permute.xlu0 %2606 }
 0x28b   : > { %3103 = vrot.lane.b32.xlu1 %v10079_v48, %s14542_s19  ;;  %2687 = vst.msk [vmem:[#allocation3 + $0x40] sm:$0xf] %vm2670_vm10, %v2607_v42  ;;  %v10091_v48 = vpack.c.bf16 %v2980_v13, %v2980_v13  ;;  %v2992_v13 = vld [vmem:[#allocation2 + $0x18b] sm:$0xff] }
 0x28c   : > { %3109 = vrot.lane.b32.xlu0 %v10082_v2, %s14542_s19  ;;  %v10094_v2 = vpack.c.bf16 %v2983_v12, %v2983_v12  ;;  %v3220_v12 = vld [vmem:[#allocation2 + $0x35] sm:$0xff] }
 0x28d   : > { %v2605_v7 = vpop.permute.xlu1 %2604 }
 0x28e   : > { %2686 = vst.msk [vmem:[#allocation3 + $0x3c] sm:$0xf] %vm2670_vm10, %v2605_v7  ;;  %v2611_v45 = vpop.permute.xlu0 %2610 }
 0x28f   : > { %3107 = vrot.lane.b32.xlu1 %v10081_v4, %s14542_s19  ;;  %2689 = vst.msk [vmem:[#allocation3 + $0x48] sm:$0xf] %vm2670_vm10, %v2611_v45  ;;  %v10093_v4 = vpack.c.bf16 %v2982_v0, %v2982_v0  ;;  %v3219_v0 = vld [vmem:[#allocation2 + $0x25] sm:$0xff] }
 0x290   : > { %3113 = vrot.lane.b32.xlu0 %v10084_v9, %s14542_s19  ;;  %v10096_v9 = vpack.c.bf16 %v2985_v14, %v2985_v14  ;;  %v3222_v14 = vld [vmem:[#allocation2 + $0x4d] sm:$0xff] }
 0x291   : > { %v2609_v22 = vpop.permute.xlu1 %2608 }
 0x292   : > { %2688 = vst.msk [vmem:[#allocation3 + $0x44] sm:$0xf] %vm2670_vm10, %v2609_v22  ;;  %v2615_v3 = vpop.permute.xlu0 %2614 }
 0x293   : > { %3111 = vrot.lane.b32.xlu1 %v10083_v41, %s14542_s19  ;;  %2691 = vst.msk [vmem:[#allocation3 + $0x50] sm:$0xf] %vm2670_vm10, %v2615_v3  ;;  %v10095_v41 = vpack.c.bf16 %v2984_v40, %v2984_v40  ;;  %v3221_v40 = vld [vmem:[#allocation2 + $0x3d] sm:$0xff] }
 0x294   : > { %3117 = vrot.lane.b32.xlu0 %v10086_v43, %s14542_s19  ;;  %v10098_v43 = vpack.c.bf16 %v2987_v61, %v2987_v61  ;;  %v3224_v61 = vld [vmem:[#allocation2 + $0x65] sm:$0xff] }
 0x295   : > { %v2613_v1 = vpop.permute.xlu1 %2612 }
 0x296   : > { %2690 = vst.msk [vmem:[#allocation3 + $0x4c] sm:$0xf] %vm2670_vm10, %v2613_v1  ;;  %v2619_v53 = vpop.permute.xlu0 %2618 }
 0x297   : > { %3115 = vrot.lane.b32.xlu1 %v10085_v33, %s14542_s19  ;;  %2693 = vst.msk [vmem:[#allocation3 + $0x58] sm:$0xf] %vm2670_vm10, %v2619_v53  ;;  %v10097_v33 = vpack.c.bf16 %v2986_v8, %v2986_v8  ;;  %v3223_v8 = vld [vmem:[#allocation2 + $0x55] sm:$0xff] }
 0x298   : > { %3121 = vrot.lane.b32.xlu0 %v10088_v59, %s14542_s19  ;;  %v10100_v59 = vpack.c.bf16 %v2989_v34, %v2989_v34  ;;  %v3226_v34 = vld [vmem:[#allocation2 + $0x7d] sm:$0xff] }
 0x299   : > { %v2617_v39 = vpop.permute.xlu1 %2616 }
 0x29a   : > { %2692 = vst.msk [vmem:[#allocation3 + $0x54] sm:$0xf] %vm2670_vm10, %v2617_v39  ;;  %v2623_v52 = vpop.permute.xlu0 %2622 }
 0x29b   : > { %3119 = vrot.lane.b32.xlu1 %v10087_v30, %s14542_s19  ;;  %2695 = vst.msk [vmem:[#allocation3 + $0x60] sm:$0xf] %vm2670_vm10, %v2623_v52  ;;  %v10099_v30 = vpack.c.bf16 %v2988_v49, %v2988_v49  ;;  %v3225_v49 = vld [vmem:[#allocation2 + $0x6d] sm:$0xff] }
 0x29c   : > { %3125 = vrot.lane.b32.xlu0 %v10090_v46, %s14542_s19  ;;  %v10102_v46 = vpack.c.bf16 %v2991_v25, %v2991_v25  ;;  %v3228_v25 = vld [vmem:[#allocation2 + $0x95] sm:$0xff] }
 0x29d   : > { %v2621_v60 = vpop.permute.xlu1 %2620 }
 0x29e   : > { %2694 = vst.msk [vmem:[#allocation3 + $0x5c] sm:$0xf] %vm2670_vm10, %v2621_v60  ;;  %v2627_v23 = vpop.permute.xlu0 %2626 }
 0x29f   : > { %3123 = vrot.lane.b32.xlu1 %v10089_v63, %s14542_s19  ;;  %2697 = vst.msk [vmem:[#allocation3 + $0x68] sm:$0xf] %vm2670_vm10, %v2627_v23  ;;  %v10101_v63 = vpack.c.bf16 %v2990_v37, %v2990_v37  ;;  %v3227_v37 = vld [vmem:[#allocation2 + $0x85] sm:$0xff] }
 0x2a0   : > { %3129 = vrot.lane.b32.xlu0 %v10092_v62, %s14542_s19  ;;  %v10104_v62 = vpack.c.bf16 %v3218_v51, %v3218_v51  ;;  %v3230_v51 = vld [vmem:[#allocation2 + $0xad] sm:$0xff] }
 0x2a1   : > { %v2625_v27 = vpop.permute.xlu1 %2624 }
 0x2a2   : > { %2696 = vst.msk [vmem:[#allocation3 + $0x64] sm:$0xf] %vm2670_vm10, %v2625_v27  ;;  %v2631_v42 = vpop.permute.xlu0 %2630 }
 0x2a3   : > { %3127 = vrot.lane.b32.xlu1 %v10091_v48, %s14542_s19  ;;  %2699 = vst.msk [vmem:[#allocation3 + $0x70] sm:$0xf] %vm2670_vm10, %v2631_v42  ;;  %v10103_v48 = vpack.c.bf16 %v2992_v13, %v2992_v13  ;;  %v3229_v13 = vld [vmem:[#allocation2 + $0x9d] sm:$0xff] }
 0x2a4   : > { %3133 = vrot.lane.b32.xlu0 %v10094_v2, %s14542_s19  ;;  %v10106_v2 = vpack.c.bf16 %v3220_v12, %v3220_v12  ;;  %v3232_v12 = vld [vmem:[#allocation2 + $0xc5] sm:$0xff] }
 0x2a5   : > { %v2629_v7 = vpop.permute.xlu1 %2628 }
 0x2a6   : > { %2698 = vst.msk [vmem:[#allocation3 + $0x6c] sm:$0xf] %vm2670_vm10, %v2629_v7  ;;  %v2635_v45 = vpop.permute.xlu0 %2634 }
 0x2a7   : > { %3131 = vrot.lane.b32.xlu1 %v10093_v4, %s14542_s19  ;;  %2701 = vst.msk [vmem:[#allocation3 + $0x78] sm:$0xf] %vm2670_vm10, %v2635_v45  ;;  %v10105_v4 = vpack.c.bf16 %v3219_v0, %v3219_v0  ;;  %v3231_v0 = vld [vmem:[#allocation2 + $0xb5] sm:$0xff] }
 0x2a8   : > { %3137 = vrot.lane.b32.xlu0 %v10096_v9, %s14542_s19  ;;  %v12262_v9 = vpack.c.bf16 %v3222_v14, %v3222_v14  ;;  %v3234_v14 = vld [vmem:[#allocation2 + $0xdd] sm:$0xff] }
 0x2a9   : > { %v2633_v22 = vpop.permute.xlu1 %2632 }
 0x2aa   : > { %2700 = vst.msk [vmem:[#allocation3 + $0x74] sm:$0xf] %vm2670_vm10, %v2633_v22  ;;  %v2833_v3 = vpop.permute.xlu0 %2832 }
 0x2ab   : > { %3135 = vrot.lane.b32.xlu1 %v10095_v41, %s14542_s19  ;;  %2929 = vst.msk [vmem:[#allocation3] sm:$0xf] %vm2928_vm11, %v2833_v3  ;;  %v10107_v41 = vpack.c.bf16 %v3221_v40, %v3221_v40  ;;  %v3233_v40 = vld [vmem:[#allocation2 + $0xcd] sm:$0xff] }
 0x2ac   : > { %3141 = vrot.lane.b32.xlu0 %v10098_v43, %s14542_s19  ;;  %v12269_v43 = vpack.c.bf16 %v3224_v61, %v3224_v61  ;;  %v12318_v61 = vpack.c.bf16 %v3234_v14, %v3234_v14 }
 0x2ad   : > { %v2637_v1 = vpop.permute.xlu1 %2636 }
 0x2ae   : > { %2702 = vst.msk [vmem:[#allocation3 + $0x7c] sm:$0xf] %vm2670_vm10, %v2637_v1  ;;  %v2837_v53 = vpop.permute.xlu0 %2836  ;;  %vm6271_vm10 = vcmask 749248  }
 0x2af   : > { %3139 = vrot.lane.b32.xlu1 %v10097_v33, %s14542_s19  ;;  %2931 = vst.msk [vmem:[#allocation3 + $0x8] sm:$0xf] %vm2928_vm11, %v2837_v53  ;;  %v12273_v33 = vpack.c.bf16 %v3223_v8, %v3223_v8 }
 0x2b0   : > { %3145 = vrot.lane.b32.xlu0 %v10100_v59, %s14542_s19  ;;  %v12278_v59 = vpack.c.bf16 %v3226_v34, %v3226_v34 }
 0x2b1   : > { %v2835_v39 = vpop.permute.xlu1 %2834 }
 0x2b2   : > { %2930 = vst.msk [vmem:[#allocation3 + $0x4] sm:$0xf] %vm2928_vm11, %v2835_v39  ;;  %v2841_v52 = vpop.permute.xlu0 %2840 }
 0x2b3   : > { %3143 = vrot.lane.b32.xlu1 %v10099_v30, %s14542_s19  ;;  %2933 = vst.msk [vmem:[#allocation3 + $0x10] sm:$0xf] %vm2928_vm11, %v2841_v52  ;;  %v12283_v30 = vpack.c.bf16 %v3225_v49, %v3225_v49  ;;  %v3238_v49 = vld [vmem:[#allocation2 + $0x10d] sm:$0xff] }
 0x2b4   : > { %3149 = vrot.lane.b32.xlu0 %v10102_v46, %s14542_s19  ;;  %v12288_v46 = vpack.c.bf16 %v3228_v25, %v3228_v25 }
 0x2b5   : > { %v2839_v60 = vpop.permute.xlu1 %2838 }
 0x2b6   : > { %2932 = vst.msk [vmem:[#allocation3 + $0xc] sm:$0xf] %vm2928_vm11, %v2839_v60  ;;  %v2845_v23 = vpop.permute.xlu0 %2844 }
 0x2b7   : > { %3147 = vrot.lane.b32.xlu1 %v10101_v63, %s14542_s19  ;;  %2935 = vst.msk [vmem:[#allocation3 + $0x18] sm:$0xf] %vm2928_vm11, %v2845_v23  ;;  %v12293_v63 = vpack.c.bf16 %v3227_v37, %v3227_v37 }
 0x2b8   : > { %3346 = vrot.lane.b32.xlu0 %v10104_v62, %s10862_s20  ;;  %v12298_v62 = vpack.c.bf16 %v3230_v51, %v3230_v51  ;;  %v3240_v51 = vld [vmem:[#allocation2 + $0x125] sm:$0xff] }
 0x2b9   : > { %v2843_v27 = vpop.permute.xlu1 %2842 }
 0x2ba   : > { %2934 = vst.msk [vmem:[#allocation3 + $0x14] sm:$0xf] %vm2928_vm11, %v2843_v27  ;;  %v2849_v42 = vpop.permute.xlu0 %2848 }
 0x2bb   : > { %3151 = vrot.lane.b32.xlu1 %v10103_v48, %s14542_s19  ;;  %2937 = vst.msk [vmem:[#allocation3 + $0x20] sm:$0xf] %vm2928_vm11, %v2849_v42  ;;  %v12303_v48 = vpack.c.bf16 %v3229_v13, %v3229_v13  ;;  %s14583_s19 = smov 8  }
 0x2bc   : > { %3350 = vrot.lane.b32.xlu0 %v10106_v2, %s10862_s20  ;;  %v12308_v2 = vpack.c.bf16 %v3232_v12, %v3232_v12 }
 0x2bd   : > { %v2847_v7 = vpop.permute.xlu1 %2846 }
 0x2be   : > { %2936 = vst.msk [vmem:[#allocation3 + $0x1c] sm:$0xf] %vm2928_vm11, %v2847_v7  ;;  %v2853_v45 = vpop.permute.xlu0 %2852 }
 0x2bf   : > { %3348 = vrot.lane.b32.xlu1 %v10105_v4, %s10862_s20  ;;  %2939 = vst.msk [vmem:[#allocation3 + $0x28] sm:$0xf] %vm2928_vm11, %v2853_v45  ;;  %v12313_v4 = vpack.c.bf16 %v3231_v0, %v3231_v0  ;;  %v12323_v45 = vpack.c.bf16 %v3233_v40, %v3233_v40  ;;  %v3242_v0 = vld [vmem:[#allocation2 + $0x13d] sm:$0xff] }
 0x2c0   : > { %3354 = vrot.lane.b32.xlu0 %v12262_v9, %s10862_s20 }
 0x2c1   : > { %v2851_v22 = vpop.permute.xlu1 %2850 }
 0x2c2   : > { %2938 = vst.msk [vmem:[#allocation3 + $0x24] sm:$0xf] %vm2928_vm11, %v2851_v22  ;;  %v2857_v3 = vpop.permute.xlu0 %2856  ;;  %v3235_v22 = vld [vmem:[#allocation2 + $0xe5] sm:$0xff] }
 0x2c3   : > { %3352 = vrot.lane.b32.xlu1 %v10107_v41, %s10862_s20  ;;  %2941 = vst.msk [vmem:[#allocation3 + $0x30] sm:$0xf] %vm2928_vm11, %v2857_v3  ;;  %v3236_v41 = vld [vmem:[#allocation2 + $0xf5] sm:$0xff] }
 0x2c4   : > { %3358 = vrot.lane.b32.xlu0 %v12269_v43, %s10862_s20  ;;  %v12328_v3 = vpack.c.bf16 %v3236_v41, %v3236_v41  ;;  %v3244_v41 = vld [vmem:[#allocation2 + $0x155] sm:$0xff] }
 0x2c5   : > { %v2855_v1 = vpop.permute.xlu1 %2854 }
 0x2c6   : > { %2940 = vst.msk [vmem:[#allocation3 + $0x2c] sm:$0xf] %vm2928_vm11, %v2855_v1  ;;  %v2861_v53 = vpop.permute.xlu0 %2860  ;;  %v12333_v1 = vpack.c.bf16 %v3235_v22, %v3235_v22 }
 0x2c7   : > { %3356 = vrot.lane.b32.xlu1 %v12273_v33, %s10862_s20  ;;  %2943 = vst.msk [vmem:[#allocation3 + $0x38] sm:$0xf] %vm2928_vm11, %v2861_v53  ;;  %v3237_v53 = vld [vmem:[#allocation2 + $0xfd] sm:$0xff] }
 0x2c8   : > { %3362 = vrot.lane.b32.xlu0 %v12278_v59, %s10862_s20 }
 0x2c9   : > { %v2859_v39 = vpop.permute.xlu1 %2858 }
 0x2ca   : > { %2942 = vst.msk [vmem:[#allocation3 + $0x34] sm:$0xf] %vm2928_vm11, %v2859_v39  ;;  %v2865_v52 = vpop.permute.xlu0 %2864  ;;  %v12338_v39 = vpack.c.bf16 %v3238_v49, %v3238_v49 }
 0x2cb   : > { %3360 = vrot.lane.b32.xlu1 %v12283_v30, %s10862_s20  ;;  %2945 = vst.msk [vmem:[#allocation3 + $0x40] sm:$0xf] %vm2928_vm11, %v2865_v52  ;;  %v12343_v52 = vpack.c.bf16 %v3237_v53, %v3237_v53  ;;  %v3246_v53 = vld [vmem:[#allocation2 + $0x16d] sm:$0xff] }
 0x2cc   : > { %3366 = vrot.lane.b32.xlu0 %v12288_v46, %s10862_s20 }
 0x2cd   : > { %v2863_v60 = vpop.permute.xlu1 %2862 }
 0x2ce   : > { %2944 = vst.msk [vmem:[#allocation3 + $0x3c] sm:$0xf] %vm2928_vm11, %v2863_v60  ;;  %v2869_v23 = vpop.permute.xlu0 %2868  ;;  %v3239_v60 = vld [vmem:[#allocation2 + $0x115] sm:$0xff] }
 0x2cf   : > { %3364 = vrot.lane.b32.xlu1 %v12293_v63, %s10862_s20  ;;  %2947 = vst.msk [vmem:[#allocation3 + $0x48] sm:$0xf] %vm2928_vm11, %v2869_v23  ;;  %v12348_v23 = vpack.c.bf16 %v3240_v51, %v3240_v51 }
 0x2d0   : > { %3370 = vrot.lane.b32.xlu0 %v12298_v62, %s10862_s20 }
 0x2d1   : > { %v2867_v27 = vpop.permute.xlu1 %2866 }
 0x2d2   : > { %2946 = vst.msk [vmem:[#allocation3 + $0x44] sm:$0xf] %vm2928_vm11, %v2867_v27  ;;  %v2873_v42 = vpop.permute.xlu0 %2872  ;;  %v12353_v27 = vpack.c.bf16 %v3239_v60, %v3239_v60 }
 0x2d3   : > { %3368 = vrot.lane.b32.xlu1 %v12303_v48, %s10862_s20  ;;  %2949 = vst.msk [vmem:[#allocation3 + $0x50] sm:$0xf] %vm2928_vm11, %v2873_v42  ;;  %v3241_v42 = vld [vmem:[#allocation2 + $0x12d] sm:$0xff] }
 0x2d4   : > { %3374 = vrot.lane.b32.xlu0 %v12308_v2, %s10862_s20 }
 0x2d5   : > { %v2871_v7 = vpop.permute.xlu1 %2870 }
 0x2d6   : > { %2948 = vst.msk [vmem:[#allocation3 + $0x4c] sm:$0xf] %vm2928_vm11, %v2871_v7  ;;  %v2877_v8 = vpop.permute.xlu0 %2876  ;;  %v12358_v7 = vpack.c.bf16 %v3242_v0, %v3242_v0  ;;  %v3248_v0 = vld [vmem:[#allocation2 + $0x185] sm:$0xff] }
 0x2d7   : > { %3372 = vrot.lane.b32.xlu1 %v12313_v4, %s10862_s20  ;;  %2951 = vst.msk [vmem:[#allocation3 + $0x58] sm:$0xf] %vm2928_vm11, %v2877_v8  ;;  %v12363_v8 = vpack.c.bf16 %v3241_v42, %v3241_v42 }
 0x2d8   : > { %3378 = vrot.lane.b32.xlu0 %v12318_v61, %s10862_s20 }
 0x2d9   : > { %v2875_v34 = vpop.permute.xlu1 %2874 }
 0x2da   : > { %2950 = vst.msk [vmem:[#allocation3 + $0x54] sm:$0xf] %vm2928_vm11, %v2875_v34  ;;  %v2881_v25 = vpop.permute.xlu0 %2880  ;;  %v3243_v34 = vld [vmem:[#allocation2 + $0x145] sm:$0xff] }
 0x2db   : > { %3376 = vrot.lane.b32.xlu1 %v12323_v45, %s10862_s20  ;;  %2953 = vst.msk [vmem:[#allocation3 + $0x60] sm:$0xf] %vm2928_vm11, %v2881_v25  ;;  %v12368_v25 = vpack.c.bf16 %v3244_v41, %v3244_v41 }
 0x2dc   : > { %3382 = vrot.lane.b32.xlu0 %v12328_v3, %s10862_s20 }
 0x2dd   : > { %v2879_v37 = vpop.permute.xlu1 %2878 }
 0x2de   : > { %2952 = vst.msk [vmem:[#allocation3 + $0x5c] sm:$0xf] %vm2928_vm11, %v2879_v37  ;;  %v2885_v13 = vpop.permute.xlu0 %2884  ;;  %v12373_v37 = vpack.c.bf16 %v3243_v34, %v3243_v34 }
 0x2df   : > { %3380 = vrot.lane.b32.xlu1 %v12333_v1, %s10862_s20  ;;  %2955 = vst.msk [vmem:[#allocation3 + $0x68] sm:$0xf] %vm2928_vm11, %v2885_v13  ;;  %v3245_v13 = vld [vmem:[#allocation2 + $0x15d] sm:$0xff] }
 0x2e0   : > { %3386 = vrot.lane.b32.xlu0 %v12338_v39, %s10862_s20 }
 0x2e1   : > { %v2883_v12 = vpop.permute.xlu1 %2882 }
 0x2e2   : > { %2954 = vst.msk [vmem:[#allocation3 + $0x64] sm:$0xf] %vm2928_vm11, %v2883_v12  ;;  %v2889_v14 = vpop.permute.xlu0 %2888  ;;  %v12378_v12 = vpack.c.bf16 %v3246_v53, %v3246_v53  ;;  %v3249_v53 = vld [vmem:[#allocation2 + $0x18d] sm:$0xff] }
 0x2e3   : > { %3384 = vrot.lane.b32.xlu1 %v12343_v52, %s10862_s20  ;;  %2957 = vst.msk [vmem:[#allocation3 + $0x70] sm:$0xf] %vm2928_vm11, %v2889_v14  ;;  %v12383_v14 = vpack.c.bf16 %v3245_v13, %v3245_v13  ;;  %v12401_v13 = vpack.c.bf16 %v3249_v53, %v3249_v53 }
 0x2e4   : > { %3390 = vrot.lane.b32.xlu0 %v12348_v23, %s10862_s20 }
 0x2e5   : > { %v2887_v40 = vpop.permute.xlu1 %2886 }
 0x2e6   : > { %2956 = vst.msk [vmem:[#allocation3 + $0x6c] sm:$0xf] %vm2928_vm11, %v2887_v40  ;;  %v2893_v22 = vpop.permute.xlu0 %2892  ;;  %v3247_v40 = vld [vmem:[#allocation2 + $0x175] sm:$0xff] }
 0x2e7   : > { %3388 = vrot.lane.b32.xlu1 %v12353_v27, %s10862_s20  ;;  %2959 = vst.msk [vmem:[#allocation3 + $0x78] sm:$0xf] %vm2928_vm11, %v2893_v22  ;;  %v12388_v22 = vpack.c.bf16 %v3248_v0, %v3248_v0  ;;  %v12393_v34 = vpack.c.bf16 %v3247_v40, %v3247_v40 }
 0x2e8   : > { %3394 = vrot.lane.b32.xlu0 %v12358_v7, %s10862_s20 }
 0x2e9   : > { %v2891_v49 = vpop.permute.xlu1 %2890 }
 0x2ea   : > { %2958 = vst.msk [vmem:[#allocation3 + $0x74] sm:$0xf] %vm2928_vm11, %v2891_v49  ;;  %v3090_v51 = vpop.permute.xlu0 %3089 }
 0x2eb   : > { %3392 = vrot.lane.b32.xlu1 %v12363_v8, %s10862_s20  ;;  %3186 = vst.msk [vmem:[#allocation3] sm:$0xf] %vm3185_vm12, %v3090_v51 }
 0x2ec   : > { %3398 = vrot.lane.b32.xlu0 %v12368_v25, %s10862_s20 }
 0x2ed   : > { %v2895_v60 = vpop.permute.xlu1 %2894 }
 0x2ee   : > { %2960 = vst.msk [vmem:[#allocation3 + $0x7c] sm:$0xf] %vm2928_vm11, %v2895_v60  ;;  %v3094_v42 = vpop.permute.xlu0 %3093  ;;  %vm6528_vm11 = vcmask 782048  }
 0x2ef   : > { %3396 = vrot.lane.b32.xlu1 %v12373_v37, %s10862_s20  ;;  %3188 = vst.msk [vmem:[#allocation3 + $0x8] sm:$0xf] %vm3185_vm12, %v3094_v42 }
 0x2f0   : > { %3402 = vrot.lane.b32.xlu0 %v12378_v12, %s10862_s20 }
 0x2f1   : > { %v3092_v41 = vpop.permute.xlu1 %3091 }
 0x2f2   : > { %3187 = vst.msk [vmem:[#allocation3 + $0x4] sm:$0xf] %vm3185_vm12, %v3092_v41  ;;  %v3098_v49 = vpop.permute.xlu0 %3097 }
 0x2f3   : > { %3400 = vrot.lane.b32.xlu1 %v12383_v14, %s10862_s20  ;;  %3190 = vst.msk [vmem:[#allocation3 + $0x10] sm:$0xf] %vm3185_vm12, %v3098_v49 }
 0x2f4   : > { %3406 = vrot.lane.b32.xlu0 %v12388_v22, %s10862_s20 }
 0x2f5   : > { %v3096_v51 = vpop.permute.xlu1 %3095 }
 0x2f6   : > { %3189 = vst.msk [vmem:[#allocation3 + $0xc] sm:$0xf] %vm3185_vm12, %v3096_v51  ;;  %v3102_v60 = vpop.permute.xlu0 %3101  ;;  %v3505_v51 = vld [vmem:[#allocation2 + $0x1b1] sm:$0xff] }
 0x2f7   : > { %3404 = vrot.lane.b32.xlu1 %v12393_v34, %s10862_s20  ;;  %3192 = vst.msk [vmem:[#allocation3 + $0x18] sm:$0xf] %vm3185_vm12, %v3102_v60  ;;  %v3504_v60 = vld [vmem:[#allocation2 + $0x1a1] sm:$0xff] }
 0x2f8   : > { %3603 = vrot.lane.b32.xlu0 %v12050_v15, %s14540_s21 }
 0x2f9   : > { %v3100_v0 = vpop.permute.xlu1 %3099 }
 0x2fa   : > { %3191 = vst.msk [vmem:[#allocation3 + $0x14] sm:$0xf] %vm3185_vm12, %v3100_v0  ;;  %v3106_v42 = vpop.permute.xlu0 %3105  ;;  %v12492_v0 = vpack.c.bf16 %v3505_v51, %v3505_v51  ;;  %v3996_v51 = vld [vmem:[#allocation2 + $0xc1] sm:$0xff] }
 0x2fb   : > { %3408 = vrot.lane.b32.xlu1 %v12401_v13, %s10862_s20  ;;  %3194 = vst.msk [vmem:[#allocation3 + $0x20] sm:$0xf] %vm3185_vm12, %v3106_v42  ;;  %s14561_s20 = smov 72  }
 0x2fc   : > { %3607 = vrot.lane.b32.xlu0 %v12057_v35, %s14540_s21 }
 0x2fd   : > { %v3104_v40 = vpop.permute.xlu1 %3103 }
 0x2fe   : > { %3193 = vst.msk [vmem:[#allocation3 + $0x1c] sm:$0xf] %vm3185_vm12, %v3104_v40  ;;  %v3110_v41 = vpop.permute.xlu0 %3109 }
 0x2ff   : > { %3605 = vrot.lane.b32.xlu1 %v12061_v16, %s14540_s21  ;;  %3196 = vst.msk [vmem:[#allocation3 + $0x28] sm:$0xf] %vm3185_vm12, %v3110_v41 }
 0x300   : > { %3611 = vrot.lane.b32.xlu0 %v12066_v38, %s14540_s21 }
 0x301   : > { %v3108_v15 = vpop.permute.xlu1 %3107 }
 0x302   : > { %3195 = vst.msk [vmem:[#allocation3 + $0x24] sm:$0xf] %vm3185_vm12, %v3108_v15  ;;  %v3114_v49 = vpop.permute.xlu0 %3113 }
 0x303   : > { %3609 = vrot.lane.b32.xlu1 %v12071_v44, %s14540_s21  ;;  %3198 = vst.msk [vmem:[#allocation3 + $0x30] sm:$0xf] %vm3185_vm12, %v3114_v49 }
 0x304   : > { %3615 = vrot.lane.b32.xlu0 %v12076_v17, %s14540_s21 }
 0x305   : > { %v3112_v35 = vpop.permute.xlu1 %3111 }
 0x306   : > { %3197 = vst.msk [vmem:[#allocation3 + $0x2c] sm:$0xf] %vm3185_vm12, %v3112_v35  ;;  %v3118_v16 = vpop.permute.xlu0 %3117 }
 0x307   : > { %3613 = vrot.lane.b32.xlu1 %v12081_v11, %s14540_s21  ;;  %3200 = vst.msk [vmem:[#allocation3 + $0x38] sm:$0xf] %vm3185_vm12, %v3118_v16 }
 0x308   : > { %3619 = vrot.lane.b32.xlu0 %v12086_v24, %s14540_s21 }
 0x309   : > { %v3116_v38 = vpop.permute.xlu1 %3115 }
 0x30a   : > { %3199 = vst.msk [vmem:[#allocation3 + $0x34] sm:$0xf] %vm3185_vm12, %v3116_v38  ;;  %v3122_v44 = vpop.permute.xlu0 %3121 }
 0x30b   : > { %3617 = vrot.lane.b32.xlu1 %v12091_v50, %s14540_s21  ;;  %3202 = vst.msk [vmem:[#allocation3 + $0x40] sm:$0xf] %vm3185_vm12, %v3122_v44 }
 0x30c   : > { %3623 = vrot.lane.b32.xlu0 %v12096_v5, %s14540_s21 }
 0x30d   : > { %v3120_v17 = vpop.permute.xlu1 %3119 }
 0x30e   : > { %3201 = vst.msk [vmem:[#allocation3 + $0x3c] sm:$0xf] %vm3185_vm12, %v3120_v17  ;;  %v3126_v11 = vpop.permute.xlu0 %3125  ;;  %v3762_v17 = vld [vmem:[#allocation2 + $0x1b5] sm:$0xff] }
 0x30f   : > { %3621 = vrot.lane.b32.xlu1 %v12101_v56, %s14540_s21  ;;  %3204 = vst.msk [vmem:[#allocation3 + $0x48] sm:$0xf] %vm3185_vm12, %v3126_v11  ;;  %v3761_v11 = vld [vmem:[#allocation2 + $0x1a5] sm:$0xff] }
 0x310   : > { %3627 = vrot.lane.b32.xlu0 %v12106_v54, %s14540_s21 }
 0x311   : > { %v3124_v24 = vpop.permute.xlu1 %3123 }
 0x312   : > { %3203 = vst.msk [vmem:[#allocation3 + $0x44] sm:$0xf] %vm3185_vm12, %v3124_v24  ;;  %v3130_v50 = vpop.permute.xlu0 %3129 }
 0x313   : > { %3625 = vrot.lane.b32.xlu1 %v12111_v19, %s14540_s21  ;;  %3206 = vst.msk [vmem:[#allocation3 + $0x50] sm:$0xf] %vm3185_vm12, %v3130_v50  ;;  %v3990_v50 = vld [vmem:[#allocation2 + $0x79] sm:$0xff] }
 0x314   : > { %3631 = vrot.lane.b32.xlu0 %v12116_v36, %s14540_s21 }
 0x315   : > { %v3128_v5 = vpop.permute.xlu1 %3127 }
 0x316   : > { %3205 = vst.msk [vmem:[#allocation3 + $0x4c] sm:$0xf] %vm3185_vm12, %v3128_v5  ;;  %v3134_v56 = vpop.permute.xlu0 %3133 }
 0x317   : > { %3629 = vrot.lane.b32.xlu1 %v12121_v47, %s14540_s21  ;;  %3208 = vst.msk [vmem:[#allocation3 + $0x58] sm:$0xf] %vm3185_vm12, %v3134_v56  ;;  %v3763_v56 = vld [vmem:[#allocation2 + $0x1bd] sm:$0xff] }
 0x318   : > { %3635 = vrot.lane.b32.xlu0 %v12126_v21, %s14540_s21 }
 0x319   : > { %v3132_v54 = vpop.permute.xlu1 %3131 }
 0x31a   : > { %3207 = vst.msk [vmem:[#allocation3 + $0x54] sm:$0xf] %vm3185_vm12, %v3132_v54  ;;  %v3138_v19 = vpop.permute.xlu0 %3137  ;;  %v10200_v54 = vpack.c.bf16 %v3990_v50, %v3990_v50  ;;  %v4010_v50 = vld [vmem:[#allocation2 + $0x169] sm:$0xff] }
 0x31b   : > { %3633 = vrot.lane.b32.xlu1 %v12131_v55, %s14540_s21  ;;  %3210 = vst.msk [vmem:[#allocation3 + $0x60] sm:$0xf] %vm3185_vm12, %v3138_v19  ;;  %v3992_v19 = vld [vmem:[#allocation2 + $0x91] sm:$0xff] }
 0x31c   : > { %3639 = vrot.lane.b32.xlu0 %v12136_v57, %s14540_s21 }
 0x31d   : > { %v3136_v36 = vpop.permute.xlu1 %3135 }
 0x31e   : > { %3209 = vst.msk [vmem:[#allocation3 + $0x5c] sm:$0xf] %vm3185_vm12, %v3136_v36  ;;  %v3142_v47 = vpop.permute.xlu0 %3141  ;;  %v10199_v36 = vpack.c.bf16 %v3763_v56, %v3763_v56  ;;  %v4009_v56 = vld [vmem:[#allocation2 + $0x159] sm:$0xff] }
 0x31f   : > { %3637 = vrot.lane.b32.xlu1 %v12141_v18, %s14540_s21  ;;  %3212 = vst.msk [vmem:[#allocation3 + $0x68] sm:$0xf] %vm3185_vm12, %v3142_v47 }
 0x320   : > { %3643 = vrot.lane.b32.xlu0 %v12146_v6, %s14540_s21 }
 0x321   : > { %v3140_v21 = vpop.permute.xlu1 %3139 }
 0x322   : > { %3211 = vst.msk [vmem:[#allocation3 + $0x64] sm:$0xf] %vm3185_vm12, %v3140_v21  ;;  %v3146_v55 = vpop.permute.xlu0 %3145  ;;  %v3991_v21 = vld [vmem:[#allocation2 + $0x81] sm:$0xff] }
 0x323   : > { %3641 = vrot.lane.b32.xlu1 %v12151_v26, %s14540_s21  ;;  %3214 = vst.msk [vmem:[#allocation3 + $0x70] sm:$0xf] %vm3185_vm12, %v3146_v55  ;;  %v3503_v26 = vld [vmem:[#allocation2 + $0x199] sm:$0xff]  ;;  %v10202_v55 = vpack.c.bf16 %v3992_v19, %v3992_v19  ;;  %v4012_v19 = vld [vmem:[#allocation2 + $0x181] sm:$0xff] }
 0x324   : > { %3647 = vrot.lane.b32.xlu0 %v12156_v10, %s14540_s21 }
 0x325   : > { %v3144_v57 = vpop.permute.xlu1 %3143 }
 0x326   : > { %3213 = vst.msk [vmem:[#allocation3 + $0x6c] sm:$0xf] %vm3185_vm12, %v3144_v57  ;;  %v3150_v18 = vpop.permute.xlu0 %3149  ;;  %v3994_v57 = vld [vmem:[#allocation2 + $0xa9] sm:$0xff] }
 0x327   : > { %3645 = vrot.lane.b32.xlu1 %v12161_v28, %s14540_s21  ;;  %3216 = vst.msk [vmem:[#allocation3 + $0x78] sm:$0xf] %vm3185_vm12, %v3150_v18  ;;  %v12484_v28 = vpack.c.bf16 %v3503_v26, %v3503_v26  ;;  %v10201_v18 = vpack.c.bf16 %v3991_v21, %v3991_v21  ;;  %v3993_v26 = vld [vmem:[#allocation2 + $0x99] sm:$0xff]  ;;  %v4011_v21 = vld [vmem:[#allocation2 + $0x171] sm:$0xff] }
 0x328   : > { %3651 = vrot.lane.b32.xlu0 %v12166_v58, %s14540_s21 }
 0x329   : > { %v3148_v6 = vpop.permute.xlu1 %3147 }
 0x32a   : > { %3215 = vst.msk [vmem:[#allocation3 + $0x74] sm:$0xf] %vm3185_vm12, %v3148_v6  ;;  %v3347_v10 = vpop.permute.xlu0 %3346 }
 0x32b   : > { %3649 = vrot.lane.b32.xlu1 %v12171_v31, %s14540_s21  ;;  %3443 = vst.msk [vmem:[#allocation3] sm:$0xf] %vm3442_vm13, %v3347_v10 }
 0x32c   : > { %3655 = vrot.lane.b32.xlu0 %v12176_v29, %s14540_s21  ;;  %v12497_v29 = vpack.c.bf16 %v3504_v60, %v3504_v60 }
 0x32d   : > { %v3152_v53 = vpop.permute.xlu1 %3151 }
 0x32e   : > { %3217 = vst.msk [vmem:[#allocation3 + $0x7c] sm:$0xf] %vm3185_vm12, %v3152_v53  ;;  %v3351_v58 = vpop.permute.xlu0 %3350  ;;  %v10204_v53 = vpack.c.bf16 %v3994_v57, %v3994_v57  ;;  %v10221_v57 = vpack.c.bf16 %v4011_v21, %v4011_v21  ;;  %v4260_v21 = vld [vmem:[#allocation2 + $0x113] sm:$0xff]  ;;  %vm6785_vm12 = vcmask 814848  }
 0x32f   : > { %3653 = vrot.lane.b32.xlu1 %v12181_v20, %s14540_s21  ;;  %3445 = vst.msk [vmem:[#allocation3 + $0x8] sm:$0xf] %vm3442_vm13, %v3351_v58  ;;  %v3506_v20 = vld [vmem:[#allocation2 + $0x1b9] sm:$0xff]  ;;  %v10203_v58 = vpack.c.bf16 %v3993_v26, %v3993_v26 }
 0x330   : > { %3659 = vrot.lane.b32.xlu0 %v12484_v28, %s14540_s21  ;;  %v12505_v41 = vpack.c.bf16 %v3506_v20, %v3506_v20  ;;  %v10206_v20 = vpack.c.bf16 %v3996_v51, %v3996_v51 }
 0x331   : > { %v3349_v31 = vpop.permute.xlu1 %3348 }
 0x332   : > { %3444 = vst.msk [vmem:[#allocation3 + $0x4] sm:$0xf] %vm3442_vm13, %v3349_v31  ;;  %v3355_v42 = vpop.permute.xlu0 %3354  ;;  %v3995_v31 = vld [vmem:[#allocation2 + $0xb1] sm:$0xff] }
 0x333   : > { %3657 = vrot.lane.b32.xlu1 %v12189_v32, %s14540_s21  ;;  %3447 = vst.msk [vmem:[#allocation3 + $0x10] sm:$0xf] %vm3442_vm13, %v3355_v42 }
 0x334   : > { %3663 = vrot.lane.b32.xlu0 %v12492_v0, %s14540_s21 }
 0x335   : > { %v3353_v40 = vpop.permute.xlu1 %3352 }
 0x336   : > { %3446 = vst.msk [vmem:[#allocation3 + $0xc] sm:$0xf] %vm3442_vm13, %v3353_v40  ;;  %v3359_v15 = vpop.permute.xlu0 %3358  ;;  %v3998_v40 = vld [vmem:[#allocation2 + $0xd9] sm:$0xff] }
 0x337   : > { %3661 = vrot.lane.b32.xlu1 %v12497_v29, %s14540_s21  ;;  %3449 = vst.msk [vmem:[#allocation3 + $0x18] sm:$0xf] %vm3442_vm13, %v3359_v15  ;;  %v10205_v15 = vpack.c.bf16 %v3995_v31, %v3995_v31 }
 0x338   : > { %3860 = vrot.lane.b32.xlu0 %v12262_v9, %s10864_s22 }
 0x339   : > { %v3357_v32 = vpop.permute.xlu1 %3356 }
 0x33a   : > { %3448 = vst.msk [vmem:[#allocation3 + $0x14] sm:$0xf] %vm3442_vm13, %v3357_v32  ;;  %v3363_v49 = vpop.permute.xlu0 %3362 }
 0x33b   : > { %3665 = vrot.lane.b32.xlu1 %v12505_v41, %s14540_s21  ;;  %3451 = vst.msk [vmem:[#allocation3 + $0x20] sm:$0xf] %vm3442_vm13, %v3363_v49  ;;  %v3997_v49 = vld [vmem:[#allocation2 + $0xc9] sm:$0xff]  ;;  %s14554_s21 = smov 88  }
 0x33c   : > { %3864 = vrot.lane.b32.xlu0 %v12269_v43, %s10864_s22 }
 0x33d   : > { %v3361_v35 = vpop.permute.xlu1 %3360 }
 0x33e   : > { %3450 = vst.msk [vmem:[#allocation3 + $0x1c] sm:$0xf] %vm3442_vm13, %v3361_v35  ;;  %v3367_v16 = vpop.permute.xlu0 %3366 }
 0x33f   : > { %3862 = vrot.lane.b32.xlu1 %v12273_v33, %s10864_s22  ;;  %3453 = vst.msk [vmem:[#allocation3 + $0x28] sm:$0xf] %vm3442_vm13, %v3367_v16  ;;  %v10208_v16 = vpack.c.bf16 %v3998_v40, %v3998_v40  ;;  %v4019_v40 = vld [vmem:[#allocation2 + $0x1d1] sm:$0xff] }
 0x340   : > { %3868 = vrot.lane.b32.xlu0 %v12278_v59, %s10864_s22 }
 0x341   : > { %v3365_v9 = vpop.permute.xlu1 %3364 }
 0x342   : > { %3452 = vst.msk [vmem:[#allocation3 + $0x24] sm:$0xf] %vm3442_vm13, %v3365_v9  ;;  %v3371_v38 = vpop.permute.xlu0 %3370  ;;  %v4000_v9 = vld [vmem:[#allocation2 + $0xf1] sm:$0xff] }
 0x343   : > { %3866 = vrot.lane.b32.xlu1 %v12283_v30, %s10864_s22  ;;  %3455 = vst.msk [vmem:[#allocation3 + $0x30] sm:$0xf] %vm3442_vm13, %v3371_v38  ;;  %v10207_v38 = vpack.c.bf16 %v3997_v49, %v3997_v49  ;;  %v4247_v49 = vld [vmem:[#allocation2 + $0x7b] sm:$0xff] }
 0x344   : > { %3872 = vrot.lane.b32.xlu0 %v12288_v46, %s10864_s22 }
 0x345   : > { %v3369_v43 = vpop.permute.xlu1 %3368 }
 0x346   : > { %3454 = vst.msk [vmem:[#allocation3 + $0x2c] sm:$0xf] %vm3442_vm13, %v3369_v43  ;;  %v3375_v33 = vpop.permute.xlu0 %3374 }
 0x347   : > { %3870 = vrot.lane.b32.xlu1 %v12293_v63, %s10864_s22  ;;  %3457 = vst.msk [vmem:[#allocation3 + $0x38] sm:$0xf] %vm3442_vm13, %v3375_v33  ;;  %v3999_v33 = vld [vmem:[#allocation2 + $0xe1] sm:$0xff] }
 0x348   : > { %3876 = vrot.lane.b32.xlu0 %v12298_v62, %s10864_s22 }
 0x349   : > { %v3373_v59 = vpop.permute.xlu1 %3372 }
 0x34a   : > { %3456 = vst.msk [vmem:[#allocation3 + $0x34] sm:$0xf] %vm3442_vm13, %v3373_v59  ;;  %v3379_v30 = vpop.permute.xlu0 %3378 }
 0x34b   : > { %3874 = vrot.lane.b32.xlu1 %v12303_v48, %s10864_s22  ;;  %3459 = vst.msk [vmem:[#allocation3 + $0x40] sm:$0xf] %vm3442_vm13, %v3379_v30  ;;  %v10210_v30 = vpack.c.bf16 %v4000_v9, %v4000_v9  ;;  %v10232_v9 = vpack.c.bf16 %v4247_v49, %v4247_v49 }
 0x34c   : > { %3880 = vrot.lane.b32.xlu0 %v12308_v2, %s10864_s22 }
 0x34d   : > { %v3377_v46 = vpop.permute.xlu1 %3376 }
 0x34e   : > { %3458 = vst.msk [vmem:[#allocation3 + $0x3c] sm:$0xf] %vm3442_vm13, %v3377_v46  ;;  %v3383_v63 = vpop.permute.xlu0 %3382  ;;  %v4002_v46 = vld [vmem:[#allocation2 + $0x109] sm:$0xff] }
 0x34f   : > { %3878 = vrot.lane.b32.xlu1 %v12313_v4, %s10864_s22  ;;  %3461 = vst.msk [vmem:[#allocation3 + $0x48] sm:$0xf] %vm3442_vm13, %v3383_v63  ;;  %v10209_v63 = vpack.c.bf16 %v3999_v33, %v3999_v33 }
 0x350   : > { %3884 = vrot.lane.b32.xlu0 %v12318_v61, %s10864_s22 }
 0x351   : > { %v3381_v62 = vpop.permute.xlu1 %3380 }
 0x352   : > { %3460 = vst.msk [vmem:[#allocation3 + $0x44] sm:$0xf] %vm3442_vm13, %v3381_v62  ;;  %v3387_v48 = vpop.permute.xlu0 %3386 }
 0x353   : > { %3882 = vrot.lane.b32.xlu1 %v12323_v45, %s10864_s22  ;;  %3463 = vst.msk [vmem:[#allocation3 + $0x50] sm:$0xf] %vm3442_vm13, %v3387_v48  ;;  %v4001_v48 = vld [vmem:[#allocation2 + $0xf9] sm:$0xff] }
 0x354   : > { %3888 = vrot.lane.b32.xlu0 %v12328_v3, %s10864_s22 }
 0x355   : > { %v3385_v2 = vpop.permute.xlu1 %3384 }
 0x356   : > { %3462 = vst.msk [vmem:[#allocation3 + $0x4c] sm:$0xf] %vm3442_vm13, %v3385_v2  ;;  %v3391_v4 = vpop.permute.xlu0 %3390 }
 0x357   : > { %3886 = vrot.lane.b32.xlu1 %v12333_v1, %s10864_s22  ;;  %3465 = vst.msk [vmem:[#allocation3 + $0x58] sm:$0xf] %vm3442_vm13, %v3391_v4  ;;  %v10212_v4 = vpack.c.bf16 %v4002_v46, %v4002_v46  ;;  %v4251_v46 = vld [vmem:[#allocation2 + $0xab] sm:$0xff] }
 0x358   : > { %3892 = vrot.lane.b32.xlu0 %v12338_v39, %s10864_s22 }
 0x359   : > { %v3389_v61 = vpop.permute.xlu1 %3388 }
 0x35a   : > { %3464 = vst.msk [vmem:[#allocation3 + $0x54] sm:$0xf] %vm3442_vm13, %v3389_v61  ;;  %v3395_v45 = vpop.permute.xlu0 %3394  ;;  %v4004_v61 = vld [vmem:[#allocation2 + $0x121] sm:$0xff] }
 0x35b   : > { %3890 = vrot.lane.b32.xlu1 %v12343_v52, %s10864_s22  ;;  %3467 = vst.msk [vmem:[#allocation3 + $0x60] sm:$0xf] %vm3442_vm13, %v3395_v45  ;;  %v10211_v45 = vpack.c.bf16 %v4001_v48, %v4001_v48  ;;  %v4250_v48 = vld [vmem:[#allocation2 + $0x9b] sm:$0xff] }
 0x35c   : > { %3896 = vrot.lane.b32.xlu0 %v12348_v23, %s10864_s22 }
 0x35d   : > { %v3393_v3 = vpop.permute.xlu1 %3392 }
 0x35e   : > { %3466 = vst.msk [vmem:[#allocation3 + $0x5c] sm:$0xf] %vm3442_vm13, %v3393_v3  ;;  %v3399_v1 = vpop.permute.xlu0 %3398 }
 0x35f   : > { %3894 = vrot.lane.b32.xlu1 %v12353_v27, %s10864_s22  ;;  %3469 = vst.msk [vmem:[#allocation3 + $0x68] sm:$0xf] %vm3442_vm13, %v3399_v1  ;;  %v4003_v1 = vld [vmem:[#allocation2 + $0x111] sm:$0xff] }
 0x360   : > { %3900 = vrot.lane.b32.xlu0 %v12358_v7, %s10864_s22 }
 0x361   : > { %v3397_v39 = vpop.permute.xlu1 %3396 }
 0x362   : > { %3468 = vst.msk [vmem:[#allocation3 + $0x64] sm:$0xf] %vm3442_vm13, %v3397_v39  ;;  %v3403_v52 = vpop.permute.xlu0 %3402 }
 0x363   : > { %3898 = vrot.lane.b32.xlu1 %v12363_v8, %s10864_s22  ;;  %3471 = vst.msk [vmem:[#allocation3 + $0x70] sm:$0xf] %vm3442_vm13, %v3403_v52  ;;  %v3760_v8 = vld [vmem:[#allocation2 + $0x19d] sm:$0xff]  ;;  %v10214_v52 = vpack.c.bf16 %v4004_v61, %v4004_v61 }
 0x364   : > { %3904 = vrot.lane.b32.xlu0 %v12368_v25, %s10864_s22  ;;  %v4253_v61 = vld [vmem:[#allocation2 + $0xc3] sm:$0xff] }
 0x365   : > { %v3401_v23 = vpop.permute.xlu1 %3400 }
 0x366   : > { %3470 = vst.msk [vmem:[#allocation3 + $0x6c] sm:$0xf] %vm3442_vm13, %v3401_v23  ;;  %v3407_v27 = vpop.permute.xlu0 %3406  ;;  %v4006_v23 = vld [vmem:[#allocation2 + $0x139] sm:$0xff] }
 0x367   : > { %3902 = vrot.lane.b32.xlu1 %v12373_v37, %s10864_s22  ;;  %3473 = vst.msk [vmem:[#allocation3 + $0x78] sm:$0xf] %vm3442_vm13, %v3407_v27  ;;  %v10196_v37 = vpack.c.bf16 %v3760_v8, %v3760_v8  ;;  %v10213_v27 = vpack.c.bf16 %v4003_v1, %v4003_v1  ;;  %v4005_v8 = vld [vmem:[#allocation2 + $0x129] sm:$0xff]  ;;  %v4252_v1 = vld [vmem:[#allocation2 + $0xb3] sm:$0xff] }
 0x368   : > { %3908 = vrot.lane.b32.xlu0 %v12378_v12, %s10864_s22 }
 0x369   : > { %v3405_v7 = vpop.permute.xlu1 %3404 }
 0x36a   : > { %3472 = vst.msk [vmem:[#allocation3 + $0x74] sm:$0xf] %vm3442_vm13, %v3405_v7  ;;  %v3604_v25 = vpop.permute.xlu0 %3603 }
 0x36b   : > { %3906 = vrot.lane.b32.xlu1 %v12383_v14, %s10864_s22  ;;  %3700 = vst.msk [vmem:[#allocation3] sm:$0xf] %vm3699_vm14, %v3604_v25  ;;  %v10198_v14 = vpack.c.bf16 %v3762_v17, %v3762_v17  ;;  %v10215_v17 = vpack.c.bf16 %v4005_v8, %v4005_v8  ;;  %v4254_v8 = vld [vmem:[#allocation2 + $0xcb] sm:$0xff] }
 0x36c   : > { %3912 = vrot.lane.b32.xlu0 %v12388_v22, %s10864_s22  ;;  %v10197_v22 = vpack.c.bf16 %v3761_v11, %v3761_v11  ;;  %v4007_v11 = vld [vmem:[#allocation2 + $0x141] sm:$0xff] }
 0x36d   : > { %v3409_v44 = vpop.permute.xlu1 %3408 }
 0x36e   : > { %3474 = vst.msk [vmem:[#allocation3 + $0x7c] sm:$0xf] %vm3442_vm13, %v3409_v44  ;;  %v3608_v12 = vpop.permute.xlu0 %3607  ;;  %v10216_v44 = vpack.c.bf16 %v4006_v23, %v4006_v23  ;;  %v4255_v23 = vld [vmem:[#allocation2 + $0xdb] sm:$0xff]  ;;  %vm6989_vm13 = vcmask 818176  }
 0x36f   : > { %3910 = vrot.lane.b32.xlu1 %v12393_v34, %s10864_s22  ;;  %3702 = vst.msk [vmem:[#allocation3 + $0x8] sm:$0xf] %vm3699_vm14, %v3608_v12 }
 0x370   : > { %3916 = vrot.lane.b32.xlu0 %v10196_v37, %s10864_s22  ;;  %v4008_v37 = vld [vmem:[#allocation2 + $0x151] sm:$0xff] }
 0x371   : > { %v3606_v24 = vpop.permute.xlu1 %3605 }
 0x372   : > { %3701 = vst.msk [vmem:[#allocation3 + $0x4] sm:$0xf] %vm3699_vm14, %v3606_v24  ;;  %v3612_v5 = vpop.permute.xlu0 %3611 }
 0x373   : > { %3914 = vrot.lane.b32.xlu1 %v12401_v13, %s10864_s22  ;;  %3704 = vst.msk [vmem:[#allocation3 + $0x10] sm:$0xf] %vm3699_vm14, %v3612_v5 }
 0x374   : > { %3920 = vrot.lane.b32.xlu0 %v10198_v14, %s10864_s22  ;;  %v10218_v14 = vpack.c.bf16 %v4008_v37, %v4008_v37  ;;  %v4257_v37 = vld [vmem:[#allocation2 + $0xf3] sm:$0xff] }
 0x375   : > { %v3610_v34 = vpop.permute.xlu1 %3609 }
 0x376   : > { %3703 = vst.msk [vmem:[#allocation3 + $0xc] sm:$0xf] %vm3699_vm14, %v3610_v34  ;;  %v3616_v47 = vpop.permute.xlu0 %3615 }
 0x377   : > { %3918 = vrot.lane.b32.xlu1 %v10197_v22, %s10864_s22  ;;  %3706 = vst.msk [vmem:[#allocation3 + $0x18] sm:$0xf] %vm3699_vm14, %v3616_v47  ;;  %v10217_v22 = vpack.c.bf16 %v4007_v11, %v4007_v11  ;;  %v4256_v11 = vld [vmem:[#allocation2 + $0xe3] sm:$0xff] }
 0x378   : > { %4118 = vrot.lane.b32.xlu0 %v10200_v54, %s14538_s24  ;;  %v10220_v54 = vpack.c.bf16 %v4010_v50, %v4010_v50  ;;  %v4259_v50 = vld [vmem:[#allocation2 + $0x10b] sm:$0xff] }
 0x379   : > { %v3614_v13 = vpop.permute.xlu1 %3613 }
 0x37a   : > { %3705 = vst.msk [vmem:[#allocation3 + $0x14] sm:$0xf] %vm3699_vm14, %v3614_v13  ;;  %v3620_v6 = vpop.permute.xlu0 %3619 }
 0x37b   : > { %3922 = vrot.lane.b32.xlu1 %v10199_v36, %s10864_s22  ;;  %3708 = vst.msk [vmem:[#allocation3 + $0x20] sm:$0xf] %vm3699_vm14, %v3620_v6  ;;  %v10219_v36 = vpack.c.bf16 %v4009_v56, %v4009_v56  ;;  %v4013_v6 = vld [vmem:[#allocation2 + $0x189] sm:$0xff]  ;;  %v4258_v56 = vld [vmem:[#allocation2 + $0xfb] sm:$0xff]  ;;  %s10870_s22 = smov 76  }
 0x37c   : > { %4122 = vrot.lane.b32.xlu0 %v10202_v55, %s14538_s24  ;;  %v10222_v55 = vpack.c.bf16 %v4012_v19, %v4012_v19  ;;  %v4261_v19 = vld [vmem:[#allocation2 + $0x123] sm:$0xff] }
 0x37d   : > { %v3618_v10 = vpop.permute.xlu1 %3617 }
 0x37e   : > { %3707 = vst.msk [vmem:[#allocation3 + $0x1c] sm:$0xf] %vm3699_vm14, %v3618_v10  ;;  %v3624_v60 = vpop.permute.xlu0 %3623  ;;  %v10223_v10 = vpack.c.bf16 %v4013_v6, %v4013_v6 }
 0x37f   : > { %4120 = vrot.lane.b32.xlu1 %v10201_v18, %s14538_s24  ;;  %3710 = vst.msk [vmem:[#allocation3 + $0x28] sm:$0xf] %vm3699_vm14, %v3624_v60 }
 0x380   : > { %4126 = vrot.lane.b32.xlu0 %v10204_v53, %s14538_s24 }
 0x381   : > { %v3622_v42 = vpop.permute.xlu1 %3621 }
 0x382   : > { %3709 = vst.msk [vmem:[#allocation3 + $0x24] sm:$0xf] %vm3699_vm14, %v3622_v42  ;;  %v3628_v32 = vpop.permute.xlu0 %3627 }
 0x383   : > { %4124 = vrot.lane.b32.xlu1 %v10203_v58, %s14538_s24  ;;  %3712 = vst.msk [vmem:[#allocation3 + $0x30] sm:$0xf] %vm3699_vm14, %v3628_v32  ;;  %v4018_v58 = vld [vmem:[#allocation2 + $0x1c9] sm:$0xff] }
 0x384   : > { %4130 = vrot.lane.b32.xlu0 %v10206_v20, %s14538_s24  ;;  %v10228_v42 = vpack.c.bf16 %v4018_v58, %v4018_v58  ;;  %v4020_v20 = vld [vmem:[#allocation2 + $0x1e1] sm:$0xff] }
 0x385   : > { %v3626_v35 = vpop.permute.xlu1 %3625  ;;  %v10230_v32 = vpack.c.bf16 %v4020_v20, %v4020_v20 }
 0x386   : > { %3711 = vst.msk [vmem:[#allocation3 + $0x2c] sm:$0xf] %vm3699_vm14, %v3626_v35  ;;  %v3632_v43 = vpop.permute.xlu0 %3631 }
 0x387   : > { %4128 = vrot.lane.b32.xlu1 %v10205_v15, %s14538_s24  ;;  %3714 = vst.msk [vmem:[#allocation3 + $0x38] sm:$0xf] %vm3699_vm14, %v3632_v43 }
 0x388   : > { %4134 = vrot.lane.b32.xlu0 %v10208_v16, %s14538_s24  ;;  %v4021_v16 = vld [vmem:[#allocation2 + $0x1e9] sm:$0xff] }
 0x389   : > { %v3630_v59 = vpop.permute.xlu1 %3629  ;;  %v10231_v43 = vpack.c.bf16 %v4021_v16, %v4021_v16 }
 0x38a   : > { %3713 = vst.msk [vmem:[#allocation3 + $0x34] sm:$0xf] %vm3699_vm14, %v3630_v59  ;;  %v3636_v62 = vpop.permute.xlu0 %3635  ;;  %v4248_v59 = vld [vmem:[#allocation2 + $0x83] sm:$0xff] }
 0x38b   : > { %4132 = vrot.lane.b32.xlu1 %v10207_v38, %s14538_s24  ;;  %3716 = vst.msk [vmem:[#allocation3 + $0x40] sm:$0xf] %vm3699_vm14, %v3636_v62  ;;  %v4249_v38 = vld [vmem:[#allocation2 + $0x93] sm:$0xff] }
 0x38c   : > { %4138 = vrot.lane.b32.xlu0 %v10210_v30, %s14538_s24  ;;  %v12670_v30 = vpack.c.bf16 %v4249_v38, %v4249_v38 }
 0x38d   : > { %v3634_v2 = vpop.permute.xlu1 %3633 }
 0x38e   : > { %3715 = vst.msk [vmem:[#allocation3 + $0x3c] sm:$0xf] %vm3699_vm14, %v3634_v2  ;;  %v3640_v3 = vpop.permute.xlu0 %3639 }
 0x38f   : > { %4136 = vrot.lane.b32.xlu1 %v10209_v63, %s14538_s24  ;;  %3718 = vst.msk [vmem:[#allocation3 + $0x48] sm:$0xf] %vm3699_vm14, %v3640_v3  ;;  %v10233_v63 = vpack.c.bf16 %v4248_v59, %v4248_v59 }
 0x390   : > { %4142 = vrot.lane.b32.xlu0 %v10212_v4, %s14538_s24  ;;  %v12677_v4 = vpack.c.bf16 %v4251_v46, %v4251_v46  ;;  %v4270_v46 = vld [vmem:[#allocation2 + $0x18b] sm:$0xff] }
 0x391   : > { %v3638_v39 = vpop.permute.xlu1 %3637 }
 0x392   : > { %3717 = vst.msk [vmem:[#allocation3 + $0x44] sm:$0xf] %vm3699_vm14, %v3638_v39  ;;  %v3644_v7 = vpop.permute.xlu0 %3643 }
 0x393   : > { %4140 = vrot.lane.b32.xlu1 %v10211_v45, %s14538_s24  ;;  %3720 = vst.msk [vmem:[#allocation3 + $0x50] sm:$0xf] %vm3699_vm14, %v3644_v7  ;;  %v12681_v45 = vpack.c.bf16 %v4250_v48, %v4250_v48  ;;  %v4273_v48 = vld [vmem:[#allocation2 + $0x1b3] sm:$0xff] }
 0x394   : > { %4146 = vrot.lane.b32.xlu0 %v10214_v52, %s14538_s24  ;;  %v12686_v52 = vpack.c.bf16 %v4253_v61, %v4253_v61 }
 0x395   : > { %v3642_v25 = vpop.permute.xlu1 %3641 }
 0x396   : > { %3719 = vst.msk [vmem:[#allocation3 + $0x4c] sm:$0xf] %vm3699_vm14, %v3642_v25  ;;  %v3648_v12 = vpop.permute.xlu0 %3647 }
 0x397   : > { %4144 = vrot.lane.b32.xlu1 %v10213_v27, %s14538_s24  ;;  %3722 = vst.msk [vmem:[#allocation3 + $0x58] sm:$0xf] %vm3699_vm14, %v3648_v12  ;;  %v12691_v27 = vpack.c.bf16 %v4252_v1, %v4252_v1 }
 0x398   : > { %4150 = vrot.lane.b32.xlu0 %v10216_v44, %s14538_s24  ;;  %v12696_v44 = vpack.c.bf16 %v4255_v23, %v4255_v23  ;;  %v4275_v23 = vld [vmem:[#allocation2 + $0x1cb] sm:$0xff] }
 0x399   : > { %v3646_v24 = vpop.permute.xlu1 %3645 }
 0x39a   : > { %3721 = vst.msk [vmem:[#allocation3 + $0x54] sm:$0xf] %vm3699_vm14, %v3646_v24  ;;  %v3652_v5 = vpop.permute.xlu0 %3651 }
 0x39b   : > { %4148 = vrot.lane.b32.xlu1 %v10215_v17, %s14538_s24  ;;  %3724 = vst.msk [vmem:[#allocation3 + $0x60] sm:$0xf] %vm3699_vm14, %v3652_v5  ;;  %v12701_v17 = vpack.c.bf16 %v4254_v8, %v4254_v8 }
 0x39c   : > { %4154 = vrot.lane.b32.xlu0 %v10218_v14, %s14538_s24  ;;  %v10242_v14 = vpack.c.bf16 %v4257_v37, %v4257_v37 }
 0x39d   : > { %v3650_v34 = vpop.permute.xlu1 %3649 }
 0x39e   : > { %3723 = vst.msk [vmem:[#allocation3 + $0x5c] sm:$0xf] %vm3699_vm14, %v3650_v34  ;;  %v3656_v47 = vpop.permute.xlu0 %3655 }
 0x39f   : > { %4152 = vrot.lane.b32.xlu1 %v10217_v22, %s14538_s24  ;;  %3726 = vst.msk [vmem:[#allocation3 + $0x68] sm:$0xf] %vm3699_vm14, %v3656_v47  ;;  %v12709_v22 = vpack.c.bf16 %v4256_v11, %v4256_v11  ;;  %v4277_v11 = vld [vmem:[#allocation2 + $0x1e3] sm:$0xff] }
 0x3a0   : > { %4158 = vrot.lane.b32.xlu0 %v10220_v54, %s14538_s24  ;;  %v10244_v54 = vpack.c.bf16 %v4259_v50, %v4259_v50  ;;  %v4276_v50 = vld [vmem:[#allocation2 + $0x1d3] sm:$0xff] }
 0x3a1   : > { %v3654_v13 = vpop.permute.xlu1 %3653 }
 0x3a2   : > { %3725 = vst.msk [vmem:[#allocation3 + $0x64] sm:$0xf] %vm3699_vm14, %v3654_v13  ;;  %v3660_v18 = vpop.permute.xlu0 %3659 }
 0x3a3   : > { %4156 = vrot.lane.b32.xlu1 %v10219_v36, %s14538_s24  ;;  %3728 = vst.msk [vmem:[#allocation3 + $0x70] sm:$0xf] %vm3699_vm14, %v3660_v18  ;;  %v10243_v36 = vpack.c.bf16 %v4258_v56, %v4258_v56  ;;  %v10245_v18 = vpack.c.bf16 %v4260_v21, %v4260_v21  ;;  %v10262_v56 = vpack.c.bf16 %v4277_v11, %v4277_v11 }
 0x3a4   : > { %4162 = vrot.lane.b32.xlu0 %v10222_v55, %s14538_s24  ;;  %v10246_v55 = vpack.c.bf16 %v4261_v19, %v4261_v19 }
 0x3a5   : > { %v3658_v26 = vpop.permute.xlu1 %3657 }
 0x3a6   : > { %3727 = vst.msk [vmem:[#allocation3 + $0x6c] sm:$0xf] %vm3699_vm14, %v3658_v26  ;;  %v3664_v53 = vpop.permute.xlu0 %3663  ;;  %v4262_v26 = vld [vmem:[#allocation2 + $0x12b] sm:$0xff] }
 0x3a7   : > { %4160 = vrot.lane.b32.xlu1 %v10221_v57, %s14538_s24  ;;  %3730 = vst.msk [vmem:[#allocation3 + $0x78] sm:$0xf] %vm3699_vm14, %v3664_v53  ;;  %v4263_v57 = vld [vmem:[#allocation2 + $0x13b] sm:$0xff]  ;;  %v10247_v58 = vpack.c.bf16 %v4262_v26, %v4262_v26 }
 0x3a8   : > { %4166 = vrot.lane.b32.xlu0 %v12484_v28, %s14538_s24  ;;  %v10248_v53 = vpack.c.bf16 %v4263_v57, %v4263_v57 }
 0x3a9   : > { %v3662_v51 = vpop.permute.xlu1 %3661 }
 0x3aa   : > { %3729 = vst.msk [vmem:[#allocation3 + $0x74] sm:$0xf] %vm3699_vm14, %v3662_v51  ;;  %v3861_v60 = vpop.permute.xlu0 %3860  ;;  %v4265_v51 = vld [vmem:[#allocation2 + $0x153] sm:$0xff] }
 0x3ab   : > { %4164 = vrot.lane.b32.xlu1 %v10223_v10, %s14538_s24  ;;  %3957 = vst.msk [vmem:[#allocation3] sm:$0xf] %vm3956_vm15, %v3861_v60  ;;  %v10250_v20 = vpack.c.bf16 %v4265_v51, %v4265_v51 }
 0x3ac   : > { %4170 = vrot.lane.b32.xlu0 %v12492_v0, %s14538_s24  ;;  %v10229_v0 = vpack.c.bf16 %v4019_v40, %v4019_v40 }
 0x3ad   : > { %v3666_v31 = vpop.permute.xlu1 %3665 }
 0x3ae   : > { %3731 = vst.msk [vmem:[#allocation3 + $0x7c] sm:$0xf] %vm3699_vm14, %v3666_v31  ;;  %v3865_v28 = vpop.permute.xlu0 %3864  ;;  %v4264_v31 = vld [vmem:[#allocation2 + $0x143] sm:$0xff]  ;;  %vm7312_vm14 = vcmask 1043456  }
 0x3af   : > { %4168 = vrot.lane.b32.xlu1 %v12497_v29, %s14538_s24  ;;  %3959 = vst.msk [vmem:[#allocation3 + $0x8] sm:$0xf] %vm3956_vm15, %v3865_v28  ;;  %v4267_v28 = vld [vmem:[#allocation2 + $0x16b] sm:$0xff]  ;;  %v10249_v40 = vpack.c.bf16 %v4264_v31, %v4264_v31 }
 0x3b0   : > { %4174 = vrot.lane.b32.xlu0 %v10228_v42, %s14538_s24 }
 0x3b1   : > { %v3863_v15 = vpop.permute.xlu1 %3862 }
 0x3b2   : > { %3958 = vst.msk [vmem:[#allocation3 + $0x4] sm:$0xf] %vm3956_vm15, %v3863_v15  ;;  %v3869_v35 = vpop.permute.xlu0 %3868 }
 0x3b3   : > { %4172 = vrot.lane.b32.xlu1 %v12505_v41, %s14538_s24  ;;  %3961 = vst.msk [vmem:[#allocation3 + $0x10] sm:$0xf] %vm3956_vm15, %v3869_v35  ;;  %v4269_v35 = vld [vmem:[#allocation2 + $0x183] sm:$0xff] }
 0x3b4   : > { %4178 = vrot.lane.b32.xlu0 %v10230_v32, %s14538_s24  ;;  %v4266_v32 = vld [vmem:[#allocation2 + $0x15b] sm:$0xff] }
 0x3b5   : > { %v3867_v29 = vpop.permute.xlu1 %3866  ;;  %v10251_v16 = vpack.c.bf16 %v4266_v32, %v4266_v32 }
 0x3b6   : > { %3960 = vst.msk [vmem:[#allocation3 + $0xc] sm:$0xf] %vm3956_vm15, %v3867_v29  ;;  %v3873_v33 = vpop.permute.xlu0 %3872 }
 0x3b7   : > { %4176 = vrot.lane.b32.xlu1 %v10229_v0, %s14538_s24  ;;  %3963 = vst.msk [vmem:[#allocation3 + $0x18] sm:$0xf] %vm3956_vm15, %v3873_v33  ;;  %v10252_v0 = vpack.c.bf16 %v4267_v28, %v4267_v28  ;;  %v4271_v33 = vld [vmem:[#allocation2 + $0x19b] sm:$0xff] }
 0x3b8   : > { %4375 = vrot.lane.b32.xlu0 %v10232_v9, %s10866_s26  ;;  %v4268_v9 = vld [vmem:[#allocation2 + $0x173] sm:$0xff] }
 0x3b9   : > { %v3871_v41 = vpop.permute.xlu1 %3870  ;;  %v10253_v59 = vpack.c.bf16 %v4268_v9, %v4268_v9 }
 0x3ba   : > { %3962 = vst.msk [vmem:[#allocation3 + $0x14] sm:$0xf] %vm3956_vm15, %v3871_v41  ;;  %v3877_v62 = vpop.permute.xlu0 %3876 }
 0x3bb   : > { %4180 = vrot.lane.b32.xlu1 %v10231_v43, %s14538_s24  ;;  %3965 = vst.msk [vmem:[#allocation3 + $0x20] sm:$0xf] %vm3956_vm15, %v3877_v62  ;;  %v10254_v43 = vpack.c.bf16 %v4269_v35, %v4269_v35  ;;  %v10256_v62 = vpack.c.bf16 %v4271_v33, %v4271_v33  ;;  %s14556_s24 = smov 84  }
 0x3bc   : > { %4379 = vrot.lane.b32.xlu0 %v12670_v30, %s10866_s26 }
 0x3bd   : > { %v3875_v2 = vpop.permute.xlu1 %3874 }
 0x3be   : > { %3964 = vst.msk [vmem:[#allocation3 + $0x1c] sm:$0xf] %vm3956_vm15, %v3875_v2  ;;  %v3881_v3 = vpop.permute.xlu0 %3880  ;;  %v10255_v2 = vpack.c.bf16 %v4270_v46, %v4270_v46 }
 0x3bf   : > { %4377 = vrot.lane.b32.xlu1 %v10233_v63, %s10866_s26  ;;  %3967 = vst.msk [vmem:[#allocation3 + $0x28] sm:$0xf] %vm3956_vm15, %v3881_v3  ;;  %v4272_v3 = vld [vmem:[#allocation2 + $0x1a3] sm:$0xff] }
 0x3c0   : > { %4383 = vrot.lane.b32.xlu0 %v12677_v4, %s10866_s26 }
 0x3c1   : > { %v3879_v39 = vpop.permute.xlu1 %3878 }
 0x3c2   : > { %3966 = vst.msk [vmem:[#allocation3 + $0x24] sm:$0xf] %vm3956_vm15, %v3879_v39  ;;  %v3885_v7 = vpop.permute.xlu0 %3884  ;;  %v10258_v39 = vpack.c.bf16 %v4273_v48, %v4273_v48 }
 0x3c3   : > { %4381 = vrot.lane.b32.xlu1 %v12681_v45, %s10866_s26  ;;  %3969 = vst.msk [vmem:[#allocation3 + $0x30] sm:$0xf] %vm3956_vm15, %v3885_v7  ;;  %v10257_v7 = vpack.c.bf16 %v4272_v3, %v4272_v3 }
 0x3c4   : > { %4387 = vrot.lane.b32.xlu0 %v12686_v52, %s10866_s26 }
 0x3c5   : > { %v3883_v25 = vpop.permute.xlu1 %3882 }
 0x3c6   : > { %3968 = vst.msk [vmem:[#allocation3 + $0x2c] sm:$0xf] %vm3956_vm15, %v3883_v25  ;;  %v3889_v12 = vpop.permute.xlu0 %3888  ;;  %v4274_v25 = vld [vmem:[#allocation2 + $0x1bb] sm:$0xff] }
 0x3c7   : > { %4385 = vrot.lane.b32.xlu1 %v12691_v27, %s10866_s26  ;;  %3971 = vst.msk [vmem:[#allocation3 + $0x38] sm:$0xf] %vm3956_vm15, %v3889_v12  ;;  %v10260_v12 = vpack.c.bf16 %v4275_v23, %v4275_v23 }
 0x3c8   : > { %4391 = vrot.lane.b32.xlu0 %v12696_v44, %s10866_s26 }
 0x3c9   : > { %v3887_v24 = vpop.permute.xlu1 %3886 }
 0x3ca   : > { %3970 = vst.msk [vmem:[#allocation3 + $0x34] sm:$0xf] %vm3956_vm15, %v3887_v24  ;;  %v3893_v5 = vpop.permute.xlu0 %3892  ;;  %v10259_v24 = vpack.c.bf16 %v4274_v25, %v4274_v25 }
 0x3cb   : > { %4389 = vrot.lane.b32.xlu1 %v12701_v17, %s10866_s26  ;;  %3973 = vst.msk [vmem:[#allocation3 + $0x40] sm:$0xf] %vm3956_vm15, %v3893_v5 }
 0x3cc   : > { %4395 = vrot.lane.b32.xlu0 %v10242_v14, %s10866_s26 }
 0x3cd   : > { %v3891_v34 = vpop.permute.xlu1 %3890 }
 0x3ce   : > { %3972 = vst.msk [vmem:[#allocation3 + $0x3c] sm:$0xf] %vm3956_vm15, %v3891_v34  ;;  %v3897_v47 = vpop.permute.xlu0 %3896  ;;  %v4504_v34 = vld [vmem:[#allocation2 + $0x7d] sm:$0xff] }
 0x3cf   : > { %4393 = vrot.lane.b32.xlu1 %v12709_v22, %s10866_s26  ;;  %3975 = vst.msk [vmem:[#allocation3 + $0x48] sm:$0xf] %vm3956_vm15, %v3897_v47  ;;  %v10264_v21 = vpack.c.bf16 %v4504_v34, %v4504_v34 }
 0x3d0   : > { %4399 = vrot.lane.b32.xlu0 %v10244_v54, %s10866_s26  ;;  %v10261_v54 = vpack.c.bf16 %v4276_v50, %v4276_v50 }
 0x3d1   : > { %v3895_v13 = vpop.permute.xlu1 %3894 }
 0x3d2   : > { %3974 = vst.msk [vmem:[#allocation3 + $0x44] sm:$0xf] %vm3956_vm15, %v3895_v13  ;;  %v3901_v6 = vpop.permute.xlu0 %3900  ;;  %v4506_v13 = vld [vmem:[#allocation2 + $0x95] sm:$0xff] }
 0x3d3   : > { %4397 = vrot.lane.b32.xlu1 %v10243_v36, %s10866_s26  ;;  %3977 = vst.msk [vmem:[#allocation3 + $0x50] sm:$0xf] %vm3956_vm15, %v3901_v6  ;;  %v4278_v36 = vld [vmem:[#allocation2 + $0x1eb] sm:$0xff]  ;;  %v10266_v26 = vpack.c.bf16 %v4506_v13, %v4506_v13 }
 0x3d4   : > { %4403 = vrot.lane.b32.xlu0 %v10246_v55, %s10866_s26  ;;  %v10263_v55 = vpack.c.bf16 %v4278_v36, %v4278_v36 }
 0x3d5   : > { %v3899_v10 = vpop.permute.xlu1 %3898 }
 0x3d6   : > { %3976 = vst.msk [vmem:[#allocation3 + $0x4c] sm:$0xf] %vm3956_vm15, %v3899_v10  ;;  %v3905_v60 = vpop.permute.xlu0 %3904  ;;  %v4508_v10 = vld [vmem:[#allocation2 + $0xad] sm:$0xff] }
 0x3d7   : > { %4401 = vrot.lane.b32.xlu1 %v10245_v18, %s10866_s26  ;;  %3979 = vst.msk [vmem:[#allocation3 + $0x58] sm:$0xf] %vm3956_vm15, %v3905_v60  ;;  %v4505_v18 = vld [vmem:[#allocation2 + $0x85] sm:$0xff]  ;;  %v10268_v31 = vpack.c.bf16 %v4508_v10, %v4508_v10 }
 0x3d8   : > { %4407 = vrot.lane.b32.xlu0 %v10248_v53, %s10866_s26  ;;  %v10265_v53 = vpack.c.bf16 %v4505_v18, %v4505_v18 }
 0x3d9   : > { %v3903_v42 = vpop.permute.xlu1 %3902 }
 0x3da   : > { %3978 = vst.msk [vmem:[#allocation3 + $0x54] sm:$0xf] %vm3956_vm15, %v3903_v42  ;;  %v3909_v15 = vpop.permute.xlu0 %3908  ;;  %v4761_v42 = vld [vmem:[#allocation2] sm:$0xff] }
 0x3db   : > { %4405 = vrot.lane.b32.xlu1 %v10247_v58, %s10866_s26  ;;  %3981 = vst.msk [vmem:[#allocation3 + $0x60] sm:$0xf] %vm3956_vm15, %v3909_v15  ;;  %v4507_v58 = vld [vmem:[#allocation2 + $0x9d] sm:$0xff]  ;;  %v10296_v32 = vpack.c.bf16 %v4761_v42, %v4761_v42 }
 0x3dc   : > { %4411 = vrot.lane.b32.xlu0 %v10250_v20, %s10866_s26  ;;  %v10267_v20 = vpack.c.bf16 %v4507_v58, %v4507_v58 }
 0x3dd   : > { %v3907_v49 = vpop.permute.xlu1 %3906 }
 0x3de   : > { %3980 = vst.msk [vmem:[#allocation3 + $0x5c] sm:$0xf] %vm3956_vm15, %v3907_v49  ;;  %v3913_v29 = vpop.permute.xlu0 %3912  ;;  %v4763_v49 = vld [vmem:[#allocation2 + $0x18] sm:$0xff] }
 0x3df   : > { %4409 = vrot.lane.b32.xlu1 %v10249_v40, %s10866_s26  ;;  %3983 = vst.msk [vmem:[#allocation3 + $0x68] sm:$0xf] %vm3956_vm15, %v3913_v29  ;;  %v4509_v40 = vld [vmem:[#allocation2 + $0xb5] sm:$0xff]  ;;  %v10298_v9 = vpack.c.bf16 %v4763_v49, %v4763_v49 }
 0x3e0   : > { %4415 = vrot.lane.b32.xlu0 %v10252_v0, %s10866_s26  ;;  %v10269_v0 = vpack.c.bf16 %v4509_v40, %v4509_v40 }
 0x3e1   : > { %v3911_v38 = vpop.permute.xlu1 %3910 }
 0x3e2   : > { %3982 = vst.msk [vmem:[#allocation3 + $0x64] sm:$0xf] %vm3956_vm15, %v3911_v38  ;;  %v3917_v41 = vpop.permute.xlu0 %3916  ;;  %v5018_v38 = vld [vmem:[#allocation2 + $0x3] sm:$0xff] }
 0x3e3   : > { %4413 = vrot.lane.b32.xlu1 %v10251_v16, %s10866_s26  ;;  %3985 = vst.msk [vmem:[#allocation3 + $0x70] sm:$0xf] %vm3956_vm15, %v3917_v41  ;;  %v4762_v16 = vld [vmem:[#allocation2 + $0x8] sm:$0xff]  ;;  %v10328_v46 = vpack.c.bf16 %v5018_v38, %v5018_v38 }
 0x3e4   : > { %4419 = vrot.lane.b32.xlu0 %v10254_v43, %s10866_s26  ;;  %v10297_v43 = vpack.c.bf16 %v4762_v16, %v4762_v16 }
 0x3e5   : > { %v3915_v63 = vpop.permute.xlu1 %3914 }
 0x3e6   : > { %3984 = vst.msk [vmem:[#allocation3 + $0x6c] sm:$0xf] %vm3956_vm15, %v3915_v63  ;;  %v3921_v61 = vpop.permute.xlu0 %3920  ;;  %v5020_v63 = vld [vmem:[#allocation2 + $0x1b] sm:$0xff] }
 0x3e7   : > { %4417 = vrot.lane.b32.xlu1 %v10253_v59, %s10866_s26  ;;  %3987 = vst.msk [vmem:[#allocation3 + $0x78] sm:$0xf] %vm3956_vm15, %v3921_v61  ;;  %v4764_v59 = vld [vmem:[#allocation2 + $0x20] sm:$0xff]  ;;  %v10330_v3 = vpack.c.bf16 %v5020_v63, %v5020_v63 }
 0x3e8   : > { %4423 = vrot.lane.b32.xlu0 %v10256_v62, %s10866_s26  ;;  %v10299_v62 = vpack.c.bf16 %v4764_v59, %v4764_v59 }
 0x3e9   : > { %v3919_v1 = vpop.permute.xlu1 %3918 }
 0x3ea   : > { %3986 = vst.msk [vmem:[#allocation3 + $0x74] sm:$0xf] %vm3956_vm15, %v3919_v1  ;;  %v4119_v8 = vpop.permute.xlu0 %4118  ;;  %v5275_v1 = vld [vmem:[#allocation2 + $0x6] sm:$0xff] }
 0x3eb   : > { %4421 = vrot.lane.b32.xlu1 %v10255_v2, %s10866_s26  ;;  %4215 = vst.msk [vmem:[#allocation3] sm:$0xf] %vm4214_vm1, %v4119_v8  ;;  %v5019_v2 = vld [vmem:[#allocation2 + $0xb] sm:$0xff]  ;;  %v10360_v25 = vpack.c.bf16 %v5275_v1, %v5275_v1 }
 0x3ec   : > { %4427 = vrot.lane.b32.xlu0 %v10258_v39, %s10866_s26  ;;  %v10329_v39 = vpack.c.bf16 %v5019_v2, %v5019_v2 }
 0x3ed   : > { %v3923_v37 = vpop.permute.xlu1 %3922 }
 0x3ee   : > { %3988 = vst.msk [vmem:[#allocation3 + $0x7c] sm:$0xf] %vm3956_vm15, %v3923_v37  ;;  %v4123_v14 = vpop.permute.xlu0 %4122  ;;  %v5277_v37 = vld [vmem:[#allocation2 + $0x1e] sm:$0xff]  ;;  %vm7308_vm15 = vcmask 64512  }
 0x3ef   : > { %4425 = vrot.lane.b32.xlu1 %v10257_v7, %s10866_s26  ;;  %4217 = vst.msk [vmem:[#allocation3 + $0x8] sm:$0xf] %vm4214_vm1, %v4123_v14  ;;  %v5021_v7 = vld [vmem:[#allocation2 + $0x23] sm:$0xff]  ;;  %v10362_v50 = vpack.c.bf16 %v5277_v37, %v5277_v37  ;;  %v10765_v37 = vld [vmem:[%s14527_s2 + $0x18] sm:$0xff]  }
 0x3f0   : > { %4431 = vrot.lane.b32.xlu0 %v10260_v12, %s10866_s26  ;;  %v10331_v12 = vpack.c.bf16 %v5021_v7, %v5021_v7  ;;  %v6561_v7 = vld [vmem:[#allocation2 + $0x96] sm:$0xff] }
 0x3f1   : > { %v4121_v5 = vpop.permute.xlu1 %4120 }
 0x3f2   : > { %4216 = vst.msk [vmem:[#allocation3 + $0x4] sm:$0xf] %vm4214_vm1, %v4121_v5  ;;  %v4127_v19 = vpop.permute.xlu0 %4126  ;;  %v5532_v5 = vld [vmem:[#allocation2 + $0x48] sm:$0xff] }
 0x3f3   : > { %4429 = vrot.lane.b32.xlu1 %v10259_v24, %s10866_s26  ;;  %4219 = vst.msk [vmem:[#allocation3 + $0x10] sm:$0xf] %vm4214_vm1, %v4127_v19  ;;  %v5276_v24 = vld [vmem:[#allocation2 + $0xe] sm:$0xff]  ;;  %v12790_v36 = vpack.c.bf16 %v5532_v5, %v5532_v5 }
 0x3f4   : > { %4435 = vrot.lane.b32.xlu0 %v10262_v56, %s10866_s26  ;;  %v10361_v56 = vpack.c.bf16 %v5276_v24, %v5276_v24  ;;  %v6562_v24 = vld [vmem:[#allocation2 + $0x9e] sm:$0xff]  ;;  %v4765_v5 = vld [vmem:[#allocation2 + $0x30] sm:$0xff] }
 0x3f5   : > { %v4125_v47 = vpop.permute.xlu1 %4124 }
 0x3f6   : > { %4218 = vst.msk [vmem:[#allocation3 + $0xc] sm:$0xf] %vm4214_vm1, %v4125_v47  ;;  %v4131_v57 = vpop.permute.xlu0 %4130  ;;  %v5534_v47 = vld [vmem:[#allocation2 + $0x60] sm:$0xff] }
 0x3f7   : > { %4433 = vrot.lane.b32.xlu1 %v10261_v54, %s10866_s26  ;;  %4221 = vst.msk [vmem:[#allocation3 + $0x18] sm:$0xf] %vm4214_vm1, %v4131_v57  ;;  %v5278_v54 = vld [vmem:[#allocation2 + $0x26] sm:$0xff]  ;;  %v12797_v18 = vpack.c.bf16 %v5534_v47, %v5534_v47 }
 0x3f8   : > { %4632 = vrot.lane.b32.xlu0 %v10264_v21, %s14564_s12  ;;  %v10363_v21 = vpack.c.bf16 %v5278_v54, %v5278_v54  ;;  %v10768_v47 = vld [vmem:[%s14527_s2 + $0x8] sm:$0xff]  }
 0x3f9   : > { %v4129_v6 = vpop.permute.xlu1 %4128 }
 0x3fa   : > { %4220 = vst.msk [vmem:[#allocation3 + $0x14] sm:$0xf] %vm4214_vm1, %v4129_v6  ;;  %v4135_v51 = vpop.permute.xlu0 %4134  ;;  %v5789_v6 = vld [vmem:[#allocation2 + $0x4e] sm:$0xff] }
 0x3fb   : > { %4437 = vrot.lane.b32.xlu1 %v10263_v55, %s10866_s26  ;;  %4223 = vst.msk [vmem:[#allocation3 + $0x20] sm:$0xf] %vm4214_vm1, %v4135_v51  ;;  %v5533_v55 = vld [vmem:[#allocation2 + $0x50] sm:$0xff]  ;;  %s14558_s26 = smov 80   ;;  %v12806_v58 = vpack.c.bf16 %v5789_v6, %v5789_v6 }
 0x3fc   : > { %4636 = vrot.lane.b32.xlu0 %v10266_v26, %s14564_s12  ;;  %v12801_v26 = vpack.c.bf16 %v5533_v55, %v5533_v55  ;;  %v4766_v55 = vld [vmem:[#allocation2 + $0x38] sm:$0xff] }
 0x3fd   : > { %v4133_v60 = vpop.permute.xlu1 %4132 }
 0x3fe   : > { %4222 = vst.msk [vmem:[#allocation3 + $0x1c] sm:$0xf] %vm4214_vm1, %v4133_v60  ;;  %v4139_v28 = vpop.permute.xlu0 %4138  ;;  %v5791_v60 = vld [vmem:[#allocation2 + $0x66] sm:$0xff] }
 0x3ff   : > { %4634 = vrot.lane.b32.xlu1 %v10265_v53, %s14564_s12  ;;  %4225 = vst.msk [vmem:[#allocation3 + $0x28] sm:$0xf] %vm4214_vm1, %v4139_v28  ;;  %v5535_v53 = vld [vmem:[#allocation2 + $0x68] sm:$0xff]  ;;  %v12816_v40 = vpack.c.bf16 %v5791_v60, %v5791_v60  ;;  %v10301_v60 = vpack.c.bf16 %v4766_v55, %v4766_v55 }
 0x400   : > { %4640 = vrot.lane.b32.xlu0 %v10268_v31, %s14564_s12  ;;  %v12811_v31 = vpack.c.bf16 %v5535_v53, %v5535_v53  ;;  %v7256_v53 = vld [vmem:[%s14529_s4] sm:$0x3] }
 0x401   : > { %v4137_v15 = vpop.permute.xlu1 %4136 }
 0x402   : > { %4224 = vst.msk [vmem:[#allocation3 + $0x24] sm:$0xf] %vm4214_vm1, %v4137_v15  ;;  %v4143_v35 = vpop.permute.xlu0 %4142  ;;  %v6047_v15 = vld [vmem:[#allocation2 + $0x90] sm:$0xff] }
 0x403   : > { %4638 = vrot.lane.b32.xlu1 %v10267_v20, %s14564_s12  ;;  %4227 = vst.msk [vmem:[#allocation3 + $0x30] sm:$0xf] %vm4214_vm1, %v4143_v35  ;;  %v5790_v20 = vld [vmem:[#allocation2 + $0x56] sm:$0xff]  ;;  %v12826_v16 = vpack.c.bf16 %v6047_v15, %v6047_v15 }
 0x404   : > { %4889 = vrot.lane.b32.xlu0 %v10296_v32, %s10868_s18  ;;  %v12821_v32 = vpack.c.bf16 %v5790_v20, %v5790_v20 }
 0x405   : > { %v4141_v29 = vpop.permute.xlu1 %4140 }
 0x406   : > { %4226 = vst.msk [vmem:[#allocation3 + $0x2c] sm:$0xf] %vm4214_vm1, %v4141_v29  ;;  %v4147_v33 = vpop.permute.xlu0 %4146  ;;  %v6049_v29 = vld [vmem:[#allocation2 + $0xa8] sm:$0xff] }
 0x407   : > { %4642 = vrot.lane.b32.xlu1 %v10269_v0, %s14564_s12  ;;  %4229 = vst.msk [vmem:[#allocation3 + $0x38] sm:$0xf] %vm4214_vm1, %v4147_v33  ;;  %v5792_v0 = vld [vmem:[#allocation2 + $0x6e] sm:$0xff]  ;;  %v12836_v59 = vpack.c.bf16 %v6049_v29, %v6049_v29 }
 0x408   : > { %4893 = vrot.lane.b32.xlu0 %v10298_v9, %s10868_s18  ;;  %v12831_v9 = vpack.c.bf16 %v5792_v0, %v5792_v0  ;;  %v14578_v0 = vmov 0.0  }
 0x409   : > { %v4145_v41 = vpop.permute.xlu1 %4144  ;;  %10646 = vmatprep.mubr.msk.bf16.mxu1 %vm10876_vm4, %v14578_v0 }
 0x40a   : > { %4228 = vst.msk [vmem:[#allocation3 + $0x34] sm:$0xf] %vm4214_vm1, %v4145_v41  ;;  %v4151_v48 = vpop.permute.xlu0 %4150  ;;  %v10762_v41 = vld [vmem:[%s14527_s2 + $0x30] ss:$0 sps:$4 sm:$0x33]  }
 0x40b   : > { %4891 = vrot.lane.b32.xlu1 %v10297_v43, %s10868_s18  ;;  %4231 = vst.msk [vmem:[#allocation3 + $0x40] sm:$0xf] %vm4214_vm1, %v4151_v48  ;;  %v6048_v43 = vld [vmem:[#allocation2 + $0x98] sm:$0xff]  ;;  %10692 = vmatprep.subr.msk.bf16.mxu0 %vm7038_vm3, %v10762_v41  ;;  %v6050_v48 = vld [vmem:[#allocation2 + $0xb0] sm:$0xff] }
 0x40c   : > { %5146 = vrot.lane.b32.xlu0 %v10328_v46, %s14561_s20  ;;  %v12844_v46 = vpack.c.bf16 %v6048_v43, %v6048_v43 }
 0x40d   : > { %v4149_v61 = vpop.permute.xlu1 %4148 }
 0x40e   : > { %4230 = vst.msk [vmem:[#allocation3 + $0x3c] sm:$0xf] %vm4214_vm1, %v4149_v61  ;;  %v4155_v23 = vpop.permute.xlu0 %4154  ;;  %v10763_v61 = vld [vmem:[%s14527_s2 + $0x28] sm:$0xff]  }
 0x40f   : > { %4895 = vrot.lane.b32.xlu1 %v10299_v62, %s10868_s18  ;;  %4233 = vst.msk [vmem:[#allocation3 + $0x48] sm:$0xf] %vm4214_vm1, %v4155_v23  ;;  %v7040_v62 = vsel %vm7038_vm3, %v10762_v41, 0  ;;  %v10764_v23 = vld [vmem:[%s14527_s2 + $0x20] sm:$0xff]   ;;  %v5024_v41 = vld [vmem:[#allocation2 + $0x4b] sm:$0xff] }
 0x410   : > { %5150 = vrot.lane.b32.xlu0 %v10330_v3, %s14561_s20  ;;  %10599 = vmatpush3.bf16.msra.mxu0 %v7040_v62  ;;  %v12857_v3 = vpack.c.bf16 %v6050_v48, %v6050_v48  ;;  %v5023_v62 = vld [vmem:[#allocation2 + $0x3b] sm:$0xff] }
 0x411   : > { %v4153_v8 = vpop.permute.xlu1 %4152  ;;  %10600 = vmatprep.subr.bf16.mxu0 %v10763_v61 }
 0x412   : > { %4232 = vst.msk [vmem:[#allocation3 + $0x44] sm:$0xf] %vm4214_vm1, %v4153_v8  ;;  %v4159_v11 = vpop.permute.xlu0 %4158 }
 0x413   : > { %5148 = vrot.lane.b32.xlu1 %v10329_v39, %s14561_s20  ;;  %4235 = vst.msk [vmem:[#allocation3 + $0x50] sm:$0xf] %vm4214_vm1, %v4159_v11 }
 0x414   : > { %5403 = vrot.lane.b32.xlu0 %v10360_v25, %s10870_s22  ;;  %10601 = vmatpush3.bf16.msra.mxu0 %v10763_v61  ;;  %v5279_v61 = vld [vmem:[#allocation2 + $0x36] sm:$0xff] }
 0x415   : > { %v4157_v14 = vpop.permute.xlu1 %4156  ;;  %10602 = vmatprep.subr.bf16.mxu0 %v10764_v23 }
 0x416   : > { %4234 = vst.msk [vmem:[#allocation3 + $0x4c] sm:$0xf] %vm4214_vm1, %v4157_v14  ;;  %v4163_v34 = vpop.permute.xlu0 %4162 }
 0x417   : > { %5152 = vrot.lane.b32.xlu1 %v10331_v12, %s14561_s20  ;;  %4237 = vst.msk [vmem:[#allocation3 + $0x58] sm:$0xf] %vm4214_vm1, %v4163_v34  ;;  %v4510_v12 = vld [vmem:[#allocation2 + $0xc5] sm:$0xff]  ;;  %v4511_v34 = vld [vmem:[#allocation2 + $0xcd] sm:$0xff] }
 0x418   : > { %5407 = vrot.lane.b32.xlu0 %v10362_v50, %s10870_s22  ;;  %10603 = vmatpush3.bf16.msra.mxu0 %v10764_v23  ;;  %v10766_v50 = vld [vmem:[%s14527_s2 + $0x10] sm:$0xff]  }
 0x419   : > { %v4161_v19 = vpop.permute.xlu1 %4160  ;;  %10604 = vmatprep.subr.bf16.mxu0 %v10765_v37 }
 0x41a   : > { %4236 = vst.msk [vmem:[#allocation3 + $0x54] sm:$0xf] %vm4214_vm1, %v4161_v19  ;;  %v4167_v13 = vpop.permute.xlu0 %4166  ;;  %v10300_v19 = vpack.c.bf16 %v4765_v5, %v4765_v5  ;;  %v5537_v5 = vld [vmem:[#allocation2 + $0x80] sm:$0xff] }
 0x41b   : > { %5405 = vrot.lane.b32.xlu1 %v10361_v56, %s10870_s22  ;;  %4239 = vst.msk [vmem:[#allocation3 + $0x60] sm:$0xf] %vm4214_vm1, %v4167_v13 }
 0x41c   : > { %5660 = vrot.lane.b32.xlu0 %v12790_v36, %s14558_s26  ;;  %10605 = vmatpush3.bf16.msra.mxu0 %v10765_v37  ;;  %v5280_v37 = vld [vmem:[#allocation2 + $0x3e] sm:$0xff] }
 0x41d   : > { %v4165_v57 = vpop.permute.xlu1 %4164  ;;  %10606 = vmatprep.subr.bf16.mxu0 %v10766_v50 }
 0x41e   : > { %4238 = vst.msk [vmem:[#allocation3 + $0x5c] sm:$0xf] %vm4214_vm1, %v4165_v57  ;;  %v4171_v10 = vpop.permute.xlu0 %4170 }
 0x41f   : > { %5409 = vrot.lane.b32.xlu1 %v10363_v21, %s10870_s22  ;;  %4241 = vst.msk [vmem:[#allocation3 + $0x68] sm:$0xf] %vm4214_vm1, %v4171_v10  ;;  %v10271_v21 = vpack.c.bf16 %v4511_v34, %v4511_v34  ;;  %v10769_v10 = vld [vmem:[%s14527_s2] sm:$0xff]  }
 0x420   : > { %5664 = vrot.lane.b32.xlu0 %v12797_v18, %s14558_s26  ;;  %10607 = vmatpush3.bf16.msra.mxu0 %v10766_v50  ;;  %v5793_v34 = vld [vmem:[#allocation2 + $0x7e] sm:$0xff] }
 0x421   : > { %v4169_v51 = vpop.permute.xlu1 %4168  ;;  %10608 = vmatprep.subr.bf16.mxu0 %v10768_v47 }
 0x422   : > { %4240 = vst.msk [vmem:[#allocation3 + $0x64] sm:$0xf] %vm4214_vm1, %v4169_v51  ;;  %v4175_v42 = vpop.permute.xlu0 %4174  ;;  %v7264_v51 = vsel %vm7038_vm3, %v7256_v53, 0  ;;  %vm7722_vm3 = vcmask 1042434  }
 0x423   : > { %5662 = vrot.lane.b32.xlu1 %v12801_v26, %s14558_s26  ;;  %4243 = vst.msk [vmem:[#allocation3 + $0x70] sm:$0xf] %vm4214_vm1, %v4175_v42  ;;  %10645 = vmatpush3.bf16.msra.mxu1 %v7264_v51  ;;  %v6053_v51 = vld [vmem:[#allocation2 + $0xd8] sm:$0xff] }
 0x424   : > { %5917 = vrot.lane.b32.xlu0 %v12806_v58, %s14556_s24  ;;  %10609 = vmatpush3.bf16.msra.mxu0 %v10768_v47  ;;  %v12963_v47 = vpack.c.bf16 %v5793_v34, %v5793_v34 }
 0x425   : > { %v4173_v28 = vpop.permute.xlu1 %4172  ;;  %10610 = vmatprep.subr.bf16.mxu0 %v10769_v10  ;;  %10650 = vmatprep.subr.bf16.mxu1 %v14578_v0 }
 0x426   : > { %4242 = vst.msk [vmem:[#allocation3 + $0x6c] sm:$0xf] %vm4214_vm1, %v4173_v28  ;;  %v4179_v49 = vpop.permute.xlu0 %4178  ;;  %v6564_v28 = vld [vmem:[#allocation2 + $0xb6] sm:$0xff] }
 0x427   : > { %5666 = vrot.lane.b32.xlu1 %v12811_v31, %s14558_s26  ;;  %4245 = vst.msk [vmem:[#allocation3 + $0x78] sm:$0xf] %vm4214_vm1, %v4179_v49  ;;  %s317_s26 = scalar_lea.vmem %s14526_s1, %s11112_s17  ;;  %v12922_v29 = vpack.c.bf16 %v6564_v28, %v6564_v28  ;;  %s14579_s17 = smov 80   ;;  %v12987_v28 = vpack.c.bf16 %v6053_v51, %v6053_v51 }
 0x428   : > { %5921 = vrot.lane.b32.xlu0 %v12816_v40, %s14556_s24  ;;  %v7255_v20 = vld [vmem:[%s317_s26] sm:$0x1]  ;;  %10611 = vmatpush3.bf16.msra.mxu0 %v10769_v10  ;;  %s14585_s26 = smov 24  }
 0x429   : > { %v4177_v35 = vpop.permute.xlu1 %4176  ;;  %v7259_v15 = vpack.c.bf16 %v7255_v20, %v7255_v20 }
 0x42a   : > { %4244 = vst.msk [vmem:[#allocation3 + $0x74] sm:$0xf] %vm4214_vm1, %v4177_v35  ;;  %v4376_v38 = vpop.permute.xlu0 %4375  ;;  %v5022_v35 = vld [vmem:[#allocation2 + $0x33] sm:$0xff] }
 0x42b   : > { %5919 = vrot.lane.b32.xlu1 %v12821_v32, %s14556_s24  ;;  %4472 = vst.msk [vmem:[#allocation3] sm:$0xf] %vm4471_vm2, %v4376_v38  ;;  %10647 = vmatmul.mubr.msk.bf16.vlgmr.msra.gmra.mxu1 %vm319_vm0, %v7259_v15  ;;  %vm4728_vm0 = vcmask 552448  }
 0x42c   : > { %6175 = vrot.lane.b32.xlu0 %v12826_v16, %s14554_s21  ;;  %10652 = vmatprep.mubr.msk.bf16.mxu1 %vm10876_vm4, %v14578_v0  ;;  %v6054_v0 = vld [vmem:[#allocation2 + $0xe0] sm:$0xff]  ;;  %vm7725_vm4 = vcmask 1043459  }
 0x42d   : > { %v4181_v33 = vpop.permute.xlu1 %4180 }
 0x42e   : > { %4246 = vst.msk [vmem:[#allocation3 + $0x7c] sm:$0xf] %vm4214_vm1, %v4181_v33  ;;  %v4380_v63 = vpop.permute.xlu0 %4379  ;;  %v10332_v33 = vpack.c.bf16 %v5022_v35, %v5022_v35  ;;  %vm7372_vm1 = vcmask 261120  }
 0x42f   : > { %5923 = vrot.lane.b32.xlu1 %v12831_v9, %s14556_s24  ;;  %4474 = vst.msk [vmem:[#allocation3 + $0x8] sm:$0xf] %vm4471_vm2, %v4380_v63  ;;  %s14560_s24 = sand.u32 1, %s10841_s28  }
 0x430   : > { %6179 = vrot.lane.b32.xlu0 %v12836_v59, %s14554_s21 }
 0x431   : > { %v4378_v2 = vpop.permute.xlu1 %4377 }
 0x432   : > { %4473 = vst.msk [vmem:[#allocation3 + $0x4] sm:$0xf] %vm4471_vm2, %v4378_v2  ;;  %v4384_v1 = vpop.permute.xlu0 %4383  ;;  %v10334_v2 = vpack.c.bf16 %v5024_v41, %v5024_v41 }
 0x433   : > { %6177 = vrot.lane.b32.xlu1 %v12844_v46, %s14554_s21  ;;  %4476 = vst.msk [vmem:[#allocation3 + $0x10] sm:$0xf] %vm4471_vm2, %v4384_v1 }
 0x434   : > { %6432 = vrot.lane.b32.xlu0 %v12670_v30, %s14552_s10  ;;  %v12871_v30 = vpack.c.bf16 %v6561_v7, %v6561_v7  ;;  %v10364_v7 = vpack.c.bf16 %v5279_v61, %v5279_v61  ;;  %v6565_v61 = vld [vmem:[#allocation2 + $0xc6] sm:$0xff] }
 0x435   : > { %v4382_v39 = vpop.permute.xlu1 %4381 }
 0x436   : > { %4475 = vst.msk [vmem:[#allocation3 + $0xc] sm:$0xf] %vm4471_vm2, %v4382_v39  ;;  %v4388_v8 = vpop.permute.xlu0 %4387  ;;  %v5025_v39 = vld [vmem:[#allocation2 + $0x53] sm:$0xff] }
 0x437   : > { %6181 = vrot.lane.b32.xlu1 %v12857_v3, %s14554_s21  ;;  %4478 = vst.msk [vmem:[#allocation3 + $0x18] sm:$0xf] %vm4471_vm2, %v4388_v8  ;;  %v10335_v8 = vpack.c.bf16 %v5025_v39, %v5025_v39  ;;  %s14582_s21 = smov 92   ;;  %v13016_v39 = vpack.c.bf16 %v6565_v61, %v6565_v61 }
 0x438   : > { %6436 = vrot.lane.b32.xlu0 %v12677_v4, %s14552_s10  ;;  %v10270_v4 = vpack.c.bf16 %v4510_v12, %v4510_v12 }
 0x439   : > { %v4386_v25 = vpop.permute.xlu1 %4385 }
 0x43a   : > { %4477 = vst.msk [vmem:[#allocation3 + $0x14] sm:$0xf] %vm4471_vm2, %v4386_v25  ;;  %v4392_v11 = vpop.permute.xlu0 %4391 }
 0x43b   : > { %6434 = vrot.lane.b32.xlu1 %v12681_v45, %s14552_s10  ;;  %4480 = vst.msk [vmem:[#allocation3 + $0x20] sm:$0xf] %vm4471_vm2, %v4392_v11  ;;  %v12888_v45 = vpack.c.bf16 %v6562_v24, %v6562_v24  ;;  %v10365_v11 = vpack.c.bf16 %v5280_v37, %v5280_v37 }
 0x43c   : > { %6689 = vrot.lane.b32.xlu0 %v12871_v30, %s14562_s13 }
 0x43d   : > { %v4390_v14 = vpop.permute.xlu1 %4389 }
 0x43e   : > { %4479 = vst.msk [vmem:[#allocation3 + $0x1c] sm:$0xf] %vm4471_vm2, %v4390_v14  ;;  %v4396_v56 = vpop.permute.xlu0 %4395 }
 0x43f   : > { %6438 = vrot.lane.b32.xlu1 %v12691_v27, %s14552_s10  ;;  %4482 = vst.msk [vmem:[#allocation3 + $0x28] sm:$0xf] %vm4471_vm2, %v4396_v56  ;;  %v6563_v27 = vld [vmem:[#allocation2 + $0xae] sm:$0xff]  ;;  %s14581_s10 = smov 88  }
 0x440   : > { %4644 = vrot.lane.b32.xlu0 %v10270_v4, %s14564_s12  ;;  %v12900_v6 = vpack.c.bf16 %v6563_v27, %v6563_v27 }
 0x441   : > { %v4394_v54 = vpop.permute.xlu1 %4393 }
 0x442   : > { %4481 = vst.msk [vmem:[#allocation3 + $0x24] sm:$0xf] %vm4471_vm2, %v4394_v54  ;;  %v4400_v13 = vpop.permute.xlu0 %4399 }
 0x443   : > { %6691 = vrot.lane.b32.xlu1 %v12888_v45, %s14562_s13  ;;  %4484 = vst.msk [vmem:[#allocation3 + $0x30] sm:$0xf] %vm4471_vm2, %v4400_v13  ;;  %v6051_v13 = vld [vmem:[#allocation2 + $0xc0] sm:$0xff] }
 0x444   : > { %4897 = vrot.lane.b32.xlu0 %v10300_v19, %s10868_s18  ;;  %v12979_v53 = vpack.c.bf16 %v6051_v13, %v6051_v13 }
 0x445   : > { %v4398_v57 = vpop.permute.xlu1 %4397 }
 0x446   : > { %4483 = vst.msk [vmem:[#allocation3 + $0x2c] sm:$0xf] %vm4471_vm2, %v4398_v57  ;;  %v4404_v42 = vpop.permute.xlu0 %4403 }
 0x447   : > { %4646 = vrot.lane.b32.xlu1 %v10271_v21, %s14564_s12  ;;  %4486 = vst.msk [vmem:[#allocation3 + $0x38] sm:$0xf] %vm4471_vm2, %v4404_v42  ;;  %v6052_v42 = vld [vmem:[#allocation2 + $0xc8] sm:$0xff] }
 0x448   : > { %6693 = vrot.lane.b32.xlu0 %v12900_v6, %s14562_s13  ;;  %v12992_v15 = vpack.c.bf16 %v6052_v42, %v6052_v42 }
 0x449   : > { %v4402_v49 = vpop.permute.xlu1 %4401 }
 0x44a   : > { %4485 = vst.msk [vmem:[#allocation3 + $0x34] sm:$0xf] %vm4471_vm2, %v4402_v49  ;;  %v4408_v38 = vpop.permute.xlu0 %4407 }
 0x44b   : > { %4899 = vrot.lane.b32.xlu1 %v10301_v60, %s10868_s18  ;;  %4488 = vst.msk [vmem:[#allocation3 + $0x40] sm:$0xf] %vm4471_vm2, %v4408_v38  ;;  %v4512_v38 = vld [vmem:[#allocation2 + $0xdd] sm:$0xff] }
 0x44c   : > { %4901 = vrot.lane.b32.xlu0 %v12790_v36, %s10868_s18  ;;  %v10333_v36 = vpack.c.bf16 %v5023_v62, %v5023_v62 }
 0x44d   : > { %v4406_v43 = vpop.permute.xlu1 %4405 }
 0x44e   : > { %4487 = vst.msk [vmem:[#allocation3 + $0x3c] sm:$0xf] %vm4471_vm2, %v4406_v43  ;;  %v4412_v63 = vpop.permute.xlu0 %4411  ;;  %v13000_v43 = vpack.c.bf16 %v6054_v0, %v6054_v0 }
 0x44f   : > { %6695 = vrot.lane.b32.xlu1 %v12922_v29, %s14562_s13  ;;  %4490 = vst.msk [vmem:[#allocation3 + $0x48] sm:$0xf] %vm4471_vm2, %v4412_v63  ;;  %v10272_v63 = vpack.c.bf16 %v4512_v38, %v4512_v38 }
 0x450   : > { %5154 = vrot.lane.b32.xlu0 %v10332_v33, %s14561_s20 }
 0x451   : > { %v4410_v48 = vpop.permute.xlu1 %4409 }
 0x452   : > { %4489 = vst.msk [vmem:[#allocation3 + $0x44] sm:$0xf] %vm4471_vm2, %v4410_v48  ;;  %v4416_v1 = vpop.permute.xlu0 %4415  ;;  %v4513_v48 = vld [vmem:[#allocation2 + $0xe5] sm:$0xff] }
 0x453   : > { %4903 = vrot.lane.b32.xlu1 %v12801_v26, %s10868_s18  ;;  %4492 = vst.msk [vmem:[#allocation3 + $0x50] sm:$0xf] %vm4471_vm2, %v4416_v1  ;;  %v5536_v26 = vld [vmem:[#allocation2 + $0x78] sm:$0xff] }
 0x454   : > { %5158 = vrot.lane.b32.xlu0 %v10334_v2, %s14561_s20  ;;  %v12948_v4 = vpack.c.bf16 %v5536_v26, %v5536_v26 }
 0x455   : > { %v4414_v23 = vpop.permute.xlu1 %4413 }
 0x456   : > { %4491 = vst.msk [vmem:[#allocation3 + $0x4c] sm:$0xf] %vm4471_vm2, %v4414_v23  ;;  %v4420_v25 = vpop.permute.xlu0 %4419  ;;  %v4514_v23 = vld [vmem:[#allocation2 + $0xf5] sm:$0xff] }
 0x457   : > { %5156 = vrot.lane.b32.xlu1 %v10333_v36, %s14561_s20  ;;  %4494 = vst.msk [vmem:[#allocation3 + $0x58] sm:$0xf] %vm4471_vm2, %v4420_v25  ;;  %v10274_v25 = vpack.c.bf16 %v4514_v23, %v4514_v23  ;;  %v6312_v23 = vld [vmem:[#allocation2 + $0xf3] sm:$0xff] }
 0x458   : > { %5411 = vrot.lane.b32.xlu0 %v10364_v7, %s10870_s22 }
 0x459   : > { %v4418_v12 = vpop.permute.xlu1 %4417 }
 0x45a   : > { %4493 = vst.msk [vmem:[#allocation3 + $0x54] sm:$0xf] %vm4471_vm2, %v4418_v12  ;;  %v4424_v24 = vpop.permute.xlu0 %4423  ;;  %v4515_v12 = vld [vmem:[#allocation2 + $0xfd] sm:$0xff] }
 0x45b   : > { %5160 = vrot.lane.b32.xlu1 %v10335_v8, %s14561_s20  ;;  %4496 = vst.msk [vmem:[#allocation3 + $0x60] sm:$0xf] %vm4471_vm2, %v4424_v24  ;;  %v6566_v8 = vld [vmem:[#allocation2 + $0xce] sm:$0xff]  ;;  %v10275_v24 = vpack.c.bf16 %v4515_v12, %v4515_v12  ;;  %v13113_v12 = vpack.c.bf16 %v6312_v23, %v6312_v23 }
 0x45c   : > { %5415 = vrot.lane.b32.xlu0 %v12806_v58, %s10870_s22  ;;  %v12958_v58 = vpack.c.bf16 %v5537_v5, %v5537_v5 }
 0x45d   : > { %v4422_v14 = vpop.permute.xlu1 %4421 }
 0x45e   : > { %4495 = vst.msk [vmem:[#allocation3 + $0x5c] sm:$0xf] %vm4471_vm2, %v4422_v14  ;;  %v4428_v50 = vpop.permute.xlu0 %4427 }
 0x45f   : > { %5413 = vrot.lane.b32.xlu1 %v10365_v11, %s10870_s22  ;;  %4498 = vst.msk [vmem:[#allocation3 + $0x68] sm:$0xf] %vm4471_vm2, %v4428_v50  ;;  %v6567_v11 = vld [vmem:[#allocation2 + $0xde] sm:$0xff] }
 0x460   : > { %5668 = vrot.lane.b32.xlu0 %v12948_v4, %s14579_s17  ;;  %v13036_v50 = vpack.c.bf16 %v6567_v11, %v6567_v11 }
 0x461   : > { %v4426_v56 = vpop.permute.xlu1 %4425 }
 0x462   : > { %4497 = vst.msk [vmem:[#allocation3 + $0x64] sm:$0xf] %vm4471_vm2, %v4426_v56  ;;  %v4432_v54 = vpop.permute.xlu0 %4431  ;;  %v6568_v56 = vld [vmem:[#allocation2 + $0xe6] sm:$0xff] }
 0x463   : > { %5417 = vrot.lane.b32.xlu1 %v12821_v32, %s10870_s22  ;;  %4500 = vst.msk [vmem:[#allocation3 + $0x70] sm:$0xf] %vm4471_vm2, %v4432_v54  ;;  %v5794_v32 = vld [vmem:[#allocation2 + $0x86] sm:$0xff] }
 0x464   : > { %5672 = vrot.lane.b32.xlu0 %v12826_v16, %s14579_s17  ;;  %v12974_v55 = vpack.c.bf16 %v5794_v32, %v5794_v32  ;;  %v5026_v54 = vld [vmem:[#allocation2 + $0x63] sm:$0xff] }
 0x465   : > { %v4430_v19 = vpop.permute.xlu1 %4429  ;;  %v10336_v32 = vpack.c.bf16 %v5026_v54, %v5026_v54 }
 0x466   : > { %4499 = vst.msk [vmem:[#allocation3 + $0x6c] sm:$0xf] %vm4471_vm2, %v4430_v19  ;;  %v4436_v27 = vpop.permute.xlu0 %4435 }
 0x467   : > { %5670 = vrot.lane.b32.xlu1 %v12958_v58, %s14579_s17  ;;  %4502 = vst.msk [vmem:[#allocation3 + $0x78] sm:$0xf] %vm4471_vm2, %v4436_v27 }
 0x468   : > { %5925 = vrot.lane.b32.xlu0 %v12963_v47, %s14580_s23 }
 0x469   : > { %v4434_v21 = vpop.permute.xlu1 %4433 }
 0x46a   : > { %4501 = vst.msk [vmem:[#allocation3 + $0x74] sm:$0xf] %vm4471_vm2, %v4434_v21  ;;  %v4633_v57 = vpop.permute.xlu0 %4632  ;;  %v5028_v21 = vld [vmem:[#allocation2 + $0x7b] sm:$0xff] }
 0x46b   : > { %5674 = vrot.lane.b32.xlu1 %v12844_v46, %s14579_s17  ;;  %4729 = vst.msk [vmem:[#allocation3] sm:$0xf] %vm4728_vm0, %v4633_v57 }
 0x46c   : > { %5929 = vrot.lane.b32.xlu0 %v12871_v30, %s14580_s23 }
 0x46d   : > { %v4438_v10 = vpop.permute.xlu1 %4437 }
 0x46e   : > { %4503 = vst.msk [vmem:[#allocation3 + $0x7c] sm:$0xf] %vm4471_vm2, %v4438_v10  ;;  %v4637_v60 = vpop.permute.xlu0 %4636  ;;  %v10338_v10 = vpack.c.bf16 %v5028_v21, %v5028_v21  ;;  %v6569_v21 = vld [vmem:[#allocation2 + $0xf6] sm:$0xff]  ;;  %vm7719_vm2 = vcmask 1041409  }
 0x46f   : > { %5927 = vrot.lane.b32.xlu1 %v12974_v55, %s14580_s23  ;;  %4731 = vst.msk [vmem:[#allocation3 + $0x8] sm:$0xf] %vm4728_vm0, %v4637_v60  ;;  %v5029_v60 = vld [vmem:[#allocation2 + $0x83] sm:$0xff] }
 0x470   : > { %6183 = vrot.lane.b32.xlu0 %v12979_v53, %s14581_s10 }
 0x471   : > { %v4635_v20 = vpop.permute.xlu1 %4634 }
 0x472   : > { %4730 = vst.msk [vmem:[#allocation3 + $0x4] sm:$0xf] %vm4728_vm0, %v4635_v20  ;;  %v4641_v49 = vpop.permute.xlu0 %4640  ;;  %v10339_v20 = vpack.c.bf16 %v5029_v60, %v5029_v60  ;;  %v4518_v60 = vld [vmem:[#allocation2 + $0x125] sm:$0xff] }
 0x473   : > { %5931 = vrot.lane.b32.xlu1 %v12888_v45, %s14580_s23  ;;  %4733 = vst.msk [vmem:[#allocation3 + $0x10] sm:$0xf] %vm4728_vm0, %v4641_v49 }
 0x474   : > { %6187 = vrot.lane.b32.xlu0 %v12987_v28, %s14581_s10 }
 0x475   : > { %v4639_v35 = vpop.permute.xlu1 %4638 }
 0x476   : > { %4732 = vst.msk [vmem:[#allocation3 + $0xc] sm:$0xf] %vm4728_vm0, %v4639_v35  ;;  %v4890_v33 = vpop.permute.xlu0 %4889 }
 0x477   : > { %6185 = vrot.lane.b32.xlu1 %v12992_v15, %s14581_s10  ;;  %4986 = vst.msk [vmem:[#allocation3] sm:$0xf] %vm4985_vm5, %v4890_v33 }
 0x478   : > { %6440 = vrot.lane.b32.xlu0 %v12686_v52, %s14582_s21  ;;  %v10273_v52 = vpack.c.bf16 %v4513_v48, %v4513_v48 }
 0x479   : > { %v4643_v41 = vpop.permute.xlu1 %4642 }
 0x47a   : > { %4734 = vst.msk [vmem:[#allocation3 + $0x14] sm:$0xf] %vm4728_vm0, %v4643_v41  ;;  %v4894_v62 = vpop.permute.xlu0 %4893 }
 0x47b   : > { %6189 = vrot.lane.b32.xlu1 %v13000_v43, %s14581_s10  ;;  %4988 = vst.msk [vmem:[#allocation3 + $0x8] sm:$0xf] %vm4985_vm5, %v4894_v62 }
 0x47c   : > { %4648 = vrot.lane.b32.xlu0 %v10272_v63, %s14564_s12 }
 0x47d   : > { %v4892_v2 = vpop.permute.xlu1 %4891 }
 0x47e   : > { %4987 = vst.msk [vmem:[#allocation3 + $0x4] sm:$0xf] %vm4985_vm5, %v4892_v2  ;;  %v5147_v36 = vpop.permute.xlu0 %5146  ;;  %v6057_v2 = vld [vmem:[#allocation2 + $0x108] sm:$0xff] }
 0x47f   : > { %6442 = vrot.lane.b32.xlu1 %v12701_v17, %s14582_s21  ;;  %5243 = vst.msk [vmem:[#allocation3] sm:$0xf] %vm5242_vm6, %v5147_v36 }
 0x480   : > { %6444 = vrot.lane.b32.xlu0 %v12696_v44, %s14582_s21  ;;  %v13026_v44 = vpack.c.bf16 %v6566_v8, %v6566_v8 }
 0x481   : > { %v4896_v1 = vpop.permute.xlu1 %4895 }
 0x482   : > { %4989 = vst.msk [vmem:[#allocation3 + $0xc] sm:$0xf] %vm4985_vm5, %v4896_v1  ;;  %v5151_v7 = vpop.permute.xlu0 %5150  ;;  %v13103_v1 = vpack.c.bf16 %v6057_v2, %v6057_v2  ;;  %v6572_v2 = vld [vmem:[#allocation2 + $0x116] sm:$0xff] }
 0x483   : > { %4650 = vrot.lane.b32.xlu1 %v10273_v52, %s14564_s12  ;;  %5245 = vst.msk [vmem:[#allocation3 + $0x8] sm:$0xf] %vm5242_vm6, %v5151_v7  ;;  %v6056_v52 = vld [vmem:[#allocation2 + $0xf8] sm:$0xff] }
 0x484   : > { %6697 = vrot.lane.b32.xlu0 %v13016_v39, %s14562_s13  ;;  %v13108_v7 = vpack.c.bf16 %v6056_v52, %v6056_v52  ;;  %v5030_v52 = vld [vmem:[#allocation2 + $0x93] sm:$0xff] }
 0x485   : > { %v5149_v17 = vpop.permute.xlu1 %5148 }
 0x486   : > { %5244 = vst.msk [vmem:[#allocation3 + $0x4] sm:$0xf] %vm5242_vm6, %v5149_v17  ;;  %v5404_v37 = vpop.permute.xlu0 %5403  ;;  %v6058_v17 = vld [vmem:[#allocation2 + $0x110] sm:$0xff] }
 0x487   : > { %6446 = vrot.lane.b32.xlu1 %v12709_v22, %s14582_s21  ;;  %5500 = vst.msk [vmem:[#allocation3] sm:$0xf] %vm5499_vm7, %v5404_v37  ;;  %v13119_v11 = vpack.c.bf16 %v6058_v17, %v6058_v17  ;;  %v5032_v17 = vld [vmem:[#allocation2 + $0xab] sm:$0xff] }
 0x488   : > { %4652 = vrot.lane.b32.xlu0 %v10274_v25, %s14564_s12 }
 0x489   : > { %v5153_v26 = vpop.permute.xlu1 %5152 }
 0x48a   : > { %5246 = vst.msk [vmem:[#allocation3 + $0xc] sm:$0xf] %vm5242_vm6, %v5153_v26  ;;  %v5408_v14 = vpop.permute.xlu0 %5407  ;;  %v4516_v26 = vld [vmem:[#allocation2 + $0x10d] sm:$0xff] }
 0x48b   : > { %6699 = vrot.lane.b32.xlu1 %v13026_v44, %s14562_s13  ;;  %5502 = vst.msk [vmem:[#allocation3 + $0x8] sm:$0xf] %vm5499_vm7, %v5408_v14  ;;  %v6313_v14 = vld [vmem:[#allocation2 + $0xfb] sm:$0xff] }
 0x48c   : > { %4905 = vrot.lane.b32.xlu0 %v12797_v18, %s10868_s18  ;;  %v13046_v18 = vpack.c.bf16 %v6568_v56, %v6568_v56  ;;  %v6314_v56 = vld [vmem:[#allocation2 + $0x10b] sm:$0xff] }
 0x48d   : > { %v5406_v22 = vpop.permute.xlu1 %5405 }
 0x48e   : > { %5501 = vst.msk [vmem:[#allocation3 + $0x4] sm:$0xf] %vm5499_vm7, %v5406_v22  ;;  %v5661_v5 = vpop.permute.xlu0 %5660 }
 0x48f   : > { %4654 = vrot.lane.b32.xlu1 %v10275_v24, %s14564_s12  ;;  %5757 = vst.msk [vmem:[#allocation3] sm:$0xf] %vm5756_vm8, %v5661_v5  ;;  %v10276_v5 = vpack.c.bf16 %v4516_v26, %v4516_v26  ;;  %v10342_v26 = vpack.c.bf16 %v5032_v17, %v5032_v17 }
 0x490   : > { %6701 = vrot.lane.b32.xlu0 %v13036_v50, %s14562_s13 }
 0x491   : > { %v5410_v34 = vpop.permute.xlu1 %5409 }
 0x492   : > { %5503 = vst.msk [vmem:[#allocation3 + $0xc] sm:$0xf] %vm5499_vm7, %v5410_v34  ;;  %v5665_v19 = vpop.permute.xlu0 %5664  ;;  %v13127_v34 = vpack.c.bf16 %v6313_v14, %v6313_v14  ;;  %v5033_v14 = vld [vmem:[#allocation2 + $0xb3] sm:$0xff] }
 0x493   : > { %4907 = vrot.lane.b32.xlu1 %v12811_v31, %s10868_s18  ;;  %5759 = vst.msk [vmem:[#allocation3 + $0x8] sm:$0xf] %vm5756_vm8, %v5665_v19  ;;  %v5027_v31 = vld [vmem:[#allocation2 + $0x6b] sm:$0xff]  ;;  %v4517_v19 = vld [vmem:[#allocation2 + $0x115] sm:$0xff] }
 0x494   : > { %4909 = vrot.lane.b32.xlu0 %v12948_v4, %s10868_s18  ;;  %v10337_v4 = vpack.c.bf16 %v5027_v31, %v5027_v31 }
 0x495   : > { %v5663_v27 = vpop.permute.xlu1 %5662 }
 0x496   : > { %5758 = vst.msk [vmem:[#allocation3 + $0x4] sm:$0xf] %vm5756_vm8, %v5663_v27  ;;  %v5918_v13 = vpop.permute.xlu0 %5917 }
 0x497   : > { %6703 = vrot.lane.b32.xlu1 %v13046_v18, %s14562_s13  ;;  %6014 = vst.msk [vmem:[#allocation3] sm:$0xf] %vm6013_vm9, %v5918_v13  ;;  %v10277_v13 = vpack.c.bf16 %v4517_v19, %v4517_v19 }
 0x498   : > { %5162 = vrot.lane.b32.xlu0 %v10336_v32, %s14561_s20  ;;  %v13131_v32 = vpack.c.bf16 %v6314_v56, %v6314_v56 }
 0x499   : > { %v5667_v57 = vpop.permute.xlu1 %5666 }
 0x49a   : > { %5760 = vst.msk [vmem:[#allocation3 + $0xc] sm:$0xf] %vm5756_vm8, %v5667_v57  ;;  %v5922_v51 = vpop.permute.xlu0 %5921  ;;  %v6315_v57 = vld [vmem:[#allocation2 + $0x113] sm:$0xff] }
 0x49b   : > { %4911 = vrot.lane.b32.xlu1 %v12958_v58, %s10868_s18  ;;  %6016 = vst.msk [vmem:[#allocation3 + $0x8] sm:$0xf] %vm6013_vm9, %v5922_v51  ;;  %v13139_v51 = vpack.c.bf16 %v6569_v21, %v6569_v21 }
 0x49c   : > { %5166 = vrot.lane.b32.xlu0 %v10338_v10, %s14561_s20 }
 0x49d   : > { %v5920_v42 = vpop.permute.xlu1 %5919 }
 0x49e   : > { %6015 = vst.msk [vmem:[#allocation3 + $0x4] sm:$0xf] %vm6013_vm9, %v5920_v42  ;;  %v6176_v49 = vpop.permute.xlu0 %6175  ;;  %v13144_v42 = vpack.c.bf16 %v6315_v57, %v6315_v57 }
 0x49f   : > { %5164 = vrot.lane.b32.xlu1 %v10337_v4, %s14561_s20  ;;  %6272 = vst.msk [vmem:[#allocation3] sm:$0xf] %vm6271_vm10, %v6176_v49  ;;  %v6570_v49 = vld [vmem:[#allocation2 + $0xfe] sm:$0xff] }
 0x4a0   : > { %5419 = vrot.lane.b32.xlu0 %v12816_v40, %s10870_s22 }
 0x4a1   : > { %v5924_v0 = vpop.permute.xlu1 %5923 }
 0x4a2   : > { %6017 = vst.msk [vmem:[#allocation3 + $0xc] sm:$0xf] %vm6013_vm9, %v5924_v0  ;;  %v6180_v58 = vpop.permute.xlu0 %6179 }
 0x4a3   : > { %5168 = vrot.lane.b32.xlu1 %v10339_v20, %s14561_s20  ;;  %6274 = vst.msk [vmem:[#allocation3 + $0x8] sm:$0xf] %vm6271_vm10, %v6180_v58  ;;  %v10278_v58 = vpack.c.bf16 %v4518_v60, %v4518_v60 }
 0x4a4   : > { %5423 = vrot.lane.b32.xlu0 %v12963_v47, %s10870_s22 }
 0x4a5   : > { %v6178_v35 = vpop.permute.xlu1 %6177 }
 0x4a6   : > { %6273 = vst.msk [vmem:[#allocation3 + $0x4] sm:$0xf] %vm6271_vm10, %v6178_v35  ;;  %v6433_v38 = vpop.permute.xlu0 %6432  ;;  %v13152_v35 = vpack.c.bf16 %v6570_v49, %v6570_v49 }
 0x4a7   : > { %5421 = vrot.lane.b32.xlu1 %v12831_v9, %s10870_s22  ;;  %6529 = vst.msk [vmem:[#allocation3] sm:$0xf] %vm6528_vm11, %v6433_v38 }
 0x4a8   : > { %5676 = vrot.lane.b32.xlu0 %v12836_v59, %s14579_s17 }
 0x4a9   : > { %v6182_v40 = vpop.permute.xlu1 %6181 }
 0x4aa   : > { %6275 = vst.msk [vmem:[#allocation3 + $0xc] sm:$0xf] %vm6271_vm10, %v6182_v40  ;;  %v6437_v33 = vpop.permute.xlu0 %6436  ;;  %v4519_v40 = vld [vmem:[#allocation2 + $0x12d] sm:$0xff] }
 0x4ab   : > { %5425 = vrot.lane.b32.xlu1 %v12974_v55, %s10870_s22  ;;  %6531 = vst.msk [vmem:[#allocation3 + $0x8] sm:$0xf] %vm6528_vm11, %v6437_v33  ;;  %v6055_v55 = vld [vmem:[#allocation2 + $0xf0] sm:$0xff] }
 0x4ac   : > { %5680 = vrot.lane.b32.xlu0 %v12979_v53, %s14579_s17  ;;  %v13095_v48 = vpack.c.bf16 %v6055_v55, %v6055_v55 }
 0x4ad   : > { %v6435_v47 = vpop.permute.xlu1 %6434 }
 0x4ae   : > { %6530 = vst.msk [vmem:[#allocation3 + $0x4] sm:$0xf] %vm6528_vm11, %v6435_v47  ;;  %v6690_v9 = vpop.permute.xlu0 %6689  ;;  %v6571_v47 = vld [vmem:[#allocation2 + $0x10e] sm:$0xff] }
 0x4af   : > { %5678 = vrot.lane.b32.xlu1 %v12857_v3, %s14579_s17  ;;  %6786 = vst.msk [vmem:[#allocation3] sm:$0xf] %vm6785_vm12, %v6690_v9  ;;  %v10279_v9 = vpack.c.bf16 %v4519_v40, %v4519_v40 }
 0x4b0   : > { %5933 = vrot.lane.b32.xlu0 %v12900_v6, %s14580_s23 }
 0x4b1   : > { %v6439_v41 = vpop.permute.xlu1 %6438 }
 0x4b2   : > { %6532 = vst.msk [vmem:[#allocation3 + $0xc] sm:$0xf] %vm6528_vm11, %v6439_v41  ;;  %v4645_v63 = vpop.permute.xlu0 %4644 }
 0x4b3   : > { %5682 = vrot.lane.b32.xlu1 %v12992_v15, %s14579_s17  ;;  %4735 = vst.msk [vmem:[#allocation3 + $0x18] sm:$0xf] %vm4728_vm0, %v4645_v63  ;;  %v13162_v63 = vpack.c.bf16 %v6571_v47, %v6571_v47 }
 0x4b4   : > { %5937 = vrot.lane.b32.xlu0 %v13016_v39, %s14580_s23 }
 0x4b5   : > { %v6692_v62 = vpop.permute.xlu1 %6691 }
 0x4b6   : > { %6787 = vst.msk [vmem:[#allocation3 + $0x4] sm:$0xf] %vm6785_vm12, %v6692_v62  ;;  %v4898_v61 = vpop.permute.xlu0 %4897 }
 0x4b7   : > { %5935 = vrot.lane.b32.xlu1 %v12922_v29, %s14580_s23  ;;  %4990 = vst.msk [vmem:[#allocation3 + $0x10] sm:$0xf] %vm4985_vm5, %v4898_v61 }
 0x4b8   : > { %6191 = vrot.lane.b32.xlu0 %v13095_v48, %s14581_s10 }
 0x4b9   : > { %v4647_v36 = vpop.permute.xlu1 %4646 }
 0x4ba   : > { %4736 = vst.msk [vmem:[#allocation3 + $0x1c] sm:$0xf] %vm4728_vm0, %v4647_v36  ;;  %v6694_v8 = vpop.permute.xlu0 %6693 }
 0x4bb   : > { %5939 = vrot.lane.b32.xlu1 %v13026_v44, %s14580_s23  ;;  %6788 = vst.msk [vmem:[#allocation3 + $0x8] sm:$0xf] %vm6785_vm12, %v6694_v8  ;;  %v10340_v8 = vpack.c.bf16 %v5030_v52, %v5030_v52 }
 0x4bc   : > { %6195 = vrot.lane.b32.xlu0 %v13103_v1, %s14581_s10 }
 0x4bd   : > { %v4900_v25 = vpop.permute.xlu1 %4899  ;;  %v10767_v37 = vld [vmem:[#allocation3] sm:$0xff]  }
 0x4be   : > { %4991 = vst.msk [vmem:[#allocation3 + $0x14] sm:$0xf] %vm4985_vm5, %v4900_v25  ;;  %10612 = vmatprep.mubr.msk.bf16.mxu0 %vm6989_vm13, %v10767_v37  ;;  %v4902_v24 = vpop.permute.xlu0 %4901 }
 0x4bf   : > { %6193 = vrot.lane.b32.xlu1 %v13108_v7, %s14581_s10  ;;  %4992 = vst.msk [vmem:[#allocation3 + $0x18] sm:$0xf] %vm4985_vm5, %v4902_v24 }
 0x4c0   : > { %6448 = vrot.lane.b32.xlu0 %v13113_v12, %s14582_s21 }
 0x4c1   : > { %v6696_v22 = vpop.permute.xlu1 %6695 }
 0x4c2   : > { %6789 = vst.msk [vmem:[#allocation3 + $0xc] sm:$0xf] %vm6785_vm12, %v6696_v22  ;;  %v5155_v54 = vpop.permute.xlu0 %5154 }
 0x4c3   : > { %6197 = vrot.lane.b32.xlu1 %v13119_v11, %s14581_s10  ;;  %5247 = vst.msk [vmem:[#allocation3 + $0x10] sm:$0xf] %vm5242_vm6, %v5155_v54 }
 0x4c4   : > { %4656 = vrot.lane.b32.xlu0 %v10276_v5, %s14564_s12  ;;  %v10343_v5 = vpack.c.bf16 %v5033_v14, %v5033_v14 }
 0x4c5   : > { %v4904_v27 = vpop.permute.xlu1 %4903 }
 0x4c6   : > { %4993 = vst.msk [vmem:[#allocation3 + $0x1c] sm:$0xf] %vm4985_vm5, %v4904_v27  ;;  %v5159_v31 = vpop.permute.xlu0 %5158 }
 0x4c7   : > { %6450 = vrot.lane.b32.xlu1 %v13127_v34, %s14582_s21  ;;  %5249 = vst.msk [vmem:[#allocation3 + $0x18] sm:$0xf] %vm5242_vm6, %v5159_v31 }
 0x4c8   : > { %6452 = vrot.lane.b32.xlu0 %v13131_v32, %s14582_s21 }
 0x4c9   : > { %v5157_v10 = vpop.permute.xlu1 %5156  ;;  %v10770_v4 = vld [vmem:[#allocation3 + $0x8] sm:$0xff]  }
 0x4ca   : > { %5248 = vst.msk [vmem:[#allocation3 + $0x14] sm:$0xf] %vm5242_vm6, %v5157_v10  ;;  %10613 = vmatmul.mubr.msk.bf16.vlgmr.msra.gmra.mxu0 %vm6989_vm13, %v10770_v4  ;;  %v5412_v20 = vpop.permute.xlu0 %5411  ;;  %v6061_v4 = vld [vmem:[#allocation2 + $0x138] sm:$0xff] }
 0x4cb   : > { %4658 = vrot.lane.b32.xlu1 %v10277_v13, %s14564_s12  ;;  %5504 = vst.msk [vmem:[#allocation3 + $0x10] sm:$0xf] %vm5499_vm7, %v5412_v20  ;;  %v6060_v20 = vld [vmem:[#allocation2 + $0x128] sm:$0xff] }
 0x4cc   : > { %6705 = vrot.lane.b32.xlu0 %v13139_v51, %s14562_s13 }
 0x4cd   : > { %v5161_v0 = vpop.permute.xlu1 %5160 }
 0x4ce   : > { %5250 = vst.msk [vmem:[#allocation3 + $0x1c] sm:$0xf] %vm5242_vm6, %v5161_v0  ;;  %v5416_v38 = vpop.permute.xlu0 %5415  ;;  %v13229_v0 = vpack.c.bf16 %v6061_v4, %v6061_v4 }
 0x4cf   : > { %6454 = vrot.lane.b32.xlu1 %v13144_v42, %s14582_s21  ;;  %5506 = vst.msk [vmem:[#allocation3 + $0x18] sm:$0xf] %vm5499_vm7, %v5416_v38  ;;  %v13234_v38 = vpack.c.bf16 %v6060_v20, %v6060_v20  ;;  %v10776_v20 = vld [vmem:[%s14528_s3] sm:$0xff]  }
 0x4d0   : > { %4660 = vrot.lane.b32.xlu0 %v10278_v58, %s14564_s12  ;;  %v6316_v58 = vld [vmem:[#allocation2 + $0x123] sm:$0xff] }
 0x4d1   : > { %v5414_v33 = vpop.permute.xlu1 %5413 }
 0x4d2   : > { %5505 = vst.msk [vmem:[#allocation3 + $0x14] sm:$0xf] %vm5499_vm7, %v5414_v33  ;;  %v5669_v41 = vpop.permute.xlu0 %5668  ;;  %v6062_v33 = vld [vmem:[#allocation2 + $0x140] sm:$0xff] }
 0x4d3   : > { %6707 = vrot.lane.b32.xlu1 %v13152_v35, %s14562_s13  ;;  %5761 = vst.msk [vmem:[#allocation3 + $0x10] sm:$0xf] %vm5756_vm8, %v5669_v41  ;;  %v13239_v41 = vpack.c.bf16 %v6316_v58, %v6316_v58 }
 0x4d4   : > { %4913 = vrot.lane.b32.xlu0 %v12826_v16, %s10868_s18  ;;  %v13172_v16 = vpack.c.bf16 %v6572_v2, %v6572_v2 }
 0x4d5   : > { %v5418_v55 = vpop.permute.xlu1 %5417 }
 0x4d6   : > { %5507 = vst.msk [vmem:[#allocation3 + $0x1c] sm:$0xf] %vm5499_vm7, %v5418_v55  ;;  %v5673_v62 = vpop.permute.xlu0 %5672  ;;  %v4520_v55 = vld [vmem:[#allocation2 + $0x13d] sm:$0xff] }
 0x4d7   : > { %4662 = vrot.lane.b32.xlu1 %v10279_v9, %s14564_s12  ;;  %5763 = vst.msk [vmem:[#allocation3 + $0x18] sm:$0xf] %vm5756_vm8, %v5673_v62  ;;  %v13245_v62 = vpack.c.bf16 %v6062_v33, %v6062_v33 }
 0x4d8   : > { %6709 = vrot.lane.b32.xlu0 %v13162_v63, %s14562_s13 }
 0x4d9   : > { %v5671_v61 = vpop.permute.xlu1 %5670 }
 0x4da   : > { %5762 = vst.msk [vmem:[#allocation3 + $0x14] sm:$0xf] %vm5756_vm8, %v5671_v61  ;;  %v5926_v36 = vpop.permute.xlu0 %5925  ;;  %v6317_v61 = vld [vmem:[#allocation2 + $0x12b] sm:$0xff] }
 0x4db   : > { %4915 = vrot.lane.b32.xlu1 %v12844_v46, %s10868_s18  ;;  %6018 = vst.msk [vmem:[#allocation3 + $0x10] sm:$0xf] %vm6013_vm9, %v5926_v36  ;;  %v5031_v46 = vld [vmem:[#allocation2 + $0x9b] sm:$0xff]  ;;  %v10280_v36 = vpack.c.bf16 %v4520_v55, %v4520_v55  ;;  %v13256_v17 = vpack.c.bf16 %v6317_v61, %v6317_v61 }
 0x4dc   : > { %4917 = vrot.lane.b32.xlu0 %v12836_v59, %s10868_s18  ;;  %v10341_v59 = vpack.c.bf16 %v5031_v46, %v5031_v46 }
 0x4dd   : > { %v5675_v23 = vpop.permute.xlu1 %5674 }
 0x4de   : > { %5764 = vst.msk [vmem:[#allocation3 + $0x1c] sm:$0xf] %vm5756_vm8, %v5675_v23  ;;  %v5930_v25 = vpop.permute.xlu0 %5929  ;;  %v6318_v23 = vld [vmem:[#allocation2 + $0x13b] sm:$0xff] }
 0x4df   : > { %6711 = vrot.lane.b32.xlu1 %v13172_v16, %s14562_s13  ;;  %6020 = vst.msk [vmem:[#allocation3 + $0x18] sm:$0xf] %vm6013_vm9, %v5930_v25  ;;  %v13263_v14 = vpack.c.bf16 %v6318_v23, %v6318_v23 }
 0x4e0   : > { %5170 = vrot.lane.b32.xlu0 %v10340_v8, %s14561_s20  ;;  %v7258_v8 = vld [vmem:[%s14532_s7] sm:$0x1] }
 0x4e1   : > { %v5928_v37 = vpop.permute.xlu1 %5927 }
 0x4e2   : > { %6019 = vst.msk [vmem:[#allocation3 + $0x14] sm:$0xf] %vm6013_vm9, %v5928_v37  ;;  %v6184_v24 = vpop.permute.xlu0 %6183  ;;  %v4521_v37 = vld [vmem:[#allocation2 + $0x145] sm:$0xff] }
 0x4e3   : > { %4919 = vrot.lane.b32.xlu1 %v12857_v3, %s10868_s18  ;;  %6276 = vst.msk [vmem:[#allocation3 + $0x10] sm:$0xf] %vm6271_vm10, %v6184_v24 }
 0x4e4   : > { %5174 = vrot.lane.b32.xlu0 %v10342_v26, %s14561_s20 }
 0x4e5   : > { %v5932_v22 = vpop.permute.xlu1 %5931 }
 0x4e6   : > { %6021 = vst.msk [vmem:[#allocation3 + $0x1c] sm:$0xf] %vm6013_vm9, %v5932_v22  ;;  %v6188_v56 = vpop.permute.xlu0 %6187 }
 0x4e7   : > { %5172 = vrot.lane.b32.xlu1 %v10341_v59, %s14561_s20  ;;  %6278 = vst.msk [vmem:[#allocation3 + $0x18] sm:$0xf] %vm6271_vm10, %v6188_v56  ;;  %v7257_v59 = vld [vmem:[%s14530_s5] sm:$0xf]  ;;  %v6573_v56 = vld [vmem:[#allocation2 + $0x126] sm:$0xff] }
 0x4e8   : > { %5427 = vrot.lane.b32.xlu0 %v12871_v30, %s10870_s22  ;;  %v7314_v22 = vsel %vm7312_vm14, %v7257_v59, 0  ;;  %vm14568_vm14 = vcmask 523712  }
 0x4e9   : > { %v6186_v54 = vpop.permute.xlu1 %6185  ;;  %10651 = vmatpush3.bf16.msra.mxu1 %v7314_v22  ;;  %v5036_v22 = vld [vmem:[#allocation2 + $0xdb] sm:$0xff] }
 0x4ea   : > { %6277 = vst.msk [vmem:[#allocation3 + $0x14] sm:$0xf] %vm6271_vm10, %v6186_v54  ;;  %v6441_v3 = vpop.permute.xlu0 %6440 }
 0x4eb   : > { %5176 = vrot.lane.b32.xlu1 %v10343_v5, %s14561_s20  ;;  %6533 = vst.msk [vmem:[#allocation3 + $0x10] sm:$0xf] %vm6528_vm11, %v6441_v3  ;;  %v7300_v46 = vpop.f32.mrf.mxu1  ;;  %v10281_v3 = vpack.c.bf16 %v4521_v37, %v4521_v37  ;;  %v5034_v37 = vld [vmem:[#allocation2 + $0xc3] sm:$0xff] }
 0x4ec   : > { %5431 = vrot.lane.b32.xlu0 %v12900_v6, %s10870_s22  ;;  %v7301_v26 = vadd.f32 %v7300_v46, %v7258_v8 }
 0x4ed   : > { %v6190_v19 = vpop.permute.xlu1 %6189  ;;  %v10648_v5 = vpop.f32.mrf.mxu1 }
 0x4ee   : > { %6279 = vst.msk [vmem:[#allocation3 + $0x1c] sm:$0xf] %vm6271_vm10, %v6190_v19  ;;  %v4649_v27 = vpop.permute.xlu0 %4648  ;;  %v7306_v54 = vmax.f32 %v7301_v26, 0.0 }
 0x4ef   : > { %5429 = vrot.lane.b32.xlu1 %v12888_v45, %s10870_s22  ;;  %4737 = vst.msk [vmem:[#allocation3 + $0x20] sm:$0xf] %vm4728_vm0, %v4649_v27  ;;  %v10775_v27 = vld [vmem:[%s14528_s3 + $0x8] sm:$0xff]  }
 0x4f0   : > { %5684 = vrot.lane.b32.xlu0 %v12987_v28, %s14579_s17  ;;  %10656 = vmatprep.subr.bf16.mxu1 %v10775_v27 }
 0x4f1   : > { %v6443_v30 = vpop.permute.xlu1 %6442 }
 0x4f2   : > { %6534 = vst.msk [vmem:[#allocation3 + $0x14] sm:$0xf] %vm6528_vm11, %v6443_v30  ;;  %v6445_v21 = vpop.permute.xlu0 %6444  ;;  %v7303_v30 = vpop.f32.mrf.mxu1 }
 0x4f3   : > { %5433 = vrot.lane.b32.xlu1 %v12922_v29, %s10870_s22  ;;  %6535 = vst.msk [vmem:[#allocation3 + $0x18] sm:$0xf] %vm6528_vm11, %v6445_v21  ;;  %v6059_v29 = vld [vmem:[#allocation2 + $0x120] sm:$0xff] }
 0x4f4   : > { %5688 = vrot.lane.b32.xlu0 %v13095_v48, %s14579_s17  ;;  %v13221_v10 = vpack.c.bf16 %v6059_v29, %v6059_v29  ;;  %v6319_v21 = vld [vmem:[#allocation2 + $0x143] sm:$0xff]  ;;  %v13274_v29 = vpack.c.bf16 %v6573_v56, %v6573_v56 }
 0x4f5   : > { %v4651_v6 = vpop.permute.xlu1 %4650  ;;  %v13280_v4 = vpack.c.bf16 %v6319_v21, %v6319_v21 }
 0x4f6   : > { %4738 = vst.msk [vmem:[#allocation3 + $0x24] sm:$0xf] %vm4728_vm0, %v4651_v6  ;;  %v6698_v45 = vpop.permute.xlu0 %6697  ;;  %v7307_v6 = vpack.c.bf16 %v7306_v54, %v7306_v54  ;;  %v10346_v54 = vpack.c.bf16 %v5036_v22, %v5036_v22 }
 0x4f7   : > { %5686 = vrot.lane.b32.xlu1 %v13000_v43, %s14579_s17  ;;  %6790 = vst.msk [vmem:[#allocation3 + $0x10] sm:$0xf] %vm6785_vm12, %v6698_v45 }
 0x4f8   : > { %5941 = vrot.lane.b32.xlu0 %v13036_v50, %s14580_s23  ;;  %10653 = vmatmul.mubr.msk.bf16.vlgmr.msra.gmra.mxu1 %vm7308_vm15, %v7307_v6 }
 0x4f9   : > { %v6447_v13 = vpop.permute.xlu1 %6446  ;;  %10657 = vmatpush3.bf16.msra.mxu1 %v10775_v27 }
 0x4fa   : > { %6536 = vst.msk [vmem:[#allocation3 + $0x1c] sm:$0xf] %vm6528_vm11, %v6447_v13  ;;  %v4653_v31 = vpop.permute.xlu0 %4652  ;;  %10658 = vmatprep.subr.bf16.mxu1 %v10776_v20 }
 0x4fb   : > { %5690 = vrot.lane.b32.xlu1 %v13108_v7, %s14579_s17  ;;  %4739 = vst.msk [vmem:[#allocation3 + $0x28] sm:$0xf] %vm4728_vm0, %v4653_v31  ;;  %v10649_v31 = vpop.f32.mrf.mxu1 }
 0x4fc   : > { %5945 = vrot.lane.b32.xlu0 %v13139_v51, %s14580_s23 }
 0x4fd   : > { %v6700_v57 = vpop.permute.xlu1 %6699  ;;  %10659 = vmatpush3.bf16.msra.mxu1 %v10776_v20 }
 0x4fe   : > { %6791 = vst.msk [vmem:[#allocation3 + $0x14] sm:$0xf] %vm6785_vm12, %v6700_v57  ;;  %v4906_v60 = vpop.permute.xlu0 %4905  ;;  %v4522_v57 = vld [vmem:[#allocation2 + $0x155] sm:$0xff] }
 0x4ff   : > { %5943 = vrot.lane.b32.xlu1 %v13046_v18, %s14580_s23  ;;  %4994 = vst.msk [vmem:[#allocation3 + $0x20] sm:$0xf] %vm4985_vm5, %v4906_v60 }
 0x500   : > { %6199 = vrot.lane.b32.xlu0 %v13221_v10, %s14581_s10 }
 0x501   : > { %v4655_v49 = vpop.permute.xlu1 %4654 }
 0x502   : > { %4740 = vst.msk [vmem:[#allocation3 + $0x2c] sm:$0xf] %vm4728_vm0, %v4655_v49  ;;  %v6702_v40 = vpop.permute.xlu0 %6701  ;;  %v6574_v49 = vld [vmem:[#allocation2 + $0x12e] sm:$0xff] }
 0x503   : > { %5947 = vrot.lane.b32.xlu1 %v13152_v35, %s14580_s23  ;;  %6792 = vst.msk [vmem:[#allocation3 + $0x18] sm:$0xf] %vm6785_vm12, %v6702_v40  ;;  %v10282_v40 = vpack.c.bf16 %v4522_v57, %v4522_v57  ;;  %v13291_v33 = vpack.c.bf16 %v6574_v49, %v6574_v49 }
 0x504   : > { %6203 = vrot.lane.b32.xlu0 %v13229_v0, %s14581_s10 }
 0x505   : > { %v4908_v47 = vpop.permute.xlu1 %4907  ;;  %v10771_v9 = vld [vmem:[#allocation3 + $0x10] sm:$0xff]  }
 0x506   : > { %4995 = vst.msk [vmem:[#allocation3 + $0x24] sm:$0xf] %vm4985_vm5, %v4908_v47  ;;  %10616 = vmatprep.mubr.msk.bf16.mxu0 %vm6989_vm13, %v10771_v9  ;;  %v4910_v2 = vpop.permute.xlu0 %4909  ;;  %v4523_v9 = vld [vmem:[#allocation2 + $0x15d] sm:$0xff] }
 0x507   : > { %6201 = vrot.lane.b32.xlu1 %v13234_v38, %s14581_s10  ;;  %4996 = vst.msk [vmem:[#allocation3 + $0x28] sm:$0xf] %vm4985_vm5, %v4910_v2  ;;  %v6575_v2 = vld [vmem:[#allocation2 + $0x13e] sm:$0xff]  ;;  %v10283_v61 = vpack.c.bf16 %v4523_v9, %v4523_v9 }
 0x508   : > { %6456 = vrot.lane.b32.xlu0 %v13239_v41, %s14582_s21  ;;  %v13301_v23 = vpack.c.bf16 %v6575_v2, %v6575_v2  ;;  %v6320_v2 = vld [vmem:[#allocation2 + $0x153] sm:$0xff] }
 0x509   : > { %v6704_v52 = vpop.permute.xlu1 %6703 }
 0x50a   : > { %6793 = vst.msk [vmem:[#allocation3 + $0x1c] sm:$0xf] %vm6785_vm12, %v6704_v52  ;;  %v5163_v25 = vpop.permute.xlu0 %5162 }
 0x50b   : > { %6205 = vrot.lane.b32.xlu1 %v13245_v62, %s14581_s10  ;;  %5251 = vst.msk [vmem:[#allocation3 + $0x20] sm:$0xf] %vm5242_vm6, %v5163_v25  ;;  %v6576_v25 = vld [vmem:[#allocation2 + $0x146] sm:$0xff] }
 0x50c   : > { %4664 = vrot.lane.b32.xlu0 %v10280_v36, %s14564_s12 }
 0x50d   : > { %v4912_v24 = vpop.permute.xlu1 %4911 }
 0x50e   : > { %4997 = vst.msk [vmem:[#allocation3 + $0x2c] sm:$0xf] %vm4985_vm5, %v4912_v24  ;;  %v5167_v19 = vpop.permute.xlu0 %5166  ;;  %v10344_v24 = vpack.c.bf16 %v5034_v37, %v5034_v37  ;;  %v4524_v37 = vld [vmem:[#allocation2 + $0x16d] sm:$0xff] }
 0x50f   : > { %6458 = vrot.lane.b32.xlu1 %v13256_v17, %s14582_s21  ;;  %5253 = vst.msk [vmem:[#allocation3 + $0x28] sm:$0xf] %vm5242_vm6, %v5167_v19  ;;  %v5037_v19 = vld [vmem:[#allocation2 + $0xe3] sm:$0xff] }
 0x510   : > { %6460 = vrot.lane.b32.xlu0 %v13263_v14, %s14582_s21  ;;  %v10347_v30 = vpack.c.bf16 %v5037_v19, %v5037_v19 }
 0x511   : > { %v5165_v45 = vpop.permute.xlu1 %5164  ;;  %v10772_v13 = vld [vmem:[#allocation3 + $0x18] sm:$0xff]  }
 0x512   : > { %5252 = vst.msk [vmem:[#allocation3 + $0x24] sm:$0xf] %vm5242_vm6, %v5165_v45  ;;  %10617 = vmatmul.mubr.msk.bf16.gmra.mxu0 %vm6989_vm13, %v10772_v13  ;;  %v5420_v60 = vpop.permute.xlu0 %5419 }
 0x513   : > { %4666 = vrot.lane.b32.xlu1 %v10281_v3, %s14564_s12  ;;  %5508 = vst.msk [vmem:[#allocation3 + $0x20] sm:$0xf] %vm5499_vm7, %v5420_v60 }
 0x514   : > { %6713 = vrot.lane.b32.xlu0 %v13274_v29, %s14562_s13 }
 0x515   : > { %v5169_v58 = vpop.permute.xlu1 %5168 }
 0x516   : > { %5254 = vst.msk [vmem:[#allocation3 + $0x2c] sm:$0xf] %vm5242_vm6, %v5169_v58  ;;  %v5424_v47 = vpop.permute.xlu0 %5423  ;;  %v6065_v58 = vld [vmem:[#allocation2 + $0x168] sm:$0xff] }
 0x517   : > { %6462 = vrot.lane.b32.xlu1 %v13280_v4, %s14582_s21  ;;  %5510 = vst.msk [vmem:[#allocation3 + $0x28] sm:$0xf] %vm5499_vm7, %v5424_v47  ;;  %v6064_v47 = vld [vmem:[#allocation2 + $0x158] sm:$0xff] }
 0x518   : > { %4668 = vrot.lane.b32.xlu0 %v10282_v40, %s14564_s12 }
 0x519   : > { %v5422_v55 = vpop.permute.xlu1 %5421 }
 0x51a   : > { %5509 = vst.msk [vmem:[#allocation3 + $0x24] sm:$0xf] %vm5499_vm7, %v5422_v55  ;;  %v5677_v52 = vpop.permute.xlu0 %5676  ;;  %v13368_v55 = vpack.c.bf16 %v6065_v58, %v6065_v58  ;;  %v4527_v58 = vld [vmem:[#allocation2 + $0x18d] sm:$0xff] }
 0x51b   : > { %6715 = vrot.lane.b32.xlu1 %v13291_v33, %s14562_s13  ;;  %5765 = vst.msk [vmem:[#allocation3 + $0x20] sm:$0xf] %vm5756_vm8, %v5677_v52 }
 0x51c   : > { %4921 = vrot.lane.b32.xlu0 %v12979_v53, %s10868_s18  ;;  %v13311_v53 = vpack.c.bf16 %v6576_v25, %v6576_v25 }
 0x51d   : > { %v5426_v36 = vpop.permute.xlu1 %5425 }
 0x51e   : > { %5511 = vst.msk [vmem:[#allocation3 + $0x2c] sm:$0xf] %vm5499_vm7, %v5426_v36  ;;  %v5681_v8 = vpop.permute.xlu0 %5680  ;;  %v6066_v36 = vld [vmem:[#allocation2 + $0x170] sm:$0xff] }
 0x51f   : > { %4670 = vrot.lane.b32.xlu1 %v10283_v61, %s14564_s12  ;;  %5767 = vst.msk [vmem:[#allocation3 + $0x28] sm:$0xf] %vm5756_vm8, %v5681_v8  ;;  %v13373_v61 = vpack.c.bf16 %v6064_v47, %v6064_v47  ;;  %v6579_v47 = vld [vmem:[#allocation2 + $0x16e] sm:$0xff] }
 0x520   : > { %6717 = vrot.lane.b32.xlu0 %v13301_v23, %s14562_s13 }
 0x521   : > { %v5679_v46 = vpop.permute.xlu1 %5678 }
 0x522   : > { %5766 = vst.msk [vmem:[#allocation3 + $0x24] sm:$0xf] %vm5756_vm8, %v5679_v46  ;;  %v5934_v26 = vpop.permute.xlu0 %5933  ;;  %v10504_v46 = vpack.c.bf16 %v6320_v2, %v6320_v2 }
 0x523   : > { %4923 = vrot.lane.b32.xlu1 %v12992_v15, %s10868_s18  ;;  %6022 = vst.msk [vmem:[#allocation3 + $0x20] sm:$0xf] %vm6013_vm9, %v5934_v26  ;;  %v5035_v15 = vld [vmem:[#allocation2 + $0xcb] sm:$0xff]  ;;  %v13382_v26 = vpack.c.bf16 %v6066_v36, %v6066_v36  ;;  %v13421_v36 = vpack.c.bf16 %v6579_v47, %v6579_v47 }
 0x524   : > { %4925 = vrot.lane.b32.xlu0 %v12987_v28, %s10868_s18  ;;  %v10345_v28 = vpack.c.bf16 %v5035_v15, %v5035_v15  ;;  %v6322_v15 = vld [vmem:[#allocation2 + $0x16b] sm:$0xff] }
 0x525   : > { %v5683_v59 = vpop.permute.xlu1 %5682  ;;  %v13391_v19 = vpack.c.bf16 %v6322_v15, %v6322_v15 }
 0x526   : > { %5768 = vst.msk [vmem:[#allocation3 + $0x2c] sm:$0xf] %vm5756_vm8, %v5683_v59  ;;  %v5938_v5 = vpop.permute.xlu0 %5937 }
 0x527   : > { %6719 = vrot.lane.b32.xlu1 %v13311_v53, %s14562_s13  ;;  %6024 = vst.msk [vmem:[#allocation3 + $0x28] sm:$0xf] %vm6013_vm9, %v5938_v5  ;;  %v10284_v5 = vpack.c.bf16 %v4524_v37, %v4524_v37 }
 0x528   : > { %5178 = vrot.lane.b32.xlu0 %v10344_v24, %s14561_s20  ;;  %v6321_v24 = vld [vmem:[#allocation2 + $0x15b] sm:$0xff] }
 0x529   : > { %v5936_v56 = vpop.permute.xlu1 %5935 }
 0x52a   : > { %6023 = vst.msk [vmem:[#allocation3 + $0x24] sm:$0xf] %vm6013_vm9, %v5936_v56  ;;  %v6192_v3 = vpop.permute.xlu0 %6191  ;;  %v10505_v56 = vpack.c.bf16 %v6321_v24, %v6321_v24 }
 0x52b   : > { %4927 = vrot.lane.b32.xlu1 %v13000_v43, %s10868_s18  ;;  %6280 = vst.msk [vmem:[#allocation3 + $0x20] sm:$0xf] %vm6271_vm10, %v6192_v3 }
 0x52c   : > { %5182 = vrot.lane.b32.xlu0 %v10346_v54, %s14561_s20 }
 0x52d   : > { %v5940_v27 = vpop.permute.xlu1 %5939 }
 0x52e   : > { %6025 = vst.msk [vmem:[#allocation3 + $0x2c] sm:$0xf] %vm6013_vm9, %v5940_v27  ;;  %v6196_v21 = vpop.permute.xlu0 %6195  ;;  %v6577_v27 = vld [vmem:[#allocation2 + $0x156] sm:$0xff] }
 0x52f   : > { %5180 = vrot.lane.b32.xlu1 %v10345_v28, %s14561_s20  ;;  %6282 = vst.msk [vmem:[#allocation3 + $0x28] sm:$0xf] %vm6271_vm10, %v6196_v21  ;;  %v4525_v28 = vld [vmem:[#allocation2 + $0x175] sm:$0xff] }
 0x530   : > { %5435 = vrot.lane.b32.xlu0 %v13016_v39, %s10870_s22 }
 0x531   : > { %v6194_v6 = vpop.permute.xlu1 %6193 }
 0x532   : > { %6281 = vst.msk [vmem:[#allocation3 + $0x24] sm:$0xf] %vm6271_vm10, %v6194_v6  ;;  %v6449_v43 = vpop.permute.xlu0 %6448  ;;  %v6323_v6 = vld [vmem:[#allocation2 + $0x173] sm:$0xff] }
 0x533   : > { %5184 = vrot.lane.b32.xlu1 %v10347_v30, %s14561_s20  ;;  %6537 = vst.msk [vmem:[#allocation3 + $0x20] sm:$0xf] %vm6528_vm11, %v6449_v43  ;;  %v10285_v30 = vpack.c.bf16 %v4525_v28, %v4525_v28 }
 0x534   : > { %5439 = vrot.lane.b32.xlu0 %v13036_v50, %s10870_s22 }
 0x535   : > { %v6198_v45 = vpop.permute.xlu1 %6197 }
 0x536   : > { %6283 = vst.msk [vmem:[#allocation3 + $0x2c] sm:$0xf] %vm6271_vm10, %v6198_v45  ;;  %v4657_v13 = vpop.permute.xlu0 %4656 }
 0x537   : > { %5437 = vrot.lane.b32.xlu1 %v13026_v44, %s10870_s22  ;;  %4741 = vst.msk [vmem:[#allocation3 + $0x30] sm:$0xf] %vm4728_vm0, %v4657_v13  ;;  %v13398_v13 = vpack.c.bf16 %v6577_v27, %v6577_v27 }
 0x538   : > { %5692 = vrot.lane.b32.xlu0 %v13103_v1, %s14579_s17 }
 0x539   : > { %v6451_v39 = vpop.permute.xlu1 %6450 }
 0x53a   : > { %6538 = vst.msk [vmem:[#allocation3 + $0x24] sm:$0xf] %vm6528_vm11, %v6451_v39  ;;  %v6453_v31 = vpop.permute.xlu0 %6452  ;;  %v4526_v39 = vld [vmem:[#allocation2 + $0x185] sm:$0xff] }
 0x53b   : > { %5441 = vrot.lane.b32.xlu1 %v13046_v18, %s10870_s22  ;;  %6539 = vst.msk [vmem:[#allocation3 + $0x28] sm:$0xf] %vm6528_vm11, %v6453_v31  ;;  %v6063_v18 = vld [vmem:[#allocation2 + $0x150] sm:$0xff]  ;;  %v13403_v31 = vpack.c.bf16 %v6323_v6, %v6323_v6 }
 0x53c   : > { %5696 = vrot.lane.b32.xlu0 %v13221_v10, %s14579_s17  ;;  %v13360_v49 = vpack.c.bf16 %v6063_v18, %v6063_v18  ;;  %v10286_v18 = vpack.c.bf16 %v4526_v39, %v4526_v39 }
 0x53d   : > { %v4659_v50 = vpop.permute.xlu1 %4658 }
 0x53e   : > { %4742 = vst.msk [vmem:[#allocation3 + $0x34] sm:$0xf] %vm4728_vm0, %v4659_v50  ;;  %v6706_v44 = vpop.permute.xlu0 %6705 }
 0x53f   : > { %5694 = vrot.lane.b32.xlu1 %v13119_v11, %s14579_s17  ;;  %6794 = vst.msk [vmem:[#allocation3 + $0x20] sm:$0xf] %vm6785_vm12, %v6706_v44  ;;  %v6578_v44 = vld [vmem:[#allocation2 + $0x15e] sm:$0xff] }
 0x540   : > { %5949 = vrot.lane.b32.xlu0 %v13162_v63, %s14580_s23 }
 0x541   : > { %v6455_v57 = vpop.permute.xlu1 %6454 }
 0x542   : > { %6540 = vst.msk [vmem:[#allocation3 + $0x2c] sm:$0xf] %vm6528_vm11, %v6455_v57  ;;  %v4661_v60 = vpop.permute.xlu0 %4660 }
 0x543   : > { %5698 = vrot.lane.b32.xlu1 %v13234_v38, %s14579_s17  ;;  %4743 = vst.msk [vmem:[#allocation3 + $0x38] sm:$0xf] %vm4728_vm0, %v4661_v60  ;;  %v13411_v60 = vpack.c.bf16 %v6578_v44, %v6578_v44 }
 0x544   : > { %5953 = vrot.lane.b32.xlu0 %v13274_v29, %s14580_s23 }
 0x545   : > { %v6708_v20 = vpop.permute.xlu1 %6707 }
 0x546   : > { %6795 = vst.msk [vmem:[#allocation3 + $0x24] sm:$0xf] %vm6785_vm12, %v6708_v20  ;;  %v4914_v40 = vpop.permute.xlu0 %4913 }
 0x547   : > { %5951 = vrot.lane.b32.xlu1 %v13172_v16, %s14580_s23  ;;  %4998 = vst.msk [vmem:[#allocation3 + $0x30] sm:$0xf] %vm4985_vm5, %v4914_v40 }
 0x548   : > { %6207 = vrot.lane.b32.xlu0 %v13360_v49, %s14581_s10 }
 0x549   : > { %v4663_v9 = vpop.permute.xlu1 %4662 }
 0x54a   : > { %4744 = vst.msk [vmem:[#allocation3 + $0x3c] sm:$0xf] %vm4728_vm0, %v4663_v9  ;;  %v6710_v52 = vpop.permute.xlu0 %6709  ;;  %v10287_v9 = vpack.c.bf16 %v4527_v58, %v4527_v58 }
 0x54b   : > { %5955 = vrot.lane.b32.xlu1 %v13291_v33, %s14580_s23  ;;  %6796 = vst.msk [vmem:[#allocation3 + $0x28] sm:$0xf] %vm6785_vm12, %v6710_v52 }
 0x54c   : > { %6211 = vrot.lane.b32.xlu0 %v13368_v55, %s14581_s10 }
 0x54d   : > { %v4916_v8 = vpop.permute.xlu1 %4915  ;;  %v10773_v25 = vld [vmem:[#allocation3 + $0x20] sm:$0xff]  }
 0x54e   : > { %4999 = vst.msk [vmem:[#allocation3 + $0x34] sm:$0xf] %vm4985_vm5, %v4916_v8  ;;  %10620 = vmatprep.mubr.msk.bf16.mxu0 %vm6989_vm13, %v10773_v25  ;;  %v4918_v59 = vpop.permute.xlu0 %4917  ;;  %v6580_v25 = vld [vmem:[#allocation2 + $0x176] sm:$0xff] }
 0x54f   : > { %6209 = vrot.lane.b32.xlu1 %v13373_v61, %s14581_s10  ;;  %5000 = vst.msk [vmem:[#allocation3 + $0x38] sm:$0xf] %vm4985_vm5, %v4918_v59 }
 0x550   : > { %6464 = vrot.lane.b32.xlu0 %v10504_v46, %s14582_s21 }
 0x551   : > { %v6712_v22 = vpop.permute.xlu1 %6711 }
 0x552   : > { %6797 = vst.msk [vmem:[#allocation3 + $0x2c] sm:$0xf] %vm6785_vm12, %v6712_v22  ;;  %v5171_v54 = vpop.permute.xlu0 %5170 }
 0x553   : > { %6213 = vrot.lane.b32.xlu1 %v13382_v26, %s14581_s10  ;;  %5255 = vst.msk [vmem:[#allocation3 + $0x30] sm:$0xf] %vm5242_vm6, %v5171_v54 }
 0x554   : > { %4672 = vrot.lane.b32.xlu0 %v10284_v5, %s14564_s12 }
 0x555   : > { %v4920_v3 = vpop.permute.xlu1 %4919 }
 0x556   : > { %5001 = vst.msk [vmem:[#allocation3 + $0x3c] sm:$0xf] %vm4985_vm5, %v4920_v3  ;;  %v5175_v21 = vpop.permute.xlu0 %5174 }
 0x557   : > { %6466 = vrot.lane.b32.xlu1 %v10505_v56, %s14582_s21  ;;  %5257 = vst.msk [vmem:[#allocation3 + $0x38] sm:$0xf] %vm5242_vm6, %v5175_v21  ;;  %v6069_v21 = vld [vmem:[#allocation2 + $0x198] sm:$0xff] }
 0x558   : > { %6468 = vrot.lane.b32.xlu0 %v13391_v19, %s14582_s21 }
 0x559   : > { %v5173_v43 = vpop.permute.xlu1 %5172  ;;  %v10774_v45 = vld [vmem:[#allocation3 + $0x28] sm:$0xff]  }
 0x55a   : > { %5256 = vst.msk [vmem:[#allocation3 + $0x34] sm:$0xf] %vm5242_vm6, %v5173_v43  ;;  %10621 = vmatmul.mubr.msk.bf16.gmra.mxu0 %vm6989_vm13, %v10774_v45  ;;  %v5428_v50 = vpop.permute.xlu0 %5427 }
 0x55b   : > { %4674 = vrot.lane.b32.xlu1 %v10285_v30, %s14564_s12  ;;  %5512 = vst.msk [vmem:[#allocation3 + $0x30] sm:$0xf] %vm5499_vm7, %v5428_v50  ;;  %v13489_v30 = vld [vmem:[%s14531_s6] ss:$0 sm:$0xff]  ;;  %v6068_v50 = vld [vmem:[#allocation2 + $0x188] sm:$0xff] }
 0x55c   : > { %6721 = vrot.lane.b32.xlu0 %v13398_v13, %s14562_s13 }
 0x55d   : > { %v5177_v57 = vpop.permute.xlu1 %5176 }
 0x55e   : > { %5258 = vst.msk [vmem:[#allocation3 + $0x3c] sm:$0xf] %vm5242_vm6, %v5177_v57  ;;  %v5432_v20 = vpop.permute.xlu0 %5431 }
 0x55f   : > { %6470 = vrot.lane.b32.xlu1 %v13403_v31, %s14582_s21  ;;  %5514 = vst.msk [vmem:[#allocation3 + $0x38] sm:$0xf] %vm5499_vm7, %v5432_v20  ;;  %v13500_v20 = vpack.c.bf16 %v6069_v21, %v6069_v21 }
 0x560   : > { %4676 = vrot.lane.b32.xlu0 %v10286_v18, %s14564_s12 }
 0x561   : > { %v5430_v40 = vpop.permute.xlu1 %5429 }
 0x562   : > { %5513 = vst.msk [vmem:[#allocation3 + $0x34] sm:$0xf] %vm5499_vm7, %v5430_v40  ;;  %v5685_v2 = vpop.permute.xlu0 %5684  ;;  %v6324_v40 = vld [vmem:[#allocation2 + $0x183] sm:$0xff] }
 0x563   : > { %6723 = vrot.lane.b32.xlu1 %v13411_v60, %s14562_s13  ;;  %5769 = vst.msk [vmem:[#allocation3 + $0x30] sm:$0xf] %vm5756_vm8, %v5685_v2 }
 0x564   : > { %4929 = vrot.lane.b32.xlu0 %v13095_v48, %s10868_s18  ;;  %v13431_v48 = vpack.c.bf16 %v6580_v25, %v6580_v25  ;;  %v6070_v25 = vld [vmem:[#allocation2 + $0x1a0] sm:$0xff] }
 0x565   : > { %v5434_v52 = vpop.permute.xlu1 %5433 }
 0x566   : > { %5515 = vst.msk [vmem:[#allocation3 + $0x3c] sm:$0xf] %vm5499_vm7, %v5434_v52  ;;  %v5689_v8 = vpop.permute.xlu0 %5688 }
 0x567   : > { %4678 = vrot.lane.b32.xlu1 %v10287_v9, %s14564_s12  ;;  %5771 = vst.msk [vmem:[#allocation3 + $0x38] sm:$0xf] %vm5756_vm8, %v5689_v8  ;;  %v13506_v9 = vpack.c.bf16 %v6068_v50, %v6068_v50 }
 0x568   : > { %6725 = vrot.lane.b32.xlu0 %v13421_v36, %s14562_s13 }
 0x569   : > { %v5687_v46 = vpop.permute.xlu1 %5686 }
 0x56a   : > { %5770 = vst.msk [vmem:[#allocation3 + $0x34] sm:$0xf] %vm5756_vm8, %v5687_v46  ;;  %v5942_v37 = vpop.permute.xlu0 %5941 }
 0x56b   : > { %4931 = vrot.lane.b32.xlu1 %v13108_v7, %s10868_s18  ;;  %6026 = vst.msk [vmem:[#allocation3 + $0x30] sm:$0xf] %vm6013_vm9, %v5942_v37 }
 0x56c   : > { %4933 = vrot.lane.b32.xlu0 %v13103_v1, %s10868_s18 }
 0x56d   : > { %v5691_v59 = vpop.permute.xlu1 %5690 }
 0x56e   : > { %5772 = vst.msk [vmem:[#allocation3 + $0x3c] sm:$0xf] %vm5756_vm8, %v5691_v59  ;;  %v5946_v24 = vpop.permute.xlu0 %5945 }
 0x56f   : > { %6727 = vrot.lane.b32.xlu1 %v13431_v48, %s14562_s13  ;;  %6028 = vst.msk [vmem:[#allocation3 + $0x38] sm:$0xf] %vm6013_vm9, %v5946_v24  ;;  %v10508_v24 = vpack.c.bf16 %v6324_v40, %v6324_v40 }
 0x570   : > { %5186 = vrot.lane.b32.xlu0 %v13113_v12, %s14561_s20 }
 0x571   : > { %v5944_v22 = vpop.permute.xlu1 %5943 }
 0x572   : > { %6027 = vst.msk [vmem:[#allocation3 + $0x34] sm:$0xf] %vm6013_vm9, %v5944_v22  ;;  %v6200_v7 = vpop.permute.xlu0 %6199 }
 0x573   : > { %4935 = vrot.lane.b32.xlu1 %v13119_v11, %s10868_s18  ;;  %6284 = vst.msk [vmem:[#allocation3 + $0x30] sm:$0xf] %vm6271_vm10, %v6200_v7  ;;  %v4528_v7 = vld [vmem:[#allocation2 + $0x19d] sm:$0xff] }
 0x574   : > { %5190 = vrot.lane.b32.xlu0 %v13131_v32, %s14561_s20 }
 0x575   : > { %v5948_v1 = vpop.permute.xlu1 %5947 }
 0x576   : > { %6029 = vst.msk [vmem:[#allocation3 + $0x3c] sm:$0xf] %vm6013_vm9, %v5948_v1  ;;  %v6204_v5 = vpop.permute.xlu0 %6203 }
 0x577   : > { %5188 = vrot.lane.b32.xlu1 %v13127_v34, %s14561_s20  ;;  %6286 = vst.msk [vmem:[#allocation3 + $0x38] sm:$0xf] %vm6271_vm10, %v6204_v5  ;;  %v13515_v5 = vpack.c.bf16 %v6070_v25, %v6070_v25 }
 0x578   : > { %5443 = vrot.lane.b32.xlu0 %v13139_v51, %s10870_s22 }
 0x579   : > { %v6202_v12 = vpop.permute.xlu1 %6201 }
 0x57a   : > { %6285 = vst.msk [vmem:[#allocation3 + $0x34] sm:$0xf] %vm6271_vm10, %v6202_v12  ;;  %v6457_v11 = vpop.permute.xlu0 %6456 }
 0x57b   : > { %5192 = vrot.lane.b32.xlu1 %v13144_v42, %s14561_s20  ;;  %6541 = vst.msk [vmem:[#allocation3 + $0x30] sm:$0xf] %vm6528_vm11, %v6457_v11  ;;  %v6325_v11 = vld [vmem:[#allocation2 + $0x18b] sm:$0xff] }
 0x57c   : > { %5447 = vrot.lane.b32.xlu0 %v13162_v63, %s10870_s22 }
 0x57d   : > { %v6206_v32 = vpop.permute.xlu1 %6205 }
 0x57e   : > { %6287 = vst.msk [vmem:[#allocation3 + $0x3c] sm:$0xf] %vm6271_vm10, %v6206_v32  ;;  %v4665_v34 = vpop.permute.xlu0 %4664 }
 0x57f   : > { %5445 = vrot.lane.b32.xlu1 %v13152_v35, %s10870_s22  ;;  %4745 = vst.msk [vmem:[#allocation3 + $0x40] sm:$0xf] %vm4728_vm0, %v4665_v34  ;;  %v10288_v34 = vpack.c.bf16 %v4528_v7, %v4528_v7 }
 0x580   : > { %5700 = vrot.lane.b32.xlu0 %v13229_v0, %s14579_s17 }
 0x581   : > { %v6459_v51 = vpop.permute.xlu1 %6458 }
 0x582   : > { %6542 = vst.msk [vmem:[#allocation3 + $0x34] sm:$0xf] %vm6528_vm11, %v6459_v51  ;;  %v6461_v42 = vpop.permute.xlu0 %6460  ;;  %v6326_v51 = vld [vmem:[#allocation2 + $0x19b] sm:$0xff] }
 0x583   : > { %5449 = vrot.lane.b32.xlu1 %v13172_v16, %s10870_s22  ;;  %6543 = vst.msk [vmem:[#allocation3 + $0x38] sm:$0xf] %vm6528_vm11, %v6461_v42  ;;  %v6067_v16 = vld [vmem:[#allocation2 + $0x180] sm:$0xff]  ;;  %v10509_v42 = vpack.c.bf16 %v6325_v11, %v6325_v11 }
 0x584   : > { %5704 = vrot.lane.b32.xlu0 %v13360_v49, %s14579_s17  ;;  %v13484_v27 = vpack.c.bf16 %v6067_v16, %v6067_v16  ;;  %v10510_v16 = vpack.c.bf16 %v6326_v51, %v6326_v51 }
 0x585   : > { %v4667_v63 = vpop.permute.xlu1 %4666 }
 0x586   : > { %4746 = vst.msk [vmem:[#allocation3 + $0x44] sm:$0xf] %vm4728_vm0, %v4667_v63  ;;  %v6714_v35 = vpop.permute.xlu0 %6713 }
 0x587   : > { %5702 = vrot.lane.b32.xlu1 %v13245_v62, %s14579_s17  ;;  %6798 = vst.msk [vmem:[#allocation3 + $0x30] sm:$0xf] %vm6785_vm12, %v6714_v35  ;;  %v4529_v35 = vld [vmem:[#allocation2 + $0x1a5] sm:$0xff] }
 0x588   : > { %5957 = vrot.lane.b32.xlu0 %v13301_v23, %s14580_s23 }
 0x589   : > { %v6463_v15 = vpop.permute.xlu1 %6462 }
 0x58a   : > { %6544 = vst.msk [vmem:[#allocation3 + $0x3c] sm:$0xf] %vm6528_vm11, %v6463_v15  ;;  %v10614_v56 = vpop.f32.mrf.mxu0  ;;  %v4669_v54 = vpop.permute.xlu0 %4668 }
 0x58b   : > { %5706 = vrot.lane.b32.xlu1 %v13373_v61, %s14579_s17  ;;  %4747 = vst.msk [vmem:[#allocation3 + $0x48] sm:$0xf] %vm4728_vm0, %v4669_v54  ;;  %v7085_v44 = vadd.f32 %v10614_v56, %v13489_v30  ;;  %v6581_v56 = vld [vmem:[#allocation2 + $0x186] sm:$0xff]  ;;  %v10289_v54 = vpack.c.bf16 %v4529_v35, %v4529_v35 }
 0x58c   : > { %v7076_v3 = vpop.f32.mrf.mxu0  ;;  %5961 = vrot.lane.b32.xlu0 %v13398_v13, %s14580_s23 }
 0x58d   : > { %v6716_v28 = vpop.permute.xlu1 %6715  ;;  %v7077_v45 = vadd.f32 %v13489_v30, %v7076_v3  ;;  %v7205_v46 = vmax.f32 %v7085_v44, 0.0  ;;  %v6327_v3 = vld [vmem:[#allocation2 + $0x1a3] sm:$0xff]  ;;  %v6582_v44 = vld [vmem:[#allocation2 + $0x18e] sm:$0xff] }
 0x58e   : > { %6799 = vst.msk [vmem:[#allocation3 + $0x34] sm:$0xf] %vm6785_vm12, %v6716_v28  ;;  %v10615_v6 = vpop.f32.mrf.mxu0  ;;  %v4922_v43 = vpop.permute.xlu0 %4921 }
 0x58f   : > { %5959 = vrot.lane.b32.xlu1 %v13311_v53, %s14580_s23  ;;  %v7088_v39 = vadd.f32 %v10615_v6, %v13489_v30  ;;  %5002 = vst.msk [vmem:[#allocation3 + $0x40] sm:$0xf] %vm4985_vm5, %v4922_v43  ;;  %v7203_v52 = vmax.f32 %v7077_v45, 0.0  ;;  %v13530_v43 = vpack.c.bf16 %v6581_v56, %v6581_v56  ;;  %v4530_v45 = vld [vmem:[#allocation2 + $0x1b5] sm:$0xff] }
 0x590   : > { %v7079_v18 = vpop.f32.mrf.mxu0  ;;  %6215 = vrot.lane.b32.xlu0 %v13484_v27, %s14581_s10 }
 0x591   : > { %v4671_v57 = vpop.permute.xlu1 %4670  ;;  %v7080_v58 = vadd.f32 %v13489_v30, %v7079_v18  ;;  %v7206_v47 = vmax.f32 %v7088_v39, 0.0  ;;  %v10511_v39 = vpack.c.bf16 %v6327_v3, %v6327_v3  ;;  %v10290_v18 = vpack.c.bf16 %v4530_v45, %v4530_v45  ;;  %v6072_v3 = vld [vmem:[#allocation2 + $0x1b8] sm:$0xff] }
 0x592   : > { %4748 = vst.msk [vmem:[#allocation3 + $0x4c] sm:$0xf] %vm4728_vm0, %v4671_v57  ;;  %v6718_v2 = vpop.permute.xlu0 %6717 }
 0x593   : > { %5963 = vrot.lane.b32.xlu1 %v13411_v60, %s14580_s23  ;;  %v7204_v8 = vmax.f32 %v7080_v58, 0.0  ;;  %6800 = vst.msk [vmem:[#allocation3 + $0x38] sm:$0xf] %vm6785_vm12, %v6718_v2  ;;  %v7236_v1 = vpack.c.bf16 %v7206_v47, %v7205_v46  ;;  %v13540_v58 = vpack.c.bf16 %v6582_v44, %v6582_v44  ;;  %v4531_v47 = vld [vmem:[#allocation2 + $0x1bd] sm:$0xff]  ;;  %v6328_v44 = vld [vmem:[#allocation2 + $0x1b3] sm:$0xff] }
 0x594   : > { %6219 = vrot.lane.b32.xlu0 %v13500_v20, %s14581_s10 }
 0x595   : > { %v4924_v37 = vpop.permute.xlu1 %4923  ;;  %v10777_v59 = vld [vmem:[#allocation3 + $0x30] sm:$0xff]   ;;  %v7235_v22 = vpack.c.bf16 %v7204_v8, %v7203_v52  ;;  %v10291_v8 = vpack.c.bf16 %v4531_v47, %v4531_v47 }
 0x596   : > { %5003 = vst.msk [vmem:[#allocation3 + $0x44] sm:$0xf] %vm4985_vm5, %v4924_v37  ;;  %10624 = vmatprep.mubr.msk.bf16.mxu0 %vm6989_vm13, %v10777_v59  ;;  %v4926_v12 = vpop.permute.xlu0 %4925  ;;  %v6583_v52 = vld [vmem:[#allocation2 + $0x19e] sm:$0xff] }
 0x597   : > { %6217 = vrot.lane.b32.xlu1 %v13506_v9, %s14581_s10  ;;  %10660 = vmatprep.mubr.msk.bf16.mxu1 %vm7372_vm1, %v7235_v22  ;;  %5004 = vst.msk [vmem:[#allocation3 + $0x48] sm:$0xf] %vm4985_vm5, %v4926_v12  ;;  %v13550_v37 = vpack.c.bf16 %v6583_v52, %v6583_v52  ;;  %v6074_v52 = vld [vmem:[#allocation2 + $0x1d0] sm:$0xff] }
 0x598   : > { %10661 = vmatmul.mubr.msk.bf16.vlgmr.msra.gmra.mxu1 %vm7372_vm1, %v7236_v1  ;;  %6472 = vrot.lane.b32.xlu0 %v10508_v24, %s14582_s21  ;;  %v6584_v24 = vld [vmem:[#allocation2 + $0x1a6] sm:$0xff] }
 0x599   : > { %v6720_v32 = vpop.permute.xlu1 %6719 }
 0x59a   : > { %6801 = vst.msk [vmem:[#allocation3 + $0x3c] sm:$0xf] %vm6785_vm12, %v6720_v32  ;;  %v5179_v63 = vpop.permute.xlu0 %5178 }
 0x59b   : > { %6221 = vrot.lane.b32.xlu1 %v13515_v5, %s14581_s10  ;;  %5259 = vst.msk [vmem:[#allocation3 + $0x40] sm:$0xf] %vm5242_vm6, %v5179_v63 }
 0x59c   : > { %4680 = vrot.lane.b32.xlu0 %v10288_v34, %s14564_s12 }
 0x59d   : > { %v4928_v15 = vpop.permute.xlu1 %4927 }
 0x59e   : > { %5005 = vst.msk [vmem:[#allocation3 + $0x4c] sm:$0xf] %vm4985_vm5, %v4928_v15  ;;  %v5183_v28 = vpop.permute.xlu0 %5182  ;;  %v6073_v15 = vld [vmem:[#allocation2 + $0x1c8] sm:$0xff] }
 0x59f   : > { %6474 = vrot.lane.b32.xlu1 %v10509_v42, %s14582_s21  ;;  %5261 = vst.msk [vmem:[#allocation3 + $0x48] sm:$0xf] %vm5242_vm6, %v5183_v28 }
 0x5a0   : > { %6476 = vrot.lane.b32.xlu0 %v10510_v16, %s14582_s21 }
 0x5a1   : > { %v5181_v21 = vpop.permute.xlu1 %5180  ;;  %v10778_v6 = vld [vmem:[#allocation3 + $0x38] sm:$0xff]  }
 0x5a2   : > { %5260 = vst.msk [vmem:[#allocation3 + $0x44] sm:$0xf] %vm5242_vm6, %v5181_v21  ;;  %10625 = vmatmul.mubr.msk.bf16.gmra.mxu0 %vm6989_vm13, %v10778_v6  ;;  %v5436_v50 = vpop.permute.xlu0 %5435 }
 0x5a3   : > { %4682 = vrot.lane.b32.xlu1 %v10289_v54, %s14564_s12  ;;  %5516 = vst.msk [vmem:[#allocation3 + $0x40] sm:$0xf] %vm5499_vm7, %v5436_v50 }
 0x5a4   : > { %6729 = vrot.lane.b32.xlu0 %v13530_v43, %s14562_s13 }
 0x5a5   : > { %v5185_v57 = vpop.permute.xlu1 %5184 }
 0x5a6   : > { %5262 = vst.msk [vmem:[#allocation3 + $0x4c] sm:$0xf] %vm5242_vm6, %v5185_v57  ;;  %v5440_v40 = vpop.permute.xlu0 %5439 }
 0x5a7   : > { %6478 = vrot.lane.b32.xlu1 %v10511_v39, %s14582_s21  ;;  %5518 = vst.msk [vmem:[#allocation3 + $0x48] sm:$0xf] %vm5499_vm7, %v5440_v40  ;;  %v10482_v39 = vpack.c.bf16 %v6073_v15, %v6073_v15 }
 0x5a8   : > { %4684 = vrot.lane.b32.xlu0 %v10290_v18, %s14564_s12  ;;  %v13630_v18 = vpack.c.bf16 %v6072_v3, %v6072_v3  ;;  %v6587_v3 = vld [vmem:[#allocation2 + $0x1ce] sm:$0xff] }
 0x5a9   : > { %v5438_v2 = vpop.permute.xlu1 %5437 }
 0x5aa   : > { %5517 = vst.msk [vmem:[#allocation3 + $0x44] sm:$0xf] %vm5499_vm7, %v5438_v2  ;;  %v5693_v25 = vpop.permute.xlu0 %5692 }
 0x5ab   : > { %6731 = vrot.lane.b32.xlu1 %v13540_v58, %s14562_s13  ;;  %5773 = vst.msk [vmem:[#allocation3 + $0x40] sm:$0xf] %vm5756_vm8, %v5693_v25 }
 0x5ac   : > { %4937 = vrot.lane.b32.xlu0 %v13221_v10, %s10868_s18  ;;  %v13560_v10 = vpack.c.bf16 %v6584_v24, %v6584_v24 }
 0x5ad   : > { %v5442_v46 = vpop.permute.xlu1 %5441 }
 0x5ae   : > { %5519 = vst.msk [vmem:[#allocation3 + $0x4c] sm:$0xf] %vm5499_vm7, %v5442_v46  ;;  %v5697_v59 = vpop.permute.xlu0 %5696 }
 0x5af   : > { %4686 = vrot.lane.b32.xlu1 %v10291_v8, %s14564_s12  ;;  %5775 = vst.msk [vmem:[#allocation3 + $0x48] sm:$0xf] %vm5756_vm8, %v5697_v59  ;;  %v10512_v59 = vpack.c.bf16 %v6328_v44, %v6328_v44  ;;  %v6588_v44 = vld [vmem:[#allocation2 + $0x1d6] sm:$0xff] }
 0x5b0   : > { %6733 = vrot.lane.b32.xlu0 %v13550_v37, %s14562_s13 }
 0x5b1   : > { %v5695_v22 = vpop.permute.xlu1 %5694 }
 0x5b2   : > { %5774 = vst.msk [vmem:[#allocation3 + $0x44] sm:$0xf] %vm5756_vm8, %v5695_v22  ;;  %v5950_v7 = vpop.permute.xlu0 %5949  ;;  %v4532_v22 = vld [vmem:[#allocation2 + $0x1cd] sm:$0xff] }
 0x5b3   : > { %4939 = vrot.lane.b32.xlu1 %v13234_v38, %s10868_s18  ;;  %6030 = vst.msk [vmem:[#allocation3 + $0x40] sm:$0xf] %vm6013_vm9, %v5950_v7 }
 0x5b4   : > { %4941 = vrot.lane.b32.xlu0 %v13229_v0, %s10868_s18 }
 0x5b5   : > { %v5699_v1 = vpop.permute.xlu1 %5698 }
 0x5b6   : > { %5776 = vst.msk [vmem:[#allocation3 + $0x4c] sm:$0xf] %vm5756_vm8, %v5699_v1  ;;  %v5954_v12 = vpop.permute.xlu0 %5953 }
 0x5b7   : > { %6735 = vrot.lane.b32.xlu1 %v13560_v10, %s14562_s13  ;;  %6032 = vst.msk [vmem:[#allocation3 + $0x48] sm:$0xf] %vm6013_vm9, %v5954_v12  ;;  %v6329_v12 = vld [vmem:[#allocation2 + $0x1bb] sm:$0xff] }
 0x5b8   : > { %5194 = vrot.lane.b32.xlu0 %v13239_v41, %s14561_s20  ;;  %v13608_v34 = vpop.f32.mrf.mxu1 }
 0x5b9   : > { %v5952_v11 = vpop.permute.xlu1 %5951 }
 0x5ba   : > { %6031 = vst.msk [vmem:[#allocation3 + $0x44] sm:$0xf] %vm6013_vm9, %v5952_v11  ;;  %v6208_v38 = vpop.permute.xlu0 %6207 }
 0x5bb   : > { %4943 = vrot.lane.b32.xlu1 %v13245_v62, %s10868_s18  ;;  %6288 = vst.msk [vmem:[#allocation3 + $0x40] sm:$0xf] %vm6271_vm10, %v6208_v38  ;;  %v10292_v38 = vpack.c.bf16 %v4532_v22, %v4532_v22 }
 0x5bc   : > { %5198 = vrot.lane.b32.xlu0 %v13263_v14, %s14561_s20 }
 0x5bd   : > { %v5956_v0 = vpop.permute.xlu1 %5955 }
 0x5be   : > { %6033 = vst.msk [vmem:[#allocation3 + $0x4c] sm:$0xf] %vm6013_vm9, %v5956_v0  ;;  %v6212_v32 = vpop.permute.xlu0 %6211  ;;  %v6330_v0 = vld [vmem:[#allocation2 + $0x1cb] sm:$0xff] }
 0x5bf   : > { %5196 = vrot.lane.b32.xlu1 %v13256_v17, %s14561_s20  ;;  %6290 = vst.msk [vmem:[#allocation3 + $0x48] sm:$0xf] %vm6271_vm10, %v6212_v32  ;;  %v10513_v32 = vpack.c.bf16 %v6329_v12, %v6329_v12 }
 0x5c0   : > { %5451 = vrot.lane.b32.xlu0 %v13274_v29, %s10870_s22 }
 0x5c1   : > { %v6210_v41 = vpop.permute.xlu1 %6209 }
 0x5c2   : > { %6289 = vst.msk [vmem:[#allocation3 + $0x44] sm:$0xf] %vm6271_vm10, %v6210_v41  ;;  %v6465_v62 = vpop.permute.xlu0 %6464 }
 0x5c3   : > { %5200 = vrot.lane.b32.xlu1 %v13280_v4, %s14561_s20  ;;  %6545 = vst.msk [vmem:[#allocation3 + $0x40] sm:$0xf] %vm6528_vm11, %v6465_v62  ;;  %v4533_v62 = vld [vmem:[#allocation2 + $0x1d5] sm:$0xff] }
 0x5c4   : > { %5455 = vrot.lane.b32.xlu0 %v13301_v23, %s10870_s22 }
 0x5c5   : > { %v6214_v14 = vpop.permute.xlu1 %6213 }
 0x5c6   : > { %6291 = vst.msk [vmem:[#allocation3 + $0x4c] sm:$0xf] %vm6271_vm10, %v6214_v14  ;;  %v4673_v17 = vpop.permute.xlu0 %4672 }
 0x5c7   : > { %5453 = vrot.lane.b32.xlu1 %v13291_v33, %s10870_s22  ;;  %4749 = vst.msk [vmem:[#allocation3 + $0x50] sm:$0xf] %vm4728_vm0, %v4673_v17  ;;  %v10514_v17 = vpack.c.bf16 %v6330_v0, %v6330_v0 }
 0x5c8   : > { %5708 = vrot.lane.b32.xlu0 %v13368_v55, %s14579_s17 }
 0x5c9   : > { %v6467_v29 = vpop.permute.xlu1 %6466 }
 0x5ca   : > { %6546 = vst.msk [vmem:[#allocation3 + $0x44] sm:$0xf] %vm6528_vm11, %v6467_v29  ;;  %v6469_v4 = vpop.permute.xlu0 %6468  ;;  %v6585_v29 = vld [vmem:[#allocation2 + $0x1b6] sm:$0xff] }
 0x5cb   : > { %5457 = vrot.lane.b32.xlu1 %v13311_v53, %s10870_s22  ;;  %6547 = vst.msk [vmem:[#allocation3 + $0x48] sm:$0xf] %vm6528_vm11, %v6469_v4  ;;  %v6071_v53 = vld [vmem:[#allocation2 + $0x1b0] sm:$0xff]  ;;  %v10293_v4 = vpack.c.bf16 %v4533_v62, %v4533_v62  ;;  %v6077_v62 = vld [vmem:[#allocation2 + $0x1f8] sm:$0xff] }
 0x5cc   : > { %5712 = vrot.lane.b32.xlu0 %v13484_v27, %s14579_s17  ;;  %v13615_v35 = vpack.c.bf16 %v6071_v53, %v6071_v53 }
 0x5cd   : > { %v4675_v23 = vpop.permute.xlu1 %4674 }
 0x5ce   : > { %4750 = vst.msk [vmem:[#allocation3 + $0x54] sm:$0xf] %vm4728_vm0, %v4675_v23  ;;  %v6722_v33 = vpop.permute.xlu0 %6721 }
 0x5cf   : > { %5710 = vrot.lane.b32.xlu1 %v13382_v26, %s14579_s17  ;;  %6802 = vst.msk [vmem:[#allocation3 + $0x40] sm:$0xf] %vm6785_vm12, %v6722_v33  ;;  %v10654_v26 = vpop.f32.mrf.mxu1  ;;  %v6331_v33 = vld [vmem:[#allocation2 + $0x1d3] sm:$0xff] }
 0x5d0   : > { %5965 = vrot.lane.b32.xlu0 %v13421_v36, %s14580_s23  ;;  %v10515_v26 = vpack.c.bf16 %v6331_v33, %v6331_v33 }
 0x5d1   : > { %v6471_v55 = vpop.permute.xlu1 %6470  ;;  %v7353_v16 = vpop.f32.mrf.mxu1 }
 0x5d2   : > { %6548 = vst.msk [vmem:[#allocation3 + $0x4c] sm:$0xf] %vm6528_vm11, %v6471_v55  ;;  %v10618_v27 = vpop.f32.mrf.mxu0  ;;  %v4677_v51 = vpop.permute.xlu0 %4676 }
 0x5d3   : > { %5714 = vrot.lane.b32.xlu1 %v13506_v9, %s14579_s17  ;;  %4751 = vst.msk [vmem:[#allocation3 + $0x58] sm:$0xf] %vm4728_vm0, %v4677_v51  ;;  %v10655_v21 = vpop.f32.mrf.mxu1  ;;  %v7101_v6 = vadd.f32 %v10618_v27, %v13489_v30  ;;  %v13650_v27 = vpack.c.bf16 %v6585_v29, %v6585_v29  ;;  %v4534_v51 = vld [vmem:[#allocation2 + $0x1e5] sm:$0xff] }
 0x5d4   : > { %v7092_v63 = vpop.f32.mrf.mxu0  ;;  %5969 = vrot.lane.b32.xlu0 %v13530_v43, %s14580_s23  ;;  %v10294_v16 = vpack.c.bf16 %v4534_v51, %v4534_v51  ;;  %v6076_v29 = vld [vmem:[#allocation2 + $0x1e8] sm:$0xff] }
 0x5d5   : > { %v6724_v42 = vpop.permute.xlu1 %6723  ;;  %v7093_v54 = vadd.f32 %v13489_v30, %v7092_v63  ;;  %v7209_v8 = vmax.f32 %v7101_v6, 0.0  ;;  %v6586_v63 = vld [vmem:[#allocation2 + $0x1be] sm:$0xff]  ;;  %v10485_v51 = vpack.c.bf16 %v6076_v29, %v6076_v29 }
 0x5d6   : > { %6803 = vst.msk [vmem:[#allocation3 + $0x44] sm:$0xf] %vm6785_vm12, %v6724_v42  ;;  %v10619_v9 = vpop.f32.mrf.mxu0  ;;  %v4930_v56 = vpop.permute.xlu0 %4929 }
 0x5d7   : > { %5967 = vrot.lane.b32.xlu1 %v13431_v48, %s14580_s23  ;;  %v7104_v28 = vadd.f32 %v10619_v9, %v13489_v30  ;;  %5006 = vst.msk [vmem:[#allocation3 + $0x50] sm:$0xf] %vm4985_vm5, %v4930_v56  ;;  %v7207_v47 = vmax.f32 %v7093_v54, 0.0  ;;  %v13660_v9 = vpack.c.bf16 %v6586_v63, %v6586_v63  ;;  %v4535_v54 = vld [vmem:[#allocation2 + $0x1ed] sm:$0xff] }
 0x5d8   : > { %v7095_v45 = vpop.f32.mrf.mxu0  ;;  %6223 = vrot.lane.b32.xlu0 %v13615_v35, %s14581_s10  ;;  %v10295_v21 = vpack.c.bf16 %v4535_v54, %v4535_v54 }
 0x5d9   : > { %v4679_v43 = vpop.permute.xlu1 %4678  ;;  %v7096_v50 = vadd.f32 %v13489_v30, %v7095_v45  ;;  %v7210_v57 = vmax.f32 %v7104_v28, 0.0  ;;  %v10546_v45 = vpack.c.bf16 %v6587_v3, %v6587_v3 }
 0x5da   : > { %4752 = vst.msk [vmem:[#allocation3 + $0x5c] sm:$0xf] %vm4728_vm0, %v4679_v43  ;;  %v6726_v40 = vpop.permute.xlu0 %6725 }
 0x5db   : > { %5971 = vrot.lane.b32.xlu1 %v13540_v58, %s14580_s23  ;;  %v7208_v2 = vmax.f32 %v7096_v50, 0.0  ;;  %6804 = vst.msk [vmem:[#allocation3 + $0x48] sm:$0xf] %vm6785_vm12, %v6726_v40  ;;  %v7238_v7 = vpack.c.bf16 %v7210_v57, %v7209_v8  ;;  %v10483_v58 = vpack.c.bf16 %v6074_v52, %v6074_v52  ;;  %v4792_v52 = vld [vmem:[#allocation2 + $0x170] sm:$0xff] }
 0x5dc   : > { %6227 = vrot.lane.b32.xlu0 %v10482_v39, %s14581_s10  ;;  %v4791_v39 = vld [vmem:[#allocation2 + $0x168] sm:$0xff] }
 0x5dd   : > { %v4932_v25 = vpop.permute.xlu1 %4931  ;;  %v10779_v46 = vld [vmem:[#allocation3 + $0x40] sm:$0xff]   ;;  %v7237_v24 = vpack.c.bf16 %v7208_v2, %v7207_v47  ;;  %v10326_v40 = vpack.c.bf16 %v4791_v39, %v4791_v39 }
 0x5de   : > { %5007 = vst.msk [vmem:[#allocation3 + $0x54] sm:$0xf] %vm4985_vm5, %v4932_v25  ;;  %10628 = vmatprep.mubr.msk.bf16.mxu0 %vm6989_vm13, %v10779_v46  ;;  %v4934_v1 = vpop.permute.xlu0 %4933  ;;  %v5046_v47 = vld [vmem:[#allocation2 + $0x153] sm:$0xff]  ;;  %v10327_v46 = vpack.c.bf16 %v4792_v52, %v4792_v52  ;;  %v6591_v52 = vld [vmem:[#allocation2 + $0x1fe] sm:$0xff] }
 0x5df   : > { %6225 = vrot.lane.b32.xlu1 %v13630_v18, %s14581_s10  ;;  %10664 = vmatprep.mubr.msk.bf16.mxu1 %vm7372_vm1, %v7237_v24  ;;  %5008 = vst.msk [vmem:[#allocation3 + $0x58] sm:$0xf] %vm4985_vm5, %v4934_v1  ;;  %v10356_v25 = vpack.c.bf16 %v5046_v47, %v5046_v47  ;;  %v5047_v24 = vld [vmem:[#allocation2 + $0x15b] sm:$0xff]  ;;  %v6335_v47 = vld [vmem:[#allocation2 + $0x203] sm:$0xff] }
 0x5e0   : > { %10665 = vmatmul.mubr.msk.bf16.gmra.mxu1 %vm7372_vm1, %v7238_v7  ;;  %6480 = vrot.lane.b32.xlu0 %v10512_v59, %s14582_s21 }
 0x5e1   : > { %v6728_v11 = vpop.permute.xlu1 %6727 }
 0x5e2   : > { %6805 = vst.msk [vmem:[#allocation3 + $0x4c] sm:$0xf] %vm6785_vm12, %v6728_v11  ;;  %v5187_v41 = vpop.permute.xlu0 %5186 }
 0x5e3   : > { %6229 = vrot.lane.b32.xlu1 %v10483_v58, %s14581_s10  ;;  %5263 = vst.msk [vmem:[#allocation3 + $0x50] sm:$0xf] %vm5242_vm6, %v5187_v41 }
 0x5e4   : > { %4688 = vrot.lane.b32.xlu0 %v10292_v38, %s14564_s12 }
 0x5e5   : > { %v4936_v14 = vpop.permute.xlu1 %4935 }
 0x5e6   : > { %5009 = vst.msk [vmem:[#allocation3 + $0x5c] sm:$0xf] %vm4985_vm5, %v4936_v14  ;;  %v5191_v23 = vpop.permute.xlu0 %5190 }
 0x5e7   : > { %6482 = vrot.lane.b32.xlu1 %v10513_v32, %s14582_s21  ;;  %5265 = vst.msk [vmem:[#allocation3 + $0x58] sm:$0xf] %vm5242_vm6, %v5191_v23 }
 0x5e8   : > { %6484 = vrot.lane.b32.xlu0 %v10514_v17, %s14582_s21 }
 0x5e9   : > { %v5189_v55 = vpop.permute.xlu1 %5188  ;;  %v10780_v53 = vld [vmem:[#allocation3 + $0x48] sm:$0xff]  }
 0x5ea   : > { %5264 = vst.msk [vmem:[#allocation3 + $0x54] sm:$0xf] %vm5242_vm6, %v5189_v55  ;;  %10629 = vmatmul.mubr.msk.bf16.gmra.mxu0 %vm6989_vm13, %v10780_v53  ;;  %v5444_v42 = vpop.permute.xlu0 %5443  ;;  %v10486_v55 = vpack.c.bf16 %v6077_v62, %v6077_v62  ;;  %v6332_v53 = vld [vmem:[#allocation2 + $0x1e3] sm:$0xff] }
 0x5eb   : > { %4690 = vrot.lane.b32.xlu1 %v10293_v4, %s14564_s12  ;;  %5520 = vst.msk [vmem:[#allocation3 + $0x50] sm:$0xf] %vm5499_vm7, %v5444_v42 }
 0x5ec   : > { %6737 = vrot.lane.b32.xlu0 %v13650_v27, %s14562_s13 }
 0x5ed   : > { %v5193_v15 = vpop.permute.xlu1 %5192 }
 0x5ee   : > { %5266 = vst.msk [vmem:[#allocation3 + $0x5c] sm:$0xf] %vm5242_vm6, %v5193_v15  ;;  %v5448_v56 = vpop.permute.xlu0 %5447  ;;  %v6078_v15 = vld [vmem:[#allocation2 + $0x200] sm:$0xff] }
 0x5ef   : > { %6486 = vrot.lane.b32.xlu1 %v10515_v26, %s14582_s21  ;;  %5522 = vst.msk [vmem:[#allocation3 + $0x58] sm:$0xf] %vm5499_vm7, %v5448_v56 }
 0x5f0   : > { %4692 = vrot.lane.b32.xlu0 %v10294_v16, %s14564_s12 }
 0x5f1   : > { %v5446_v28 = vpop.permute.xlu1 %5445 }
 0x5f2   : > { %5521 = vst.msk [vmem:[#allocation3 + $0x54] sm:$0xf] %vm5499_vm7, %v5446_v28  ;;  %v5701_v6 = vpop.permute.xlu0 %5700  ;;  %v10516_v28 = vpack.c.bf16 %v6332_v53, %v6332_v53 }
 0x5f3   : > { %6739 = vrot.lane.b32.xlu1 %v13660_v9, %s14562_s13  ;;  %5777 = vst.msk [vmem:[#allocation3 + $0x50] sm:$0xf] %vm5756_vm8, %v5701_v6 }
 0x5f4   : > { %4945 = vrot.lane.b32.xlu0 %v13360_v49, %s10868_s18  ;;  %v10547_v49 = vpack.c.bf16 %v6588_v44, %v6588_v44  ;;  %v6589_v44 = vld [vmem:[#allocation2 + $0x1e6] sm:$0xff] }
 0x5f5   : > { %v5450_v43 = vpop.permute.xlu1 %5449 }
 0x5f6   : > { %5523 = vst.msk [vmem:[#allocation3 + $0x5c] sm:$0xf] %vm5499_vm7, %v5450_v43  ;;  %v5705_v50 = vpop.permute.xlu0 %5704 }
 0x5f7   : > { %4694 = vrot.lane.b32.xlu1 %v10295_v21, %s14564_s12  ;;  %5779 = vst.msk [vmem:[#allocation3 + $0x58] sm:$0xf] %vm5756_vm8, %v5705_v50  ;;  %v6334_v21 = vld [vmem:[#allocation2 + $0x1fb] sm:$0xff] }
 0x5f8   : > { %6741 = vrot.lane.b32.xlu0 %v10546_v45, %s14562_s13  ;;  %v6333_v45 = vld [vmem:[#allocation2 + $0x1eb] sm:$0xff]  ;;  %v10518_v50 = vpack.c.bf16 %v6334_v21, %v6334_v21 }
 0x5f9   : > { %v5703_v57 = vpop.permute.xlu1 %5702 }
 0x5fa   : > { %5778 = vst.msk [vmem:[#allocation3 + $0x54] sm:$0xf] %vm5756_vm8, %v5703_v57  ;;  %v5958_v2 = vpop.permute.xlu0 %5957  ;;  %v10517_v57 = vpack.c.bf16 %v6333_v45, %v6333_v45 }
 0x5fb   : > { %4947 = vrot.lane.b32.xlu1 %v13373_v61, %s10868_s18  ;;  %6034 = vst.msk [vmem:[#allocation3 + $0x50] sm:$0xf] %vm6013_vm9, %v5958_v2  ;;  %v10357_v61 = vpack.c.bf16 %v5047_v24, %v5047_v24  ;;  %v10548_v2 = vpack.c.bf16 %v6589_v44, %v6589_v44 }
 0x5fc   : > { %4949 = vrot.lane.b32.xlu0 %v10326_v40, %s10868_s18 }
 0x5fd   : > { %v5707_v8 = vpop.permute.xlu1 %5706 }
 0x5fe   : > { %5780 = vst.msk [vmem:[#allocation3 + $0x5c] sm:$0xf] %vm5756_vm8, %v5707_v8  ;;  %v5962_v59 = vpop.permute.xlu0 %5961  ;;  %v10519_v8 = vpack.c.bf16 %v6335_v47, %v6335_v47 }
 0x5ff   : > { %6743 = vrot.lane.b32.xlu1 %v10547_v49, %s14562_s13  ;;  %6036 = vst.msk [vmem:[#allocation3 + $0x58] sm:$0xf] %vm6013_vm9, %v5962_v59 }
 0x600   : > { %5202 = vrot.lane.b32.xlu0 %v10356_v25, %s14561_s20 }
 0x601   : > { %v5960_v22 = vpop.permute.xlu1 %5959 }
 0x602   : > { %6035 = vst.msk [vmem:[#allocation3 + $0x54] sm:$0xf] %vm6013_vm9, %v5960_v22  ;;  %v6216_v7 = vpop.permute.xlu0 %6215  ;;  %v10550_v22 = vpack.c.bf16 %v6591_v52, %v6591_v52 }
 0x603   : > { %4951 = vrot.lane.b32.xlu1 %v10327_v46, %s10868_s18  ;;  %6292 = vst.msk [vmem:[#allocation3 + $0x50] sm:$0xf] %vm6271_vm10, %v6216_v7  ;;  %v6590_v46 = vld [vmem:[#allocation2 + $0x1ee] sm:$0xff]  ;;  %s14030_s18 = sshll.u32 %s14560_s24, 4  ;;  %s14589_s24 = smov 56  }
 0x604   : > { %5206 = vrot.lane.b32.xlu0 %v13391_v19, %s14561_s20 }
 0x605   : > { %v5964_v58 = vpop.permute.xlu1 %5963 }
 0x606   : > { %6037 = vst.msk [vmem:[#allocation3 + $0x5c] sm:$0xf] %vm6013_vm9, %v5964_v58  ;;  %v6220_v1 = vpop.permute.xlu0 %6219  ;;  %v6592_v58 = vld [vmem:[#allocation2 + $0x206] sm:$0xff] }
 0x607   : > { %5204 = vrot.lane.b32.xlu1 %v10357_v61, %s14561_s20  ;;  %6294 = vst.msk [vmem:[#allocation3 + $0x58] sm:$0xf] %vm6271_vm10, %v6220_v1  ;;  %v10549_v61 = vpack.c.bf16 %v6590_v46, %v6590_v46 }
 0x608   : > { %5459 = vrot.lane.b32.xlu0 %v13398_v13, %s10870_s22 }
 0x609   : > { %v6218_v12 = vpop.permute.xlu1 %6217 }
 0x60a   : > { %6293 = vst.msk [vmem:[#allocation3 + $0x54] sm:$0xf] %vm6271_vm10, %v6218_v12  ;;  %v6473_v11 = vpop.permute.xlu0 %6472  ;;  %v10551_v12 = vpack.c.bf16 %v6592_v58, %v6592_v58 }
 0x60b   : > { %5208 = vrot.lane.b32.xlu1 %v13403_v31, %s14561_s20  ;;  %6549 = vst.msk [vmem:[#allocation3 + $0x50] sm:$0xf] %vm6528_vm11, %v6473_v11 }
 0x60c   : > { %5463 = vrot.lane.b32.xlu0 %v13421_v36, %s10870_s22 }
 0x60d   : > { %v6222_v19 = vpop.permute.xlu1 %6221 }
 0x60e   : > { %6295 = vst.msk [vmem:[#allocation3 + $0x5c] sm:$0xf] %vm6271_vm10, %v6222_v19  ;;  %v4681_v38 = vpop.permute.xlu0 %4680 }
 0x60f   : > { %5461 = vrot.lane.b32.xlu1 %v13411_v60, %s10870_s22  ;;  %4753 = vst.msk [vmem:[#allocation3 + $0x60] sm:$0xf] %vm4728_vm0, %v4681_v38 }
 0x610   : > { %5716 = vrot.lane.b32.xlu0 %v13500_v20, %s14579_s17 }
 0x611   : > { %v6475_v13 = vpop.permute.xlu1 %6474 }
 0x612   : > { %6550 = vst.msk [vmem:[#allocation3 + $0x54] sm:$0xf] %vm6528_vm11, %v6475_v13  ;;  %v6477_v31 = vpop.permute.xlu0 %6476 }
 0x613   : > { %5465 = vrot.lane.b32.xlu1 %v13431_v48, %s10870_s22  ;;  %6551 = vst.msk [vmem:[#allocation3 + $0x58] sm:$0xf] %vm6528_vm11, %v6477_v31  ;;  %v6075_v48 = vld [vmem:[#allocation2 + $0x1e0] sm:$0xff]  ;;  %s14586_s22 = smov 32  }
 0x614   : > { %5720 = vrot.lane.b32.xlu0 %v13615_v35, %s14579_s17 }
 0x615   : > { %v4683_v36 = vpop.permute.xlu1 %4682 }
 0x616   : > { %4754 = vst.msk [vmem:[#allocation3 + $0x64] sm:$0xf] %vm4728_vm0, %v4683_v36  ;;  %v6730_v60 = vpop.permute.xlu0 %6729 }
 0x617   : > { %5718 = vrot.lane.b32.xlu1 %v13515_v5, %s14579_s17  ;;  %6806 = vst.msk [vmem:[#allocation3 + $0x50] sm:$0xf] %vm6785_vm12, %v6730_v60  ;;  %v10484_v5 = vpack.c.bf16 %v6075_v48, %v6075_v48 }
 0x618   : > { %5973 = vrot.lane.b32.xlu0 %v13550_v37, %s14580_s23 }
 0x619   : > { %v6479_v20 = vpop.permute.xlu1 %6478 }
 0x61a   : > { %6552 = vst.msk [vmem:[#allocation3 + $0x5c] sm:$0xf] %vm6528_vm11, %v6479_v20  ;;  %v10622_v0 = vpop.f32.mrf.mxu0  ;;  %v4685_v35 = vpop.permute.xlu0 %4684 }
 0x61b   : > { %5722 = vrot.lane.b32.xlu1 %v13630_v18, %s14579_s17  ;;  %4755 = vst.msk [vmem:[#allocation3 + $0x68] sm:$0xf] %vm4728_vm0, %v4685_v35  ;;  %v7117_v4 = vadd.f32 %v10622_v0, %v13489_v30  ;;  %v7356_v35 = vlaneseq }
 0x61c   : > { %v7108_v41 = vpop.f32.mrf.mxu0  ;;  %5977 = vrot.lane.b32.xlu0 %v13650_v27, %s14580_s23 }
 0x61d   : > { %v6732_v32 = vpop.permute.xlu1 %6731  ;;  %v7109_v18 = vadd.f32 %v13489_v30, %v7108_v41  ;;  %v7213_v16 = vmax.f32 %v7117_v4, 0.0 }
 0x61e   : > { %6807 = vst.msk [vmem:[#allocation3 + $0x54] sm:$0xf] %vm6785_vm12, %v6732_v32  ;;  %v10623_v37 = vpop.f32.mrf.mxu0  ;;  %v4938_v14 = vpop.permute.xlu0 %4937 }
 0x61f   : > { %5975 = vrot.lane.b32.xlu1 %v13560_v10, %s14580_s23  ;;  %v7120_v17 = vadd.f32 %v10623_v37, %v13489_v30  ;;  %5010 = vst.msk [vmem:[#allocation3 + $0x60] sm:$0xf] %vm4985_vm5, %v4938_v14  ;;  %v7211_v42 = vmax.f32 %v7109_v18, 0.0 }
 0x620   : > { %v7111_v33 = vpop.f32.mrf.mxu0  ;;  %6231 = vrot.lane.b32.xlu0 %v10484_v5, %s14581_s10  ;;  %v7357_v5 = vshrl.u32 %v7356_v35, 7 }
 0x621   : > { %v4687_v23 = vpop.permute.xlu1 %4686  ;;  %v7112_v10 = vadd.f32 %v13489_v30, %v7111_v33  ;;  %v7214_v27 = vmax.f32 %v7120_v17, 0.0 }
 0x622   : > { %4756 = vst.msk [vmem:[#allocation3 + $0x6c] sm:$0xf] %vm4728_vm0, %v4687_v23  ;;  %v6734_v26 = vpop.permute.xlu0 %6733  ;;  %v7358_v14 = vsub.s32 0, %v7357_v5 }
 0x623   : > { %5979 = vrot.lane.b32.xlu1 %v13660_v9, %s14580_s23  ;;  %v7212_v63 = vmax.f32 %v7112_v10, 0.0  ;;  %6808 = vst.msk [vmem:[#allocation3 + $0x58] sm:$0xf] %vm6785_vm12, %v6734_v26  ;;  %v7240_v6 = vpack.c.bf16 %v7214_v27, %v7213_v16  ;;  %v10487_v9 = vpack.c.bf16 %v6078_v15, %v6078_v15  ;;  %s14066_s23 = scalar_lea.vmem [#allocation5], %s14030_s18  ;;  %s14588_s18 = smov 48  }
 0x624   : > { %6235 = vrot.lane.b32.xlu0 %v10486_v55, %s14581_s10  ;;  %v13776_v29 = vrot.slane %v13608_v34, %v7358_v14  ;;  %v13783_v55 = vld [vmem:[%s14532_s7 + $0x1] ss:$0 sm:$0xff] }
 0x625   : > { %v4940_v56 = vpop.permute.xlu1 %4939  ;;  %v10781_v54 = vld [vmem:[#allocation3 + $0x50] sm:$0xff]   ;;  %v7239_v3 = vpack.c.bf16 %v7212_v63, %v7211_v42 }
 0x626   : > { %5011 = vst.msk [vmem:[#allocation3 + $0x64] sm:$0xf] %vm4985_vm5, %v4940_v56  ;;  %10632 = vmatprep.mubr.msk.bf16.mxu0 %vm6989_vm13, %v10781_v54  ;;  %v4942_v43 = vpop.permute.xlu0 %4941 }
 0x627   : > { %6233 = vrot.lane.b32.xlu1 %v10485_v51, %s14581_s10  ;;  %10668 = vmatprep.mubr.msk.bf16.mxu1 %vm7372_vm1, %v7239_v3  ;;  %5012 = vst.msk [vmem:[#allocation3 + $0x68] sm:$0xf] %vm4985_vm5, %v4942_v43 }
 0x628   : > { %10669 = vmatmul.mubr.msk.bf16.gmra.mxu1 %vm7372_vm1, %v7240_v6  ;;  %6488 = vrot.lane.b32.xlu0 %v10516_v28, %s14582_s21 }
 0x629   : > { %v6736_v39 = vpop.permute.xlu1 %6735 }
 0x62a   : > { %6809 = vst.msk [vmem:[#allocation3 + $0x5c] sm:$0xf] %vm6785_vm12, %v6736_v39  ;;  %v5195_v40 = vpop.permute.xlu0 %5194 }
 0x62b   : > { %6237 = vrot.lane.b32.xlu1 %v10487_v9, %s14581_s10  ;;  %5267 = vst.msk [vmem:[#allocation3 + $0x60] sm:$0xf] %vm5242_vm6, %v5195_v40 }
 0x62c   : > { %6492 = vrot.lane.b32.xlu0 %v10518_v50, %s14582_s21 }
 0x62d   : > { %v4944_v49 = vpop.permute.xlu1 %4943 }
 0x62e   : > { %5013 = vst.msk [vmem:[#allocation3 + $0x6c] sm:$0xf] %vm4985_vm5, %v4944_v49  ;;  %v5199_v25 = vpop.permute.xlu0 %5198 }
 0x62f   : > { %6490 = vrot.lane.b32.xlu1 %v10517_v57, %s14582_s21  ;;  %5269 = vst.msk [vmem:[#allocation3 + $0x68] sm:$0xf] %vm5242_vm6, %v5199_v25 }
 0x630   : > { %6745 = vrot.lane.b32.xlu0 %v10548_v2, %s14562_s13 }
 0x631   : > { %v5197_v59 = vpop.permute.xlu1 %5196  ;;  %v10782_v24 = vld [vmem:[#allocation3 + $0x58] sm:$0xff]  }
 0x632   : > { %5268 = vst.msk [vmem:[#allocation3 + $0x64] sm:$0xf] %vm5242_vm6, %v5197_v59  ;;  %10633 = vmatmul.mubr.msk.bf16.gmra.mxu0 %vm6989_vm13, %v10782_v24  ;;  %v5452_v7 = vpop.permute.xlu0 %5451 }
 0x633   : > { %6494 = vrot.lane.b32.xlu1 %v10519_v8, %s14582_s21  ;;  %5524 = vst.msk [vmem:[#allocation3 + $0x60] sm:$0xf] %vm5499_vm7, %v5452_v7  ;;  %s14587_s21 = smov 40  }
 0x634   : > { %6749 = vrot.lane.b32.xlu0 %v10550_v22, %s14562_s13 }
 0x635   : > { %v5201_v1 = vpop.permute.xlu1 %5200 }
 0x636   : > { %5270 = vst.msk [vmem:[#allocation3 + $0x6c] sm:$0xf] %vm5242_vm6, %v5201_v1  ;;  %v5456_v11 = vpop.permute.xlu0 %5455 }
 0x637   : > { %6747 = vrot.lane.b32.xlu1 %v10549_v61, %s14562_s13  ;;  %5526 = vst.msk [vmem:[#allocation3 + $0x68] sm:$0xf] %vm5499_vm7, %v5456_v11 }
 0x639   : > { %v5454_v19 = vpop.permute.xlu1 %5453 }
 0x63a   : > { %5525 = vst.msk [vmem:[#allocation3 + $0x64] sm:$0xf] %vm5499_vm7, %v5454_v19  ;;  %v5709_v38 = vpop.permute.xlu0 %5708 }
 0x63b   : > { %6751 = vrot.lane.b32.xlu1 %v10551_v12, %s14562_s13  ;;  %5781 = vst.msk [vmem:[#allocation3 + $0x60] sm:$0xf] %vm5756_vm8, %v5709_v38 }
 0x63d   : > { %v5458_v13 = vpop.permute.xlu1 %5457 }
 0x63e   : > { %5527 = vst.msk [vmem:[#allocation3 + $0x6c] sm:$0xf] %vm5499_vm7, %v5458_v13  ;;  %v5713_v31 = vpop.permute.xlu0 %5712 }
 0x63f   : > { %5783 = vst.msk [vmem:[#allocation3 + $0x68] sm:$0xf] %vm5756_vm8, %v5713_v31 }
 0x641   : > { %v5711_v36 = vpop.permute.xlu1 %5710 }
 0x642   : > { %5782 = vst.msk [vmem:[#allocation3 + $0x64] sm:$0xf] %vm5756_vm8, %v5711_v36  ;;  %v5966_v60 = vpop.permute.xlu0 %5965 }
 0x643   : > { %6038 = vst.msk [vmem:[#allocation3 + $0x60] sm:$0xf] %vm6013_vm9, %v5966_v60 }
 0x645   : > { %v5715_v20 = vpop.permute.xlu1 %5714 }
 0x646   : > { %5784 = vst.msk [vmem:[#allocation3 + $0x6c] sm:$0xf] %vm5756_vm8, %v5715_v20  ;;  %v5970_v48 = vpop.permute.xlu0 %5969 }
 0x647   : > { %6040 = vst.msk [vmem:[#allocation3 + $0x68] sm:$0xf] %vm6013_vm9, %v5970_v48 }
 0x649   : > { %v5968_v0 = vpop.permute.xlu1 %5967 }
 0x64a   : > { %6039 = vst.msk [vmem:[#allocation3 + $0x64] sm:$0xf] %vm6013_vm9, %v5968_v0  ;;  %v6224_v32 = vpop.permute.xlu0 %6223 }
 0x64b   : > { %6296 = vst.msk [vmem:[#allocation3 + $0x60] sm:$0xf] %vm6271_vm10, %v6224_v32 }
 0x64d   : > { %v5972_v41 = vpop.permute.xlu1 %5971 }
 0x64e   : > { %6041 = vst.msk [vmem:[#allocation3 + $0x6c] sm:$0xf] %vm6013_vm9, %v5972_v41  ;;  %v6228_v62 = vpop.permute.xlu0 %6227 }
 0x64f   : > { %6298 = vst.msk [vmem:[#allocation3 + $0x68] sm:$0xf] %vm6271_vm10, %v6228_v62 }
 0x651   : > { %v6226_v37 = vpop.permute.xlu1 %6225 }
 0x652   : > { %6297 = vst.msk [vmem:[#allocation3 + $0x64] sm:$0xf] %vm6271_vm10, %v6226_v37  ;;  %v6481_v18 = vpop.permute.xlu0 %6480 }
 0x653   : > { %6553 = vst.msk [vmem:[#allocation3 + $0x60] sm:$0xf] %vm6528_vm11, %v6481_v18 }
 0x655   : > { %v6230_v17 = vpop.permute.xlu1 %6229 }
 0x656   : > { %6299 = vst.msk [vmem:[#allocation3 + $0x6c] sm:$0xf] %vm6271_vm10, %v6230_v17  ;;  %v4689_v4 = vpop.permute.xlu0 %4688 }
 0x657   : > { %4757 = vst.msk [vmem:[#allocation3 + $0x70] sm:$0xf] %vm4728_vm0, %v4689_v4 }
 0x658   : > { %v10662_v33 = vpop.f32.mrf.mxu1 }
 0x659   : > { %v6483_v23 = vpop.permute.xlu1 %6482  ;;  %v7464_v10 = vadd.f32 %v10662_v33, %v13776_v29 }
 0x65a   : > { %6554 = vst.msk [vmem:[#allocation3 + $0x64] sm:$0xf] %vm6528_vm11, %v6483_v23  ;;  %v7455_v53 = vpop.f32.mrf.mxu1  ;;  %v6485_v27 = vpop.permute.xlu0 %6484 }
 0x65b   : > { %v7592_v34 = vadd.f32 %v13783_v55, %v7464_v10  ;;  %v7456_v51 = vadd.f32 %v7455_v53, %v13776_v29  ;;  %6555 = vst.msk [vmem:[#allocation3 + $0x68] sm:$0xf] %vm6528_vm11, %v6485_v27 }
 0x65c   : > { %v10663_v42 = vpop.f32.mrf.mxu1 }
 0x65d   : > { %v4691_v26 = vpop.permute.xlu1 %4690  ;;  %v7624_v63 = vmax.f32 %v7592_v34, 0.0  ;;  %v7590_v15 = vadd.f32 %v13783_v55, %v7456_v51  ;;  %v7467_v16 = vadd.f32 %v10663_v42, %v13776_v29 }
 0x65e   : > { %4758 = vst.msk [vmem:[#allocation3 + $0x74] sm:$0xf] %vm4728_vm0, %v4691_v26  ;;  %v7458_v56 = vpop.f32.mrf.mxu1  ;;  %v6738_v54 = vpop.permute.xlu0 %6737 }
 0x65f   : > { %7656 = vst.msk [vmem:[#allocation4 + $0x10] sm:$0xff] %vm7308_vm15, %v7624_v63  ;;  %v7622_v28 = vmax.f32 %v7590_v15, 0.0  ;;  %v7593_v3 = vadd.f32 %v13783_v55, %v7467_v16  ;;  %v7459_v21 = vadd.f32 %v7458_v56, %v13776_v29 }
 0x660   : > { %6810 = vst.msk [vmem:[#allocation3 + $0x60] sm:$0xf] %vm6785_vm12, %v6738_v54 }
 0x661   : > { %v6487_v6 = vpop.permute.xlu1 %6486  ;;  %7654 = vst.msk [vmem:[#allocation4] sm:$0xff] %vm7308_vm15, %v7622_v28  ;;  %v7625_v9 = vmax.f32 %v7593_v3, 0.0  ;;  %v7591_v43 = vadd.f32 %v13783_v55, %v7459_v21 }
 0x662   : > { %6556 = vst.msk [vmem:[#allocation3 + $0x6c] sm:$0xf] %vm6528_vm11, %v6487_v6  ;;  %v10626_v45 = vpop.f32.mrf.mxu0  ;;  %v4693_v39 = vpop.permute.xlu0 %4692 }
 0x663   : > { %7657 = vst.msk [vmem:[#allocation4 + $0x18] sm:$0xff] %vm7308_vm15, %v7625_v9  ;;  %v7623_v50 = vmax.f32 %v7591_v43, 0.0  ;;  %v7133_v52 = vadd.f32 %v10626_v45, %v13489_v30 }
 0x664   : > { %4759 = vst.msk [vmem:[#allocation3 + $0x78] sm:$0xf] %vm4728_vm0, %v4693_v39  ;;  %v7124_v57 = vpop.f32.mrf.mxu0 }
 0x665   : > { %v6740_v44 = vpop.permute.xlu1 %6739  ;;  %7655 = vst.msk [vmem:[#allocation4 + $0x8] sm:$0xff] %vm7308_vm15, %v7623_v50  ;;  %v7125_v49 = vadd.f32 %v13489_v30, %v7124_v57  ;;  %v7217_v7 = vmax.f32 %v7133_v52, 0.0 }
 0x666   : > { %6811 = vst.msk [vmem:[#allocation3 + $0x64] sm:$0xf] %vm6785_vm12, %v6740_v44  ;;  %v10627_v40 = vpop.f32.mrf.mxu0  ;;  %v4946_v47 = vpop.permute.xlu0 %4945 }
 0x667   : > { %v7136_v2 = vadd.f32 %v10627_v40, %v13489_v30  ;;  %5014 = vst.msk [vmem:[#allocation3 + $0x70] sm:$0xf] %vm4985_vm5, %v4946_v47  ;;  %v7215_v22 = vmax.f32 %v7125_v49, 0.0 }
 0x668   : > { %v7127_v25 = vpop.f32.mrf.mxu0 }
 0x669   : > { %v4695_v8 = vpop.permute.xlu1 %4694  ;;  %v7128_v46 = vadd.f32 %v13489_v30, %v7127_v25  ;;  %v7218_v59 = vmax.f32 %v7136_v2, 0.0  ;;  %v13862_v25 = vld [vmem:[%s14531_s6] ss:$0 sm:$0xff] }
 0x66a   : > { %4760 = vst.msk [vmem:[#allocation3 + $0x7c] sm:$0xf] %vm4728_vm0, %v4695_v8  ;;  %v6742_v24 = vpop.permute.xlu0 %6741  ;;  %vm7728_vm0 = vcmask 1044484  }
 0x66b   : > { %v7216_v61 = vmax.f32 %v7128_v46, 0.0  ;;  %6812 = vst.msk [vmem:[#allocation3 + $0x68] sm:$0xf] %vm6785_vm12, %v6742_v24  ;;  %v7242_v11 = vpack.c.bf16 %v7218_v59, %v7217_v7 }
 0x66d   : > { %v4948_v58 = vpop.permute.xlu1 %4947  ;;  %v10783_v1 = vld [vmem:[#allocation3 + $0x60] sm:$0xff]   ;;  %v7241_v12 = vpack.c.bf16 %v7216_v61, %v7215_v22 }
 0x66e   : > { %5015 = vst.msk [vmem:[#allocation3 + $0x74] sm:$0xf] %vm4985_vm5, %v4948_v58  ;;  %10636 = vmatprep.mubr.msk.bf16.mxu0 %vm6989_vm13, %v10783_v1  ;;  %v4950_v19 = vpop.permute.xlu0 %4949 }
 0x66f   : > { %10672 = vmatprep.mubr.msk.bf16.mxu1 %vm7372_vm1, %v7241_v12  ;;  %5016 = vst.msk [vmem:[#allocation3 + $0x78] sm:$0xf] %vm4985_vm5, %v4950_v19 }
 0x670   : > { %10673 = vmatmul.mubr.msk.bf16.gmra.mxu1 %vm7372_vm1, %v7242_v11 }
 0x671   : > { %v6744_v30 = vpop.permute.xlu1 %6743 }
 0x672   : > { %6813 = vst.msk [vmem:[#allocation3 + $0x6c] sm:$0xf] %vm6785_vm12, %v6744_v30  ;;  %v5203_v38 = vpop.permute.xlu0 %5202 }
 0x673   : > { %5271 = vst.msk [vmem:[#allocation3 + $0x70] sm:$0xf] %vm5242_vm6, %v5203_v38 }
 0x675   : > { %v4952_v13 = vpop.permute.xlu1 %4951 }
 0x676   : > { %5017 = vst.msk [vmem:[#allocation3 + $0x7c] sm:$0xf] %vm4985_vm5, %v4952_v13  ;;  %v5207_v31 = vpop.permute.xlu0 %5206  ;;  %vm7731_vm5 = vcmask 1045509  }
 0x677   : > { %5273 = vst.msk [vmem:[#allocation3 + $0x78] sm:$0xf] %vm5242_vm6, %v5207_v31 }
 0x679   : > { %v5205_v36 = vpop.permute.xlu1 %5204  ;;  %v10784_v60 = vld [vmem:[#allocation3 + $0x68] sm:$0xff]  }
 0x67a   : > { %5272 = vst.msk [vmem:[#allocation3 + $0x74] sm:$0xf] %vm5242_vm6, %v5205_v36  ;;  %10637 = vmatmul.mubr.msk.bf16.gmra.mxu0 %vm6989_vm13, %v10784_v60  ;;  %v5460_v20 = vpop.permute.xlu0 %5459 }
 0x67b   : > { %5528 = vst.msk [vmem:[#allocation3 + $0x70] sm:$0xf] %vm5499_vm7, %v5460_v20 }
 0x67d   : > { %v5209_v48 = vpop.permute.xlu1 %5208 }
 0x67e   : > { %5274 = vst.msk [vmem:[#allocation3 + $0x7c] sm:$0xf] %vm5242_vm6, %v5209_v48  ;;  %v5464_v0 = vpop.permute.xlu0 %5463  ;;  %vm7734_vm6 = vcmask 1046534  }
 0x67f   : > { %5530 = vst.msk [vmem:[#allocation3 + $0x78] sm:$0xf] %vm5499_vm7, %v5464_v0 }
 0x681   : > { %v5462_v35 = vpop.permute.xlu1 %5461 }
 0x682   : > { %5529 = vst.msk [vmem:[#allocation3 + $0x74] sm:$0xf] %vm5499_vm7, %v5462_v35  ;;  %v5717_v32 = vpop.permute.xlu0 %5716 }
 0x683   : > { %5785 = vst.msk [vmem:[#allocation3 + $0x70] sm:$0xf] %vm5756_vm8, %v5717_v32 }
 0x685   : > { %v5466_v41 = vpop.permute.xlu1 %5465 }
 0x686   : > { %5531 = vst.msk [vmem:[#allocation3 + $0x7c] sm:$0xf] %vm5499_vm7, %v5466_v41  ;;  %v5721_v5 = vpop.permute.xlu0 %5720  ;;  %vm7737_vm7 = vcmask 1047559  }
 0x687   : > { %5787 = vst.msk [vmem:[#allocation3 + $0x78] sm:$0xf] %vm5756_vm8, %v5721_v5 }
 0x689   : > { %v5719_v62 = vpop.permute.xlu1 %5718 }
 0x68a   : > { %5786 = vst.msk [vmem:[#allocation3 + $0x74] sm:$0xf] %vm5756_vm8, %v5719_v62  ;;  %v5974_v37 = vpop.permute.xlu0 %5973 }
 0x68b   : > { %6042 = vst.msk [vmem:[#allocation3 + $0x70] sm:$0xf] %vm6013_vm9, %v5974_v37 }
 0x68d   : > { %v5723_v14 = vpop.permute.xlu1 %5722 }
 0x68e   : > { %5788 = vst.msk [vmem:[#allocation3 + $0x7c] sm:$0xf] %vm5756_vm8, %v5723_v14  ;;  %v5978_v18 = vpop.permute.xlu0 %5977  ;;  %vm7823_vm8 = vcmask 130112  }
 0x68f   : > { %6044 = vst.msk [vmem:[#allocation3 + $0x78] sm:$0xf] %vm6013_vm9, %v5978_v18 }
 0x691   : > { %v5976_v17 = vpop.permute.xlu1 %5975 }
 0x692   : > { %6043 = vst.msk [vmem:[#allocation3 + $0x74] sm:$0xf] %vm6013_vm9, %v5976_v17  ;;  %v6232_v4 = vpop.permute.xlu0 %6231 }
 0x693   : > { %6300 = vst.msk [vmem:[#allocation3 + $0x70] sm:$0xf] %vm6271_vm10, %v6232_v4 }
 0x695   : > { %v5980_v23 = vpop.permute.xlu1 %5979 }
 0x696   : > { %6045 = vst.msk [vmem:[#allocation3 + $0x7c] sm:$0xf] %vm6013_vm9, %v5980_v23  ;;  %v6236_v33 = vpop.permute.xlu0 %6235  ;;  %vm7892_vm9 = vcmask 195712  }
 0x697   : > { %6302 = vst.msk [vmem:[#allocation3 + $0x78] sm:$0xf] %vm6271_vm10, %v6236_v33 }
 0x699   : > { %v6234_v10 = vpop.permute.xlu1 %6233 }
 0x69a   : > { %6301 = vst.msk [vmem:[#allocation3 + $0x74] sm:$0xf] %vm6271_vm10, %v6234_v10  ;;  %v6489_v53 = vpop.permute.xlu0 %6488 }
 0x69b   : > { %6557 = vst.msk [vmem:[#allocation3 + $0x70] sm:$0xf] %vm6528_vm11, %v6489_v53 }
 0x69d   : > { %v6238_v27 = vpop.permute.xlu1 %6237 }
 0x69e   : > { %6303 = vst.msk [vmem:[#allocation3 + $0x7c] sm:$0xf] %vm6271_vm10, %v6238_v27  ;;  %v6493_v34 = vpop.permute.xlu0 %6492  ;;  %vm14569_vm10 = vcmask 261312  }
 0x69f   : > { %6559 = vst.msk [vmem:[#allocation3 + $0x78] sm:$0xf] %vm6528_vm11, %v6493_v34 }
 0x6a0   : > { %v10666_v26 = vpop.f32.mrf.mxu1 }
 0x6a1   : > { %v6491_v51 = vpop.permute.xlu1 %6490  ;;  %v7480_v42 = vadd.f32 %v10666_v26, %v13776_v29 }
 0x6a2   : > { %6558 = vst.msk [vmem:[#allocation3 + $0x74] sm:$0xf] %vm6528_vm11, %v6491_v51  ;;  %v7471_v63 = vpop.f32.mrf.mxu1  ;;  %v6746_v15 = vpop.permute.xlu0 %6745 }
 0x6a3   : > { %v7596_v16 = vadd.f32 %v13783_v55, %v7480_v42  ;;  %v7472_v56 = vadd.f32 %v7471_v63, %v13776_v29  ;;  %6814 = vst.msk [vmem:[#allocation3 + $0x70] sm:$0xf] %vm6785_vm12, %v6746_v15 }
 0x6a4   : > { %v10667_v28 = vpop.f32.mrf.mxu1 }
 0x6a5   : > { %v6495_v54 = vpop.permute.xlu1 %6494  ;;  %v7628_v3 = vmax.f32 %v7596_v16, 0.0  ;;  %v7594_v21 = vadd.f32 %v13783_v55, %v7472_v56  ;;  %v7483_v6 = vadd.f32 %v10667_v28, %v13776_v29  ;;  %v7827_v28 = vld [vmem:[#allocation4 + $0x12] sm:$0x1] }
 0x6a6   : > { %6560 = vst.msk [vmem:[#allocation3 + $0x7c] sm:$0xf] %vm6528_vm11, %v6495_v54  ;;  %v7474_v9 = vpop.f32.mrf.mxu1  ;;  %v6750_v43 = vpop.permute.xlu0 %6749  ;;  %v7758_v54 = vld [vmem:[#allocation4 + $0x11] sm:$0x1]  ;;  %vm14566_vm11 = vcmask 326912  }
 0x6a7   : > { %7660 = vst.msk [vmem:[#allocation4 + $0x30] sm:$0xff] %vm7308_vm15, %v7628_v3  ;;  %v7626_v45 = vmax.f32 %v7594_v21, 0.0  ;;  %v7597_v39 = vadd.f32 %v13783_v55, %v7483_v6  ;;  %v7475_v50 = vadd.f32 %v7474_v9, %v13776_v29  ;;  %v13890_v3 = vld [vmem:[#allocation4 + $0x13] sm:$0x1]  ;;  %v13892_v21 = vld [vmem:[#allocation4 + $0x14] sm:$0x1] }
 0x6a8   : > { %6816 = vst.msk [vmem:[#allocation3 + $0x78] sm:$0xf] %vm6785_vm12, %v6750_v43  ;;  %v13894_v6 = vld [vmem:[#allocation4 + $0x15] sm:$0x1]  ;;  %v13896_v9 = vld [vmem:[#allocation4 + $0x16] sm:$0x1] }
 0x6a9   : > { %v6748_v44 = vpop.permute.xlu1 %6747  ;;  %7658 = vst.msk [vmem:[#allocation4 + $0x20] sm:$0xff] %vm7308_vm15, %v7626_v45  ;;  %v7629_v57 = vmax.f32 %v7597_v39, 0.0  ;;  %v7595_v40 = vadd.f32 %v13783_v55, %v7475_v50  ;;  %v13898_v43 = vld [vmem:[#allocation4 + $0x17] sm:$0x1]  ;;  %v7789_v39 = vrot.slane %v7758_v54, 7  ;;  %v7858_v50 = vrot.slane %v7827_v28, 7 }
 0x6aa   : > { %6815 = vst.msk [vmem:[#allocation3 + $0x74] sm:$0xf] %vm6785_vm12, %v6748_v44  ;;  %v10630_v47 = vpop.f32.mrf.mxu0  ;;  %v7927_v44 = vrot.slane %v13890_v3, 7 }
 0x6ab   : > { %7661 = vst.msk [vmem:[#allocation4 + $0x38] sm:$0xff] %vm7308_vm15, %v7629_v57  ;;  %v7627_v49 = vmax.f32 %v7595_v40, 0.0  ;;  %v7149_v24 = vadd.f32 %v13862_v25, %v10630_v47  ;;  %v13901_v57 = vld [vmem:[#allocation4 + $0x18] sm:$0x1]  ;;  %v13904_v47 = vld [vmem:[#allocation4 + $0x19] sm:$0x1] }
 0x6ac   : > { %v7140_v52 = vpop.f32.mrf.mxu0 }
 0x6ad   : > { %v6752_v2 = vpop.permute.xlu1 %6751  ;;  %7659 = vst.msk [vmem:[#allocation4 + $0x28] sm:$0xff] %vm7308_vm15, %v7627_v49  ;;  %v7141_v46 = vadd.f32 %v13862_v25, %v7140_v52  ;;  %v7221_v11 = vmax.f32 %v7149_v24, 0.0  ;;  %v13906_v49 = vld [vmem:[#allocation4 + $0x1a] sm:$0x1]  ;;  %v8134_v24 = vrot.slane %v13896_v9, 7 }
 0x6ae   : > { %6817 = vst.msk [vmem:[#allocation3 + $0x7c] sm:$0xf] %vm6785_vm12, %v6752_v2  ;;  %v10631_v8 = vpop.f32.mrf.mxu0  ;;  %v13908_v2 = vld [vmem:[#allocation4 + $0x1b] sm:$0x1]  ;;  %vm14565_vm12 = vcmask 392512  }
 0x6af   : > { %v7152_v59 = vadd.f32 %v13862_v25, %v10631_v8  ;;  %v7219_v1 = vmax.f32 %v7141_v46, 0.0  ;;  %v7996_v46 = vrot.slane %v13892_v21, 7  ;;  %v13943_v21 = vld [vmem:[#allocation4 + $0x35] sm:$0x1] }
 0x6b0   : > { %v7143_v22 = vpop.f32.mrf.mxu0  ;;  %v7759_v8 = vld [vmem:[#allocation4 + $0x21] sm:$0x1]  ;;  %v13941_v28 = vld [vmem:[#allocation4 + $0x25] sm:$0x1] }
 0x6b1   : > { %v10785_v61 = vld [vmem:[#allocation3 + $0x70] sm:$0xff]   ;;  %v7144_v7 = vadd.f32 %v13862_v25, %v7143_v22  ;;  %v7222_v58 = vmax.f32 %v7152_v59, 0.0  ;;  %v8065_v59 = vrot.slane %v13894_v6, 7  ;;  %v8203_v22 = vrot.slane %v13898_v43, 7 }
 0x6b2   : > { %10640 = vmatprep.mubr.msk.bf16.mxu0 %vm6989_vm13, %v10785_v61 }
 0x6b3   : > { %v7220_v12 = vmax.f32 %v7144_v7, 0.0  ;;  %v7244_v38 = vpack.c.bf16 %v7222_v58, %v7221_v11  ;;  %v7757_v58 = vld [vmem:[#allocation4 + $0x1] sm:$0x1]  ;;  %v7828_v11 = vld [vmem:[#allocation4 + $0x22] sm:$0x1] }
 0x6b5   : > { %v10786_v19 = vld [vmem:[#allocation3 + $0x78] sm:$0xff]   ;;  %v7243_v30 = vpack.c.bf16 %v7220_v12, %v7219_v1  ;;  %v7760_v1 = vld [vmem:[#allocation4 + $0x31] sm:$0x1]  ;;  %v7826_v12 = vld [vmem:[#allocation4 + $0x2] sm:$0x1] }
 0x6b6   : > { %10641 = vmatmul.mubr.msk.bf16.gmra.mxu0 %vm6989_vm13, %v10786_v19  ;;  %v13916_v19 = vld [vmem:[#allocation4 + $0x10] sm:$0x1]  ;;  %vm14567_vm13 = vcmask 458112  }
 0x6b7   : > { %10676 = vmatprep.mubr.msk.bf16.mxu1 %vm7372_vm1, %v7243_v30 }
 0x6b8   : > { %10677 = vmatmul.mubr.msk.bf16.gmra.mxu1 %vm7372_vm1, %v7244_v38  ;;  %v7829_v38 = vld [vmem:[#allocation4 + $0x32] sm:$0x1] }
 0x6e8   : > { %v10670_v13 = vpop.f32.mrf.mxu1 }
 0x6e9   : > { %v7496_v31 = vadd.f32 %v10670_v13, %v13776_v29  ;;  %v8272_v13 = vrot.slane %v13901_v57, 7 }
 0x6ea   : > { %v7487_v36 = vpop.f32.mrf.mxu1 }
 0x6eb   : > { %v7600_v60 = vadd.f32 %v13783_v55, %v7496_v31  ;;  %v7488_v20 = vadd.f32 %v7487_v36, %v13776_v29  ;;  %v8341_v31 = vrot.slane %v13904_v47, 7  ;;  %v8410_v36 = vrot.slane %v13906_v49, 7 }
 0x6ec   : > { %v10671_v48 = vpop.f32.mrf.mxu1 }
 0x6ed   : > { %v7632_v0 = vmax.f32 %v7600_v60, 0.0  ;;  %v7598_v35 = vadd.f32 %v13783_v55, %v7488_v20  ;;  %v7499_v32 = vadd.f32 %v10671_v48, %v13776_v29 }
 0x6ee   : > { %v7490_v41 = vpop.f32.mrf.mxu1 }
 0x6ef   : > { %7664 = vst.msk [vmem:[#allocation4 + $0x50] sm:$0xff] %vm7308_vm15, %v7632_v0  ;;  %v7630_v5 = vmax.f32 %v7598_v35, 0.0  ;;  %v7601_v62 = vadd.f32 %v13783_v55, %v7499_v32  ;;  %v7491_v37 = vadd.f32 %v7490_v41, %v13776_v29  ;;  %v7791_v35 = vrot.slane %v7759_v8, 6  ;;  %v7897_v32 = vld [vmem:[#allocation4 + $0x23] sm:$0x1] }
 0x6f0   : > { %v13924_v41 = vld [vmem:[#allocation4 + $0x33] sm:$0x1] }
 0x6f1   : > { %7662 = vst.msk [vmem:[#allocation4 + $0x40] sm:$0xff] %vm7308_vm15, %v7630_v5  ;;  %v7633_v14 = vmax.f32 %v7601_v62, 0.0  ;;  %v7599_v18 = vadd.f32 %v13783_v55, %v7491_v37  ;;  %v7793_v62 = vrot.slane %v7760_v1, 5  ;;  %v7860_v37 = vrot.slane %v7828_v11, 6  ;;  %v13957_v1 = vld [vmem:[#allocation4 + $0x20] sm:$0x1] }
 0x6f2   : > { %v10634_v17 = vpop.f32.mrf.mxu0 }
 0x6f3   : > { %7665 = vst.msk [vmem:[#allocation4 + $0x58] sm:$0xff] %vm7308_vm15, %v7633_v14  ;;  %v7631_v4 = vmax.f32 %v7599_v18, 0.0  ;;  %v7165_v27 = vadd.f32 %v13862_v25, %v10634_v17  ;;  %v13926_v14 = vld [vmem:[#allocation4 + $0x24] sm:$0x1]  ;;  %v7718_v18 = vrot.slane %v13916_v19, 7 }
 0x6f4   : > { %v7156_v23 = vpop.f32.mrf.mxu0  ;;  %v7998_v54 = vrot.slane %v13926_v14, 6 }
 0x6f5   : > { %7663 = vst.msk [vmem:[#allocation4 + $0x48] sm:$0xff] %vm7308_vm15, %v7631_v4  ;;  %v7157_v10 = vadd.f32 %v13862_v25, %v7156_v23  ;;  %v7225_v15 = vmax.f32 %v7165_v27, 0.0 }
 0x6f6   : > { %v10635_v33 = vpop.f32.mrf.mxu0  ;;  %v7762_v3 = vld [vmem:[#allocation4 + $0x51] sm:$0x1] }
 0x6f7   : > { %v7168_v53 = vadd.f32 %v13862_v25, %v10635_v33  ;;  %v7223_v42 = vmax.f32 %v7157_v10, 0.0  ;;  %v7862_v33 = vrot.slane %v7829_v38, 5  ;;  %v7895_v10 = vld [vmem:[#allocation4 + $0x3] sm:$0x1]  ;;  %v8067_v38 = vrot.slane %v13941_v28, 6 }
 0x6f8   : > { %v7159_v34 = vpop.f32.mrf.mxu0  ;;  %v7761_v27 = vld [vmem:[#allocation4 + $0x41] sm:$0x1] }
 0x6f9   : > { %v7160_v51 = vadd.f32 %v13862_v25, %v7159_v34  ;;  %v7226_v26 = vmax.f32 %v7168_v53, 0.0  ;;  %v7964_v53 = vld [vmem:[#allocation4 + $0x4] sm:$0x1]  ;;  %v7790_v34 = vsel %vm7719_vm2, %v7789_v39, %v7757_v58  ;;  %v7830_v39 = vld [vmem:[#allocation4 + $0x42] sm:$0x1] }
 0x6fa   : > { %v13955_v58 = vld [vmem:[#allocation4 + $0x27] sm:$0x1] }
 0x6fb   : > { %v7224_v63 = vmax.f32 %v7160_v51, 0.0  ;;  %v7246_v56 = vpack.c.bf16 %v7226_v26, %v7225_v15  ;;  %v7859_v51 = vsel %vm7719_vm2, %v7858_v50, %v7826_v12  ;;  %v7929_v26 = vrot.slane %v7897_v32, 6 }
 0x6fc   : > { %v7861_v50 = vsel %vm7722_vm3, %v7860_v37, %v7859_v51 }
 0x6fd   : > { %v7245_v16 = vpack.c.bf16 %v7224_v63, %v7223_v42  ;;  %v7931_v42 = vrot.slane %v13924_v41, 5  ;;  %v13935_v63 = vld [vmem:[#allocation4 + $0x34] sm:$0x1] }
 0x6ff   : > { %10680 = vmatprep.mubr.msk.bf16.mxu1 %vm7372_vm1, %v7245_v16 }
 0x700   : > { %10681 = vmatmul.mubr.msk.bf16.gmra.mxu1 %vm7372_vm1, %v7246_v56  ;;  %v7792_v56 = vsel %vm7722_vm3, %v7791_v35, %v7790_v34 }
 0x701   : > { %v7794_v11 = vsel %vm7725_vm4, %v7793_v62, %v7792_v56  ;;  %v7721_v62 = vrot.slane %v13957_v1, 6 }
 0x730   : > { %v10674_v45 = vpop.f32.mrf.mxu1 }
 0x731   : > { %v7512_v40 = vadd.f32 %v10674_v45, %v13776_v29 }
 0x732   : > { %v7503_v52 = vpop.f32.mrf.mxu1 }
 0x733   : > { %v7604_v61 = vadd.f32 %v13783_v55, %v7512_v40  ;;  %v7504_v7 = vadd.f32 %v7503_v52, %v13776_v29  ;;  %v13946_v40 = vld [vmem:[#allocation4 + $0x26] sm:$0x1]  ;;  %v13948_v52 = vld [vmem:[#allocation4 + $0x36] sm:$0x1] }
 0x734   : > { %v10675_v30 = vpop.f32.mrf.mxu1  ;;  %v8136_v35 = vrot.slane %v13946_v40, 6  ;;  %v8138_v41 = vrot.slane %v13948_v52, 5 }
 0x735   : > { %v7636_v20 = vmax.f32 %v7604_v61, 0.0  ;;  %v7602_v48 = vadd.f32 %v13783_v55, %v7504_v7  ;;  %v7515_v0 = vadd.f32 %v10675_v30, %v13776_v29  ;;  %v7928_v61 = vsel %vm7719_vm2, %v7927_v44, %v7895_v10 }
 0x736   : > { %v7506_v5 = vpop.f32.mrf.mxu1  ;;  %v7997_v7 = vsel %vm7719_vm2, %v7996_v46, %v7964_v53  ;;  %v8000_v30 = vrot.slane %v13935_v63, 5  ;;  %v7863_v44 = vsel %vm7725_vm4, %v7862_v33, %v7861_v50  ;;  %v7899_v46 = vld [vmem:[#allocation4 + $0x43] sm:$0x1]  ;;  %v7968_v50 = vld [vmem:[#allocation4 + $0x44] sm:$0x1] }
 0x737   : > { %7668 = vst.msk [vmem:[#allocation4 + $0x70] sm:$0xff] %vm7308_vm15, %v7636_v20  ;;  %v7634_v17 = vmax.f32 %v7602_v48, 0.0  ;;  %v7605_v4 = vadd.f32 %v13783_v55, %v7515_v0  ;;  %v7507_v23 = vadd.f32 %v7506_v5, %v13776_v29  ;;  %v8069_v20 = vrot.slane %v13943_v21, 5 }
 0x738   : > { %v7864_v48 = vrot.slane %v7830_v39, 4  ;;  %v7930_v0 = vsel %vm7722_vm3, %v7929_v26, %v7928_v61  ;;  %v8205_v5 = vrot.slane %v13955_v58, 6  ;;  %v7933_v26 = vrot.slane %v7899_v46, 4  ;;  %v7900_v46 = vld [vmem:[#allocation4 + $0x53] sm:$0x1] }
 0x739   : > { %7666 = vst.msk [vmem:[#allocation4 + $0x60] sm:$0xff] %vm7308_vm15, %v7634_v17  ;;  %v7637_v15 = vmax.f32 %v7605_v4, 0.0  ;;  %v7603_v16 = vadd.f32 %v13783_v55, %v7507_v23  ;;  %v7795_v55 = vrot.slane %v7761_v27, 4  ;;  %v7831_v23 = vld [vmem:[#allocation4 + $0x52] sm:$0x1]  ;;  %v7797_v27 = vrot.slane %v7762_v3, 3 }
 0x73a   : > { %v10638_v45 = vpop.f32.mrf.mxu0  ;;  %v7932_v51 = vsel %vm7725_vm4, %v7931_v42, %v7930_v0  ;;  %v7865_v56 = vsel %vm7728_vm0, %v7864_v48, %v7863_v44  ;;  %v7999_v0 = vsel %vm7722_vm3, %v7998_v54, %v7997_v7  ;;  %v7935_v7 = vrot.slane %v7900_v46, 3  ;;  %v8038_v46 = vld [vmem:[#allocation4 + $0x55] sm:$0x1] }
 0x73b   : > { %7669 = vst.msk [vmem:[#allocation4 + $0x78] sm:$0xff] %vm7308_vm15, %v7637_v15  ;;  %v7635_v8 = vmax.f32 %v7603_v16, 0.0  ;;  %v7796_v4 = vsel %vm7728_vm0, %v7795_v55, %v7794_v11  ;;  %v7181_v33 = vadd.f32 %v13862_v25, %v10638_v45  ;;  %v8033_v11 = vld [vmem:[#allocation4 + $0x5] sm:$0x1] }
 0x73c   : > { %v7172_v12 = vpop.f32.mrf.mxu0  ;;  %v7798_v55 = vsel %vm7731_vm5, %v7797_v27, %v7796_v4  ;;  %v7686_v4 = vld [vmem:[#allocation4] sm:$0x1] }
 0x73d   : > { %7667 = vst.msk [vmem:[#allocation4 + $0x68] sm:$0xff] %vm7308_vm15, %v7635_v8  ;;  %v7173_v37 = vadd.f32 %v13862_v25, %v7172_v12  ;;  %v7866_v12 = vrot.slane %v7831_v23, 3  ;;  %v7934_v23 = vsel %vm7728_vm0, %v7933_v26, %v7932_v51  ;;  %v8066_v51 = vsel %vm7719_vm2, %v8065_v59, %v8033_v11  ;;  %v14007_v59 = vld [vmem:[#allocation4 + $0x28] sm:$0x1] }
 0x73e   : > { %v10639_v32 = vpop.f32.mrf.mxu0  ;;  %v7764_v17 = vld [vmem:[#allocation4 + $0x71] sm:$0x1]  ;;  %v7833_v42 = vld [vmem:[#allocation4 + $0x72] sm:$0x1]  ;;  %v7936_v63 = vsel %vm7731_vm5, %v7935_v7, %v7934_v23  ;;  %v8068_v6 = vsel %vm7722_vm3, %v8067_v38, %v8066_v51  ;;  %v8240_v23 = vld [vmem:[#allocation4 + $0x8] sm:$0x1] }
 0x73f   : > { %v7184_v14 = vadd.f32 %v13862_v25, %v10639_v32  ;;  %v7801_v61 = vrot.slane %v7764_v17, 1  ;;  %v7227_v32 = vmax.f32 %v7173_v37, 0.0  ;;  %v7867_v48 = vsel %vm7731_vm5, %v7866_v12, %v7865_v56  ;;  %v7969_v56 = vld [vmem:[#allocation4 + $0x54] sm:$0x1]  ;;  %v8106_v12 = vld [vmem:[#allocation4 + $0x46] sm:$0x1] }
 0x740   : > { %v7175_v10 = vpop.f32.mrf.mxu0  ;;  %v7763_v53 = vld [vmem:[#allocation4 + $0x61] sm:$0x1]  ;;  %v7832_v34 = vld [vmem:[#allocation4 + $0x62] sm:$0x1]  ;;  %v7901_v45 = vld [vmem:[#allocation4 + $0x63] sm:$0x1]  ;;  %v8070_v1 = vsel %vm7725_vm4, %v8069_v20, %v8068_v6 }
 0x741   : > { %v7176_v15 = vadd.f32 %v13862_v25, %v7175_v10  ;;  %v7799_v16 = vrot.slane %v7763_v53, 2  ;;  %v7868_v39 = vrot.slane %v7832_v34, 2  ;;  %v7230_v8 = vmax.f32 %v7184_v14, 0.0  ;;  %v8102_v53 = vld [vmem:[#allocation4 + $0x6] sm:$0x1] }
 0x742   : > { %v7229_v10 = vmax.f32 %v7181_v33, 0.0  ;;  %v8002_v14 = vrot.slane %v7968_v50, 4  ;;  %v7937_v27 = vrot.slane %v7901_v45, 2  ;;  %v13985_v34 = vld [vmem:[#allocation4 + $0x37] sm:$0x1]  ;;  %v7870_v54 = vrot.slane %v7833_v42, 1 }
 0x743   : > { %v7228_v3 = vmax.f32 %v7176_v15, 0.0  ;;  %v7800_v60 = vsel %vm7734_vm6, %v7799_v16, %v7798_v55  ;;  %v7869_v37 = vsel %vm7734_vm6, %v7868_v39, %v7867_v48  ;;  %v7970_v33 = vld [vmem:[#allocation4 + $0x64] sm:$0x1]  ;;  %v7902_v16 = vld [vmem:[#allocation4 + $0x73] sm:$0x1]  ;;  %v8001_v50 = vsel %vm7725_vm4, %v8000_v30, %v7999_v0 }
 0x744   : > { %v7802_v44 = vsel %vm7737_vm7, %v7801_v61, %v7800_v60  ;;  %v7248_v15 = vpack.c.bf16 %v7230_v8, %v7229_v10  ;;  %v8037_v60 = vld [vmem:[#allocation4 + $0x45] sm:$0x1]  ;;  %v8135_v26 = vsel %vm7719_vm2, %v8134_v24, %v8102_v53  ;;  %v7690_v39 = vld [vmem:[#allocation4 + $0x40] sm:$0x1]  ;;  %v7720_v8 = vsel %vm7719_vm2, %v7718_v18, %v7686_v4  ;;  %v7689_v24 = vld [vmem:[#allocation4 + $0x30] sm:$0x1] }
 0x745   : > { %v7247_v17 = vpack.c.bf16 %v7228_v3, %v7227_v32  ;;  %7817 = vrot.lane.b32.xlu0 %v7802_v44, %s14583_s19  ;;  %v7871_v55 = vsel %vm7737_vm7, %v7870_v54, %v7869_v37  ;;  %v8207_v9 = vrot.slane %v13985_v34, 5  ;;  %v7938_v19 = vsel %vm7734_vm6, %v7937_v27, %v7936_v63  ;;  %v8171_v45 = vld [vmem:[#allocation4 + $0x7] sm:$0x1]  ;;  %v8039_v32 = vld [vmem:[#allocation4 + $0x65] sm:$0x1] }
 0x746   : > { %v8003_v18 = vsel %vm7728_vm0, %v8002_v14, %v8001_v50  ;;  %v8006_v30 = vrot.slane %v7970_v33, 2  ;;  %v8071_v61 = vrot.slane %v8037_v60, 4  ;;  %v7939_v11 = vrot.slane %v7902_v16, 1  ;;  %v7971_v42 = vld [vmem:[#allocation4 + $0x74] sm:$0x1] }
 0x747   : > { %10684 = vmatprep.mubr.msk.bf16.mxu1 %vm7372_vm1, %v7247_v17  ;;  %v8004_v28 = vrot.slane %v7969_v56, 3  ;;  %v7727_v3 = vrot.slane %v7690_v39, 4  ;;  %v7723_v38 = vsel %vm7722_vm3, %v7721_v62, %v7720_v8  ;;  %v8137_v0 = vsel %vm7722_vm3, %v8136_v35, %v8135_v26  ;;  %v8175_v62 = vld [vmem:[#allocation4 + $0x47] sm:$0x1]  ;;  %v7691_v4 = vld [vmem:[#allocation4 + $0x50] sm:$0x1] }
 0x748   : > { %10685 = vmatmul.mubr.msk.bf16.gmra.mxu1 %vm7372_vm1, %v7248_v15  ;;  %v8274_v10 = vrot.slane %v14007_v59, 6  ;;  %v7724_v44 = vrot.slane %v7689_v24, 5  ;;  %v7940_v48 = vsel %vm7737_vm7, %v7939_v11, %v7938_v19  ;;  %v8140_v53 = vrot.slane %v8106_v12, 4  ;;  %v8107_v37 = vld [vmem:[#allocation4 + $0x56] sm:$0x1] }
 0x749   : > { %7886 = vrot.lane.b32.xlu0 %v7871_v55, %s14584_s25  ;;  %v8005_v14 = vsel %vm7731_vm5, %v8004_v28, %v8003_v18  ;;  %v8072_v35 = vsel %vm7728_vm0, %v8071_v61, %v8070_v1  ;;  %v8075_v17 = vrot.slane %v8039_v32, 2  ;;  %v8008_v21 = vrot.slane %v7971_v42, 1  ;;  %v8108_v20 = vld [vmem:[#allocation4 + $0x66] sm:$0x1]  ;;  %v7692_v7 = vld [vmem:[#allocation4 + $0x60] sm:$0x1] }
 0x74a   : > { %v8007_v40 = vsel %vm7734_vm6, %v8006_v30, %v8005_v14  ;;  %v7726_v27 = vsel %vm7725_vm4, %v7724_v44, %v7723_v38  ;;  %v8073_v15 = vrot.slane %v8038_v46, 3  ;;  %v8204_v54 = vsel %vm7719_vm2, %v8203_v22, %v8171_v45  ;;  %v8040_v60 = vld [vmem:[#allocation4 + $0x75] sm:$0x1]  ;;  %v7693_v51 = vld [vmem:[#allocation4 + $0x70] sm:$0x1] }
 0x74b   : > { %v7729_v33 = vsel %vm7728_vm0, %v7727_v3, %v7726_v27  ;;  %v8139_v16 = vsel %vm7725_vm4, %v8138_v41, %v8137_v0  ;;  %v8206_v56 = vsel %vm7722_vm3, %v8205_v5, %v8204_v54  ;;  %v8209_v50 = vrot.slane %v8175_v62, 4  ;;  %v8243_v8 = vld [vmem:[#allocation4 + $0x38] sm:$0x1]  ;;  %v14046_v55 = vld [vmem:[#allocation4 + $0x1c] sm:$0x1] }
 0x74c   : > { %v7730_v26 = vrot.slane %v7691_v4, 3  ;;  %v8009_v39 = vsel %vm7737_vm7, %v8008_v21, %v8007_v40  ;;  %v8074_v43 = vsel %vm7731_vm5, %v8073_v15, %v8072_v35  ;;  %v8141_v22 = vsel %vm7728_vm0, %v8140_v53, %v8139_v16  ;;  %v8311_v41 = vld [vmem:[#allocation4 + $0x29] sm:$0x1]  ;;  %v8177_v19 = vld [vmem:[#allocation4 + $0x67] sm:$0x1] }
 0x74d   : > { %7955 = vrot.lane.b32.xlu0 %v7940_v48, %s14585_s26  ;;  %v7733_v63 = vrot.slane %v7692_v7, 2  ;;  %v8076_v52 = vsel %vm7734_vm6, %v8075_v17, %v8074_v43  ;;  %v8144_v58 = vrot.slane %v8108_v20, 2  ;;  %v7736_v5 = vrot.slane %v7693_v51, 1  ;;  %v8244_v18 = vld [vmem:[#allocation4 + $0x48] sm:$0x1] }
 0x74e   : > { %v7732_v6 = vsel %vm7731_vm5, %v7730_v26, %v7729_v33  ;;  %v8077_v59 = vrot.slane %v8040_v60, 1  ;;  %v8142_v24 = vrot.slane %v8107_v37, 3  ;;  %v8273_v30 = vsel %vm7719_vm2, %v8272_v13, %v8240_v23  ;;  %v8309_v61 = vld [vmem:[#allocation4 + $0x9] sm:$0x1]  ;;  %v8109_v45 = vld [vmem:[#allocation4 + $0x76] sm:$0x1] }
 0x74f   : > { %v7735_v12 = vsel %vm7734_vm6, %v7733_v63, %v7732_v6  ;;  %v8176_v11 = vld [vmem:[#allocation4 + $0x57] sm:$0x1]  ;;  %v8275_v28 = vsel %vm7722_vm3, %v8274_v10, %v8273_v30  ;;  %v8276_v32 = vrot.slane %v8243_v8, 5  ;;  %v8548_v3 = vrot.slane %v14046_v55, 7  ;;  %v8312_v13 = vld [vmem:[#allocation4 + $0x39] sm:$0x1] }
 0x750   : > { %v7738_v38 = vsel %vm7737_vm7, %v7736_v5, %v7735_v12  ;;  %v8078_v42 = vsel %vm7737_vm7, %v8077_v59, %v8076_v52  ;;  %v8143_v46 = vsel %vm7731_vm5, %v8142_v24, %v8141_v22  ;;  %v8208_v57 = vsel %vm7725_vm4, %v8207_v9, %v8206_v56  ;;  %v14063_v44 = vld [vmem:[#allocation4 + $0x1d] sm:$0x1]  ;;  %v8380_v34 = vld [vmem:[#allocation4 + $0x2a] sm:$0x1]  ;;  %v8246_v62 = vld [vmem:[#allocation4 + $0x68] sm:$0x1] }
 0x751   : > { %8024 = vrot.lane.b32.xlu0 %v8009_v39, %s14586_s22  ;;  %v8343_v0 = vrot.slane %v8311_v41, 6  ;;  %7755 = vst.msk [vmem:[%s14066_s23] sm:$0xff] %vm7308_vm15, %v7738_v38  ;;  %v8145_v10 = vsel %vm7734_vm6, %v8144_v58, %v8143_v46  ;;  %v8210_v48 = vsel %vm7728_vm0, %v8209_v50, %v8208_v57  ;;  %v8213_v14 = vrot.slane %v8177_v19, 2  ;;  %v8313_v4 = vld [vmem:[#allocation4 + $0x49] sm:$0x1] }
 0x752   : > { %v8278_v1 = vrot.slane %v8244_v18, 4  ;;  %v8146_v53 = vrot.slane %v8109_v45, 1  ;;  %v8211_v9 = vrot.slane %v8176_v11, 3  ;;  %v8378_v40 = vld [vmem:[#allocation4 + $0xa] sm:$0x1]  ;;  %v8277_v37 = vsel %vm7725_vm4, %v8276_v32, %v8275_v28 }
 0x753   : > { %v8178_v35 = vld [vmem:[#allocation4 + $0x77] sm:$0x1]  ;;  %v8245_v17 = vld [vmem:[#allocation4 + $0x58] sm:$0x1]  ;;  %v8342_v23 = vsel %vm7719_vm2, %v8341_v31, %v8309_v61  ;;  %v8345_v27 = vrot.slane %v8312_v13, 5  ;;  %v8617_v21 = vrot.slane %v14063_v44, 7  ;;  %v8411_v8 = vsel %vm7719_vm2, %v8410_v36, %v8378_v40 }
 0x754   : > { %v8147_v15 = vsel %vm7737_vm7, %v8146_v53, %v8145_v10  ;;  %v8212_v20 = vsel %vm7731_vm5, %v8211_v9, %v8210_v48  ;;  %v8344_v54 = vsel %vm7722_vm3, %v8343_v0, %v8342_v23  ;;  %v8381_v7 = vld [vmem:[#allocation4 + $0x3a] sm:$0x1]  ;;  %v8412_v33 = vrot.slane %v8380_v34, 6  ;;  %v8449_v60 = vld [vmem:[#allocation4 + $0x2b] sm:$0x1] }
 0x755   : > { %8093 = vrot.lane.b32.xlu0 %v8078_v42, %s14587_s21  ;;  %v8214_v16 = vsel %vm7734_vm6, %v8213_v14, %v8212_v20  ;;  %v8279_v47 = vsel %vm7728_vm0, %v8278_v1, %v8277_v37  ;;  %v8282_v56 = vrot.slane %v8246_v62, 2  ;;  %v8347_v31 = vrot.slane %v8313_v4, 4  ;;  %v8315_v26 = vld [vmem:[#allocation4 + $0x69] sm:$0x1]  ;;  %v8382_v39 = vld [vmem:[#allocation4 + $0x4a] sm:$0x1] }
 0x756   : > { %v8215_v50 = vrot.slane %v8178_v35, 1  ;;  %v8280_v51 = vrot.slane %v8245_v17, 3  ;;  %v8247_v43 = vld [vmem:[#allocation4 + $0x78] sm:$0x1]  ;;  %v8314_v22 = vld [vmem:[#allocation4 + $0x59] sm:$0x1]  ;;  %v8346_v5 = vsel %vm7725_vm4, %v8345_v27, %v8344_v54  ;;  %v8413_v6 = vsel %vm7722_vm3, %v8412_v33, %v8411_v8 }
 0x757   : > { %v8414_v63 = vrot.slane %v8381_v7, 5  ;;  %v8481_v52 = vrot.slane %v8449_v60, 6  ;;  %v8447_v59 = vld [vmem:[#allocation4 + $0xb] sm:$0x1]  ;;  %v8450_v24 = vld [vmem:[#allocation4 + $0x3b] sm:$0x1]  ;;  %v8348_v49 = vsel %vm7728_vm0, %v8347_v31, %v8346_v5 }
 0x758   : > { %v8216_v58 = vsel %vm7737_vm7, %v8215_v50, %v8214_v16  ;;  %v8281_v41 = vsel %vm7731_vm5, %v8280_v51, %v8279_v47  ;;  %v8518_v19 = vld [vmem:[#allocation4 + $0x2c] sm:$0x1]  ;;  %v8351_v36 = vrot.slane %v8315_v26, 2  ;;  %v8416_v30 = vrot.slane %v8382_v39, 4  ;;  %v8384_v45 = vld [vmem:[#allocation4 + $0x6a] sm:$0x1] }
 0x759   : > { %8162 = vrot.lane.b32.xlu0 %v8147_v15, %s14588_s18  ;;  %v8283_v18 = vsel %vm7734_vm6, %v8282_v56, %v8281_v41  ;;  %v8284_v61 = vrot.slane %v8247_v43, 1  ;;  %v8349_v12 = vrot.slane %v8314_v22, 3  ;;  %v8451_v11 = vld [vmem:[#allocation4 + $0x4b] sm:$0x1]  ;;  %v8316_v28 = vld [vmem:[#allocation4 + $0x79] sm:$0x1]  ;;  %v8415_v10 = vsel %vm7725_vm4, %v8414_v63, %v8413_v6 }
 0x75a   : > { %v8383_v32 = vld [vmem:[#allocation4 + $0x5a] sm:$0x1]  ;;  %v14590_v38 = vrot.slane %v13908_v2, 7  ;;  %v8483_v46 = vrot.slane %v8450_v24, 5  ;;  %v8550_v57 = vrot.slane %v8518_v19, 6  ;;  %v8417_v2 = vsel %vm7728_vm0, %v8416_v30, %v8415_v10 }
 0x75b   : > { %v8285_v13 = vsel %vm7737_vm7, %v8284_v61, %v8283_v18  ;;  %v8350_v0 = vsel %vm7731_vm5, %v8349_v12, %v8348_v49  ;;  %v8516_v14 = vld [vmem:[#allocation4 + $0xc] sm:$0x1]  ;;  %v8519_v1 = vld [vmem:[#allocation4 + $0x3c] sm:$0x1]  ;;  %v8587_v34 = vld [vmem:[#allocation4 + $0x2d] sm:$0x1] }
 0x75c   : > { %v8480_v42 = vsel %vm7719_vm2, %v14590_v38, %v8447_v59  ;;  %v8352_v53 = vsel %vm7734_vm6, %v8351_v36, %v8350_v0  ;;  %v8420_v9 = vrot.slane %v8384_v45, 2  ;;  %v8485_v62 = vrot.slane %v8451_v11, 4  ;;  %v8453_v35 = vld [vmem:[#allocation4 + $0x6b] sm:$0x1]  ;;  %v8520_v17 = vld [vmem:[#allocation4 + $0x4c] sm:$0x1] }
 0x75d   : > { %8231 = vrot.lane.b32.xlu0 %v8216_v58, %s14589_s24  ;;  %v8482_v48 = vsel %vm7722_vm3, %v8481_v52, %v8480_v42  ;;  %v8353_v4 = vrot.slane %v8316_v28, 1  ;;  %v8418_v40 = vrot.slane %v8383_v32, 3  ;;  %v8385_v37 = vld [vmem:[#allocation4 + $0x7a] sm:$0x1]  ;;  %v8452_v23 = vld [vmem:[#allocation4 + $0x5b] sm:$0x1]  ;;  %v8549_v27 = vsel %vm7719_vm2, %v8548_v3, %v8516_v14 }
 0x75e   : > { %v8552_v15 = vrot.slane %v8519_v1, 5  ;;  %v8619_v20 = vrot.slane %v8587_v34, 6  ;;  %v8484_v33 = vsel %vm7725_vm4, %v8483_v46, %v8482_v48  ;;  %v8551_v60 = vsel %vm7722_vm3, %v8550_v57, %v8549_v27  ;;  %v8585_v16 = vld [vmem:[#allocation4 + $0xd] sm:$0x1]  ;;  %v8588_v47 = vld [vmem:[#allocation4 + $0x3d] sm:$0x1] }
 0x75f   : > { %v8354_v54 = vsel %vm7737_vm7, %v8353_v4, %v8352_v53  ;;  %v8419_v7 = vsel %vm7731_vm5, %v8418_v40, %v8417_v2  ;;  %v8655_v56 = vld [vmem:[#allocation4 + $0x1e] sm:$0x1]  ;;  %v8486_v55 = vsel %vm7728_vm0, %v8485_v62, %v8484_v33  ;;  %v8489_v3 = vrot.slane %v8453_v35, 2  ;;  %v8656_v51 = vld [vmem:[#allocation4 + $0x2e] sm:$0x1] }
 0x760   : > { %v8421_v31 = vsel %vm7734_vm6, %v8420_v9, %v8419_v7  ;;  %v8554_v50 = vrot.slane %v8520_v17, 4  ;;  %v8422_v26 = vrot.slane %v8385_v37, 1  ;;  %v8487_v39 = vrot.slane %v8452_v23, 3  ;;  %v8522_v43 = vld [vmem:[#allocation4 + $0x6c] sm:$0x1] }
 0x761   : > { %8300 = vrot.lane.b32.xlu0 %v8285_v13, %s14564_s12  ;;  %v8589_v22 = vld [vmem:[#allocation4 + $0x4d] sm:$0x1]  ;;  %v8654_v8 = vld [vmem:[#allocation4 + $0xe] sm:$0x1]  ;;  %v8454_v63 = vld [vmem:[#allocation4 + $0x7b] sm:$0x1]  ;;  %v8553_v58 = vsel %vm7725_vm4, %v8552_v15, %v8551_v60  ;;  %v8618_v41 = vsel %vm7719_vm2, %v8617_v21, %v8585_v16 }
 0x762   : > { %v8521_v52 = vld [vmem:[#allocation4 + $0x5c] sm:$0x1]  ;;  %v8621_v5 = vrot.slane %v8588_v47, 5  ;;  %v8686_v6 = vrot.slane %v8655_v56, 7  ;;  %v8423_v59 = vsel %vm7737_vm7, %v8422_v26, %v8421_v31  ;;  %v8488_v24 = vsel %vm7731_vm5, %v8487_v39, %v8486_v55  ;;  %v8657_v18 = vld [vmem:[#allocation4 + $0x3e] sm:$0x1] }
 0x763   : > { %v8620_v19 = vsel %vm7722_vm3, %v8619_v20, %v8618_v41  ;;  %v8688_v49 = vrot.slane %v8656_v51, 6  ;;  %v8724_v36 = vld [vmem:[#allocation4 + $0x1f] sm:$0x1]  ;;  %v8490_v30 = vsel %vm7734_vm6, %v8489_v3, %v8488_v24  ;;  %v8555_v61 = vsel %vm7728_vm0, %v8554_v50, %v8553_v58  ;;  %v8725_v21 = vld [vmem:[#allocation4 + $0x2f] sm:$0x1]  ;;  %s10879_s12 = smov 120  }
 0x764   : > { %v8558_v44 = vrot.slane %v8522_v43, 2  ;;  %v8623_v12 = vrot.slane %v8589_v22, 4  ;;  %v8491_v45 = vrot.slane %v8454_v63, 1  ;;  %v8556_v11 = vrot.slane %v8521_v52, 3  ;;  %v8591_v28 = vld [vmem:[#allocation4 + $0x6d] sm:$0x1] }
 0x765   : > { %8369 = vrot.lane.b32.xlu0 %v8354_v54, %s14561_s20  ;;  %v8658_v32 = vld [vmem:[#allocation4 + $0x4e] sm:$0x1]  ;;  %v8523_v38 = vld [vmem:[#allocation4 + $0x7c] sm:$0x1]  ;;  %v8590_v42 = vld [vmem:[#allocation4 + $0x5d] sm:$0x1]  ;;  %v8622_v46 = vsel %vm7725_vm4, %v8621_v5, %v8620_v19  ;;  %v8687_v57 = vsel %vm7719_vm2, %v8686_v6, %v8654_v8 }
 0x766   : > { %v8690_v13 = vrot.slane %v8657_v18, 5  ;;  %v8755_v0 = vrot.slane %v8724_v36, 7  ;;  %v8492_v10 = vsel %vm7737_vm7, %v8491_v45, %v8490_v30  ;;  %v8557_v48 = vsel %vm7731_vm5, %v8556_v11, %v8555_v61  ;;  %v8723_v1 = vld [vmem:[#allocation4 + $0xf] sm:$0x1]  ;;  %v8660_v35 = vld [vmem:[#allocation4 + $0x6e] sm:$0x1] }
 0x767   : > { %v8689_v14 = vsel %vm7722_vm3, %v8688_v49, %v8687_v57  ;;  %v8757_v34 = vrot.slane %v8725_v21, 6  ;;  %v8559_v53 = vsel %vm7734_vm6, %v8558_v44, %v8557_v48  ;;  %v8624_v2 = vsel %vm7728_vm0, %v8623_v12, %v8622_v46  ;;  %v8727_v17 = vld [vmem:[#allocation4 + $0x4f] sm:$0x1]  ;;  %v8592_v37 = vld [vmem:[#allocation4 + $0x7d] sm:$0x1]  ;;  %s14563_s20 = smov 104  }
 0x768   : > { %v8627_v9 = vrot.slane %v8591_v28, 2  ;;  %v8692_v62 = vrot.slane %v8658_v32, 4  ;;  %v8560_v4 = vrot.slane %v8523_v38, 1  ;;  %v8625_v40 = vrot.slane %v8590_v42, 3  ;;  %v8659_v23 = vld [vmem:[#allocation4 + $0x5e] sm:$0x1] }
 0x769   : > { %8438 = vrot.lane.b32.xlu0 %v8423_v59, %s14579_s17  ;;  %v8726_v27 = vld [vmem:[#allocation4 + $0x3f] sm:$0x1]  ;;  %v8756_v15 = vsel %vm7719_vm2, %v8755_v0, %v8723_v1  ;;  %v8691_v7 = vsel %vm7725_vm4, %v8690_v13, %v8689_v14  ;;  %v8696_v47 = vrot.slane %v8660_v35, 2  ;;  %v8761_v56 = vrot.slane %v8727_v17, 4  ;;  %v8729_v3 = vld [vmem:[#allocation4 + $0x6f] sm:$0x1] }
 0x76a   : > { %v8561_v20 = vsel %vm7737_vm7, %v8560_v4, %v8559_v53  ;;  %v8626_v54 = vsel %vm7731_vm5, %v8625_v40, %v8624_v2  ;;  %v8758_v33 = vsel %vm7722_vm3, %v8757_v34, %v8756_v15  ;;  %v8693_v16 = vsel %vm7728_vm0, %v8692_v62, %v8691_v7  ;;  %v8661_v51 = vld [vmem:[#allocation4 + $0x7e] sm:$0x1]  ;;  %v8728_v26 = vld [vmem:[#allocation4 + $0x5f] sm:$0x1]  ;;  %v14155_v21 = vld [vmem:[%s14532_s7 + $0x1] ss:$0 sm:$0xff] }
 0x76b   : > { %v8628_v60 = vsel %vm7734_vm6, %v8627_v9, %v8626_v54  ;;  %v8629_v31 = vrot.slane %v8592_v37, 1  ;;  %v8694_v55 = vrot.slane %v8659_v23, 3  ;;  %v8759_v50 = vrot.slane %v8726_v27, 5  ;;  %v8730_v6 = vld [vmem:[#allocation4 + $0x7f] sm:$0x1] }
 0x76c   : > { %v8765_v52 = vrot.slane %v8729_v3, 2  ;;  %v8698_v41 = vrot.slane %v8661_v51, 1  ;;  %v8763_v5 = vrot.slane %v8728_v26, 3  ;;  %v8767_v44 = vrot.slane %v8730_v6, 1 }
 0x76d   : > { %8507 = vrot.lane.b32.xlu0 %v8492_v10, %s14581_s10  ;;  %v8630_v39 = vsel %vm7737_vm7, %v8629_v31, %v8628_v60  ;;  %v8695_v43 = vsel %vm7731_vm5, %v8694_v55, %v8693_v16  ;;  %v8760_v22 = vsel %vm7725_vm4, %v8759_v50, %v8758_v33 }
 0x76e   : > { %v8697_v8 = vsel %vm7734_vm6, %v8696_v47, %v8695_v43  ;;  %v8762_v63 = vsel %vm7728_vm0, %v8761_v56, %v8760_v22 }
 0x76f   : > { %v8699_v19 = vsel %vm7737_vm7, %v8698_v41, %v8697_v8  ;;  %v8764_v18 = vsel %vm7731_vm5, %v8763_v5, %v8762_v63 }
 0x770   : > { %v8766_v36 = vsel %vm7734_vm6, %v8765_v52, %v8764_v18 }
 0x771   : > { %8576 = vrot.lane.b32.xlu0 %v8561_v20, %s14562_s13  ;;  %s10878_s13 = smov 112   ;;  %v8768_v46 = vsel %vm7737_vm7, %v8767_v44, %v8766_v36 }
 0x775   : > { %8645 = vrot.lane.b32.xlu0 %v8630_v39, %s14563_s20  ;;  %s14591_s20 = smov 64  }
 0x776   : > { %v10642_v58 = vpop.f32.mrf.mxu0 }
 0x777   : > { %v7197_v32 = vadd.f32 %v13862_v25, %v10642_v58 }
 0x778   : > { %v7188_v59 = vpop.f32.mrf.mxu0  ;;  %v10678_v24 = vpop.f32.mrf.mxu1 }
 0x779   : > { %v7528_v49 = vadd.f32 %v10678_v24, %v13776_v29  ;;  %8714 = vrot.lane.b32.xlu0 %v8699_v19, %s10878_s13  ;;  %v7189_v12 = vadd.f32 %v13862_v25, %v7188_v59  ;;  %v7233_v9 = vmax.f32 %v7197_v32, 0.0 }
 0x77a   : > { %v10643_v30 = vpop.f32.mrf.mxu0  ;;  %v7519_v61 = vpop.f32.mrf.mxu1 }
 0x77b   : > { %v7608_v45 = vadd.f32 %v14155_v21, %v7528_v49  ;;  %v7200_v11 = vadd.f32 %v13862_v25, %v10643_v30  ;;  %v7520_v28 = vadd.f32 %v7519_v61, %v13776_v29  ;;  %v7231_v1 = vmax.f32 %v7189_v12, 0.0 }
 0x77c   : > { %v7191_v38 = vpop.f32.mrf.mxu0  ;;  %v10679_v42 = vpop.f32.mrf.mxu1 }
 0x77d   : > { %v7640_v57 = vmax.f32 %v7608_v45, 0.0  ;;  %v7606_v13 = vadd.f32 %v14155_v21, %v7520_v28  ;;  %v7192_v0 = vadd.f32 %v13862_v25, %v7191_v38  ;;  %8783 = vrot.lane.b32.xlu0 %v8768_v46, %s10879_s12  ;;  %v7234_v10 = vmax.f32 %v7200_v11, 0.0 }
 0x77e   : > { %v7531_v48 = vadd.f32 %v10679_v42, %v13776_v29  ;;  %v7522_v14 = vpop.f32.mrf.mxu1 }
 0x77f   : > { %7672 = vst.msk [vmem:[#allocation4 + $0x90] sm:$0xff] %vm7308_vm15, %v7640_v57  ;;  %v7638_v34 = vmax.f32 %v7606_v13, 0.0  ;;  %v7232_v53 = vmax.f32 %v7192_v0, 0.0  ;;  %v7523_v2 = vadd.f32 %v7522_v14, %v13776_v29  ;;  %v7250_v40 = vpack.c.bf16 %v7234_v10, %v7233_v9 }
 0x780   : > { %v7609_v62 = vadd.f32 %v14155_v21, %v7531_v48 }
 0x781   : > { %7670 = vst.msk [vmem:[#allocation4 + $0x80] sm:$0xff] %vm7308_vm15, %v7638_v34  ;;  %v7249_v25 = vpack.c.bf16 %v7232_v53, %v7231_v1  ;;  %v7607_v4 = vadd.f32 %v14155_v21, %v7523_v2 }
 0x782   : > { %v7641_v35 = vmax.f32 %v7609_v62, 0.0 }
 0x783   : > { %v7639_v17 = vmax.f32 %v7607_v4, 0.0  ;;  %10688 = vmatprep.mubr.msk.bf16.mxu1 %vm7372_vm1, %v7249_v25 }
 0x784   : > { %7673 = vst.msk [vmem:[#allocation4 + $0x98] sm:$0xff] %vm7308_vm15, %v7641_v35  ;;  %10689 = vmatmul.mubr.msk.bf16.gmra.mxu1 %vm7372_vm1, %v7250_v40  ;;  %vm14570_vm1 = vcmask 589312  }
 0x785   : > { %7671 = vst.msk [vmem:[#allocation4 + $0x88] sm:$0xff] %vm7308_vm15, %v7639_v17 }
 0x786   : > { %v7766_v0 = vld [vmem:[#allocation4 + $0x91] sm:$0x1]  ;;  %v7835_v10 = vld [vmem:[#allocation4 + $0x92] sm:$0x1]  ;;  %v7904_v14 = vld [vmem:[#allocation4 + $0x93] sm:$0x1] }
 0x787   : > { %v14229_v1 = vld [vmem:[#allocation4 + $0x94] sm:$0x1]  ;;  %v14231_v34 = vld [vmem:[#allocation4 + $0x95] sm:$0x1]  ;;  %v14234_v2 = vld [vmem:[#allocation4 + $0x96] sm:$0x1] }
 0x788   : > { %v14236_v9 = vld [vmem:[#allocation4 + $0x97] sm:$0x1]  ;;  %v7803_v4 = vrot.slane %v7766_v0, 7  ;;  %v7872_v40 = vrot.slane %v7835_v10, 7 }
 0x78b   : > { %v14238_v62 = vld [vmem:[#allocation4 + $0x98] sm:$0x1]  ;;  %v14240_v35 = vld [vmem:[#allocation4 + $0x99] sm:$0x1] }
 0x7b7   : > { %v7818_v37 = vpop.permute.xlu0 %7817 }
 0x7b8   : > { %7824 = vst.msk [vmem:[%s14066_s23] sm:$0xff] %vm7823_vm8, %v7818_v37 }
 0x7bb   : > { %v7887_v23 = vpop.permute.xlu0 %7886 }
 0x7bc   : > { %7893 = vst.msk [vmem:[%s14066_s23] sm:$0xff] %vm7892_vm9, %v7887_v23  ;;  %v7765_v23 = vld [vmem:[#allocation4 + $0x81] sm:$0x1] }
 0x7bf   : > { %v7956_v27 = vpop.permute.xlu0 %7955 }
 0x7c0   : > { %7962 = vst.msk [vmem:[%s14066_s23] sm:$0xff] %vm14569_vm10, %v7956_v27  ;;  %v10682_v15 = vpop.f32.mrf.mxu1  ;;  %vm8651_vm10 = vcmask 917312   ;;  %v7941_v27 = vrot.slane %v7904_v14, 7  ;;  %v7694_v14 = vld [vmem:[#allocation4 + $0x80] sm:$0x1] }
 0x7c1   : > { %v7544_v20 = vadd.f32 %v10682_v15, %v13776_v29  ;;  %v8010_v15 = vrot.slane %v14229_v1, 7 }
 0x7c2   : > { %v7535_v54 = vpop.f32.mrf.mxu1 }
 0x7c3   : > { %v7612_v7 = vadd.f32 %v14155_v21, %v7544_v20  ;;  %v7536_v33 = vadd.f32 %v7535_v54, %v13776_v29  ;;  %v8025_v60 = vpop.permute.xlu0 %8024 }
 0x7c4   : > { %8031 = vst.msk [vmem:[%s14066_s23] sm:$0xff] %vm14566_vm11, %v8025_v60  ;;  %v10683_v16 = vpop.f32.mrf.mxu1  ;;  %vm8444_vm11 = vcmask 720512   ;;  %v8217_v60 = vrot.slane %v14236_v9, 7 }
 0x7c5   : > { %v7644_v47 = vmax.f32 %v7612_v7, 0.0  ;;  %v7610_v56 = vadd.f32 %v14155_v21, %v7536_v33  ;;  %v7547_v31 = vadd.f32 %v10683_v16, %v13776_v29  ;;  %v8079_v7 = vrot.slane %v14231_v34, 7 }
 0x7c6   : > { %v7538_v55 = vpop.f32.mrf.mxu1  ;;  %v8148_v33 = vrot.slane %v14234_v2, 7  ;;  %v8286_v16 = vrot.slane %v14238_v62, 7 }
 0x7c7   : > { %7676 = vst.msk [vmem:[#allocation4 + $0xb0] sm:$0xff] %vm7308_vm15, %v7644_v47  ;;  %v7642_v3 = vmax.f32 %v7610_v56, 0.0  ;;  %v7613_v50 = vadd.f32 %v14155_v21, %v7547_v31  ;;  %v7539_v51 = vadd.f32 %v7538_v55, %v13776_v29  ;;  %v8094_v26 = vpop.permute.xlu0 %8093  ;;  %v7834_v55 = vld [vmem:[#allocation4 + $0x82] sm:$0x1] }
 0x7c8   : > { %8100 = vst.msk [vmem:[%s14066_s23] sm:$0xff] %vm14565_vm12, %v8094_v26  ;;  %vm14571_vm12 = vcmask 654912  }
 0x7c9   : > { %7674 = vst.msk [vmem:[#allocation4 + $0xa0] sm:$0xff] %vm7308_vm15, %v7642_v3  ;;  %v7645_v39 = vmax.f32 %v7613_v50, 0.0  ;;  %v7611_v43 = vadd.f32 %v14155_v21, %v7539_v51  ;;  %v7903_v3 = vld [vmem:[#allocation4 + $0x83] sm:$0x1]  ;;  %v8355_v50 = vrot.slane %v14240_v35, 7 }
 0x7ca   : > { %v14252_v51 = vld [vmem:[#allocation4 + $0x9a] sm:$0x1] }
 0x7cb   : > { %7677 = vst.msk [vmem:[#allocation4 + $0xb8] sm:$0xff] %vm7308_vm15, %v7645_v39  ;;  %v7643_v22 = vmax.f32 %v7611_v43, 0.0  ;;  %v8163_v8 = vpop.permute.xlu0 %8162 }
 0x7cc   : > { %8169 = vst.msk [vmem:[%s14066_s23] sm:$0xff] %vm14567_vm13, %v8163_v8  ;;  %vm8513_vm13 = vcmask 786112  }
 0x7cd   : > { %7675 = vst.msk [vmem:[#allocation4 + $0xa8] sm:$0xff] %vm7308_vm15, %v7643_v22  ;;  %v14254_v22 = vld [vmem:[#allocation4 + $0x9b] sm:$0x1] }
 0x7cf   : > { %v8232_v63 = vpop.permute.xlu0 %8231 }
 0x7d0   : > { %8238 = vst.msk [vmem:[%s14066_s23] sm:$0xff] %vm14568_vm14, %v8232_v63  ;;  %vm8582_vm14 = vcmask 851712   ;;  %v7767_v54 = vld [vmem:[#allocation4 + $0xa1] sm:$0x1]  ;;  %v7836_v39 = vld [vmem:[#allocation4 + $0xa2] sm:$0x1] }
 0x7d1   : > { %v7905_v43 = vld [vmem:[#allocation4 + $0xa3] sm:$0x1]  ;;  %v14291_v1 = vld [vmem:[#allocation4 + $0xa7] sm:$0x1] }
 0x7d3   : > { %v8301_v52 = vpop.permute.xlu0 %8300 }
 0x7d4   : > { %8307 = vst.msk [vmem:[%s14066_s23] sm:$0xff] %vm14570_vm1, %v8301_v52  ;;  %vm8720_vm1 = vcmask 982912  }
 0x7d7   : > { %v8370_v58 = vpop.permute.xlu0 %8369 }
 0x7d8   : > { %8376 = vst.msk [vmem:[%s14066_s23] sm:$0xff] %vm14571_vm12, %v8370_v58  ;;  %vm8789_vm12 = vcmask 1048512   ;;  %v7768_v58 = vld [vmem:[#allocation4 + $0xb1] sm:$0x1] }
 0x7db   : > { %v8439_v41 = vpop.permute.xlu0 %8438 }
 0x7dc   : > { %8445 = vst.msk [vmem:[%s14066_s23] sm:$0xff] %vm8444_vm11, %v8439_v41  ;;  %v7805_v41 = vrot.slane %v7767_v54, 6  ;;  %v14277_v54 = vld [vmem:[#allocation4 + $0xa6] sm:$0x1] }
 0x7df   : > { %v8508_v5 = vpop.permute.xlu0 %8507 }
 0x7e0   : > { %8514 = vst.msk [vmem:[%s14066_s23] sm:$0xff] %vm8513_vm13, %v8508_v5  ;;  %v7695_v5 = vld [vmem:[#allocation4 + $0x90] sm:$0x1] }
 0x7e3   : > { %v8577_v6 = vpop.permute.xlu0 %8576 }
 0x7e4   : > { %8583 = vst.msk [vmem:[%s14066_s23] sm:$0xff] %vm8582_vm14, %v8577_v6 }
 0x7e7   : > { %v8646_v59 = vpop.permute.xlu0 %8645 }
 0x7e8   : > { %8652 = vst.msk [vmem:[%s14066_s23] sm:$0xff] %vm8651_vm10, %v8646_v59  ;;  %v7804_v59 = vsel %vm7719_vm2, %v7803_v4, %v7765_v23 }
 0x7eb   : > { %v8715_v24 = vpop.permute.xlu0 %8714 }
 0x7ec   : > { %8721 = vst.msk [vmem:[%s14066_s23] sm:$0xff] %vm8720_vm1, %v8715_v24  ;;  %v7837_v24 = vld [vmem:[#allocation4 + $0xb2] sm:$0x1] }
 0x7ed   : > { %v7876_v0 = vrot.slane %v7837_v24, 5 }
 0x7ef   : > { %v8784_v19 = vpop.permute.xlu0 %8783 }
 0x7f0   : > { %8790 = vst.msk [vmem:[%s14066_s23] sm:$0xff] %vm8789_vm12, %v8784_v19  ;;  %v7906_v19 = vld [vmem:[#allocation4 + $0xb3] sm:$0x1] }
 0x7f1   : > { %v7945_v10 = vrot.slane %v7906_v19, 5 }
 0x808   : > { %v10686_v18 = vpop.f32.mrf.mxu1 }
 0x809   : > { %v7560_v49 = vadd.f32 %v10686_v18, %v13776_v29 }
 0x80a   : > { %v7551_v36 = vpop.f32.mrf.mxu1 }
 0x80b   : > { %v7616_v30 = vadd.f32 %v14155_v21, %v7560_v49  ;;  %v7552_v61 = vadd.f32 %v7551_v36, %v13776_v29  ;;  %v7874_v36 = vrot.slane %v7836_v39, 6  ;;  %v7696_v39 = vld [vmem:[#allocation4 + $0xa0] sm:$0x1] }
 0x80c   : > { %v10687_v44 = vpop.f32.mrf.mxu1 }
 0x80d   : > { %v7648_v12 = vmax.f32 %v7616_v30, 0.0  ;;  %v7614_v45 = vadd.f32 %v14155_v21, %v7552_v61  ;;  %v7563_v11 = vadd.f32 %v10687_v44, %v13776_v29  ;;  %v7943_v30 = vrot.slane %v7905_v43, 6  ;;  %v14262_v61 = vld [vmem:[#allocation4 + $0xb4] sm:$0x1] }
 0x80e   : > { %v7554_v28 = vpop.f32.mrf.mxu1 }
 0x80f   : > { %7680 = vst.msk [vmem:[#allocation4 + $0xd0] sm:$0xff] %vm7308_vm15, %v7648_v12  ;;  %v7646_v32 = vmax.f32 %v7614_v45, 0.0  ;;  %v7617_v38 = vadd.f32 %v14155_v21, %v7563_v11  ;;  %v7555_v42 = vadd.f32 %v7554_v28, %v13776_v29  ;;  %v7942_v12 = vsel %vm7719_vm2, %v7941_v27, %v7903_v3  ;;  %v7972_v45 = vld [vmem:[#allocation4 + $0x84] sm:$0x1] }
 0x810   : > { %v7974_v11 = vld [vmem:[#allocation4 + $0xa4] sm:$0x1]  ;;  %v8424_v28 = vrot.slane %v14252_v51, 7 }
 0x811   : > { %7678 = vst.msk [vmem:[#allocation4 + $0xc0] sm:$0xff] %vm7308_vm15, %v7646_v32  ;;  %v7649_v46 = vmax.f32 %v7617_v38, 0.0  ;;  %v7615_v57 = vadd.f32 %v14155_v21, %v7555_v42  ;;  %v8493_v32 = vrot.slane %v14254_v22, 7 }
 0x813   : > { %7681 = vst.msk [vmem:[#allocation4 + $0xd8] sm:$0xff] %vm7308_vm15, %v7649_v46  ;;  %v7647_v13 = vmax.f32 %v7615_v57, 0.0  ;;  %v8041_v46 = vld [vmem:[#allocation4 + $0x85] sm:$0x1]  ;;  %v7739_v57 = vrot.slane %v7695_v5, 7 }
 0x814   : > { %v8080_v3 = vsel %vm7719_vm2, %v8079_v7, %v8041_v46 }
 0x815   : > { %7679 = vst.msk [vmem:[#allocation4 + $0xc8] sm:$0xff] %vm7308_vm15, %v7647_v13  ;;  %v7807_v13 = vrot.slane %v7768_v58, 5  ;;  %v7740_v43 = vsel %vm7719_vm2, %v7739_v57, %v7694_v14 }
 0x818   : > { %v7769_v6 = vld [vmem:[#allocation4 + $0xc1] sm:$0x1]  ;;  %v7838_v44 = vld [vmem:[#allocation4 + $0xc2] sm:$0x1]  ;;  %v7907_v27 = vld [vmem:[#allocation4 + $0xc3] sm:$0x1] }
 0x819   : > { %v7809_v42 = vrot.slane %v7769_v6, 4  ;;  %v7878_v4 = vrot.slane %v7838_v44, 4  ;;  %v7947_v7 = vrot.slane %v7907_v27, 4  ;;  %v8045_v57 = vld [vmem:[#allocation4 + $0xc5] sm:$0x1] }
 0x844   : > { %v10690_v48 = vpop.f32.mrf.mxu1 }
 0x845   : > { %v7576_v53 = vadd.f32 %v10690_v48, %v13776_v29  ;;  %v8014_v48 = vrot.slane %v14262_v61, 5  ;;  %v8046_v61 = vld [vmem:[#allocation4 + $0xd5] sm:$0x1] }
 0x846   : > { %v7567_v25 = vpop.f32.mrf.mxu1 }
 0x847   : > { %v7620_v17 = vadd.f32 %v14155_v21, %v7576_v53  ;;  %v7568_v37 = vadd.f32 %v7567_v25, %v13776_v29  ;;  %v7770_v53 = vld [vmem:[#allocation4 + $0xd1] sm:$0x1] }
 0x848   : > { %v10691_v20 = vpop.f32.mrf.mxu1 }
 0x849   : > { %v7652_v47 = vmax.f32 %v7620_v17, 0.0  ;;  %v7618_v56 = vadd.f32 %v14155_v21, %v7568_v37  ;;  %v7579_v31 = vadd.f32 %v10691_v20, %v13776_v29  ;;  %v8012_v17 = vrot.slane %v7974_v11, 6  ;;  %v8043_v37 = vld [vmem:[#allocation4 + $0xa5] sm:$0x1]  ;;  %v14275_v20 = vld [vmem:[#allocation4 + $0xb5] sm:$0x1] }
 0x84a   : > { %v7570_v26 = vpop.f32.mrf.mxu1  ;;  %v8081_v5 = vrot.slane %v8043_v37, 6  ;;  %v8150_v11 = vrot.slane %v14277_v54, 6 }
 0x84b   : > { %7684 = vst.msk [vmem:[#allocation4 + $0xf0] sm:$0xff] %vm7308_vm15, %v7652_v47  ;;  %v7650_v8 = vmax.f32 %v7618_v56, 0.0  ;;  %v7621_v63 = vadd.f32 %v14155_v21, %v7579_v31  ;;  %v7571_v52 = vadd.f32 %v7570_v26, %v13776_v29  ;;  %v7873_v29 = vsel %vm7719_vm2, %v7872_v40, %v7834_v55  ;;  %v7839_v31 = vld [vmem:[#allocation4 + $0xd2] sm:$0x1]  ;;  %v14286_v26 = vld [vmem:[#allocation4 + $0xb6] sm:$0x1] }
 0x84c   : > { %v7875_v25 = vsel %vm7722_vm3, %v7874_v36, %v7873_v29  ;;  %v7944_v40 = vsel %vm7722_vm3, %v7943_v30, %v7942_v12  ;;  %v8011_v55 = vsel %vm7719_vm2, %v8010_v15, %v7972_v45  ;;  %v8083_v36 = vrot.slane %v14275_v20, 5  ;;  %v14296_v30 = vld [vmem:[#allocation4 + $0xb7] sm:$0x1]  ;;  %v7908_v12 = vld [vmem:[#allocation4 + $0xd3] sm:$0x1] }
 0x84d   : > { %7682 = vst.msk [vmem:[#allocation4 + $0xe0] sm:$0xff] %vm7308_vm15, %v7650_v8  ;;  %v7653_v18 = vmax.f32 %v7621_v63, 0.0  ;;  %v7619_v49 = vadd.f32 %v14155_v21, %v7571_v52  ;;  %v7806_v21 = vsel %vm7722_vm3, %v7805_v41, %v7804_v59  ;;  %v7811_v63 = vrot.slane %v7770_v53, 3  ;;  %v7976_v59 = vld [vmem:[#allocation4 + $0xc4] sm:$0x1] }
 0x84e   : > { %v7808_v23 = vsel %vm7725_vm4, %v7807_v13, %v7806_v21  ;;  %v7877_v58 = vsel %vm7725_vm4, %v7876_v0, %v7875_v25  ;;  %v7946_v41 = vsel %vm7725_vm4, %v7945_v10, %v7944_v40  ;;  %v8013_v45 = vsel %vm7722_vm3, %v8012_v17, %v8011_v55  ;;  %v7697_v0 = vld [vmem:[#allocation4 + $0xb0] sm:$0x1]  ;;  %v7977_v25 = vld [vmem:[#allocation4 + $0xd4] sm:$0x1]  ;;  %v14308_v17 = vld [vmem:[#allocation4 + $0xa8] sm:$0x1] }
 0x84f   : > { %7685 = vst.msk [vmem:[#allocation4 + $0xf8] sm:$0xff] %vm7308_vm15, %v7653_v18  ;;  %v7651_v38 = vmax.f32 %v7619_v49, 0.0  ;;  %v7810_v56 = vsel %vm7728_vm0, %v7809_v42, %v7808_v23  ;;  %v7879_v34 = vsel %vm7728_vm0, %v7878_v4, %v7877_v58  ;;  %v7880_v18 = vrot.slane %v7839_v31, 3  ;;  %v8110_v4 = vld [vmem:[#allocation4 + $0x86] sm:$0x1] }
 0x850   : > { %v7812_v24 = vsel %vm7731_vm5, %v7811_v63, %v7810_v56  ;;  %v8016_v46 = vrot.slane %v7976_v59, 4  ;;  %v8152_v13 = vrot.slane %v14286_v26, 5  ;;  %v7948_v14 = vsel %vm7728_vm0, %v7947_v7, %v7946_v41  ;;  %v8114_v41 = vld [vmem:[#allocation4 + $0xc6] sm:$0x1] }
 0x851   : > { %7683 = vst.msk [vmem:[#allocation4 + $0xe8] sm:$0xff] %vm7308_vm15, %v7651_v38  ;;  %v7741_v38 = vrot.slane %v7696_v39, 6  ;;  %v7881_v42 = vsel %vm7731_vm5, %v7880_v18, %v7879_v34  ;;  %v8219_v40 = vrot.slane %v14291_v1, 6  ;;  %v7949_v23 = vrot.slane %v7908_v12, 3 }
 0x852   : > { %v7772_v47 = vld [vmem:[#allocation4 + $0xf1] sm:$0x1]  ;;  %v7841_v29 = vld [vmem:[#allocation4 + $0xf2] sm:$0x1]  ;;  %v8015_v20 = vsel %vm7725_vm4, %v8014_v48, %v8013_v45  ;;  %v8082_v54 = vsel %vm7722_vm3, %v8081_v5, %v8080_v3  ;;  %v7910_v56 = vld [vmem:[#allocation4 + $0xf3] sm:$0x1]  ;;  %v8149_v7 = vsel %vm7719_vm2, %v8148_v33, %v8110_v4 }
 0x853   : > { %v7815_v19 = vrot.slane %v7772_v47, 1  ;;  %v7884_v37 = vrot.slane %v7841_v29, 1  ;;  %v7698_v47 = vld [vmem:[#allocation4 + $0xc0] sm:$0x1]  ;;  %v8085_v31 = vrot.slane %v8045_v57, 4  ;;  %v8221_v55 = vrot.slane %v14296_v30, 5 }
 0x854   : > { %v7771_v8 = vld [vmem:[#allocation4 + $0xe1] sm:$0x1]  ;;  %v7840_v52 = vld [vmem:[#allocation4 + $0xe2] sm:$0x1]  ;;  %v7909_v49 = vld [vmem:[#allocation4 + $0xe3] sm:$0x1]  ;;  %v7742_v39 = vsel %vm7722_vm3, %v7741_v38, %v7740_v43  ;;  %v7950_v63 = vsel %vm7731_vm5, %v7949_v23, %v7948_v14  ;;  %v8084_v43 = vsel %vm7725_vm4, %v8083_v36, %v8082_v54  ;;  %v8151_v18 = vsel %vm7722_vm3, %v8150_v11, %v8149_v7 }
 0x855   : > { %v7813_v15 = vrot.slane %v7771_v8, 2  ;;  %v7882_v6 = vrot.slane %v7840_v52, 2  ;;  %v7951_v53 = vrot.slane %v7909_v49, 2  ;;  %v7978_v27 = vld [vmem:[#allocation4 + $0xe4] sm:$0x1]  ;;  %v7743_v26 = vrot.slane %v7697_v0, 5 }
 0x856   : > { %v8017_v52 = vsel %vm7728_vm0, %v8016_v46, %v8015_v20  ;;  %v8018_v58 = vrot.slane %v7977_v25, 3  ;;  %v8020_v3 = vrot.slane %v7978_v27, 2  ;;  %v7699_v5 = vld [vmem:[#allocation4 + $0xd0] sm:$0x1]  ;;  %v7745_v1 = vrot.slane %v7698_v47, 4 }
 0x857   : > { %v7814_v44 = vsel %vm7734_vm6, %v7813_v15, %v7812_v24  ;;  %v7883_v10 = vsel %vm7734_vm6, %v7882_v6, %v7881_v42  ;;  %v7952_v48 = vsel %vm7734_vm6, %v7951_v53, %v7950_v63  ;;  %v7953_v15 = vrot.slane %v7910_v56, 1  ;;  %v7979_v34 = vld [vmem:[#allocation4 + $0xf4] sm:$0x1]  ;;  %v8047_v6 = vld [vmem:[#allocation4 + $0xe5] sm:$0x1] }
 0x858   : > { %v7816_v21 = vsel %vm7737_vm7, %v7815_v19, %v7814_v44  ;;  %v7885_v8 = vsel %vm7737_vm7, %v7884_v37, %v7883_v10  ;;  %v8288_v59 = vrot.slane %v14308_v17, 6  ;;  %v8019_v24 = vsel %vm7731_vm5, %v8018_v58, %v8017_v52  ;;  %v8179_v49 = vld [vmem:[#allocation4 + $0x87] sm:$0x1]  ;;  %v8116_v46 = vld [vmem:[#allocation4 + $0xe6] sm:$0x1] }
 0x859   : > { %7819 = vrot.lane.b32.xlu1 %v7816_v21, %s14583_s19  ;;  %v8086_v19 = vsel %vm7728_vm0, %v8085_v31, %v8084_v43  ;;  %v7744_v44 = vsel %vm7725_vm4, %v7743_v26, %v7742_v39  ;;  %v7954_v29 = vsel %vm7737_vm7, %v7953_v15, %v7952_v48  ;;  %v8087_v12 = vrot.slane %v8046_v61, 3  ;;  %v8183_v36 = vld [vmem:[#allocation4 + $0xc7] sm:$0x1]  ;;  %v8248_v57 = vld [vmem:[#allocation4 + $0x88] sm:$0x1] }
 0x85a   : > { %v8154_v45 = vrot.slane %v8114_v41, 4  ;;  %v7747_v38 = vrot.slane %v7699_v5, 3  ;;  %v8021_v2 = vsel %vm7734_vm6, %v8020_v3, %v8019_v24  ;;  %v8022_v33 = vrot.slane %v7979_v34, 1  ;;  %v7700_v0 = vld [vmem:[#allocation4 + $0xe0] sm:$0x1] }
 0x85b   : > { %v8089_v21 = vrot.slane %v8047_v6, 2  ;;  %v7746_v42 = vsel %vm7728_vm0, %v7745_v1, %v7744_v44  ;;  %v8218_v11 = vsel %vm7719_vm2, %v8217_v60, %v8179_v49  ;;  %v7701_v10 = vld [vmem:[#allocation4 + $0xf0] sm:$0x1]  ;;  %v8048_v14 = vld [vmem:[#allocation4 + $0xf5] sm:$0x1]  ;;  %v8153_v25 = vsel %vm7725_vm4, %v8152_v13, %v8151_v18 }
 0x85c   : > { %v8115_v53 = vld [vmem:[#allocation4 + $0xd6] sm:$0x1]  ;;  %v8220_v4 = vsel %vm7722_vm3, %v8219_v40, %v8218_v11  ;;  %v8223_v17 = vrot.slane %v8183_v36, 4  ;;  %v7749_v37 = vrot.slane %v7700_v0, 2  ;;  %v8023_v23 = vsel %vm7737_vm7, %v8022_v33, %v8021_v2  ;;  %v8251_v20 = vld [vmem:[#allocation4 + $0xb8] sm:$0x1] }
 0x85d   : > { %7888 = vrot.lane.b32.xlu1 %v7885_v8, %s14584_s25  ;;  %v8088_v27 = vsel %vm7731_vm5, %v8087_v12, %v8086_v19  ;;  %v8319_v54 = vld [vmem:[#allocation4 + $0xa9] sm:$0x1]  ;;  %v7751_v9 = vrot.slane %v7701_v10, 1  ;;  %v7748_v60 = vsel %vm7731_vm5, %v7747_v38, %v7746_v42  ;;  %v8155_v13 = vsel %vm7728_vm0, %v8154_v45, %v8153_v25  ;;  %v8185_v39 = vld [vmem:[#allocation4 + $0xe7] sm:$0x1]  ;;  %s14592_s25 = smov 72  }
 0x85e   : > { %v8090_v47 = vsel %vm7734_vm6, %v8089_v21, %v8088_v27  ;;  %v8158_v56 = vrot.slane %v8116_v46, 2  ;;  %v7750_v40 = vsel %vm7734_vm6, %v7749_v37, %v7748_v60  ;;  %v8091_v31 = vrot.slane %v8048_v14, 1  ;;  %v8252_v8 = vld [vmem:[#allocation4 + $0xc8] sm:$0x1]  ;;  %v8117_v52 = vld [vmem:[#allocation4 + $0xf6] sm:$0x1] }
 0x85f   : > { %v8156_v26 = vrot.slane %v8115_v53, 3  ;;  %v7752_v63 = vsel %vm7737_vm7, %v7751_v9, %v7750_v40  ;;  %v8184_v58 = vld [vmem:[#allocation4 + $0xd7] sm:$0x1]  ;;  %v8287_v61 = vsel %vm7719_vm2, %v8286_v16, %v8248_v57  ;;  %v8290_v48 = vrot.slane %v8251_v20, 5  ;;  %v8317_v34 = vld [vmem:[#allocation4 + $0x89] sm:$0x1] }
 0x860   : > { %v8357_v3 = vrot.slane %v8319_v54, 6  ;;  %7756 = vst.msk [vmem:[%s14066_s23 + $0x8] sm:$0xff] %vm7308_vm15, %v7752_v63  ;;  %v8092_v41 = vsel %vm7737_vm7, %v8091_v31, %v8090_v47  ;;  %v8222_v1 = vsel %vm7725_vm4, %v8221_v55, %v8220_v4  ;;  %v8289_v15 = vsel %vm7722_vm3, %v8288_v59, %v8287_v61  ;;  %v8320_v6 = vld [vmem:[#allocation4 + $0xb9] sm:$0x1]  ;;  %v14358_v43 = vld [vmem:[#allocation4 + $0x9c] sm:$0x1] }
 0x861   : > { %7957 = vrot.lane.b32.xlu1 %v7954_v29, %s14585_s26  ;;  %v8157_v5 = vsel %vm7731_vm5, %v8156_v26, %v8155_v13  ;;  %v8224_v16 = vsel %vm7728_vm0, %v8223_v17, %v8222_v1  ;;  %v8227_v7 = vrot.slane %v8185_v39, 2  ;;  %v8292_v24 = vrot.slane %v8252_v8, 4  ;;  %v8388_v19 = vld [vmem:[#allocation4 + $0xaa] sm:$0x1]  ;;  %v8254_v30 = vld [vmem:[#allocation4 + $0xe8] sm:$0x1] }
 0x862   : > { %v8159_v62 = vsel %vm7734_vm6, %v8158_v56, %v8157_v5  ;;  %v8160_v18 = vrot.slane %v8117_v52, 1  ;;  %v8225_v49 = vrot.slane %v8184_v58, 3  ;;  %v8321_v44 = vld [vmem:[#allocation4 + $0xc9] sm:$0x1]  ;;  %v8386_v55 = vld [vmem:[#allocation4 + $0x8a] sm:$0x1]  ;;  %v8291_v12 = vsel %vm7725_vm4, %v8290_v48, %v8289_v15 }
 0x863   : > { %v8186_v29 = vld [vmem:[#allocation4 + $0xf7] sm:$0x1]  ;;  %v8253_v59 = vld [vmem:[#allocation4 + $0xd8] sm:$0x1]  ;;  %v8356_v45 = vsel %vm7719_vm2, %v8355_v50, %v8317_v34  ;;  %v8359_v36 = vrot.slane %v8320_v6, 5  ;;  %v8562_v38 = vrot.slane %v14358_v43, 7  ;;  %v8293_v35 = vsel %vm7728_vm0, %v8292_v24, %v8291_v12 }
 0x864   : > { %v8161_v2 = vsel %vm7737_vm7, %v8160_v18, %v8159_v62  ;;  %v8226_v33 = vsel %vm7731_vm5, %v8225_v49, %v8224_v16  ;;  %v8358_v21 = vsel %vm7722_vm3, %v8357_v3, %v8356_v45  ;;  %v8389_v42 = vld [vmem:[#allocation4 + $0xba] sm:$0x1]  ;;  %v8426_v46 = vrot.slane %v8388_v19, 6  ;;  %v14371_v11 = vld [vmem:[#allocation4 + $0x9d] sm:$0x1] }
 0x865   : > { %8026 = vrot.lane.b32.xlu1 %v8023_v23, %s14586_s22  ;;  %v8228_v57 = vsel %vm7734_vm6, %v8227_v7, %v8226_v33  ;;  %v8296_v50 = vrot.slane %v8254_v30, 2  ;;  %v8361_v0 = vrot.slane %v8321_v44, 4  ;;  %v8457_v10 = vld [vmem:[#allocation4 + $0xab] sm:$0x1]  ;;  %v8229_v14 = vrot.slane %v8186_v29, 1 }
 0x866   : > { %v8294_v53 = vrot.slane %v8253_v59, 3  ;;  %v8323_v25 = vld [vmem:[#allocation4 + $0xe9] sm:$0x1]  ;;  %v8390_v4 = vld [vmem:[#allocation4 + $0xca] sm:$0x1]  ;;  %v8360_v27 = vsel %vm7725_vm4, %v8359_v36, %v8358_v21  ;;  %v8425_v20 = vsel %vm7719_vm2, %v8424_v28, %v8386_v55  ;;  %v8428_v54 = vrot.slane %v8389_v42, 5 }
 0x867   : > { %v8455_v17 = vld [vmem:[#allocation4 + $0x8b] sm:$0x1]  ;;  %v8255_v37 = vld [vmem:[#allocation4 + $0xf8] sm:$0x1]  ;;  %v8322_v23 = vld [vmem:[#allocation4 + $0xd9] sm:$0x1]  ;;  %v8230_v60 = vsel %vm7737_vm7, %v8229_v14, %v8228_v57  ;;  %v8427_v13 = vsel %vm7722_vm3, %v8426_v46, %v8425_v20  ;;  %v8362_v51 = vsel %vm7728_vm0, %v8361_v0, %v8360_v27 }
 0x868   : > { %v8631_v9 = vrot.slane %v14371_v11, 7  ;;  %v8295_v47 = vsel %vm7731_vm5, %v8294_v53, %v8293_v35  ;;  %v8458_v56 = vld [vmem:[#allocation4 + $0xbb] sm:$0x1]  ;;  %v8495_v40 = vrot.slane %v8457_v10, 6  ;;  %v8526_v31 = vld [vmem:[#allocation4 + $0xac] sm:$0x1]  ;;  %v8494_v3 = vsel %vm7719_vm2, %v8493_v32, %v8455_v17 }
 0x869   : > { %8095 = vrot.lane.b32.xlu1 %v8092_v41, %s14587_s21  ;;  %v8297_v26 = vsel %vm7734_vm6, %v8296_v50, %v8295_v47  ;;  %v8365_v39 = vrot.slane %v8323_v25, 2  ;;  %v8430_v28 = vrot.slane %v8390_v4, 4  ;;  %v8298_v8 = vrot.slane %v8255_v37, 1  ;;  %v8392_v52 = vld [vmem:[#allocation4 + $0xea] sm:$0x1] }
 0x86a   : > { %v8363_v63 = vrot.slane %v8322_v23, 3  ;;  %v8459_v58 = vld [vmem:[#allocation4 + $0xcb] sm:$0x1]  ;;  %v8324_v61 = vld [vmem:[#allocation4 + $0xf9] sm:$0x1]  ;;  %v8497_v41 = vrot.slane %v8458_v56, 5  ;;  %v8429_v34 = vsel %vm7725_vm4, %v8428_v54, %v8427_v13  ;;  %v8496_v6 = vsel %vm7722_vm3, %v8495_v40, %v8494_v3 }
 0x86b   : > { %v8391_v48 = vld [vmem:[#allocation4 + $0xda] sm:$0x1]  ;;  %v8564_v5 = vrot.slane %v8526_v31, 6  ;;  %v8299_v1 = vsel %vm7737_vm7, %v8298_v8, %v8297_v26  ;;  %v8524_v62 = vld [vmem:[#allocation4 + $0x8c] sm:$0x1]  ;;  %v8431_v22 = vsel %vm7728_vm0, %v8430_v28, %v8429_v34  ;;  %v8434_v32 = vrot.slane %v8392_v52, 2 }
 0x86c   : > { %v8364_v15 = vsel %vm7731_vm5, %v8363_v63, %v8362_v51  ;;  %v8527_v16 = vld [vmem:[#allocation4 + $0xbc] sm:$0x1]  ;;  %v8595_v7 = vld [vmem:[#allocation4 + $0xad] sm:$0x1]  ;;  %v8499_v19 = vrot.slane %v8459_v58, 4  ;;  %v8367_v49 = vrot.slane %v8324_v61, 1  ;;  %v8563_v12 = vsel %vm7719_vm2, %v8562_v38, %v8524_v62 }
 0x86d   : > { %8164 = vrot.lane.b32.xlu1 %v8161_v2, %s14588_s18  ;;  %v8366_v24 = vsel %vm7734_vm6, %v8365_v39, %v8364_v15  ;;  %v8593_v18 = vld [vmem:[#allocation4 + $0x8d] sm:$0x1]  ;;  %v8432_v30 = vrot.slane %v8391_v48, 3  ;;  %v8461_v44 = vld [vmem:[#allocation4 + $0xeb] sm:$0x1]  ;;  %v8566_v45 = vrot.slane %v8527_v16, 5  ;;  %v8498_v21 = vsel %vm7725_vm4, %v8497_v41, %v8496_v6 }
 0x86e   : > { %v8528_v55 = vld [vmem:[#allocation4 + $0xcc] sm:$0x1]  ;;  %v8393_v29 = vld [vmem:[#allocation4 + $0xfa] sm:$0x1]  ;;  %v8460_v59 = vld [vmem:[#allocation4 + $0xdb] sm:$0x1]  ;;  %v8368_v2 = vsel %vm7737_vm7, %v8367_v49, %v8366_v24  ;;  %v8565_v42 = vsel %vm7722_vm3, %v8564_v5, %v8563_v12  ;;  %v8500_v43 = vsel %vm7728_vm0, %v8499_v19, %v8498_v21  ;;  %v8632_v25 = vsel %vm7719_vm2, %v8631_v9, %v8593_v18 }
 0x86f   : > { %v8633_v36 = vrot.slane %v8595_v7, 6  ;;  %v8433_v33 = vsel %vm7731_vm5, %v8432_v30, %v8431_v22  ;;  %v8596_v46 = vld [vmem:[#allocation4 + $0xbd] sm:$0x1]  ;;  %v8663_v11 = vld [vmem:[#allocation4 + $0x9e] sm:$0x1]  ;;  %v8503_v35 = vrot.slane %v8461_v44, 2  ;;  %v8567_v47 = vsel %vm7725_vm4, %v8566_v45, %v8565_v42 }
 0x870   : > { %v8435_v57 = vsel %vm7734_vm6, %v8434_v32, %v8433_v33  ;;  %v8568_v38 = vrot.slane %v8528_v55, 4  ;;  %v8664_v50 = vld [vmem:[#allocation4 + $0xae] sm:$0x1]  ;;  %v8436_v0 = vrot.slane %v8393_v29, 1  ;;  %v8501_v10 = vrot.slane %v8460_v59, 3  ;;  %s14602_s18 = sand.u32 1, %s10841_s28  }
 0x871   : > { %8233 = vrot.lane.b32.xlu1 %v8230_v60, %s14589_s24  ;;  %v8530_v14 = vld [vmem:[#allocation4 + $0xec] sm:$0x1]  ;;  %v8597_v53 = vld [vmem:[#allocation4 + $0xcd] sm:$0x1]  ;;  %v8662_v4 = vld [vmem:[#allocation4 + $0x8e] sm:$0x1]  ;;  %v8634_v23 = vsel %vm7722_vm3, %v8633_v36, %v8632_v25 }
 0x872   : > { %v8462_v17 = vld [vmem:[#allocation4 + $0xfb] sm:$0x1]  ;;  %v8529_v37 = vld [vmem:[#allocation4 + $0xdc] sm:$0x1]  ;;  %v8635_v27 = vrot.slane %v8596_v46, 5  ;;  %v8700_v20 = vrot.slane %v8663_v11, 7  ;;  %v8437_v54 = vsel %vm7737_vm7, %v8436_v0, %v8435_v57  ;;  %v8502_v60 = vsel %vm7731_vm5, %v8501_v10, %v8500_v43 }
 0x873   : > { %v8665_v13 = vld [vmem:[#allocation4 + $0xbe] sm:$0x1]  ;;  %v8702_v56 = vrot.slane %v8664_v50, 6  ;;  %v8732_v40 = vld [vmem:[#allocation4 + $0x9f] sm:$0x1]  ;;  %v8504_v9 = vsel %vm7734_vm6, %v8503_v35, %v8502_v60  ;;  %v8569_v31 = vsel %vm7728_vm0, %v8568_v38, %v8567_v47  ;;  %v8572_v26 = vrot.slane %v8530_v14, 2 }
 0x874   : > { %v8637_v51 = vrot.slane %v8597_v53, 4  ;;  %v8733_v39 = vld [vmem:[#allocation4 + $0xaf] sm:$0x1]  ;;  %v8505_v28 = vrot.slane %v8462_v17, 1  ;;  %v8570_v8 = vrot.slane %v8529_v37, 3  ;;  %v8636_v48 = vsel %vm7725_vm4, %v8635_v27, %v8634_v23  ;;  %s8806_s24 = sshll.u32 %s14066_s23, 4  ;;  %s14478_s24 = int_to_ptr.vmem [resolvable:$true] %s8806_s24 }
 0x875   : > { %8302 = vrot.lane.b32.xlu1 %v8299_v1, %s14591_s20  ;;  %v8599_v63 = vld [vmem:[#allocation4 + $0xed] sm:$0x1]  ;;  %v8666_v52 = vld [vmem:[#allocation4 + $0xce] sm:$0x1]  ;;  %v8531_v58 = vld [vmem:[#allocation4 + $0xfc] sm:$0x1]  ;;  %v8701_v3 = vsel %vm7719_vm2, %v8700_v20, %v8662_v4 }
 0x876   : > { %v8598_v61 = vld [vmem:[#allocation4 + $0xdd] sm:$0x1]  ;;  %v8704_v41 = vrot.slane %v8665_v13, 5  ;;  %v8769_v5 = vrot.slane %v8732_v40, 7  ;;  %v8506_v1 = vsel %vm7737_vm7, %v8505_v28, %v8504_v9  ;;  %v8571_v15 = vsel %vm7731_vm5, %v8570_v8, %v8569_v31  ;;  %v8731_v6 = vld [vmem:[#allocation4 + $0x8f] sm:$0x1] }
 0x877   : > { %v8703_v34 = vsel %vm7722_vm3, %v8702_v56, %v8701_v3  ;;  %v8771_v62 = vrot.slane %v8733_v39, 6  ;;  %v8573_v16 = vsel %vm7734_vm6, %v8572_v26, %v8571_v15  ;;  %v8638_v7 = vsel %vm7728_vm0, %v8637_v51, %v8636_v48  ;;  %v8668_v18 = vld [vmem:[#allocation4 + $0xee] sm:$0x1]  ;;  %v8735_v49 = vld [vmem:[#allocation4 + $0xcf] sm:$0x1]  ;;  %s10880_s20 = smov [#allocation5]  }
 0x878   : > { %v8641_v24 = vrot.slane %v8599_v63, 2  ;;  %v8706_v22 = vrot.slane %v8666_v52, 4  ;;  %v8574_v32 = vrot.slane %v8531_v58, 1  ;;  %v8639_v19 = vrot.slane %v8598_v61, 3  ;;  %v8600_v30 = vld [vmem:[#allocation4 + $0xfd] sm:$0x1] }
 0x879   : > { %8371 = vrot.lane.b32.xlu1 %v8368_v2, %s14592_s25  ;;  %v8667_v44 = vld [vmem:[#allocation4 + $0xde] sm:$0x1]  ;;  %v8734_v55 = vld [vmem:[#allocation4 + $0xbf] sm:$0x1]  ;;  %v8770_v29 = vsel %vm7719_vm2, %v8769_v5, %v8731_v6  ;;  %v8705_v45 = vsel %vm7725_vm4, %v8704_v41, %v8703_v34  ;;  %v8710_v21 = vrot.slane %v8668_v18, 2  ;;  %v8775_v42 = vrot.slane %v8735_v49, 4 }
 0x87a   : > { %v8575_v59 = vsel %vm7737_vm7, %v8574_v32, %v8573_v16  ;;  %v8640_v12 = vsel %vm7731_vm5, %v8639_v19, %v8638_v7  ;;  %v8772_v36 = vsel %vm7722_vm3, %v8771_v62, %v8770_v29  ;;  %v8707_v33 = vsel %vm7728_vm0, %v8706_v22, %v8705_v45  ;;  %v8737_v57 = vld [vmem:[#allocation4 + $0xef] sm:$0x1]  ;;  %v8669_v35 = vld [vmem:[#allocation4 + $0xfe] sm:$0x1]  ;;  %v8736_v38 = vld [vmem:[#allocation4 + $0xdf] sm:$0x1] }
 0x87b   : > { %v8642_v2 = vsel %vm7734_vm6, %v8641_v24, %v8640_v12  ;;  %v8643_v46 = vrot.slane %v8600_v30, 1  ;;  %v8708_v11 = vrot.slane %v8667_v44, 3  ;;  %v8773_v43 = vrot.slane %v8734_v55, 5  ;;  %v8738_v37 = vld [vmem:[#allocation4 + $0xff] sm:$0x1]  ;;  %s10793_s25 = sshll.u32 %s10880_s20, 4  ;;  %s10794_s25 = int_to_ptr.vmem [resolvable:$false] %s10793_s25 }
 0x87c   : > { %v8779_v25 = vrot.slane %v8737_v57, 2  ;;  %v8712_v4 = vrot.slane %v8669_v35, 1  ;;  %v8777_v17 = vrot.slane %v8736_v38, 3  ;;  %vm14595_vm15 = vcmask 261312   ;;  %p10796_p0 = scmp.lt.s32.totalorder %s14478_s24, %s10794_s25 }
 0x87d   : > { %8440 = vrot.lane.b32.xlu1 %v8437_v54, %s14579_s17  ;;  %s14593_s17 = smov 96   ;;  %v8644_v50 = vsel %vm7737_vm7, %v8643_v46, %v8642_v2  ;;  %v8709_v0 = vsel %vm7731_vm5, %v8708_v11, %v8707_v33  ;;  %v8774_v10 = vsel %vm7725_vm4, %v8773_v43, %v8772_v36  ;;  %v8781_v54 = vrot.slane %v8738_v37, 1 }
 0x87e   : > { %v8711_v14 = vsel %vm7734_vm6, %v8710_v21, %v8709_v0  ;;  %v8776_v53 = vsel %vm7728_vm0, %v8775_v42, %v8774_v10  ;;  %vm14596_vm2 = vcmask 326912   ;;  %vm14597_vm3 = vcmask 392512  }
 0x87f   : > { %v8713_v23 = vsel %vm7737_vm7, %v8712_v4, %v8711_v14  ;;  %v8778_v27 = vsel %vm7731_vm5, %v8777_v17, %v8776_v53  ;;  %vm14598_vm4 = vcmask 458112   ;;  %vm14599_vm0 = vcmask 523712  }
 0x880   : > { %v8780_v20 = vsel %vm7734_vm6, %v8779_v25, %v8778_v27  ;;  %vm14600_vm5 = vcmask 589312   ;;  %vm14601_vm6 = vcmask 654912  }
 0x881   : > { %8509 = vrot.lane.b32.xlu1 %v8506_v1, %s14581_s10  ;;  %s14594_s10 = smov 104   ;;  %v8782_v60 = vsel %vm7737_vm7, %v8781_v54, %v8780_v20 }
 0x885   : > { %8578 = vrot.lane.b32.xlu1 %v8575_v59, %s14593_s17  ;;  %s10795_s17 = scalar_lea.vmem %s10794_s25, 512 }
 0x889   : > { %8647 = vrot.lane.b32.xlu1 %v8644_v50, %s14594_s10 }
 0x88d   : > { %8716 = vrot.lane.b32.xlu1 %v8713_v23, %s10878_s13  ;;  %s10552_s13 = sshll.u32 %s10948_s9, 8  ;;  %s10789_s9 = scalar_lea.vmem %s14478_s24, 256 }
 0x88e   : > { %s14476_s21 = scalar_lea.hbm %s14533_s8, %s10552_s13  ;;  %p10790_p11 = scmp.ne.s32.totalorder %s14478_s24, %s10789_s9 }
 0x88f   : > { %p10797_p1 = scmp.lt.s32.totalorder %s10795_s17, %s10789_s9 }
 0x890   : > { %p10791_p12 = pnand %p10790_p11, %p10965_p5 }
 0x891   : > { %8785 = vrot.lane.b32.xlu1 %v8782_v60, %s10879_s12  ;;  %s14484_s12 = scalar_lea.sflag [#allocation6], %s14602_s18  ;;  %p10798_p2 = por %p10797_p1, %p10796_p0 }
 0x892   : > { %p10792_p13 = pneg %p10791_p12 }
 0x894   : > { %p10799_p3 = pnand %p10798_p2, %p10792_p13 }
 0x8cb   : > { %v7820_v47 = vpop.permute.xlu1 %7819 }
 0x8cc   : > { %7825 = vst.msk [vmem:[%s14066_s23 + $0x8] sm:$0xff] %vm7823_vm8, %v7820_v47 }
 0x8cf   : > { %v7889_v13 = vpop.permute.xlu1 %7888 }
 0x8d0   : > { %7894 = vst.msk [vmem:[%s14066_s23 + $0x8] sm:$0xff] %vm7892_vm9, %v7889_v13 }
 0x8d3   : > { %v7958_v56 = vpop.permute.xlu1 %7957 }
 0x8d4   : > { %7963 = vst.msk [vmem:[%s14066_s23 + $0x8] sm:$0xff] %vm14595_vm15, %v7958_v56 }
 0x8d7   : > { %v8027_v40 = vpop.permute.xlu1 %8026 }
 0x8d8   : > { %8032 = vst.msk [vmem:[%s14066_s23 + $0x8] sm:$0xff] %vm14596_vm2, %v8027_v40 }
 0x8db   : > { %v8096_v9 = vpop.permute.xlu1 %8095 }
 0x8dc   : > { %8101 = vst.msk [vmem:[%s14066_s23 + $0x8] sm:$0xff] %vm14597_vm3, %v8096_v9 }
 0x8df   : > { %v8165_v31 = vpop.permute.xlu1 %8164 }
 0x8e0   : > { %8170 = vst.msk [vmem:[%s14066_s23 + $0x8] sm:$0xff] %vm14598_vm4, %v8165_v31 }
 0x8e3   : > { %v8234_v26 = vpop.permute.xlu1 %8233 }
 0x8e4   : > { %8239 = vst.msk [vmem:[%s14066_s23 + $0x8] sm:$0xff] %vm14599_vm0, %v8234_v26 }
 0x8e7   : > { %v8303_v51 = vpop.permute.xlu1 %8302 }
 0x8e8   : > { %8308 = vst.msk [vmem:[%s14066_s23 + $0x8] sm:$0xff] %vm14600_vm5, %v8303_v51 }
 0x8eb   : > { %v8372_v39 = vpop.permute.xlu1 %8371 }
 0x8ec   : > { %8377 = vst.msk [vmem:[%s14066_s23 + $0x8] sm:$0xff] %vm14601_vm6, %v8372_v39 }
 0x8ef   : > { %v8441_v28 = vpop.permute.xlu1 %8440 }
 0x8f0   : > { %8446 = vst.msk [vmem:[%s14066_s23 + $0x8] sm:$0xff] %vm8444_vm11, %v8441_v28 }
 0x8f3   : > { %v8510_v8 = vpop.permute.xlu1 %8509 }
 0x8f4   : > { %8515 = vst.msk [vmem:[%s14066_s23 + $0x8] sm:$0xff] %vm8513_vm13, %v8510_v8 }
 0x8f7   : > { %v8579_v63 = vpop.permute.xlu1 %8578 }
 0x8f8   : > { %8584 = vst.msk [vmem:[%s14066_s23 + $0x8] sm:$0xff] %vm8582_vm14, %v8579_v63 }
 0x8fb   : > { %v8648_v52 = vpop.permute.xlu1 %8647 }
 0x8fc   : > { %8653 = vst.msk [vmem:[%s14066_s23 + $0x8] sm:$0xff] %vm8651_vm10, %v8648_v52 }
 0x8ff   : > { %v8717_v58 = vpop.permute.xlu1 %8716 }
 0x900   : > { %8722 = vst.msk [vmem:[%s14066_s23 + $0x8] sm:$0xff] %vm8720_vm1, %v8717_v58 }
 0x903   : > { %v8786_v61 = vpop.permute.xlu1 %8785 }
 0x904   : > { %8791 = vst.msk [vmem:[%s14066_s23 + $0x8] sm:$0xff] %vm8789_vm12, %v8786_v61 }
 0x905   : > { %10802 = shalt.err (!%p10799_p3)
}
 0x906   : > { %s10803_s23 = scalar_lea.hbm %s14476_s21, 256  ;;  %s10807_s26 = scalar_lea.hbm %s14533_s8, 512 }
 0x907   : > { %p10804_p4 = scmp.ne.s32.totalorder %s14476_s21, %s10803_s23  ;;  %p10808_p9 = scmp.lt.s32.totalorder %s14476_s21, %s14533_s8 }
 0x908   : > { %p10809_p10 = scmp.lt.s32.totalorder %s10807_s26, %s10803_s23 }
 0x909   : > { %p10805_p7 = pnand %p10804_p4, %p10965_p5 }
 0x90a   : > { %p10810_p11 = por %p10809_p10, %p10808_p9 }
 0x90b   : > { %p10806_p8 = pneg %p10805_p7 }
 0x90d   : > { %p10811_p12 = pnand %p10810_p11, %p10806_p8 }
 0x90f   : > { %10814 = shalt.err (!%p10811_p12)
}
 0x910   : > { %s10881_s9 = smov 128  }
 0x911   : > { %10693 = dma.vmem_to_hbm [thread:$0]  (%p10965_p5), %s14478_s24, 256, %s14476_s21, %s14484_s12, %s10881_s9, %s10881_s9, %s14583_s19  }
 0x912 PF: > { %p10699_p13 = scmp.ge.s32.totalorder %s10849_s30, 2  ;;  %s8821_s20 = sand.u32 1, %s10837_s27  }
 0x913   : > { %s8822_s25 = scalar_lea.sflag [#allocation6], %s8821_s20 }
 0x914   : > { %p10696_p0 = pnand %p10699_p13, %p10969_p6 }
 0x916   : > { %p10697_p1 = pneg %p10696_p0 }
 0x918   : > { %10832 = dma.done.wait (%p10697_p1), %s8822_s25, 256  }
 0x919   : > { %10834 = vsyncadd (%p10697_p1), %s8822_s25, 4294967040  ;;  %p18_p2 = scmp.ge.s32.totalorder %s10952_s11, 4   ;;  %s14603_s27 = smov %s10841_s28 }
 0x91a   : > { %s14604_s28 = smov %s10845_s29  ;;  %s14605_s29 = smov %s10963_s14 }
 0x91b   : > { %s14606_s30 = smov %s10952_s11  ;;  %20 = sbr.rel (!%p18_p2) target bundleno = 3 (0x3), region = 97 }
 0x920   :  { %8827 = vsyncpa [#allocation6], 1 }
 0x921   :  { %8829 = vsyncpa [#allocation6 + $0x1], 1 }

</bundles_post_ra>
